<compile_context>
chip_gen: v7x
topology: tpu7x:2x2x1
jax: 0.10.0
libtpu: 0.0.40
codegen_flags: <defaults>
</compile_context>

<pallas_src>
import functools

import jax
import jax.numpy as jnp
from jax.experimental import pallas as pl
from jax.experimental.pallas import tpu as pltpu


CH_PAD = 128      # lane-dense channel padding (MXU K and N dimensions)
R_BLK_MAX = 512   # rows (of 128 lanes) per reduction chunk -> 256 KiB f32 block


# ----------------------------------------------------------------------------
# Pallas kernels
# ----------------------------------------------------------------------------

def _conv3x3_kernel(x_ref, w_ref, b_ref, o_ref, acc_ref):
    """3x3 same-padding conv + bias + ReLU on a batch tile (no im2col).

    x_ref  : (Bt, H+2, W+2, CH_PAD) bf16  spatially pre-padded activations
    w_ref  : (9, CH_PAD, CH_PAD)    bf16  per-tap (dy,dx) weight matrices
    b_ref  : (1, CH_PAD)            f32
    o_ref  : (Bt, H*W, CH_PAD)      bf16  lane-dense output
    acc_ref: (Bt*H*W, CH_PAD)       f32   VMEM accumulator scratch
    """
    Bt, Hp, Wp, C = x_ref.shape
    H, W = Hp - 2, Wp - 2
    acc_ref[...] = jnp.zeros_like(acc_ref)
    for t in range(9):                          # static unroll: 9 shifted matmuls
        dy, dx = divmod(t, 3)
        xs = x_ref[:, dy:dy + H, dx:dx + W, :].reshape(Bt * H * W, C)
        acc_ref[...] += jnp.dot(xs, w_ref[t],
                                preferred_element_type=jnp.float32)
    # bias + ReLU once, in the epilogue (NOT inside the 9-tap loop).
    out = jnp.maximum(acc_ref[...] + b_ref[...], 0.0)
    o_ref[...] = out.reshape(Bt, H * W, C).astype(o_ref.dtype)


def _fused_reduce_kernel(a_ref, b_ref, o_ref):
    """Per-loss-term partial sums: rows [sum|a-b|, sum(a), sum(b), sum(a*b)].

    a_ref, b_ref: (1, R_BLK, 128) f32 (zero padded); o_ref: (1, 4, 128) f32.
    grid = (terms, row_chunks); the output block is revisited along the row
    axis (reduction axis last, marked "arbitrary").
    """
    @pl.when(pl.program_id(1) == 0)
    def _():
        o_ref[...] = jnp.zeros_like(o_ref)

    a = a_ref[0]
    b = b_ref[0]
    sad = jnp.sum(jnp.abs(a - b), keepdims=True)   # (1, 1)
    sa = jnp.sum(a, keepdims=True)
    sb = jnp.sum(b, keepdims=True)
    sab = jnp.sum(a * b, keepdims=True)
    row = jax.lax.broadcasted_iota(jnp.int32, (4, 128), 0)
    upd = (jnp.where(row == 0, sad, 0.0) + jnp.where(row == 1, sa, 0.0)
           + jnp.where(row == 2, sb, 0.0) + jnp.where(row == 3, sab, 0.0))
    o_ref[0] += upd


# ----------------------------------------------------------------------------
# Wrappers
# ----------------------------------------------------------------------------

def conv3x3_relu(x, w9, b):
    """x: (B, H, W, CH_PAD) bf16 -> (B, H, W, CH_PAD) bf16."""
    B, H, W, C = x.shape
    xp = jnp.pad(x, ((0, 0), (1, 1), (1, 1), (0, 0)))
    Bt = 2 if B % 2 == 0 else 1         # grid >= 2 so v7x's second TC gets work
    out = pl.pallas_call(
        _conv3x3_kernel,
        out_shape=jax.ShapeDtypeStruct((B, H * W, C), jnp.bfloat16),
        grid=(B // Bt,),
        in_specs=[
            pl.BlockSpec((Bt, H + 2, W + 2, C), lambda n: (n, 0, 0, 0)),
            pl.BlockSpec((9, C, C), lambda n: (0, 0, 0)),
            pl.BlockSpec((1, C), lambda n: (0, 0)),
        ],
        out_specs=pl.BlockSpec((Bt, H * W, C), lambda n: (n, 0, 0)),
        scratch_shapes=[pltpu.VMEM((Bt * H * W, C), jnp.float32)],
        compiler_params=pltpu.CompilerParams(
            dimension_semantics=("parallel",),
            # Blocks here are tiny; at real VGG resolutions row-tile H*W so the
            # double-buffered blocks stay inside v7x's 64 MiB physical VMEM.
            vmem_limit_bytes=32 * 1024 * 1024,
        ),
    )(xp, w9, b)
    return out.reshape(B, H, W, C)


def maxpool2(x):
    # Non-hot-path glue: 2x2 max pool, stride 2 (NHWC).
    B, H, W, C = x.shape
    return x.reshape(B, H // 2, 2, W // 2, 2, C).max(axis=(2, 4))


def _round_up(n, m):
    return (n + m - 1) // m * m


def fused_reductions(pairs):
    """One pallas_call computing, for each (a, b) pair:
    [sum|a-b|, sum(a), sum(b), sum(a*b)].  Returns (T, 4) f32."""
    T = len(pairs)
    max_rows = max(pl.cdiv(max(a.size, b.size), 128) for a, b in pairs)
    r_blk = min(R_BLK_MAX, _round_up(max_rows, 8))
    R = _round_up(max_rows, r_blk)

    def to_rows(v):
        flat = v.astype(jnp.float32).reshape(-1)
        flat = jnp.pad(flat, (0, R * 128 - flat.size))
        return flat.reshape(R, 128)

    A = jnp.stack([to_rows(a) for a, _ in pairs])   # (T, R, 128)
    B = jnp.stack([to_rows(b) for _, b in pairs])

    out = pl.pallas_call(
        _fused_reduce_kernel,
        out_shape=jax.ShapeDtypeStruct((T, 4, 128), jnp.float32),
        grid=(T, R // r_blk),
        in_specs=[pl.BlockSpec((1, r_blk, 128), lambda t, r: (t, r, 0)),
                  pl.BlockSpec((1, r_blk, 128), lambda t, r: (t, r, 0))],
        out_specs=pl.BlockSpec((1, 4, 128), lambda t, r: (t, 0, 0)),
        compiler_params=pltpu.CompilerParams(
            dimension_semantics=("parallel", "arbitrary")),
    )(A, B)
    return out[:, :, 0]                              # (T, 4)


# ----------------------------------------------------------------------------
# VGG-style feature extractors (deterministic synthetic weights)
# ----------------------------------------------------------------------------

def make_vgg_params(key, cin, channels):
    params = []
    for cout in channels:
        key, k1, k2 = jax.random.split(key, 3)
        w = jax.random.normal(k1, (3, 3, cin, cout), jnp.float32) * 0.1
        b = jax.random.normal(k2, (1, cout), jnp.float32) * 0.01
        params.append((w, b))
        cin = cout
    return params


def prep_vgg_params(params):
    """Zero-pad cin/cout to CH_PAD, flatten the 3x3 taps, cast weights to bf16."""
    prepped = []
    for w, b in params:
        _, _, cin, cout = w.shape
        wp = jnp.zeros((3, 3, CH_PAD, CH_PAD), jnp.float32)
        wp = wp.at[:, :, :cin, :cout].set(w)
        w9 = wp.reshape(9, CH_PAD, CH_PAD).astype(jnp.bfloat16)
        bp = jnp.zeros((1, CH_PAD), jnp.float32).at[:, :cout].set(b)
        prepped.append((w9, bp, cout))
    return prepped


def vgg_features(x, prepped):
    """Tap a feature map after every conv+relu stage (2x2 maxpool between)."""
    feats = []
    h = x
    for i, (w9, bp, cout) in enumerate(prepped):
        h = conv3x3_relu(h, w9, bp)
        feats.append((h, cout))
        if i < len(prepped) - 1:
            h = maxpool2(h)
    return feats


# ----------------------------------------------------------------------------
# LossGF forward
# ----------------------------------------------------------------------------

def loss_gf(x, x_hat, s, s_hat, r_hat, D_res_list, D_hat_res_list,
            vggface_prepped, vgg19_prepped,
            vgg19_weight=0.15, vggface_weight=0.025, FM_weight=10.0):
    N = x.shape[0]
    # NCHW -> NHWC; run each VGG stack ONCE on the concatenated (x, x_hat)
    # batch; pad channels to 128 (padded channels have zero weights).
    xx = jnp.concatenate([x, x_hat], axis=0)
    xx = jnp.transpose(xx, (0, 2, 3, 1)).astype(jnp.bfloat16)
    xx = jnp.pad(xx, ((0, 0), (0, 0), (0, 0), (0, CH_PAD - xx.shape[-1])))

    face_feats = vgg_features(xx, vggface_prepped)
    vgg19_feats = vgg_features(xx, vgg19_prepped)

    pairs, l1_terms = [], []

    def add_l1(a, b, numel, weight):
        l1_terms.append((len(pairs), numel, weight))
        pairs.append((a, b))

    # LossCnt: per-layer L1 means over REAL (unpadded) channels; padded
    # channels are identical in both halves so they add 0 to sum|a-b|.
    for f, c_real in face_feats:
        add_l1(f[:N], f[N:], N * f.shape[1] * f.shape[2] * c_real, vggface_weight)
    for f, c_real in vgg19_feats:
        add_l1(f[:N], f[N:], N * f.shape[1] * f.shape[2] * c_real, vgg19_weight)
    # LossAdv feature-matching terms.
    for res, res_hat in zip(D_res_list, D_hat_res_list):
        add_l1(res, res_hat, res.size, FM_weight)
    # -mean(r_hat) term (uses the sum(a) column).
    r_idx = len(pairs)
    pairs.append((r_hat, jnp.zeros_like(r_hat)))
    # Dice term (LossGF calls lossDice(s_hat, s); the formula is symmetric).
    d_idx = len(pairs)
    pairs.append((s_hat, s))

    sums = fused_reductions(pairs)   # (T, 4): [sum|a-b|, sum a, sum b, sum a*b]

    loss = 0.0
    for idx, numel, weight in l1_terms:
        loss = loss + weight * sums[idx, 0] / numel
    loss = loss - sums[r_idx, 1] / r_hat.size
    inter, s_hat_sum, s_sum = sums[d_idx, 3], sums[d_idx, 1], sums[d_idx, 2]
    loss = loss + (1.0 - (2.0 * inter + 1.0) / (s_hat_sum + s_sum + 1.0))
    return loss


# ----------------------------------------------------------------------------
# Main
# ----------------------------------------------------------------------------

if __name__ == "__main__":
    key = jax.random.PRNGKey(0)
    ks = jax.random.split(key, 12)
    N, H, W = 2, 16, 16

    # Inputs follow the PyTorch NCHW convention.
    x = jax.random.normal(ks[0], (N, 3, H, W), jnp.float32)
    x_hat = jax.random.normal(ks[1], (N, 3, H, W), jnp.float32)
    s = jax.nn.sigmoid(jax.random.normal(ks[2], (N, 1, H, W), jnp.float32))
    s_hat = jax.nn.sigmoid(jax.random.normal(ks[3], (N, 1, H, W), jnp.float32))
    r_hat = jax.random.normal(ks[4], (N, 1), jnp.float32)

    D_res_list = [
        jax.random.normal(ks[5], (N, 8, 16, 16), jnp.float32),
        jax.random.normal(ks[6], (N, 16, 8, 8), jnp.float32),
        jax.random.normal(ks[7], (N, 32, 4, 4), jnp.float32),
    ]
    D_hat_res_list = [
        jax.random.normal(ks[8], (N, 8, 16, 16), jnp.float32),
        jax.random.normal(ks[9], (N, 16, 8, 8), jnp.float32),
        jax.random.normal(ks[10], (N, 32, 4, 4), jnp.float32),
    ]

    # Deterministic synthetic "VGG19" / "VGGFace" feature-extractor weights.
    vgg19_prepped = prep_vgg_params(
        make_vgg_params(jax.random.PRNGKey(1), 3, (8, 16, 32)))
    vggface_prepped = prep_vgg_params(
        make_vgg_params(jax.random.PRNGKey(2), 3, (8, 16)))

    loss_fn = jax.jit(functools.partial(
        loss_gf, vggface_prepped=vggface_prepped, vgg19_prepped=vgg19_prepped))
    loss = loss_fn(x, x_hat, s, s_hat, r_hat, D_res_list, D_hat_res_list)
    loss = jax.block_until_ready(loss)

    assert loss.shape == ()
    assert bool(jnp.isfinite(loss))
    print("KERNEL_OK")
</pallas_src>

<mosaic_0001>
module attributes {stable_mosaic.version = 11 : i64} {
  func.func @_conv3x3_kernel(%arg0: i32, %arg1: memref<2x18x18x128xbf16, #tpu.memory_space<vmem>>, %arg2: memref<9x128x128xbf16, #tpu.memory_space<vmem>>, %arg3: memref<1x128xf32, #tpu.memory_space<vmem>>, %arg4: memref<2x256x128xbf16, #tpu.memory_space<vmem>>, %arg5: memref<512x128xf32, #tpu.memory_space<vmem>>) attributes {dimension_semantics = [#tpu.dimension_semantics<parallel>], iteration_bounds = array<i64: 2>, scalar_prefetch = 0 : i64, scratch_operands = 1 : i64, tpu.core_type = #tpu.core_type<tc>, window_params = [{transform_indices = @transform_0, window_bounds = array<i64: 2, 18, 18, 128>}, {pipeline_mode = #tpu.pipeline_mode<synchronous>, transform_indices = @transform_1, window_bounds = array<i64: 9, 128, 128>}, {pipeline_mode = #tpu.pipeline_mode<synchronous>, transform_indices = @transform_2, window_bounds = array<i64: 1, 128>}, {transform_indices = @transform_3, window_bounds = array<i64: 2, 256, 128>}]} {
    %cst = arith.constant 0.000000e+00 : f32
    %0 = vector.broadcast %cst : f32 to vector<512x128xf32>
    %c0 = arith.constant 0 : index
    %c0_0 = arith.constant 0 : index
    %1 = vector.load %arg5[%c0, %c0_0] : memref<512x128xf32, #tpu.memory_space<vmem>>, vector<512x128xf32>
    tpu.vector_store %arg5[%c0, %c0_0], %0 {strides = array<i32>} : memref<512x128xf32, #tpu.memory_space<vmem>>, vector<512x128xf32>,
    %c0_1 = arith.constant 0 : index
    %c0_2 = arith.constant 0 : index
    %c0_3 = arith.constant 0 : index
    %c0_4 = arith.constant 0 : index
    %2 = vector.load %arg1[%c0_1, %c0_2, %c0_3, %c0_4] : memref<2x18x18x128xbf16, #tpu.memory_space<vmem>>, vector<2x16x16x128xbf16>
    %3 = vector.shape_cast %2 : vector<2x16x16x128xbf16> to vector<512x128xbf16>
    %c0_5 = arith.constant 0 : index
    %c0_6 = arith.constant 0 : index
    %4 = vector.load %arg5[%c0_5, %c0_6] : memref<512x128xf32, #tpu.memory_space<vmem>>, vector<512x128xf32>
    %c0_7 = arith.constant 0 : index
    %c0_8 = arith.constant 0 : index
    %c0_9 = arith.constant 0 : index
    %5 = vector.load %arg2[%c0_7, %c0_8, %c0_9] : memref<9x128x128xbf16, #tpu.memory_space<vmem>>, vector<1x128x128xbf16>
    %6 = vector.shape_cast %5 : vector<1x128x128xbf16> to vector<128x128xbf16>
    %cst_10 = arith.constant dense<0.000000e+00> : vector<512x128xf32>
    %7 = tpu.matmul %3, %6, %cst_10 {dimension_numbers = #tpu.dot_dimension_numbers<[1], [0], [0], [1], [0, 0, 1, 1], [], []>} : vector<512x128xbf16>, vector<128x128xbf16>, vector<512x128xf32> -> vector<512x128xf32>
    %8 = arith.addf %4, %7 : vector<512x128xf32>
    %c0_11 = arith.constant 0 : index
    %c0_12 = arith.constant 0 : index
    %9 = vector.load %arg5[%c0_11, %c0_12] : memref<512x128xf32, #tpu.memory_space<vmem>>, vector<512x128xf32>
    tpu.vector_store %arg5[%c0_11, %c0_12], %8 {strides = array<i32>} : memref<512x128xf32, #tpu.memory_space<vmem>>, vector<512x128xf32>,
    %c0_13 = arith.constant 0 : index
    %c0_14 = arith.constant 0 : index
    %c1 = arith.constant 1 : index
    %c0_15 = arith.constant 0 : index
    %10 = vector.load %arg1[%c0_13, %c0_14, %c1, %c0_15] : memref<2x18x18x128xbf16, #tpu.memory_space<vmem>>, vector<2x16x16x128xbf16>
    %11 = vector.shape_cast %10 : vector<2x16x16x128xbf16> to vector<512x128xbf16>
    %c0_16 = arith.constant 0 : index
    %c0_17 = arith.constant 0 : index
    %12 = vector.load %arg5[%c0_16, %c0_17] : memref<512x128xf32, #tpu.memory_space<vmem>>, vector<512x128xf32>
    %c1_18 = arith.constant 1 : index
    %c0_19 = arith.constant 0 : index
    %c0_20 = arith.constant 0 : index
    %13 = vector.load %arg2[%c1_18, %c0_19, %c0_20] : memref<9x128x128xbf16, #tpu.memory_space<vmem>>, vector<1x128x128xbf16>
    %14 = vector.shape_cast %13 : vector<1x128x128xbf16> to vector<128x128xbf16>
    %cst_21 = arith.constant dense<0.000000e+00> : vector<512x128xf32>
    %15 = tpu.matmul %11, %14, %cst_21 {dimension_numbers = #tpu.dot_dimension_numbers<[1], [0], [0], [1], [0, 0, 1, 1], [], []>} : vector<512x128xbf16>, vector<128x128xbf16>, vector<512x128xf32> -> vector<512x128xf32>
    %16 = arith.addf %12, %15 : vector<512x128xf32>
    %c0_22 = arith.constant 0 : index
    %c0_23 = arith.constant 0 : index
    %17 = vector.load %arg5[%c0_22, %c0_23] : memref<512x128xf32, #tpu.memory_space<vmem>>, vector<512x128xf32>
    tpu.vector_store %arg5[%c0_22, %c0_23], %16 {strides = array<i32>} : memref<512x128xf32, #tpu.memory_space<vmem>>, vector<512x128xf32>,
    %c0_24 = arith.constant 0 : index
    %c0_25 = arith.constant 0 : index
    %c2 = arith.constant 2 : index
    %c0_26 = arith.constant 0 : index
    %18 = vector.load %arg1[%c0_24, %c0_25, %c2, %c0_26] : memref<2x18x18x128xbf16, #tpu.memory_space<vmem>>, vector<2x16x16x128xbf16>
    %19 = vector.shape_cast %18 : vector<2x16x16x128xbf16> to vector<512x128xbf16>
    %c0_27 = arith.constant 0 : index
    %c0_28 = arith.constant 0 : index
    %20 = vector.load %arg5[%c0_27, %c0_28] : memref<512x128xf32, #tpu.memory_space<vmem>>, vector<512x128xf32>
    %c2_29 = arith.constant 2 : index
    %c0_30 = arith.constant 0 : index
    %c0_31 = arith.constant 0 : index
    %21 = vector.load %arg2[%c2_29, %c0_30, %c0_31] : memref<9x128x128xbf16, #tpu.memory_space<vmem>>, vector<1x128x128xbf16>
    %22 = vector.shape_cast %21 : vector<1x128x128xbf16> to vector<128x128xbf16>
    %cst_32 = arith.constant dense<0.000000e+00> : vector<512x128xf32>
    %23 = tpu.matmul %19, %22, %cst_32 {dimension_numbers = #tpu.dot_dimension_numbers<[1], [0], [0], [1], [0, 0, 1, 1], [], []>} : vector<512x128xbf16>, vector<128x128xbf16>, vector<512x128xf32> -> vector<512x128xf32>
    %24 = arith.addf %20, %23 : vector<512x128xf32>
    %c0_33 = arith.constant 0 : index
    %c0_34 = arith.constant 0 : index
    %25 = vector.load %arg5[%c0_33, %c0_34] : memref<512x128xf32, #tpu.memory_space<vmem>>, vector<512x128xf32>
    tpu.vector_store %arg5[%c0_33, %c0_34], %24 {strides = array<i32>} : memref<512x128xf32, #tpu.memory_space<vmem>>, vector<512x128xf32>,
    %c0_35 = arith.constant 0 : index
    %c1_36 = arith.constant 1 : index
    %c0_37 = arith.constant 0 : index
    %c0_38 = arith.constant 0 : index
    %26 = vector.load %arg1[%c0_35, %c1_36, %c0_37, %c0_38] : memref<2x18x18x128xbf16, #tpu.memory_space<vmem>>, vector<2x16x16x128xbf16>
    %27 = vector.shape_cast %26 : vector<2x16x16x128xbf16> to vector<512x128xbf16>
    %c0_39 = arith.constant 0 : index
    %c0_40 = arith.constant 0 : index
    %28 = vector.load %arg5[%c0_39, %c0_40] : memref<512x128xf32, #tpu.memory_space<vmem>>, vector<512x128xf32>
    %c3 = arith.constant 3 : index
    %c0_41 = arith.constant 0 : index
    %c0_42 = arith.constant 0 : index
    %29 = vector.load %arg2[%c3, %c0_41, %c0_42] : memref<9x128x128xbf16, #tpu.memory_space<vmem>>, vector<1x128x128xbf16>
    %30 = vector.shape_cast %29 : vector<1x128x128xbf16> to vector<128x128xbf16>
    %cst_43 = arith.constant dense<0.000000e+00> : vector<512x128xf32>
    %31 = tpu.matmul %27, %30, %cst_43 {dimension_numbers = #tpu.dot_dimension_numbers<[1], [0], [0], [1], [0, 0, 1, 1], [], []>} : vector<512x128xbf16>, vector<128x128xbf16>, vector<512x128xf32> -> vector<512x128xf32>
    %32 = arith.addf %28, %31 : vector<512x128xf32>
    %c0_44 = arith.constant 0 : index
    %c0_45 = arith.constant 0 : index
    %33 = vector.load %arg5[%c0_44, %c0_45] : memref<512x128xf32, #tpu.memory_space<vmem>>, vector<512x128xf32>
    tpu.vector_store %arg5[%c0_44, %c0_45], %32 {strides = array<i32>} : memref<512x128xf32, #tpu.memory_space<vmem>>, vector<512x128xf32>,
    %c0_46 = arith.constant 0 : index
    %c1_47 = arith.constant 1 : index
    %c1_48 = arith.constant 1 : index
    %c0_49 = arith.constant 0 : index
    %34 = vector.load %arg1[%c0_46, %c1_47, %c1_48, %c0_49] : memref<2x18x18x128xbf16, #tpu.memory_space<vmem>>, vector<2x16x16x128xbf16>
    %35 = vector.shape_cast %34 : vector<2x16x16x128xbf16> to vector<512x128xbf16>
    %c0_50 = arith.constant 0 : index
    %c0_51 = arith.constant 0 : index
    %36 = vector.load %arg5[%c0_50, %c0_51] : memref<512x128xf32, #tpu.memory_space<vmem>>, vector<512x128xf32>
    %c4 = arith.constant 4 : index
    %c0_52 = arith.constant 0 : index
    %c0_53 = arith.constant 0 : index
    %37 = vector.load %arg2[%c4, %c0_52, %c0_53] : memref<9x128x128xbf16, #tpu.memory_space<vmem>>, vector<1x128x128xbf16>
    %38 = vector.shape_cast %37 : vector<1x128x128xbf16> to vector<128x128xbf16>
    %cst_54 = arith.constant dense<0.000000e+00> : vector<512x128xf32>
    %39 = tpu.matmul %35, %38, %cst_54 {dimension_numbers = #tpu.dot_dimension_numbers<[1], [0], [0], [1], [0, 0, 1, 1], [], []>} : vector<512x128xbf16>, vector<128x128xbf16>, vector<512x128xf32> -> vector<512x128xf32>
    %40 = arith.addf %36, %39 : vector<512x128xf32>
    %c0_55 = arith.constant 0 : index
    %c0_56 = arith.constant 0 : index
    %41 = vector.load %arg5[%c0_55, %c0_56] : memref<512x128xf32, #tpu.memory_space<vmem>>, vector<512x128xf32>
    tpu.vector_store %arg5[%c0_55, %c0_56], %40 {strides = array<i32>} : memref<512x128xf32, #tpu.memory_space<vmem>>, vector<512x128xf32>,
    %c0_57 = arith.constant 0 : index
    %c1_58 = arith.constant 1 : index
    %c2_59 = arith.constant 2 : index
    %c0_60 = arith.constant 0 : index
    %42 = vector.load %arg1[%c0_57, %c1_58, %c2_59, %c0_60] : memref<2x18x18x128xbf16, #tpu.memory_space<vmem>>, vector<2x16x16x128xbf16>
    %43 = vector.shape_cast %42 : vector<2x16x16x128xbf16> to vector<512x128xbf16>
    %c0_61 = arith.constant 0 : index
    %c0_62 = arith.constant 0 : index
    %44 = vector.load %arg5[%c0_61, %c0_62] : memref<512x128xf32, #tpu.memory_space<vmem>>, vector<512x128xf32>
    %c5 = arith.constant 5 : index
    %c0_63 = arith.constant 0 : index
    %c0_64 = arith.constant 0 : index
    %45 = vector.load %arg2[%c5, %c0_63, %c0_64] : memref<9x128x128xbf16, #tpu.memory_space<vmem>>, vector<1x128x128xbf16>
    %46 = vector.shape_cast %45 : vector<1x128x128xbf16> to vector<128x128xbf16>
    %cst_65 = arith.constant dense<0.000000e+00> : vector<512x128xf32>
    %47 = tpu.matmul %43, %46, %cst_65 {dimension_numbers = #tpu.dot_dimension_numbers<[1], [0], [0], [1], [0, 0, 1, 1], [], []>} : vector<512x128xbf16>, vector<128x128xbf16>, vector<512x128xf32> -> vector<512x128xf32>
    %48 = arith.addf %44, %47 : vector<512x128xf32>
    %c0_66 = arith.constant 0 : index
    %c0_67 = arith.constant 0 : index
    %49 = vector.load %arg5[%c0_66, %c0_67] : memref<512x128xf32, #tpu.memory_space<vmem>>, vector<512x128xf32>
    tpu.vector_store %arg5[%c0_66, %c0_67], %48 {strides = array<i32>} : memref<512x128xf32, #tpu.memory_space<vmem>>, vector<512x128xf32>,
    %c0_68 = arith.constant 0 : index
    %c2_69 = arith.constant 2 : index
    %c0_70 = arith.constant 0 : index
    %c0_71 = arith.constant 0 : index
    %50 = vector.load %arg1[%c0_68, %c2_69, %c0_70, %c0_71] : memref<2x18x18x128xbf16, #tpu.memory_space<vmem>>, vector<2x16x16x128xbf16>
    %51 = vector.shape_cast %50 : vector<2x16x16x128xbf16> to vector<512x128xbf16>
    %c0_72 = arith.constant 0 : index
    %c0_73 = arith.constant 0 : index
    %52 = vector.load %arg5[%c0_72, %c0_73] : memref<512x128xf32, #tpu.memory_space<vmem>>, vector<512x128xf32>
    %c6 = arith.constant 6 : index
    %c0_74 = arith.constant 0 : index
    %c0_75 = arith.constant 0 : index
    %53 = vector.load %arg2[%c6, %c0_74, %c0_75] : memref<9x128x128xbf16, #tpu.memory_space<vmem>>, vector<1x128x128xbf16>
    %54 = vector.shape_cast %53 : vector<1x128x128xbf16> to vector<128x128xbf16>
    %cst_76 = arith.constant dense<0.000000e+00> : vector<512x128xf32>
    %55 = tpu.matmul %51, %54, %cst_76 {dimension_numbers = #tpu.dot_dimension_numbers<[1], [0], [0], [1], [0, 0, 1, 1], [], []>} : vector<512x128xbf16>, vector<128x128xbf16>, vector<512x128xf32> -> vector<512x128xf32>
    %56 = arith.addf %52, %55 : vector<512x128xf32>
    %c0_77 = arith.constant 0 : index
    %c0_78 = arith.constant 0 : index
    %57 = vector.load %arg5[%c0_77, %c0_78] : memref<512x128xf32, #tpu.memory_space<vmem>>, vector<512x128xf32>
    tpu.vector_store %arg5[%c0_77, %c0_78], %56 {strides = array<i32>} : memref<512x128xf32, #tpu.memory_space<vmem>>, vector<512x128xf32>,
    %c0_79 = arith.constant 0 : index
    %c2_80 = arith.constant 2 : index
    %c1_81 = arith.constant 1 : index
    %c0_82 = arith.constant 0 : index
    %58 = vector.load %arg1[%c0_79, %c2_80, %c1_81, %c0_82] : memref<2x18x18x128xbf16, #tpu.memory_space<vmem>>, vector<2x16x16x128xbf16>
    %59 = vector.shape_cast %58 : vector<2x16x16x128xbf16> to vector<512x128xbf16>
    %c0_83 = arith.constant 0 : index
    %c0_84 = arith.constant 0 : index
    %60 = vector.load %arg5[%c0_83, %c0_84] : memref<512x128xf32, #tpu.memory_space<vmem>>, vector<512x128xf32>
    %c7 = arith.constant 7 : index
    %c0_85 = arith.constant 0 : index
    %c0_86 = arith.constant 0 : index
    %61 = vector.load %arg2[%c7, %c0_85, %c0_86] : memref<9x128x128xbf16, #tpu.memory_space<vmem>>, vector<1x128x128xbf16>
    %62 = vector.shape_cast %61 : vector<1x128x128xbf16> to vector<128x128xbf16>
    %cst_87 = arith.constant dense<0.000000e+00> : vector<512x128xf32>
    %63 = tpu.matmul %59, %62, %cst_87 {dimension_numbers = #tpu.dot_dimension_numbers<[1], [0], [0], [1], [0, 0, 1, 1], [], []>} : vector<512x128xbf16>, vector<128x128xbf16>, vector<512x128xf32> -> vector<512x128xf32>
    %64 = arith.addf %60, %63 : vector<512x128xf32>
    %c0_88 = arith.constant 0 : index
    %c0_89 = arith.constant 0 : index
    %65 = vector.load %arg5[%c0_88, %c0_89] : memref<512x128xf32, #tpu.memory_space<vmem>>, vector<512x128xf32>
    tpu.vector_store %arg5[%c0_88, %c0_89], %64 {strides = array<i32>} : memref<512x128xf32, #tpu.memory_space<vmem>>, vector<512x128xf32>,
    %c0_90 = arith.constant 0 : index
    %c2_91 = arith.constant 2 : index
    %c2_92 = arith.constant 2 : index
    %c0_93 = arith.constant 0 : index
    %66 = vector.load %arg1[%c0_90, %c2_91, %c2_92, %c0_93] : memref<2x18x18x128xbf16, #tpu.memory_space<vmem>>, vector<2x16x16x128xbf16>
    %67 = vector.shape_cast %66 : vector<2x16x16x128xbf16> to vector<512x128xbf16>
    %c0_94 = arith.constant 0 : index
    %c0_95 = arith.constant 0 : index
    %68 = vector.load %arg5[%c0_94, %c0_95] : memref<512x128xf32, #tpu.memory_space<vmem>>, vector<512x128xf32>
    %c8 = arith.constant 8 : index
    %c0_96 = arith.constant 0 : index
    %c0_97 = arith.constant 0 : index
    %69 = vector.load %arg2[%c8, %c0_96, %c0_97] : memref<9x128x128xbf16, #tpu.memory_space<vmem>>, vector<1x128x128xbf16>
    %70 = vector.shape_cast %69 : vector<1x128x128xbf16> to vector<128x128xbf16>
    %cst_98 = arith.constant dense<0.000000e+00> : vector<512x128xf32>
    %71 = tpu.matmul %67, %70, %cst_98 {dimension_numbers = #tpu.dot_dimension_numbers<[1], [0], [0], [1], [0, 0, 1, 1], [], []>} : vector<512x128xbf16>, vector<128x128xbf16>, vector<512x128xf32> -> vector<512x128xf32>
    %72 = arith.addf %68, %71 : vector<512x128xf32>
    %c0_99 = arith.constant 0 : index
    %c0_100 = arith.constant 0 : index
    %73 = vector.load %arg5[%c0_99, %c0_100] : memref<512x128xf32, #tpu.memory_space<vmem>>, vector<512x128xf32>
    tpu.vector_store %arg5[%c0_99, %c0_100], %72 {strides = array<i32>} : memref<512x128xf32, #tpu.memory_space<vmem>>, vector<512x128xf32>,
    %c0_101 = arith.constant 0 : index
    %c0_102 = arith.constant 0 : index
    %74 = vector.load %arg5[%c0_101, %c0_102] : memref<512x128xf32, #tpu.memory_space<vmem>>, vector<512x128xf32>
    %c0_103 = arith.constant 0 : index
    %c0_104 = arith.constant 0 : index
    %75 = vector.load %arg3[%c0_103, %c0_104] : memref<1x128xf32, #tpu.memory_space<vmem>>, vector<1x128xf32>
    %76 = vector.broadcast %75 : vector<1x128xf32> to vector<512x128xf32>
    %77 = arith.addf %74, %76 : vector<512x128xf32>
    %cst_105 = arith.constant 0.000000e+00 : f32
    %78 = vector.broadcast %cst_105 : f32 to vector<512x128xf32>
    %79 = arith.maximumf %77, %78 : vector<512x128xf32>
    %80 = vector.shape_cast %79 : vector<512x128xf32> to vector<2x256x128xf32>
    %81 = arith.truncf %80 : vector<2x256x128xf32> to vector<2x256x128xbf16>
    %c0_106 = arith.constant 0 : index
    %c0_107 = arith.constant 0 : index
    %c0_108 = arith.constant 0 : index
    %82 = vector.load %arg4[%c0_106, %c0_107, %c0_108] : memref<2x256x128xbf16, #tpu.memory_space<vmem>>, vector<2x256x128xbf16>
    tpu.vector_store %arg4[%c0_106, %c0_107, %c0_108], %81 {strides = array<i32>} : memref<2x256x128xbf16, #tpu.memory_space<vmem>>, vector<2x256x128xbf16>,
    return
  }
  func.func @transform_0(%arg0: i32) -> (i32, i32, i32, i32) {
    %c0_i32 = arith.constant 0 : i32
    %c0_i32_0 = arith.constant 0 : i32
    %c0_i32_1 = arith.constant 0 : i32
    %c0_i32_2 = arith.constant 0 : i32
    return %arg0, %c0_i32, %c0_i32_0, %c0_i32_1 : i32, i32, i32, i32
  }
  func.func @transform_1(%arg0: i32) -> (i32, i32, i32) {
    %c0_i32 = arith.constant 0 : i32
    %c0_i32_0 = arith.constant 0 : i32
    %c0_i32_1 = arith.constant 0 : i32
    %c0_i32_2 = arith.constant 0 : i32
    return %c0_i32, %c0_i32_0, %c0_i32_1 : i32, i32, i32
  }
  func.func @transform_2(%arg0: i32) -> (i32, i32) {
    %c0_i32 = arith.constant 0 : i32
    %c0_i32_0 = arith.constant 0 : i32
    %c0_i32_1 = arith.constant 0 : i32
    return %c0_i32, %c0_i32_0 : i32, i32
  }
  func.func @transform_3(%arg0: i32) -> (i32, i32, i32) {
    %c0_i32 = arith.constant 0 : i32
    %c0_i32_0 = arith.constant 0 : i32
    %c0_i32_1 = arith.constant 0 : i32
    return %arg0, %c0_i32, %c0_i32_0 : i32, i32, i32
  }
}

module attributes {stable_mosaic.version = 11 : i64} {
  func.func @_conv3x3_kernel(%arg0: i32, %arg1: memref<2x10x10x128xbf16, #tpu.memory_space<vmem>>, %arg2: memref<9x128x128xbf16, #tpu.memory_space<vmem>>, %arg3: memref<1x128xf32, #tpu.memory_space<vmem>>, %arg4: memref<2x64x128xbf16, #tpu.memory_space<vmem>>, %arg5: memref<128x128xf32, #tpu.memory_space<vmem>>) attributes {dimension_semantics = [#tpu.dimension_semantics<parallel>], iteration_bounds = array<i64: 2>, scalar_prefetch = 0 : i64, scratch_operands = 1 : i64, tpu.core_type = #tpu.core_type<tc>, window_params = [{transform_indices = @transform_0, window_bounds = array<i64: 2, 10, 10, 128>}, {pipeline_mode = #tpu.pipeline_mode<synchronous>, transform_indices = @transform_1, window_bounds = array<i64: 9, 128, 128>}, {pipeline_mode = #tpu.pipeline_mode<synchronous>, transform_indices = @transform_2, window_bounds = array<i64: 1, 128>}, {transform_indices = @transform_3, window_bounds = array<i64: 2, 64, 128>}]} {
    %cst = arith.constant 0.000000e+00 : f32
    %0 = vector.broadcast %cst : f32 to vector<128x128xf32>
    %c0 = arith.constant 0 : index
    %c0_0 = arith.constant 0 : index
    %1 = vector.load %arg5[%c0, %c0_0] : memref<128x128xf32, #tpu.memory_space<vmem>>, vector<128x128xf32>
    tpu.vector_store %arg5[%c0, %c0_0], %0 {strides = array<i32>} : memref<128x128xf32, #tpu.memory_space<vmem>>, vector<128x128xf32>,
    %c0_1 = arith.constant 0 : index
    %c0_2 = arith.constant 0 : index
    %c0_3 = arith.constant 0 : index
    %c0_4 = arith.constant 0 : index
    %2 = vector.load %arg1[%c0_1, %c0_2, %c0_3, %c0_4] : memref<2x10x10x128xbf16, #tpu.memory_space<vmem>>, vector<2x8x8x128xbf16>
    %3 = vector.shape_cast %2 : vector<2x8x8x128xbf16> to vector<128x128xbf16>
    %c0_5 = arith.constant 0 : index
    %c0_6 = arith.constant 0 : index
    %4 = vector.load %arg5[%c0_5, %c0_6] : memref<128x128xf32, #tpu.memory_space<vmem>>, vector<128x128xf32>
    %c0_7 = arith.constant 0 : index
    %c0_8 = arith.constant 0 : index
    %c0_9 = arith.constant 0 : index
    %5 = vector.load %arg2[%c0_7, %c0_8, %c0_9] : memref<9x128x128xbf16, #tpu.memory_space<vmem>>, vector<1x128x128xbf16>
    %6 = vector.shape_cast %5 : vector<1x128x128xbf16> to vector<128x128xbf16>
    %cst_10 = arith.constant dense<0.000000e+00> : vector<128x128xf32>
    %7 = tpu.matmul %3, %6, %cst_10 {dimension_numbers = #tpu.dot_dimension_numbers<[1], [0], [0], [1], [0, 0, 1, 1], [], []>} : vector<128x128xbf16>, vector<128x128xbf16>, vector<128x128xf32> -> vector<128x128xf32>
    %8 = arith.addf %4, %7 : vector<128x128xf32>
    %c0_11 = arith.constant 0 : index
    %c0_12 = arith.constant 0 : index
    %9 = vector.load %arg5[%c0_11, %c0_12] : memref<128x128xf32, #tpu.memory_space<vmem>>, vector<128x128xf32>
    tpu.vector_store %arg5[%c0_11, %c0_12], %8 {strides = array<i32>} : memref<128x128xf32, #tpu.memory_space<vmem>>, vector<128x128xf32>,
    %c0_13 = arith.constant 0 : index
    %c0_14 = arith.constant 0 : index
    %c1 = arith.constant 1 : index
    %c0_15 = arith.constant 0 : index
    %10 = vector.load %arg1[%c0_13, %c0_14, %c1, %c0_15] : memref<2x10x10x128xbf16, #tpu.memory_space<vmem>>, vector<2x8x8x128xbf16>
    %11 = vector.shape_cast %10 : vector<2x8x8x128xbf16> to vector<128x128xbf16>
    %c0_16 = arith.constant 0 : index
    %c0_17 = arith.constant 0 : index
    %12 = vector.load %arg5[%c0_16, %c0_17] : memref<128x128xf32, #tpu.memory_space<vmem>>, vector<128x128xf32>
    %c1_18 = arith.constant 1 : index
    %c0_19 = arith.constant 0 : index
    %c0_20 = arith.constant 0 : index
    %13 = vector.load %arg2[%c1_18, %c0_19, %c0_20] : memref<9x128x128xbf16, #tpu.memory_space<vmem>>, vector<1x128x128xbf16>
    %14 = vector.shape_cast %13 : vector<1x128x128xbf16> to vector<128x128xbf16>
    %cst_21 = arith.constant dense<0.000000e+00> : vector<128x128xf32>
    %15 = tpu.matmul %11, %14, %cst_21 {dimension_numbers = #tpu.dot_dimension_numbers<[1], [0], [0], [1], [0, 0, 1, 1], [], []>} : vector<128x128xbf16>, vector<128x128xbf16>, vector<128x128xf32> -> vector<128x128xf32>
    %16 = arith.addf %12, %15 : vector<128x128xf32>
    %c0_22 = arith.constant 0 : index
    %c0_23 = arith.constant 0 : index
    %17 = vector.load %arg5[%c0_22, %c0_23] : memref<128x128xf32, #tpu.memory_space<vmem>>, vector<128x128xf32>
    tpu.vector_store %arg5[%c0_22, %c0_23], %16 {strides = array<i32>} : memref<128x128xf32, #tpu.memory_space<vmem>>, vector<128x128xf32>,
    %c0_24 = arith.constant 0 : index
    %c0_25 = arith.constant 0 : index
    %c2 = arith.constant 2 : index
    %c0_26 = arith.constant 0 : index
    %18 = vector.load %arg1[%c0_24, %c0_25, %c2, %c0_26] : memref<2x10x10x128xbf16, #tpu.memory_space<vmem>>, vector<2x8x8x128xbf16>
    %19 = vector.shape_cast %18 : vector<2x8x8x128xbf16> to vector<128x128xbf16>
    %c0_27 = arith.constant 0 : index
    %c0_28 = arith.constant 0 : index
    %20 = vector.load %arg5[%c0_27, %c0_28] : memref<128x128xf32, #tpu.memory_space<vmem>>, vector<128x128xf32>
    %c2_29 = arith.constant 2 : index
    %c0_30 = arith.constant 0 : index
    %c0_31 = arith.constant 0 : index
    %21 = vector.load %arg2[%c2_29, %c0_30, %c0_31] : memref<9x128x128xbf16, #tpu.memory_space<vmem>>, vector<1x128x128xbf16>
    %22 = vector.shape_cast %21 : vector<1x128x128xbf16> to vector<128x128xbf16>
    %cst_32 = arith.constant dense<0.000000e+00> : vector<128x128xf32>
    %23 = tpu.matmul %19, %22, %cst_32 {dimension_numbers = #tpu.dot_dimension_numbers<[1], [0], [0], [1], [0, 0, 1, 1], [], []>} : vector<128x128xbf16>, vector<128x128xbf16>, vector<128x128xf32> -> vector<128x128xf32>
    %24 = arith.addf %20, %23 : vector<128x128xf32>
    %c0_33 = arith.constant 0 : index
    %c0_34 = arith.constant 0 : index
    %25 = vector.load %arg5[%c0_33, %c0_34] : memref<128x128xf32, #tpu.memory_space<vmem>>, vector<128x128xf32>
    tpu.vector_store %arg5[%c0_33, %c0_34], %24 {strides = array<i32>} : memref<128x128xf32, #tpu.memory_space<vmem>>, vector<128x128xf32>,
    %c0_35 = arith.constant 0 : index
    %c1_36 = arith.constant 1 : index
    %c0_37 = arith.constant 0 : index
    %c0_38 = arith.constant 0 : index
    %26 = vector.load %arg1[%c0_35, %c1_36, %c0_37, %c0_38] : memref<2x10x10x128xbf16, #tpu.memory_space<vmem>>, vector<2x8x8x128xbf16>
    %27 = vector.shape_cast %26 : vector<2x8x8x128xbf16> to vector<128x128xbf16>
    %c0_39 = arith.constant 0 : index
    %c0_40 = arith.constant 0 : index
    %28 = vector.load %arg5[%c0_39, %c0_40] : memref<128x128xf32, #tpu.memory_space<vmem>>, vector<128x128xf32>
    %c3 = arith.constant 3 : index
    %c0_41 = arith.constant 0 : index
    %c0_42 = arith.constant 0 : index
    %29 = vector.load %arg2[%c3, %c0_41, %c0_42] : memref<9x128x128xbf16, #tpu.memory_space<vmem>>, vector<1x128x128xbf16>
    %30 = vector.shape_cast %29 : vector<1x128x128xbf16> to vector<128x128xbf16>
    %cst_43 = arith.constant dense<0.000000e+00> : vector<128x128xf32>
    %31 = tpu.matmul %27, %30, %cst_43 {dimension_numbers = #tpu.dot_dimension_numbers<[1], [0], [0], [1], [0, 0, 1, 1], [], []>} : vector<128x128xbf16>, vector<128x128xbf16>, vector<128x128xf32> -> vector<128x128xf32>
    %32 = arith.addf %28, %31 : vector<128x128xf32>
    %c0_44 = arith.constant 0 : index
    %c0_45 = arith.constant 0 : index
    %33 = vector.load %arg5[%c0_44, %c0_45] : memref<128x128xf32, #tpu.memory_space<vmem>>, vector<128x128xf32>
    tpu.vector_store %arg5[%c0_44, %c0_45], %32 {strides = array<i32>} : memref<128x128xf32, #tpu.memory_space<vmem>>, vector<128x128xf32>,
    %c0_46 = arith.constant 0 : index
    %c1_47 = arith.constant 1 : index
    %c1_48 = arith.constant 1 : index
    %c0_49 = arith.constant 0 : index
    %34 = vector.load %arg1[%c0_46, %c1_47, %c1_48, %c0_49] : memref<2x10x10x128xbf16, #tpu.memory_space<vmem>>, vector<2x8x8x128xbf16>
    %35 = vector.shape_cast %34 : vector<2x8x8x128xbf16> to vector<128x128xbf16>
    %c0_50 = arith.constant 0 : index
    %c0_51 = arith.constant 0 : index
    %36 = vector.load %arg5[%c0_50, %c0_51] : memref<128x128xf32, #tpu.memory_space<vmem>>, vector<128x128xf32>
    %c4 = arith.constant 4 : index
    %c0_52 = arith.constant 0 : index
    %c0_53 = arith.constant 0 : index
    %37 = vector.load %arg2[%c4, %c0_52, %c0_53] : memref<9x128x128xbf16, #tpu.memory_space<vmem>>, vector<1x128x128xbf16>
    %38 = vector.shape_cast %37 : vector<1x128x128xbf16> to vector<128x128xbf16>
    %cst_54 = arith.constant dense<0.000000e+00> : vector<128x128xf32>
    %39 = tpu.matmul %35, %38, %cst_54 {dimension_numbers = #tpu.dot_dimension_numbers<[1], [0], [0], [1], [0, 0, 1, 1], [], []>} : vector<128x128xbf16>, vector<128x128xbf16>, vector<128x128xf32> -> vector<128x128xf32>
    %40 = arith.addf %36, %39 : vector<128x128xf32>
    %c0_55 = arith.constant 0 : index
    %c0_56 = arith.constant 0 : index
    %41 = vector.load %arg5[%c0_55, %c0_56] : memref<128x128xf32, #tpu.memory_space<vmem>>, vector<128x128xf32>
    tpu.vector_store %arg5[%c0_55, %c0_56], %40 {strides = array<i32>} : memref<128x128xf32, #tpu.memory_space<vmem>>, vector<128x128xf32>,
    %c0_57 = arith.constant 0 : index
    %c1_58 = arith.constant 1 : index
    %c2_59 = arith.constant 2 : index
    %c0_60 = arith.constant 0 : index
    %42 = vector.load %arg1[%c0_57, %c1_58, %c2_59, %c0_60] : memref<2x10x10x128xbf16, #tpu.memory_space<vmem>>, vector<2x8x8x128xbf16>
    %43 = vector.shape_cast %42 : vector<2x8x8x128xbf16> to vector<128x128xbf16>
    %c0_61 = arith.constant 0 : index
    %c0_62 = arith.constant 0 : index
    %44 = vector.load %arg5[%c0_61, %c0_62] : memref<128x128xf32, #tpu.memory_space<vmem>>, vector<128x128xf32>
    %c5 = arith.constant 5 : index
    %c0_63 = arith.constant 0 : index
    %c0_64 = arith.constant 0 : index
    %45 = vector.load %arg2[%c5, %c0_63, %c0_64] : memref<9x128x128xbf16, #tpu.memory_space<vmem>>, vector<1x128x128xbf16>
    %46 = vector.shape_cast %45 : vector<1x128x128xbf16> to vector<128x128xbf16>
    %cst_65 = arith.constant dense<0.000000e+00> : vector<128x128xf32>
    %47 = tpu.matmul %43, %46, %cst_65 {dimension_numbers = #tpu.dot_dimension_numbers<[1], [0], [0], [1], [0, 0, 1, 1], [], []>} : vector<128x128xbf16>, vector<128x128xbf16>, vector<128x128xf32> -> vector<128x128xf32>
    %48 = arith.addf %44, %47 : vector<128x128xf32>
    %c0_66 = arith.constant 0 : index
    %c0_67 = arith.constant 0 : index
    %49 = vector.load %arg5[%c0_66, %c0_67] : memref<128x128xf32, #tpu.memory_space<vmem>>, vector<128x128xf32>
    tpu.vector_store %arg5[%c0_66, %c0_67], %48 {strides = array<i32>} : memref<128x128xf32, #tpu.memory_space<vmem>>, vector<128x128xf32>,
    %c0_68 = arith.constant 0 : index
    %c2_69 = arith.constant 2 : index
    %c0_70 = arith.constant 0 : index
    %c0_71 = arith.constant 0 : index
    %50 = vector.load %arg1[%c0_68, %c2_69, %c0_70, %c0_71] : memref<2x10x10x128xbf16, #tpu.memory_space<vmem>>, vector<2x8x8x128xbf16>
    %51 = vector.shape_cast %50 : vector<2x8x8x128xbf16> to vector<128x128xbf16>
    %c0_72 = arith.constant 0 : index
    %c0_73 = arith.constant 0 : index
    %52 = vector.load %arg5[%c0_72, %c0_73] : memref<128x128xf32, #tpu.memory_space<vmem>>, vector<128x128xf32>
    %c6 = arith.constant 6 : index
    %c0_74 = arith.constant 0 : index
    %c0_75 = arith.constant 0 : index
    %53 = vector.load %arg2[%c6, %c0_74, %c0_75] : memref<9x128x128xbf16, #tpu.memory_space<vmem>>, vector<1x128x128xbf16>
    %54 = vector.shape_cast %53 : vector<1x128x128xbf16> to vector<128x128xbf16>
    %cst_76 = arith.constant dense<0.000000e+00> : vector<128x128xf32>
    %55 = tpu.matmul %51, %54, %cst_76 {dimension_numbers = #tpu.dot_dimension_numbers<[1], [0], [0], [1], [0, 0, 1, 1], [], []>} : vector<128x128xbf16>, vector<128x128xbf16>, vector<128x128xf32> -> vector<128x128xf32>
    %56 = arith.addf %52, %55 : vector<128x128xf32>
    %c0_77 = arith.constant 0 : index
    %c0_78 = arith.constant 0 : index
    %57 = vector.load %arg5[%c0_77, %c0_78] : memref<128x128xf32, #tpu.memory_space<vmem>>, vector<128x128xf32>
    tpu.vector_store %arg5[%c0_77, %c0_78], %56 {strides = array<i32>} : memref<128x128xf32, #tpu.memory_space<vmem>>, vector<128x128xf32>,
    %c0_79 = arith.constant 0 : index
    %c2_80 = arith.constant 2 : index
    %c1_81 = arith.constant 1 : index
    %c0_82 = arith.constant 0 : index
    %58 = vector.load %arg1[%c0_79, %c2_80, %c1_81, %c0_82] : memref<2x10x10x128xbf16, #tpu.memory_space<vmem>>, vector<2x8x8x128xbf16>
    %59 = vector.shape_cast %58 : vector<2x8x8x128xbf16> to vector<128x128xbf16>
    %c0_83 = arith.constant 0 : index
    %c0_84 = arith.constant 0 : index
    %60 = vector.load %arg5[%c0_83, %c0_84] : memref<128x128xf32, #tpu.memory_space<vmem>>, vector<128x128xf32>
    %c7 = arith.constant 7 : index
    %c0_85 = arith.constant 0 : index
    %c0_86 = arith.constant 0 : index
    %61 = vector.load %arg2[%c7, %c0_85, %c0_86] : memref<9x128x128xbf16, #tpu.memory_space<vmem>>, vector<1x128x128xbf16>
    %62 = vector.shape_cast %61 : vector<1x128x128xbf16> to vector<128x128xbf16>
    %cst_87 = arith.constant dense<0.000000e+00> : vector<128x128xf32>
    %63 = tpu.matmul %59, %62, %cst_87 {dimension_numbers = #tpu.dot_dimension_numbers<[1], [0], [0], [1], [0, 0, 1, 1], [], []>} : vector<128x128xbf16>, vector<128x128xbf16>, vector<128x128xf32> -> vector<128x128xf32>
    %64 = arith.addf %60, %63 : vector<128x128xf32>
    %c0_88 = arith.constant 0 : index
    %c0_89 = arith.constant 0 : index
    %65 = vector.load %arg5[%c0_88, %c0_89] : memref<128x128xf32, #tpu.memory_space<vmem>>, vector<128x128xf32>
    tpu.vector_store %arg5[%c0_88, %c0_89], %64 {strides = array<i32>} : memref<128x128xf32, #tpu.memory_space<vmem>>, vector<128x128xf32>,
    %c0_90 = arith.constant 0 : index
    %c2_91 = arith.constant 2 : index
    %c2_92 = arith.constant 2 : index
    %c0_93 = arith.constant 0 : index
    %66 = vector.load %arg1[%c0_90, %c2_91, %c2_92, %c0_93] : memref<2x10x10x128xbf16, #tpu.memory_space<vmem>>, vector<2x8x8x128xbf16>
    %67 = vector.shape_cast %66 : vector<2x8x8x128xbf16> to vector<128x128xbf16>
    %c0_94 = arith.constant 0 : index
    %c0_95 = arith.constant 0 : index
    %68 = vector.load %arg5[%c0_94, %c0_95] : memref<128x128xf32, #tpu.memory_space<vmem>>, vector<128x128xf32>
    %c8 = arith.constant 8 : index
    %c0_96 = arith.constant 0 : index
    %c0_97 = arith.constant 0 : index
    %69 = vector.load %arg2[%c8, %c0_96, %c0_97] : memref<9x128x128xbf16, #tpu.memory_space<vmem>>, vector<1x128x128xbf16>
    %70 = vector.shape_cast %69 : vector<1x128x128xbf16> to vector<128x128xbf16>
    %cst_98 = arith.constant dense<0.000000e+00> : vector<128x128xf32>
    %71 = tpu.matmul %67, %70, %cst_98 {dimension_numbers = #tpu.dot_dimension_numbers<[1], [0], [0], [1], [0, 0, 1, 1], [], []>} : vector<128x128xbf16>, vector<128x128xbf16>, vector<128x128xf32> -> vector<128x128xf32>
    %72 = arith.addf %68, %71 : vector<128x128xf32>
    %c0_99 = arith.constant 0 : index
    %c0_100 = arith.constant 0 : index
    %73 = vector.load %arg5[%c0_99, %c0_100] : memref<128x128xf32, #tpu.memory_space<vmem>>, vector<128x128xf32>
    tpu.vector_store %arg5[%c0_99, %c0_100], %72 {strides = array<i32>} : memref<128x128xf32, #tpu.memory_space<vmem>>, vector<128x128xf32>,
    %c0_101 = arith.constant 0 : index
    %c0_102 = arith.constant 0 : index
    %74 = vector.load %arg5[%c0_101, %c0_102] : memref<128x128xf32, #tpu.memory_space<vmem>>, vector<128x128xf32>
    %c0_103 = arith.constant 0 : index
    %c0_104 = arith.constant 0 : index
    %75 = vector.load %arg3[%c0_103, %c0_104] : memref<1x128xf32, #tpu.memory_space<vmem>>, vector<1x128xf32>
    %76 = vector.broadcast %75 : vector<1x128xf32> to vector<128x128xf32>
    %77 = arith.addf %74, %76 : vector<128x128xf32>
    %cst_105 = arith.constant 0.000000e+00 : f32
    %78 = vector.broadcast %cst_105 : f32 to vector<128x128xf32>
    %79 = arith.maximumf %77, %78 : vector<128x128xf32>
    %80 = vector.shape_cast %79 : vector<128x128xf32> to vector<2x64x128xf32>
    %81 = arith.truncf %80 : vector<2x64x128xf32> to vector<2x64x128xbf16>
    %c0_106 = arith.constant 0 : index
    %c0_107 = arith.constant 0 : index
    %c0_108 = arith.constant 0 : index
    %82 = vector.load %arg4[%c0_106, %c0_107, %c0_108] : memref<2x64x128xbf16, #tpu.memory_space<vmem>>, vector<2x64x128xbf16>
    tpu.vector_store %arg4[%c0_106, %c0_107, %c0_108], %81 {strides = array<i32>} : memref<2x64x128xbf16, #tpu.memory_space<vmem>>, vector<2x64x128xbf16>,
    return
  }
  func.func @transform_0(%arg0: i32) -> (i32, i32, i32, i32) {
    %c0_i32 = arith.constant 0 : i32
    %c0_i32_0 = arith.constant 0 : i32
    %c0_i32_1 = arith.constant 0 : i32
    %c0_i32_2 = arith.constant 0 : i32
    return %arg0, %c0_i32, %c0_i32_0, %c0_i32_1 : i32, i32, i32, i32
  }
  func.func @transform_1(%arg0: i32) -> (i32, i32, i32) {
    %c0_i32 = arith.constant 0 : i32
    %c0_i32_0 = arith.constant 0 : i32
    %c0_i32_1 = arith.constant 0 : i32
    %c0_i32_2 = arith.constant 0 : i32
    return %c0_i32, %c0_i32_0, %c0_i32_1 : i32, i32, i32
  }
  func.func @transform_2(%arg0: i32) -> (i32, i32) {
    %c0_i32 = arith.constant 0 : i32
    %c0_i32_0 = arith.constant 0 : i32
    %c0_i32_1 = arith.constant 0 : i32
    return %c0_i32, %c0_i32_0 : i32, i32
  }
  func.func @transform_3(%arg0: i32) -> (i32, i32, i32) {
    %c0_i32 = arith.constant 0 : i32
    %c0_i32_0 = arith.constant 0 : i32
    %c0_i32_1 = arith.constant 0 : i32
    return %arg0, %c0_i32, %c0_i32_0 : i32, i32, i32
  }
}

module attributes {stable_mosaic.version = 11 : i64} {
  func.func @_conv3x3_kernel(%arg0: i32, %arg1: memref<2x6x6x128xbf16, #tpu.memory_space<vmem>>, %arg2: memref<9x128x128xbf16, #tpu.memory_space<vmem>>, %arg3: memref<1x128xf32, #tpu.memory_space<vmem>>, %arg4: memref<2x16x128xbf16, #tpu.memory_space<vmem>>, %arg5: memref<32x128xf32, #tpu.memory_space<vmem>>) attributes {dimension_semantics = [#tpu.dimension_semantics<parallel>], iteration_bounds = array<i64: 2>, scalar_prefetch = 0 : i64, scratch_operands = 1 : i64, tpu.core_type = #tpu.core_type<tc>, window_params = [{transform_indices = @transform_0, window_bounds = array<i64: 2, 6, 6, 128>}, {pipeline_mode = #tpu.pipeline_mode<synchronous>, transform_indices = @transform_1, window_bounds = array<i64: 9, 128, 128>}, {pipeline_mode = #tpu.pipeline_mode<synchronous>, transform_indices = @transform_2, window_bounds = array<i64: 1, 128>}, {transform_indices = @transform_3, window_bounds = array<i64: 2, 16, 128>}]} {
    %cst = arith.constant 0.000000e+00 : f32
    %0 = vector.broadcast %cst : f32 to vector<32x128xf32>
    %c0 = arith.constant 0 : index
    %c0_0 = arith.constant 0 : index
    %1 = vector.load %arg5[%c0, %c0_0] : memref<32x128xf32, #tpu.memory_space<vmem>>, vector<32x128xf32>
    tpu.vector_store %arg5[%c0, %c0_0], %0 {strides = array<i32>} : memref<32x128xf32, #tpu.memory_space<vmem>>, vector<32x128xf32>,
    %c0_1 = arith.constant 0 : index
    %c0_2 = arith.constant 0 : index
    %c0_3 = arith.constant 0 : index
    %c0_4 = arith.constant 0 : index
    %2 = vector.load %arg1[%c0_1, %c0_2, %c0_3, %c0_4] : memref<2x6x6x128xbf16, #tpu.memory_space<vmem>>, vector<2x4x4x128xbf16>
    %3 = vector.shape_cast %2 : vector<2x4x4x128xbf16> to vector<32x128xbf16>
    %c0_5 = arith.constant 0 : index
    %c0_6 = arith.constant 0 : index
    %4 = vector.load %arg5[%c0_5, %c0_6] : memref<32x128xf32, #tpu.memory_space<vmem>>, vector<32x128xf32>
    %c0_7 = arith.constant 0 : index
    %c0_8 = arith.constant 0 : index
    %c0_9 = arith.constant 0 : index
    %5 = vector.load %arg2[%c0_7, %c0_8, %c0_9] : memref<9x128x128xbf16, #tpu.memory_space<vmem>>, vector<1x128x128xbf16>
    %6 = vector.shape_cast %5 : vector<1x128x128xbf16> to vector<128x128xbf16>
    %cst_10 = arith.constant dense<0.000000e+00> : vector<32x128xf32>
    %7 = tpu.matmul %3, %6, %cst_10 {dimension_numbers = #tpu.dot_dimension_numbers<[1], [0], [0], [1], [0, 0, 1, 1], [], []>} : vector<32x128xbf16>, vector<128x128xbf16>, vector<32x128xf32> -> vector<32x128xf32>
    %8 = arith.addf %4, %7 : vector<32x128xf32>
    %c0_11 = arith.constant 0 : index
    %c0_12 = arith.constant 0 : index
    %9 = vector.load %arg5[%c0_11, %c0_12] : memref<32x128xf32, #tpu.memory_space<vmem>>, vector<32x128xf32>
    tpu.vector_store %arg5[%c0_11, %c0_12], %8 {strides = array<i32>} : memref<32x128xf32, #tpu.memory_space<vmem>>, vector<32x128xf32>,
    %c0_13 = arith.constant 0 : index
    %c0_14 = arith.constant 0 : index
    %c1 = arith.constant 1 : index
    %c0_15 = arith.constant 0 : index
    %10 = vector.load %arg1[%c0_13, %c0_14, %c1, %c0_15] : memref<2x6x6x128xbf16, #tpu.memory_space<vmem>>, vector<2x4x4x128xbf16>
    %11 = vector.shape_cast %10 : vector<2x4x4x128xbf16> to vector<32x128xbf16>
    %c0_16 = arith.constant 0 : index
    %c0_17 = arith.constant 0 : index
    %12 = vector.load %arg5[%c0_16, %c0_17] : memref<32x128xf32, #tpu.memory_space<vmem>>, vector<32x128xf32>
    %c1_18 = arith.constant 1 : index
    %c0_19 = arith.constant 0 : index
    %c0_20 = arith.constant 0 : index
    %13 = vector.load %arg2[%c1_18, %c0_19, %c0_20] : memref<9x128x128xbf16, #tpu.memory_space<vmem>>, vector<1x128x128xbf16>
    %14 = vector.shape_cast %13 : vector<1x128x128xbf16> to vector<128x128xbf16>
    %cst_21 = arith.constant dense<0.000000e+00> : vector<32x128xf32>
    %15 = tpu.matmul %11, %14, %cst_21 {dimension_numbers = #tpu.dot_dimension_numbers<[1], [0], [0], [1], [0, 0, 1, 1], [], []>} : vector<32x128xbf16>, vector<128x128xbf16>, vector<32x128xf32> -> vector<32x128xf32>
    %16 = arith.addf %12, %15 : vector<32x128xf32>
    %c0_22 = arith.constant 0 : index
    %c0_23 = arith.constant 0 : index
    %17 = vector.load %arg5[%c0_22, %c0_23] : memref<32x128xf32, #tpu.memory_space<vmem>>, vector<32x128xf32>
    tpu.vector_store %arg5[%c0_22, %c0_23], %16 {strides = array<i32>} : memref<32x128xf32, #tpu.memory_space<vmem>>, vector<32x128xf32>,
    %c0_24 = arith.constant 0 : index
    %c0_25 = arith.constant 0 : index
    %c2 = arith.constant 2 : index
    %c0_26 = arith.constant 0 : index
    %18 = vector.load %arg1[%c0_24, %c0_25, %c2, %c0_26] : memref<2x6x6x128xbf16, #tpu.memory_space<vmem>>, vector<2x4x4x128xbf16>
    %19 = vector.shape_cast %18 : vector<2x4x4x128xbf16> to vector<32x128xbf16>
    %c0_27 = arith.constant 0 : index
    %c0_28 = arith.constant 0 : index
    %20 = vector.load %arg5[%c0_27, %c0_28] : memref<32x128xf32, #tpu.memory_space<vmem>>, vector<32x128xf32>
    %c2_29 = arith.constant 2 : index
    %c0_30 = arith.constant 0 : index
    %c0_31 = arith.constant 0 : index
    %21 = vector.load %arg2[%c2_29, %c0_30, %c0_31] : memref<9x128x128xbf16, #tpu.memory_space<vmem>>, vector<1x128x128xbf16>
    %22 = vector.shape_cast %21 : vector<1x128x128xbf16> to vector<128x128xbf16>
    %cst_32 = arith.constant dense<0.000000e+00> : vector<32x128xf32>
    %23 = tpu.matmul %19, %22, %cst_32 {dimension_numbers = #tpu.dot_dimension_numbers<[1], [0], [0], [1], [0, 0, 1, 1], [], []>} : vector<32x128xbf16>, vector<128x128xbf16>, vector<32x128xf32> -> vector<32x128xf32>
    %24 = arith.addf %20, %23 : vector<32x128xf32>
    %c0_33 = arith.constant 0 : index
    %c0_34 = arith.constant 0 : index
    %25 = vector.load %arg5[%c0_33, %c0_34] : memref<32x128xf32, #tpu.memory_space<vmem>>, vector<32x128xf32>
    tpu.vector_store %arg5[%c0_33, %c0_34], %24 {strides = array<i32>} : memref<32x128xf32, #tpu.memory_space<vmem>>, vector<32x128xf32>,
    %c0_35 = arith.constant 0 : index
    %c1_36 = arith.constant 1 : index
    %c0_37 = arith.constant 0 : index
    %c0_38 = arith.constant 0 : index
    %26 = vector.load %arg1[%c0_35, %c1_36, %c0_37, %c0_38] : memref<2x6x6x128xbf16, #tpu.memory_space<vmem>>, vector<2x4x4x128xbf16>
    %27 = vector.shape_cast %26 : vector<2x4x4x128xbf16> to vector<32x128xbf16>
    %c0_39 = arith.constant 0 : index
    %c0_40 = arith.constant 0 : index
    %28 = vector.load %arg5[%c0_39, %c0_40] : memref<32x128xf32, #tpu.memory_space<vmem>>, vector<32x128xf32>
    %c3 = arith.constant 3 : index
    %c0_41 = arith.constant 0 : index
    %c0_42 = arith.constant 0 : index
    %29 = vector.load %arg2[%c3, %c0_41, %c0_42] : memref<9x128x128xbf16, #tpu.memory_space<vmem>>, vector<1x128x128xbf16>
    %30 = vector.shape_cast %29 : vector<1x128x128xbf16> to vector<128x128xbf16>
    %cst_43 = arith.constant dense<0.000000e+00> : vector<32x128xf32>
    %31 = tpu.matmul %27, %30, %cst_43 {dimension_numbers = #tpu.dot_dimension_numbers<[1], [0], [0], [1], [0, 0, 1, 1], [], []>} : vector<32x128xbf16>, vector<128x128xbf16>, vector<32x128xf32> -> vector<32x128xf32>
    %32 = arith.addf %28, %31 : vector<32x128xf32>
    %c0_44 = arith.constant 0 : index
    %c0_45 = arith.constant 0 : index
    %33 = vector.load %arg5[%c0_44, %c0_45] : memref<32x128xf32, #tpu.memory_space<vmem>>, vector<32x128xf32>
    tpu.vector_store %arg5[%c0_44, %c0_45], %32 {strides = array<i32>} : memref<32x128xf32, #tpu.memory_space<vmem>>, vector<32x128xf32>,
    %c0_46 = arith.constant 0 : index
    %c1_47 = arith.constant 1 : index
    %c1_48 = arith.constant 1 : index
    %c0_49 = arith.constant 0 : index
    %34 = vector.load %arg1[%c0_46, %c1_47, %c1_48, %c0_49] : memref<2x6x6x128xbf16, #tpu.memory_space<vmem>>, vector<2x4x4x128xbf16>
    %35 = vector.shape_cast %34 : vector<2x4x4x128xbf16> to vector<32x128xbf16>
    %c0_50 = arith.constant 0 : index
    %c0_51 = arith.constant 0 : index
    %36 = vector.load %arg5[%c0_50, %c0_51] : memref<32x128xf32, #tpu.memory_space<vmem>>, vector<32x128xf32>
    %c4 = arith.constant 4 : index
    %c0_52 = arith.constant 0 : index
    %c0_53 = arith.constant 0 : index
    %37 = vector.load %arg2[%c4, %c0_52, %c0_53] : memref<9x128x128xbf16, #tpu.memory_space<vmem>>, vector<1x128x128xbf16>
    %38 = vector.shape_cast %37 : vector<1x128x128xbf16> to vector<128x128xbf16>
    %cst_54 = arith.constant dense<0.000000e+00> : vector<32x128xf32>
    %39 = tpu.matmul %35, %38, %cst_54 {dimension_numbers = #tpu.dot_dimension_numbers<[1], [0], [0], [1], [0, 0, 1, 1], [], []>} : vector<32x128xbf16>, vector<128x128xbf16>, vector<32x128xf32> -> vector<32x128xf32>
    %40 = arith.addf %36, %39 : vector<32x128xf32>
    %c0_55 = arith.constant 0 : index
    %c0_56 = arith.constant 0 : index
    %41 = vector.load %arg5[%c0_55, %c0_56] : memref<32x128xf32, #tpu.memory_space<vmem>>, vector<32x128xf32>
    tpu.vector_store %arg5[%c0_55, %c0_56], %40 {strides = array<i32>} : memref<32x128xf32, #tpu.memory_space<vmem>>, vector<32x128xf32>,
    %c0_57 = arith.constant 0 : index
    %c1_58 = arith.constant 1 : index
    %c2_59 = arith.constant 2 : index
    %c0_60 = arith.constant 0 : index
    %42 = vector.load %arg1[%c0_57, %c1_58, %c2_59, %c0_60] : memref<2x6x6x128xbf16, #tpu.memory_space<vmem>>, vector<2x4x4x128xbf16>
    %43 = vector.shape_cast %42 : vector<2x4x4x128xbf16> to vector<32x128xbf16>
    %c0_61 = arith.constant 0 : index
    %c0_62 = arith.constant 0 : index
    %44 = vector.load %arg5[%c0_61, %c0_62] : memref<32x128xf32, #tpu.memory_space<vmem>>, vector<32x128xf32>
    %c5 = arith.constant 5 : index
    %c0_63 = arith.constant 0 : index
    %c0_64 = arith.constant 0 : index
    %45 = vector.load %arg2[%c5, %c0_63, %c0_64] : memref<9x128x128xbf16, #tpu.memory_space<vmem>>, vector<1x128x128xbf16>
    %46 = vector.shape_cast %45 : vector<1x128x128xbf16> to vector<128x128xbf16>
    %cst_65 = arith.constant dense<0.000000e+00> : vector<32x128xf32>
    %47 = tpu.matmul %43, %46, %cst_65 {dimension_numbers = #tpu.dot_dimension_numbers<[1], [0], [0], [1], [0, 0, 1, 1], [], []>} : vector<32x128xbf16>, vector<128x128xbf16>, vector<32x128xf32> -> vector<32x128xf32>
    %48 = arith.addf %44, %47 : vector<32x128xf32>
    %c0_66 = arith.constant 0 : index
    %c0_67 = arith.constant 0 : index
    %49 = vector.load %arg5[%c0_66, %c0_67] : memref<32x128xf32, #tpu.memory_space<vmem>>, vector<32x128xf32>
    tpu.vector_store %arg5[%c0_66, %c0_67], %48 {strides = array<i32>} : memref<32x128xf32, #tpu.memory_space<vmem>>, vector<32x128xf32>,
    %c0_68 = arith.constant 0 : index
    %c2_69 = arith.constant 2 : index
    %c0_70 = arith.constant 0 : index
    %c0_71 = arith.constant 0 : index
    %50 = vector.load %arg1[%c0_68, %c2_69, %c0_70, %c0_71] : memref<2x6x6x128xbf16, #tpu.memory_space<vmem>>, vector<2x4x4x128xbf16>
    %51 = vector.shape_cast %50 : vector<2x4x4x128xbf16> to vector<32x128xbf16>
    %c0_72 = arith.constant 0 : index
    %c0_73 = arith.constant 0 : index
    %52 = vector.load %arg5[%c0_72, %c0_73] : memref<32x128xf32, #tpu.memory_space<vmem>>, vector<32x128xf32>
    %c6 = arith.constant 6 : index
    %c0_74 = arith.constant 0 : index
    %c0_75 = arith.constant 0 : index
    %53 = vector.load %arg2[%c6, %c0_74, %c0_75] : memref<9x128x128xbf16, #tpu.memory_space<vmem>>, vector<1x128x128xbf16>
    %54 = vector.shape_cast %53 : vector<1x128x128xbf16> to vector<128x128xbf16>
    %cst_76 = arith.constant dense<0.000000e+00> : vector<32x128xf32>
    %55 = tpu.matmul %51, %54, %cst_76 {dimension_numbers = #tpu.dot_dimension_numbers<[1], [0], [0], [1], [0, 0, 1, 1], [], []>} : vector<32x128xbf16>, vector<128x128xbf16>, vector<32x128xf32> -> vector<32x128xf32>
    %56 = arith.addf %52, %55 : vector<32x128xf32>
    %c0_77 = arith.constant 0 : index
    %c0_78 = arith.constant 0 : index
    %57 = vector.load %arg5[%c0_77, %c0_78] : memref<32x128xf32, #tpu.memory_space<vmem>>, vector<32x128xf32>
    tpu.vector_store %arg5[%c0_77, %c0_78], %56 {strides = array<i32>} : memref<32x128xf32, #tpu.memory_space<vmem>>, vector<32x128xf32>,
    %c0_79 = arith.constant 0 : index
    %c2_80 = arith.constant 2 : index
    %c1_81 = arith.constant 1 : index
    %c0_82 = arith.constant 0 : index
    %58 = vector.load %arg1[%c0_79, %c2_80, %c1_81, %c0_82] : memref<2x6x6x128xbf16, #tpu.memory_space<vmem>>, vector<2x4x4x128xbf16>
    %59 = vector.shape_cast %58 : vector<2x4x4x128xbf16> to vector<32x128xbf16>
    %c0_83 = arith.constant 0 : index
    %c0_84 = arith.constant 0 : index
    %60 = vector.load %arg5[%c0_83, %c0_84] : memref<32x128xf32, #tpu.memory_space<vmem>>, vector<32x128xf32>
    %c7 = arith.constant 7 : index
    %c0_85 = arith.constant 0 : index
    %c0_86 = arith.constant 0 : index
    %61 = vector.load %arg2[%c7, %c0_85, %c0_86] : memref<9x128x128xbf16, #tpu.memory_space<vmem>>, vector<1x128x128xbf16>
    %62 = vector.shape_cast %61 : vector<1x128x128xbf16> to vector<128x128xbf16>
    %cst_87 = arith.constant dense<0.000000e+00> : vector<32x128xf32>
    %63 = tpu.matmul %59, %62, %cst_87 {dimension_numbers = #tpu.dot_dimension_numbers<[1], [0], [0], [1], [0, 0, 1, 1], [], []>} : vector<32x128xbf16>, vector<128x128xbf16>, vector<32x128xf32> -> vector<32x128xf32>
    %64 = arith.addf %60, %63 : vector<32x128xf32>
    %c0_88 = arith.constant 0 : index
    %c0_89 = arith.constant 0 : index
    %65 = vector.load %arg5[%c0_88, %c0_89] : memref<32x128xf32, #tpu.memory_space<vmem>>, vector<32x128xf32>
    tpu.vector_store %arg5[%c0_88, %c0_89], %64 {strides = array<i32>} : memref<32x128xf32, #tpu.memory_space<vmem>>, vector<32x128xf32>,
    %c0_90 = arith.constant 0 : index
    %c2_91 = arith.constant 2 : index
    %c2_92 = arith.constant 2 : index
    %c0_93 = arith.constant 0 : index
    %66 = vector.load %arg1[%c0_90, %c2_91, %c2_92, %c0_93] : memref<2x6x6x128xbf16, #tpu.memory_space<vmem>>, vector<2x4x4x128xbf16>
    %67 = vector.shape_cast %66 : vector<2x4x4x128xbf16> to vector<32x128xbf16>
    %c0_94 = arith.constant 0 : index
    %c0_95 = arith.constant 0 : index
    %68 = vector.load %arg5[%c0_94, %c0_95] : memref<32x128xf32, #tpu.memory_space<vmem>>, vector<32x128xf32>
    %c8 = arith.constant 8 : index
    %c0_96 = arith.constant 0 : index
    %c0_97 = arith.constant 0 : index
    %69 = vector.load %arg2[%c8, %c0_96, %c0_97] : memref<9x128x128xbf16, #tpu.memory_space<vmem>>, vector<1x128x128xbf16>
    %70 = vector.shape_cast %69 : vector<1x128x128xbf16> to vector<128x128xbf16>
    %cst_98 = arith.constant dense<0.000000e+00> : vector<32x128xf32>
    %71 = tpu.matmul %67, %70, %cst_98 {dimension_numbers = #tpu.dot_dimension_numbers<[1], [0], [0], [1], [0, 0, 1, 1], [], []>} : vector<32x128xbf16>, vector<128x128xbf16>, vector<32x128xf32> -> vector<32x128xf32>
    %72 = arith.addf %68, %71 : vector<32x128xf32>
    %c0_99 = arith.constant 0 : index
    %c0_100 = arith.constant 0 : index
    %73 = vector.load %arg5[%c0_99, %c0_100] : memref<32x128xf32, #tpu.memory_space<vmem>>, vector<32x128xf32>
    tpu.vector_store %arg5[%c0_99, %c0_100], %72 {strides = array<i32>} : memref<32x128xf32, #tpu.memory_space<vmem>>, vector<32x128xf32>,
    %c0_101 = arith.constant 0 : index
    %c0_102 = arith.constant 0 : index
    %74 = vector.load %arg5[%c0_101, %c0_102] : memref<32x128xf32, #tpu.memory_space<vmem>>, vector<32x128xf32>
    %c0_103 = arith.constant 0 : index
    %c0_104 = arith.constant 0 : index
    %75 = vector.load %arg3[%c0_103, %c0_104] : memref<1x128xf32, #tpu.memory_space<vmem>>, vector<1x128xf32>
    %76 = vector.broadcast %75 : vector<1x128xf32> to vector<32x128xf32>
    %77 = arith.addf %74, %76 : vector<32x128xf32>
    %cst_105 = arith.constant 0.000000e+00 : f32
    %78 = vector.broadcast %cst_105 : f32 to vector<32x128xf32>
    %79 = arith.maximumf %77, %78 : vector<32x128xf32>
    %80 = vector.shape_cast %79 : vector<32x128xf32> to vector<2x16x128xf32>
    %81 = arith.truncf %80 : vector<2x16x128xf32> to vector<2x16x128xbf16>
    %c0_106 = arith.constant 0 : index
    %c0_107 = arith.constant 0 : index
    %c0_108 = arith.constant 0 : index
    %82 = vector.load %arg4[%c0_106, %c0_107, %c0_108] : memref<2x16x128xbf16, #tpu.memory_space<vmem>>, vector<2x16x128xbf16>
    tpu.vector_store %arg4[%c0_106, %c0_107, %c0_108], %81 {strides = array<i32>} : memref<2x16x128xbf16, #tpu.memory_space<vmem>>, vector<2x16x128xbf16>,
    return
  }
  func.func @transform_0(%arg0: i32) -> (i32, i32, i32, i32) {
    %c0_i32 = arith.constant 0 : i32
    %c0_i32_0 = arith.constant 0 : i32
    %c0_i32_1 = arith.constant 0 : i32
    %c0_i32_2 = arith.constant 0 : i32
    return %arg0, %c0_i32, %c0_i32_0, %c0_i32_1 : i32, i32, i32, i32
  }
  func.func @transform_1(%arg0: i32) -> (i32, i32, i32) {
    %c0_i32 = arith.constant 0 : i32
    %c0_i32_0 = arith.constant 0 : i32
    %c0_i32_1 = arith.constant 0 : i32
    %c0_i32_2 = arith.constant 0 : i32
    return %c0_i32, %c0_i32_0, %c0_i32_1 : i32, i32, i32
  }
  func.func @transform_2(%arg0: i32) -> (i32, i32) {
    %c0_i32 = arith.constant 0 : i32
    %c0_i32_0 = arith.constant 0 : i32
    %c0_i32_1 = arith.constant 0 : i32
    return %c0_i32, %c0_i32_0 : i32, i32
  }
  func.func @transform_3(%arg0: i32) -> (i32, i32, i32) {
    %c0_i32 = arith.constant 0 : i32
    %c0_i32_0 = arith.constant 0 : i32
    %c0_i32_1 = arith.constant 0 : i32
    return %arg0, %c0_i32, %c0_i32_0 : i32, i32, i32
  }
}

module attributes {stable_mosaic.version = 11 : i64} {
  func.func @_fused_reduce_kernel(%arg0: i32, %arg1: i32, %arg2: memref<1x512x128xf32, #tpu.memory_space<vmem>>, %arg3: memref<1x512x128xf32, #tpu.memory_space<vmem>>, %arg4: memref<1x4x128xf32, #tpu.memory_space<vmem>>) attributes {dimension_semantics = [#tpu.dimension_semantics<parallel>, #tpu.dimension_semantics<arbitrary>], iteration_bounds = array<i64: 10, 1>, scalar_prefetch = 0 : i64, scratch_operands = 0 : i64, tpu.core_type = #tpu.core_type<tc>, window_params = [{transform_indices = @transform_0, window_bounds = array<i64: 1, 512, 128>}, {transform_indices = @transform_1, window_bounds = array<i64: 1, 512, 128>}, {transform_indices = @transform_2, window_bounds = array<i64: 1, 4, 128>}]} {
    %c0_i32 = arith.constant 0 : i32
    %0 = arith.cmpi eq, %arg1, %c0_i32 : i32
    %1 = arith.extui %0 : i1 to i32
    %c0_i32_0 = arith.constant 0 : i32
    %2 = arith.cmpi ne, %1, %c0_i32_0 : i32
    scf.if %2 {
      %cst_20 = arith.constant 0.000000e+00 : f32
      %64 = vector.broadcast %cst_20 : f32 to vector<1x4x128xf32>
      %c0_21 = arith.constant 0 : index
      %c0_22 = arith.constant 0 : index
      %c0_23 = arith.constant 0 : index
      %65 = vector.load %arg4[%c0_21, %c0_22, %c0_23] : memref<1x4x128xf32, #tpu.memory_space<vmem>>, vector<1x4x128xf32>
      tpu.vector_store %arg4[%c0_21, %c0_22, %c0_23], %64 {strides = array<i32>} : memref<1x4x128xf32, #tpu.memory_space<vmem>>, vector<1x4x128xf32>,
    } else {
    }
    %c0 = arith.constant 0 : index
    %c0_1 = arith.constant 0 : index
    %c0_2 = arith.constant 0 : index
    %3 = vector.load %arg2[%c0, %c0_1, %c0_2] : memref<1x512x128xf32, #tpu.memory_space<vmem>>, vector<1x512x128xf32>
    %4 = vector.shape_cast %3 : vector<1x512x128xf32> to vector<512x128xf32>
    %c0_3 = arith.constant 0 : index
    %c0_4 = arith.constant 0 : index
    %c0_5 = arith.constant 0 : index
    %5 = vector.load %arg3[%c0_3, %c0_4, %c0_5] : memref<1x512x128xf32, #tpu.memory_space<vmem>>, vector<1x512x128xf32>
    %6 = vector.shape_cast %5 : vector<1x512x128xf32> to vector<512x128xf32>
    %7 = arith.subf %4, %6 : vector<512x128xf32>
    %8 = math.absf %7 : vector<512x128xf32>
    %9 = vector.shape_cast %8 : vector<512x128xf32> to vector<1x512x128xf32>
    %cst = arith.constant dense<0.000000e+00> : vector<1xf32>
    %10 = vector.multi_reduction <add>, %9, %cst [1, 2] : vector<1x512x128xf32> to vector<1xf32>
    %11 = vector.shape_cast %10 : vector<1xf32> to vector<1x1x1xf32>
    %12 = vector.extract %11[0, 0, 0] : f32 from vector<1x1x1xf32>
    %13 = vector.broadcast %12 : f32 to vector<1x1xf32>
    %14 = vector.shape_cast %4 : vector<512x128xf32> to vector<1x512x128xf32>
    %cst_6 = arith.constant dense<0.000000e+00> : vector<1xf32>
    %15 = vector.multi_reduction <add>, %14, %cst_6 [1, 2] : vector<1x512x128xf32> to vector<1xf32>
    %16 = vector.shape_cast %15 : vector<1xf32> to vector<1x1x1xf32>
    %17 = vector.extract %16[0, 0, 0] : f32 from vector<1x1x1xf32>
    %18 = vector.broadcast %17 : f32 to vector<1x1xf32>
    %19 = vector.shape_cast %6 : vector<512x128xf32> to vector<1x512x128xf32>
    %cst_7 = arith.constant dense<0.000000e+00> : vector<1xf32>
    %20 = vector.multi_reduction <add>, %19, %cst_7 [1, 2] : vector<1x512x128xf32> to vector<1xf32>
    %21 = vector.shape_cast %20 : vector<1xf32> to vector<1x1x1xf32>
    %22 = vector.extract %21[0, 0, 0] : f32 from vector<1x1x1xf32>
    %23 = vector.broadcast %22 : f32 to vector<1x1xf32>
    %24 = arith.mulf %4, %6 : vector<512x128xf32>
    %25 = vector.shape_cast %24 : vector<512x128xf32> to vector<1x512x128xf32>
    %cst_8 = arith.constant dense<0.000000e+00> : vector<1xf32>
    %26 = vector.multi_reduction <add>, %25, %cst_8 [1, 2] : vector<1x512x128xf32> to vector<1xf32>
    %27 = vector.shape_cast %26 : vector<1xf32> to vector<1x1x1xf32>
    %28 = vector.extract %27[0, 0, 0] : f32 from vector<1x1x1xf32>
    %29 = vector.broadcast %28 : f32 to vector<1x1xf32>
    %30 = tpu.iota {dimensions = array<i32: 0>} : vector<4x128xi32>
    %c0_i32_9 = arith.constant 0 : i32
    %31 = vector.broadcast %c0_i32_9 : i32 to vector<4x128xi32>
    %32 = arith.cmpi eq, %30, %31 : vector<4x128xi32>
    %cst_10 = arith.constant 0.000000e+00 : f32
    %33 = vector.shape_cast %13 : vector<1x1xf32> to vector<1x1xf32>
    %34 = vector.broadcast %33 : vector<1x1xf32> to vector<4x128xf32>
    %35 = vector.broadcast %cst_10 : f32 to vector<4x128xf32>
    %36 = arith.select %32, %34, %35 : vector<4x128xi1>, vector<4x128xf32>
    %c1_i32 = arith.constant 1 : i32
    %37 = vector.broadcast %c1_i32 : i32 to vector<4x128xi32>
    %38 = arith.cmpi eq, %30, %37 : vector<4x128xi32>
    %cst_11 = arith.constant 0.000000e+00 : f32
    %39 = vector.shape_cast %18 : vector<1x1xf32> to vector<1x1xf32>
    %40 = vector.broadcast %39 : vector<1x1xf32> to vector<4x128xf32>
    %41 = vector.broadcast %cst_11 : f32 to vector<4x128xf32>
    %42 = arith.select %38, %40, %41 : vector<4x128xi1>, vector<4x128xf32>
    %43 = arith.addf %36, %42 : vector<4x128xf32>
    %c2_i32 = arith.constant 2 : i32
    %44 = vector.broadcast %c2_i32 : i32 to vector<4x128xi32>
    %45 = arith.cmpi eq, %30, %44 : vector<4x128xi32>
    %cst_12 = arith.constant 0.000000e+00 : f32
    %46 = vector.shape_cast %23 : vector<1x1xf32> to vector<1x1xf32>
    %47 = vector.broadcast %46 : vector<1x1xf32> to vector<4x128xf32>
    %48 = vector.broadcast %cst_12 : f32 to vector<4x128xf32>
    %49 = arith.select %45, %47, %48 : vector<4x128xi1>, vector<4x128xf32>
    %50 = arith.addf %43, %49 : vector<4x128xf32>
    %c3_i32 = arith.constant 3 : i32
    %51 = vector.broadcast %c3_i32 : i32 to vector<4x128xi32>
    %52 = arith.cmpi eq, %30, %51 : vector<4x128xi32>
    %cst_13 = arith.constant 0.000000e+00 : f32
    %53 = vector.shape_cast %29 : vector<1x1xf32> to vector<1x1xf32>
    %54 = vector.broadcast %53 : vector<1x1xf32> to vector<4x128xf32>
    %55 = vector.broadcast %cst_13 : f32 to vector<4x128xf32>
    %56 = arith.select %52, %54, %55 : vector<4x128xi1>, vector<4x128xf32>
    %57 = arith.addf %50, %56 : vector<4x128xf32>
    %c0_14 = arith.constant 0 : index
    %c0_15 = arith.constant 0 : index
    %c0_16 = arith.constant 0 : index
    %58 = vector.load %arg4[%c0_14, %c0_15, %c0_16] : memref<1x4x128xf32, #tpu.memory_space<vmem>>, vector<1x4x128xf32>
    %59 = vector.shape_cast %58 : vector<1x4x128xf32> to vector<4x128xf32>
    %60 = arith.addf %59, %57 : vector<4x128xf32>
    %c0_17 = arith.constant 0 : index
    %c0_18 = arith.constant 0 : index
    %c0_19 = arith.constant 0 : index
    %61 = vector.load %arg4[%c0_17, %c0_18, %c0_19] : memref<1x4x128xf32, #tpu.memory_space<vmem>>, vector<1x4x128xf32>
    %62 = vector.shape_cast %61 : vector<1x4x128xf32> to vector<4x128xf32>
    %63 = vector.shape_cast %60 : vector<4x128xf32> to vector<1x4x128xf32>
    tpu.vector_store %arg4[%c0_17, %c0_18, %c0_19], %63 {strides = array<i32>} : memref<1x4x128xf32, #tpu.memory_space<vmem>>, vector<1x4x128xf32>,
    return
  }
  func.func @transform_0(%arg0: i32, %arg1: i32) -> (i32, i32, i32) {
    %c0_i32 = arith.constant 0 : i32
    %c0_i32_0 = arith.constant 0 : i32
    return %arg0, %arg1, %c0_i32 : i32, i32, i32
  }
  func.func @transform_1(%arg0: i32, %arg1: i32) -> (i32, i32, i32) {
    %c0_i32 = arith.constant 0 : i32
    %c0_i32_0 = arith.constant 0 : i32
    return %arg0, %arg1, %c0_i32 : i32, i32, i32
  }
  func.func @transform_2(%arg0: i32, %arg1: i32) -> (i32, i32, i32) {
    %c0_i32 = arith.constant 0 : i32
    %c0_i32_0 = arith.constant 0 : i32
    %c0_i32_1 = arith.constant 0 : i32
    return %arg0, %c0_i32, %c0_i32_0 : i32, i32, i32
  }
}

</mosaic_0001>

<bundles_post_ra>
// kernel: loss_gf.9
= control target key start
LH: loop header
LB: loop body
LE: loop exit
PB: predicated region body
PF: predicated region fallthrough
CT: control target
= control target key end

     0   :  { %s5104_s12 = smov 0   ;;  %s5870_s0 = inlined_call_operand.vmem [shape: bf16[4,10,10,128], index: 0, kind: input, shape index: {}]   ;;  %s5871_s1 = inlined_call_operand.vmem [shape: bf16[9,128,128], index: 1, kind: input, shape index: {}]   ;;  %s5872_s2 = inlined_call_operand.vmem [shape: f32[1,128], index: 2, kind: input, shape index: {}]   ;;  %s5873_s3 = inlined_call_operand.vmem [shape: bf16[4,64,128], index: 3, kind: output, shape index: {}]  }
   0x1 LB: > { %s3822_s13 = sadd.s32 4294967295, %s5082_s12   ;;  %p3826_p0 = scmp.ge.s32.totalorder %s5082_s12, 1  ;;  %s5082_s12 = sphi %s5104_s12, %s13_s12  }
   0x2   : > { %p139_p1 = scmp.lt.s32.totalorder %s5082_s12, 3 }
   0x4   : > { %p140_p2 = pnand %p3826_p0, %p139_p1 }
   0x5   : > { %v4980_v0 = vld [vmem:[%s5871_s1] sm:$0xff] (!%p140_p2)   ;;  %s3827_s16 = sshll.u32 (!%p140_p2), %s3822_s13, 1  ;;  %v4982_v2 = vld [vmem:[%s5871_s1 + $0x8] sm:$0xff] (!%p140_p2)   ;;  %v4984_v4 = vld [vmem:[%s5871_s1 + $0x10] sm:$0xff] (!%p140_p2)   ;;  %vm501_vm0 = vsmask.f32 (!%p140_p2), 3328 }
   0x6   : > { %143 = sbr.rel (%p140_p2) target bundleno = 432 (0x1b0), region = 32  ;;  %v4981_v1 = vld [vmem:[%s5871_s1 + $0x100] sm:$0xff] (!%p140_p2)   ;;  %4539 = vmatprep.subr.bf16.mxu1 (!%p140_p2), %v4980_v0  ;;  %p166_p3 = scmp.lt.s32.totalorder (!%p140_p2), %s3827_s16, 3  ;;  %v4983_v3 = vld [vmem:[%s5871_s1 + $0x108] sm:$0xff] (!%p140_p2)   ;;  %v4985_v5 = vld [vmem:[%s5871_s1 + $0x110] sm:$0xff] (!%p140_p2)   ;;  %vm1034_vm3 = vcmask (!%p140_p2), 1042432  }
   0x7   : > { %4667 = vmatprep.subr.bf16.mxu0 (!%p140_p2), %v4981_v1  ;;  %4540 = vmatpush3.bf16.msra.mxu1 (!%p140_p2), %v4980_v0  ;;  %v4986_v6 = vld [vmem:[%s5871_s1 + $0x18] sm:$0xff] (!%p140_p2)   ;;  %v4988_v8 = vld [vmem:[%s5871_s1 + $0x20] sm:$0xff] (!%p140_p2)   ;;  %v4990_v10 = vld [vmem:[%s5871_s1 + $0x28] sm:$0xff] (!%p140_p2)   ;;  %vm502_vm1 = vsmask.f32 (!%p140_p2), 7440  ;;  %vm1035_vm4 = vcmask (!%p140_p2), 1046532  }
   0x8   : > { %4668 = vmatpush3.bf16.msra.mxu0 (!%p140_p2), %v4981_v1  ;;  %4541 = vmatprep.subr.bf16.mxu1 (!%p140_p2), %v4982_v2  ;;  %v4987_v7 = vld [vmem:[%s5871_s1 + $0x118] sm:$0xff] (!%p140_p2)   ;;  %v4989_v9 = vld [vmem:[%s5871_s1 + $0x120] sm:$0xff] (!%p140_p2)   ;;  %v4991_v11 = vld [vmem:[%s5871_s1 + $0x128] sm:$0xff] (!%p140_p2)  }
   0x9   : > { %4669 = vmatprep.subr.bf16.mxu0 (!%p140_p2), %v4983_v3  ;;  %v4992_v22 = vld [vmem:[%s5871_s1 + $0x30] sm:$0xff] (!%p140_p2)   ;;  %v4994_v29 = vld [vmem:[%s5871_s1 + $0x38] sm:$0xff] (!%p140_p2)   ;;  %vm5172_vm2 = vmor (!%p140_p2), %vm501_vm0, %vm502_vm1 }
   0xa   : > { %v4993_v26 = vld [vmem:[%s5871_s1 + $0x130] sm:$0xff] (!%p140_p2)   ;;  %v4995_v34 = vld [vmem:[%s5871_s1 + $0x138] sm:$0xff] (!%p140_p2)   ;;  %v4998_v47 = vld [vmem:[%s5871_s1 + $0x40] sm:$0xff] (!%p140_p2)  }
   0xb   : > { %4542 = vmatpush3.bf16.msra.mxu1 (!%p140_p2), %v4982_v2  ;;  %v4999_v55 = vld [vmem:[%s5871_s1 + $0x140] sm:$0xff] (!%p140_p2)   ;;  %v5000_v62 = vld [vmem:[%s5871_s1 + $0x48] sm:$0xff] (!%p140_p2)   ;;  %vm5314_vm5 = vmor (!%p140_p2), %vm1034_vm3, %vm1035_vm4 }
   0xc   : > { %4670 = vmatpush3.bf16.msra.mxu0 (!%p140_p2), %v4983_v3  ;;  %4543 = vmatprep.subr.bf16.mxu1 (!%p140_p2), %v4984_v4 }
   0xd   : > { %s5879_s16 = smov (!%p166_p3, %s3827_s16), 3  ;;  %4671 = vmatprep.subr.bf16.mxu0 %v4985_v5 }
   0xe   : > { %s4971_s4 = smul.u32 80, %s5879_s16  ;;  %s4331_s19 = sshll.u32 %s5879_s16, 5 }
   0xf   : > { %4544 = vmatpush3.bf16.msra.mxu1 %v4984_v4  ;;  %s5845_s22 = scalar_lea.vmem %s5873_s3, %s4331_s19 }
  0x10   : > { %4672 = vmatpush3.bf16.msra.mxu0 %v4985_v5  ;;  %4545 = vmatprep.subr.bf16.mxu1 %v4986_v6  ;;  %s5151_s14 = scalar_lea.vmem %s5870_s0, %s4971_s4 }
  0x11   : > { %4673 = vmatprep.subr.bf16.mxu0 %v4987_v7  ;;  %v4996_v12 = vld [vmem:[%s5151_s14] ss:$8 sps:$4 sm:$0xff]   ;;  %v3977_v14 = vld [vmem:[%s5151_s14 + $0xc] sm:$0x1]  ;;  %v3978_v15 = vld [vmem:[%s5151_s14 + $0x10] sm:$0xf] }
  0x12   : > { %v3976_v13 = vld [vmem:[%s5151_s14 + $0x8] sm:$0xf]  ;;  %4555 = vmatprep.mubr.bf16.mxu1 %v4996_v12  ;;  %v3979_v18 = vld [vmem:[%s5151_s14 + $0x14] sm:$0x1]  ;;  %v1660_v19 = vshll.u32 %v3977_v14, 16  ;;  %v1665_v20 = vshrl.u32 %v3978_v15, 16 }
  0x13   : > { %4546 = vmatpush3.bf16.msra.mxu1 %v4986_v6  ;;  %v1651_v16 = vshrl.u32 %v3976_v13, 16  ;;  %v1654_v17 = vshll.u32 %v3976_v13, 16  ;;  %v1668_v21 = vshll.u32 %v3978_v15, 16  ;;  %v1674_v25 = vshll.u32 %v3979_v18, 16  ;;  %v3980_v36 = vld [vmem:[%s5151_s14 + $0x18] sm:$0xf] }
  0x14   : > { %4674 = vmatpush3.bf16.msra.mxu0 %v4987_v7  ;;  %4547 = vmatprep.subr.bf16.mxu1 %v4988_v8  ;;  %v1667_v27 = vrot.slane %v1665_v20, 4  ;;  %v1662_v32 = vrot.slane %v1660_v19, 5  ;;  %v3981_v37 = vld [vmem:[%s5151_s14 + $0x1c] sm:$0x1]  ;;  %v3982_v39 = vld [vmem:[%s5151_s14 + $0x20] sm:$0xf] }
  0x15   : > { %4675 = vmatprep.subr.bf16.mxu0 %v4989_v9  ;;  %v1653_v23 = vrot.slane %v1651_v16, 4  ;;  %v1656_v24 = vrot.slane %v1654_v17, 5  ;;  %v1670_v28 = vrot.slane %v1668_v21, 5  ;;  %v1676_v33 = vrot.slane %v1674_v25, 5  ;;  %v3983_v40 = vld [vmem:[%s5151_s14 + $0x24] sm:$0x1] }
  0x16   : > { %v1679_v41 = vshrl.u32 %v3980_v36, 16  ;;  %v1682_v43 = vshll.u32 %v3980_v36, 16  ;;  %v1688_v44 = vshll.u32 %v3981_v37, 16  ;;  %v1693_v45 = vshrl.u32 %v3982_v39, 16  ;;  %v4997_v57 = vld [vmem:[%s5151_s14 + $0x10] ss:$8 sps:$4 sm:$0xff]  }
  0x17   : > { %4548 = vmatpush3.bf16.msra.mxu1 %v4988_v8  ;;  %v1657_v31 = vor.u32 %v1656_v24, %v1653_v23  ;;  %v1671_v35 = vor.u32 %v1670_v28, %v1667_v27  ;;  %v1696_v49 = vshll.u32 %v3982_v39, 16  ;;  %v1702_v50 = vshll.u32 %v3983_v40, 16  ;;  %v5002_v63 = vld [vmem:[%s5151_s14 + $0x20] ss:$8 sps:$4 sm:$0xff]   ;;  %v3985_v1 = vld [vmem:[%s5151_s14 + $0x2c] sm:$0x1] }
  0x18   : > { %4676 = vmatpush3.bf16.msra.mxu0 %v4989_v9  ;;  %4549 = vmatprep.subr.bf16.mxu1 %v4990_v10  ;;  %v1681_v48 = vrot.slane %v1679_v41, 4  ;;  %v1684_v52 = vrot.slane %v1682_v43, 5  ;;  %v1690_v53 = vrot.slane %v1688_v44, 5  ;;  %v1695_v54 = vrot.slane %v1693_v45, 4  ;;  %v3984_v0 = vld [vmem:[%s5151_s14 + $0x28] sm:$0xf] }
  0x19   : > { %4677 = vmatprep.subr.bf16.mxu0 %v4991_v11  ;;  %v1658_v38 = vrot.slane %v1657_v31, 4  ;;  %v1672_v42 = vrot.slane %v1671_v35, 4  ;;  %v1698_v58 = vrot.slane %v1696_v49, 5  ;;  %v1704_v59 = vrot.slane %v1702_v50, 5  ;;  %v3986_v3 = vld [vmem:[%s5151_s14 + $0x30] sm:$0xf] }
  0x1a   : > { %v1685_v60 = vor.u32 %v1684_v52, %v1681_v48  ;;  %v3987_v4 = vld [vmem:[%s5151_s14 + $0x34] sm:$0x1]  ;;  %v1707_v5 = vshrl.u32 %v3984_v0, 16  ;;  %v1710_v7 = vshll.u32 %v3984_v0, 16  ;;  %v1716_v8 = vshll.u32 %v3985_v1, 16  ;;  %v5001_v15 = vld [vmem:[%s5871_s1 + $0x148] sm:$0xff]  }
  0x1b   : > { %4550 = vmatpush3.bf16.msra.mxu1 %v4990_v10  ;;  %v1663_v46 = vsel %vm5172_vm2, %v1658_v38, %v1662_v32  ;;  %v1677_v51 = vsel %vm5172_vm2, %v1672_v42, %v1676_v33  ;;  %v1699_v61 = vor.u32 %v1698_v58, %v1695_v54  ;;  %v1721_v9 = vshrl.u32 %v3986_v3, 16  ;;  %v5004_v19 = vld [vmem:[%s5871_s1 + $0x50] sm:$0xff]   ;;  %v3988_v25 = vld [vmem:[%s5151_s14 + $0x38] sm:$0xf]  ;;  %v3990_v27 = vld [vmem:[%s5151_s14 + $0x40] sm:$0xf] }
  0x1c   : > { %4678 = vmatpush3.bf16.msra.mxu0 %v4991_v11  ;;  %4551 = vmatprep.subr.bf16.mxu1 %v4992_v22  ;;  %v4024_v56 = vcombine.low %v1663_v46, %v1677_v51  ;;  %v1686_v2 = vrot.slane %v1685_v60, 4  ;;  %v1709_v11 = vrot.slane %v1707_v5, 4  ;;  %v1724_v12 = vshll.u32 %v3986_v3, 16  ;;  %v5003_v24 = vld [vmem:[%s5151_s14 + $0x30] ss:$8 sps:$4 sm:$0xff]  }
  0x1d   : > { %4679 = vmatprep.subr.bf16.mxu0 %v4993_v26  ;;  %v1700_v6 = vrot.slane %v1699_v61, 4  ;;  %v1730_v13 = vshll.u32 %v3987_v4, 16  ;;  %v1712_v16 = vrot.slane %v1710_v7, 5  ;;  %v1718_v17 = vrot.slane %v1716_v8, 5  ;;  %v5007_v50 = vld [vmem:[%s5871_s1 + $0x158] sm:$0xff]  }
  0x1e   : > { %4683 = vmatprep.mubr.bf16.mxu0 %v4024_v56  ;;  %v1691_v10 = vsel %vm5172_vm2, %v1686_v2, %v1690_v53  ;;  %v1723_v18 = vrot.slane %v1721_v9, 4  ;;  %v1726_v21 = vrot.slane %v1724_v12, 5  ;;  %v1735_v31 = vshrl.u32 %v3988_v25, 16  ;;  %v5008_v53 = vld [vmem:[%s5151_s14 + $0x50] ss:$8 sps:$4 sm:$0xff]   ;;  %v5012_v12 = vld [vmem:[%s5871_s1 + $0x68] sm:$0xff]  }
  0x1f   : > { %4552 = vmatpush3.bf16.msra.mxu1 %v4992_v22  ;;  %v1705_v14 = vsel %vm5172_vm2, %v1700_v6, %v1704_v59  ;;  %v1732_v22 = vrot.slane %v1730_v13, 5  ;;  %v1713_v23 = vor.u32 %v1712_v16, %v1709_v11  ;;  %v1738_v32 = vshll.u32 %v3988_v25, 16  ;;  %v3993_v56 = vld [vmem:[%s5151_s14 + $0x5c] sm:$0x1]  ;;  %v3994_v59 = vld [vmem:[%s5151_s14 + $0x60] sm:$0xf] }
  0x20   : > { %4680 = vmatpush3.bf16.msra.mxu0 %v4993_v26  ;;  %4553 = vmatprep.subr.bf16.mxu1 %v4994_v29  ;;  %v4025_v20 = vcombine.low %v1691_v10, %v1705_v14  ;;  %v3989_v26 = vld [vmem:[%s5151_s14 + $0x3c] sm:$0x1]  ;;  %v1727_v28 = vor.u32 %v1726_v21, %v1723_v18  ;;  %v1749_v36 = vshrl.u32 %v3990_v27, 16  ;;  %v1752_v37 = vshll.u32 %v3990_v27, 16  ;;  %v3995_v60 = vld [vmem:[%s5151_s14 + $0x64] sm:$0x1] }
  0x21   : > { %4681 = vmatprep.subr.bf16.mxu0 %v4995_v34  ;;  %v1744_v33 = vshll.u32 %v3989_v26, 16  ;;  %v1714_v35 = vrot.slane %v1713_v23, 4  ;;  %v1737_v40 = vrot.slane %v1735_v31, 4  ;;  %v1740_v41 = vrot.slane %v1738_v32, 5  ;;  %v5011_v6 = vld [vmem:[%s5871_s1 + $0x160] sm:$0xff]   ;;  %v5016_v25 = vld [vmem:[%s5871_s1 + $0x70] sm:$0xff]  }
  0x22   : > { %v1728_v39 = vrot.slane %v1727_v28, 4  ;;  %v1751_v44 = vrot.slane %v1749_v36, 4  ;;  %v1754_v45 = vrot.slane %v1752_v37, 5  ;;  %v1772_v0 = vshll.u32 %v3993_v56, 16  ;;  %v5009_v11 = vld [vmem:[%s5151_s14 + $0x60] ss:$8 sps:$4 sm:$0xff]  }
  0x23   : > { %4554 = vmatpush3.bf16.msra.mxu1 %v4994_v29  ;;  %v3991_v29 = vld [vmem:[%s5151_s14 + $0x44] sm:$0x1]  ;;  %v1746_v42 = vrot.slane %v1744_v33, 5  ;;  %v1719_v43 = vsel %vm5172_vm2, %v1714_v35, %v1718_v17  ;;  %v1741_v49 = vor.u32 %v1740_v41, %v1737_v40  ;;  %v1777_v1 = vshrl.u32 %v3994_v59, 16  ;;  %v3996_v16 = vld [vmem:[%s5151_s14 + $0x68] sm:$0xf] }
  0x24   : > { %4682 = vmatpush3.bf16.msra.mxu0 %v4995_v34  ;;  %4571 = vmatprep.subr.bf16.mxu1 %v4998_v47  ;;  %v5005_v34 = vld [vmem:[%s5871_s1 + $0x150] sm:$0xff]   ;;  %v1758_v38 = vshll.u32 %v3991_v29, 16  ;;  %v1733_v48 = vsel %vm5172_vm2, %v1728_v39, %v1732_v22  ;;  %v1755_v52 = vor.u32 %v1754_v45, %v1751_v44  ;;  %v1780_v4 = vshll.u32 %v3994_v59, 16  ;;  %v3997_v17 = vld [vmem:[%s5151_s14 + $0x6c] sm:$0x1] }
  0x25   : > { %4699 = vmatprep.subr.bf16.mxu0 %v4999_v55  ;;  %v4026_v51 = vcombine.low %v1719_v43, %v1733_v48  ;;  %v1742_v54 = vrot.slane %v1741_v49, 4  ;;  %v1786_v5 = vshll.u32 %v3995_v60, 16  ;;  %v1774_v9 = vrot.slane %v1772_v0, 5  ;;  %v3998_v18 = vld [vmem:[%s5151_s14 + $0x70] sm:$0xf]  ;;  %v5018_v48 = vld [vmem:[%s5871_s1 + $0x78] sm:$0xff]  }
  0x26   : > { %4556 = vmatmul.mubr.bf16.vlgmr.msra.gmra.mrb[0].mxu1 %v4997_v57  ;;  %v1760_v46 = vrot.slane %v1758_v38, 5  ;;  %v5010_v57 = vld [vmem:[%s5871_s1 + $0x60] sm:$0xff]   ;;  %v1756_v58 = vrot.slane %v1755_v52, 4  ;;  %v1779_v10 = vrot.slane %v1777_v1, 4  ;;  %v1782_v13 = vrot.slane %v1780_v4, 5  ;;  %v5017_v39 = vld [vmem:[%s5871_s1 + $0x170] sm:$0xff]  }
  0x27   : > { %4572 = vmatpush3.bf16.msra.mxu1 %v4998_v47  ;;  %4559 = vmatprep.mubr.bf16.mxu1 %v5002_v63  ;;  %v5006_v47 = vld [vmem:[%s5871_s1 + $0x58] sm:$0xff]   ;;  %v1788_v14 = vrot.slane %v1786_v5, 5  ;;  %v3999_v21 = vld [vmem:[%s5151_s14 + $0x74] sm:$0x1]  ;;  %v1791_v22 = vshrl.u32 %v3996_v16, 16  ;;  %v1794_v23 = vshll.u32 %v3996_v16, 16 }
  0x28   : > { %4573 = vmatprep.subr.bf16.mxu1 %v5000_v62  ;;  %4684 = vmatmul.mubr.bf16.vlgmr.msra.gmra.mrb[0].mxu0 %v4025_v20  ;;  %v1761_v2 = vsel %vm5172_vm2, %v1756_v58, %v1760_v46  ;;  %v1783_v20 = vor.u32 %v1782_v13, %v1779_v10  ;;  %v1805_v27 = vshrl.u32 %v3998_v18, 16  ;;  %v1808_v28 = vshll.u32 %v3998_v18, 16  ;;  %v5014_v44 = vld [vmem:[%s5151_s14 + $0x70] ss:$8 sps:$4 sm:$0xff]  }
  0x29   : > { %4700 = vmatpush3.bf16.msra.mxu0 %v4999_v55  ;;  %v3992_v55 = vld [vmem:[%s5151_s14 + $0x58] sm:$0xf]  ;;  %4687 = vmatprep.mubr.bf16.mxu0 %v4026_v51  ;;  %v1814_v29 = vshll.u32 %v3999_v21, 16  ;;  %v1793_v32 = vrot.slane %v1791_v22, 4  ;;  %v1796_v33 = vrot.slane %v1794_v23, 5 }
  0x2a   : > { %4701 = vmatprep.subr.bf16.mxu0 %v5001_v15  ;;  %v1763_v61 = vshrl.u32 %v3992_v55, 16  ;;  %v1766_v63 = vshll.u32 %v3992_v55, 16  ;;  %v1784_v31 = vrot.slane %v1783_v20, 4  ;;  %v1807_v36 = vrot.slane %v1805_v27, 4  ;;  %v4000_v46 = vld [vmem:[%s5151_s14 + $0x78] sm:$0xf] }
  0x2b   : > { %4574 = vmatpush3.bf16.msra.mxu1 %v5000_v62  ;;  %v1747_v62 = vsel %vm5172_vm2, %v1742_v54, %v1746_v42  ;;  %v1810_v37 = vrot.slane %v1808_v28, 5  ;;  %v1816_v38 = vrot.slane %v1814_v29, 5  ;;  %v1797_v41 = vor.u32 %v1796_v33, %v1793_v32  ;;  %v4003_v51 = vld [vmem:[%s5151_s14 + $0x84] sm:$0x1]  ;;  %v469_v33 = vld [vmem:[%s5151_s14] sm:$0xf] }
  0x2c   : > { %4575 = vmatprep.subr.bf16.mxu1 %v5004_v19  ;;  %v1765_v3 = vrot.slane %v1763_v61, 4  ;;  %v4027_v7 = vcombine.low %v1747_v62, %v1761_v2  ;;  %v1768_v8 = vrot.slane %v1766_v63, 5  ;;  %v1789_v40 = vsel %vm5172_vm2, %v1784_v31, %v1788_v14  ;;  %v5019_v61 = vld [vmem:[%s5871_s1 + $0x178] sm:$0xff]   ;;  %v5015_v2 = vld [vmem:[%s5151_s14 + $0x80] ss:$8 sps:$4 sm:$0xff]  }
  0x2d   : > { %4702 = vmatpush3.bf16.msra.mxu0 %v5001_v15  ;;  %v1811_v43 = vor.u32 %v1810_v37, %v1807_v36  ;;  %v1798_v45 = vrot.slane %v1797_v41, 4  ;;  %v1819_v52 = vshrl.u32 %v4000_v46, 16  ;;  %v1822_v54 = vshll.u32 %v4000_v46, 16  ;;  %v472_v37 = vld [vmem:[%s5151_s14 + $0xc] sm:$0x1] }
  0x2e   : > { %4560 = vmatmul.mubr.bf16.gmra.mrb[4].mxu1 %v5003_v24  ;;  %4703 = vmatprep.subr.bf16.mxu0 %v5005_v34  ;;  %v1769_v15 = vor.u32 %v1768_v8, %v1765_v3  ;;  %v1800_v24 = vshll.u32 %v3997_v17, 16  ;;  %v1842_v60 = vshll.u32 %v4003_v51, 16  ;;  %v5285_v3 = vld [vmem:[%s5871_s1 + $0x80] sm:$0xff]   ;;  %v4005_v8 = vld [vmem:[%s5151_s14 + $0x8c] sm:$0x1] }
  0x2f   : > { %4576 = vmatpush3.bf16.msra.mxu1 %v5004_v19  ;;  %4563 = vmatprep.mubr.bf16.mxu1 %v5008_v53  ;;  %v5013_v19 = vld [vmem:[%s5871_s1 + $0x168] sm:$0xff]   ;;  %v1812_v49 = vrot.slane %v1811_v43, 4  ;;  %v1821_v58 = vrot.slane %v1819_v52, 4  ;;  %v1824_v63 = vrot.slane %v1822_v54, 5  ;;  %v1856_v14 = vshll.u32 %v4005_v8, 16 }
  0x30   : > { %4577 = vmatprep.subr.bf16.mxu1 %v5006_v47  ;;  %4688 = vmatmul.mubr.bf16.gmra.mrb[4].mxu0 %v4027_v7  ;;  %v1770_v26 = vrot.slane %v1769_v15, 4  ;;  %v1844_v5 = vrot.slane %v1842_v60, 5  ;;  %v4004_v7 = vld [vmem:[%s5151_s14 + $0x88] sm:$0xf]  ;;  %v5294_v15 = vld [vmem:[%s5871_s1 + $0x180] sm:$0xff]  }
  0x31   : > { %4704 = vmatpush3.bf16.msra.mxu0 %v5005_v34  ;;  %v1802_v34 = vrot.slane %v1800_v24, 5  ;;  %v1850_v13 = vshll.u32 %v4004_v7, 16  ;;  %v1858_v23 = vrot.slane %v1856_v14, 5 }
  0x32   : > { %4705 = vmatprep.subr.bf16.mxu0 %v5007_v50  ;;  %v1775_v35 = vsel %vm5172_vm2, %v1770_v26, %v1774_v9  ;;  %v4006_v9 = vld [vmem:[%s5151_s14 + $0x90] sm:$0xf] }
  0x33   : > { %4578 = vmatpush3.bf16.msra.mxu1 %v5006_v47  ;;  %v4028_v42 = vcombine.low %v1775_v35, %v1789_v40  ;;  %v4001_v47 = vld [vmem:[%s5151_s14 + $0x7c] sm:$0x1]  ;;  %v1803_v53 = vsel %vm5172_vm2, %v1798_v45, %v1802_v34  ;;  %v1861_v17 = vshrl.u32 %v4006_v9, 16  ;;  %v1864_v18 = vshll.u32 %v4006_v9, 16  ;;  %v470_v34 = vld [vmem:[%s5151_s14 + $0x4] sm:$0x1] }
  0x34   : > { %4579 = vmatprep.subr.bf16.mxu1 %v5010_v57  ;;  %v1828_v55 = vshll.u32 %v4001_v47, 16  ;;  %v1852_v22 = vrot.slane %v1850_v13, 5  ;;  %v471_v35 = vld [vmem:[%s5151_s14 + $0x8] sm:$0xf]  ;;  %v514_v40 = vshll.u32 %v470_v34, 16 }
  0x35   : > { %4706 = vmatpush3.bf16.msra.mxu0 %v5007_v50  ;;  %4691 = vmatprep.mubr.bf16.mxu0 %v4028_v42  ;;  %v4002_v50 = vld [vmem:[%s5151_s14 + $0x80] sm:$0xf]  ;;  %v1866_v26 = vrot.slane %v1864_v18, 5  ;;  %v519_v42 = vshrl.u32 %v471_v35, 16  ;;  %v522_v43 = vshll.u32 %v471_v35, 16 }
  0x36   : > { %4564 = vmatmul.mubr.bf16.gmra.mrb[8].mxu1 %v5009_v11  ;;  %4707 = vmatprep.subr.bf16.mxu0 %v5011_v6  ;;  %v1833_v56 = vshrl.u32 %v4002_v50, 16  ;;  %v1836_v59 = vshll.u32 %v4002_v50, 16  ;;  %v1830_v0 = vrot.slane %v1828_v55, 5  ;;  %v4007_v11 = vld [vmem:[%s5151_s14 + $0x94] sm:$0x1] }
  0x37   : > { %4580 = vmatpush3.bf16.msra.mxu1 %v5010_v57  ;;  %4567 = vmatprep.mubr.bf16.mxu1 %v5014_v44  ;;  %v1817_v57 = vsel %vm5172_vm2, %v1812_v49, %v1816_v38  ;;  %v505_v38 = vshrl.u32 %v469_v33, 16  ;;  %v528_v44 = vshll.u32 %v472_v37, 16  ;;  %v4040_v45 = vld [vmem:[%s5151_s14 + $0x8] sm:$0xe]  ;;  %v516_v49 = vrot.slane %v514_v40, 5 }
  0x38   : > { %4581 = vmatprep.subr.bf16.mxu1 %v5012_v12  ;;  %v4029_v62 = vcombine.low %v1803_v53, %v1817_v57  ;;  %v1835_v1 = vrot.slane %v1833_v56, 4  ;;  %v1838_v4 = vrot.slane %v1836_v59, 5  ;;  %v4041_v50 = vld [vmem:[%s5151_s14 + $0xc] sm:$0x1]  ;;  %v521_v52 = vrot.slane %v519_v42, 4 }
  0x39   : > { %4708 = vmatpush3.bf16.msra.mxu0 %v5011_v6  ;;  %v1825_v6 = vor.u32 %v1824_v63, %v1821_v58  ;;  %v507_v47 = vrot.slane %v505_v38, 4  ;;  %v524_v53 = vrot.slane %v522_v43, 5  ;;  %v530_v54 = vrot.slane %v528_v44, 5  ;;  %v4042_v56 = vld [vmem:[%s5151_s14 + $0x10] sm:$0xe]  ;;  %v5023_v38 = vld [vmem:[%s5871_s1 + $0x188] sm:$0xff]  }
  0x3a   : > { %4709 = vmatprep.subr.bf16.mxu0 %v5013_v19  ;;  %4692 = vmatmul.mubr.bf16.gmra.mrb[8].mxu0 %v4029_v62  ;;  %v1839_v10 = vor.u32 %v1838_v4, %v1835_v1  ;;  %v4043_v59 = vld [vmem:[%s5151_s14 + $0x14] sm:$0x1]  ;;  %v4072_v60 = vrot.slane %v4040_v45, 9  ;;  %v473_v62 = vld [vmem:[%s5151_s14 + $0x10] sm:$0xf] }
  0x3b   : > { %4582 = vmatpush3.bf16.msra.mxu1 %v5012_v12  ;;  %v1847_v12 = vshrl.u32 %v4004_v7, 16  ;;  %v1826_v16 = vrot.slane %v1825_v6, 4  ;;  %v525_v63 = vor.u32 %v524_v53, %v521_v52  ;;  %v2186_v1 = vrot.slane %v4043_v59, 5  ;;  %v475_v4 = vld [vmem:[%s5151_s14 + $0x18] sm:$0xf] }
  0x3c   : > { %4583 = vmatprep.subr.bf16.mxu1 %v5016_v25  ;;  %v1840_v20 = vrot.slane %v1839_v10, 4  ;;  %v476_v7 = vld [vmem:[%s5151_s14 + $0x1c] sm:$0x1]  ;;  %v533_v8 = vshrl.u32 %v473_v62, 16  ;;  %v536_v9 = vshll.u32 %v473_v62, 16  ;;  %v547_v13 = vshrl.u32 %v475_v4, 16 }
  0x3d   : > { %4710 = vmatpush3.bf16.msra.mxu0 %v5013_v19  ;;  %v1870_v19 = vshll.u32 %v4007_v11, 16  ;;  %v1849_v21 = vrot.slane %v1847_v12, 4  ;;  %v1831_v24 = vsel %vm5172_vm2, %v1826_v16, %v1830_v0  ;;  %v4073_v0 = vrot.slane %v4042_v56, 9  ;;  %v477_v44 = vld [vmem:[%s5151_s14 + $0x20] sm:$0xf] }
  0x3e   : > { %4711 = vmatprep.subr.bf16.mxu0 %v5017_v39  ;;  %4568 = vmatmul.mubr.bf16.gmra.mrb[12].mxu1 %v5015_v2  ;;  %v1845_v28 = vsel %vm5172_vm2, %v1840_v20, %v1844_v5  ;;  %v474_v2 = vld [vmem:[%s5151_s14 + $0x14] sm:$0x1]  ;;  %v526_v10 = vrot.slane %v525_v63, 4  ;;  %v538_v18 = vrot.slane %v536_v9, 5  ;;  %v478_v45 = vld [vmem:[%s5151_s14 + $0x24] sm:$0x1] }
  0x3f   : > { %4584 = vmatpush3.bf16.msra.mxu1 %v5016_v25  ;;  %v1863_v25 = vrot.slane %v1861_v17, 4  ;;  %v1872_v27 = vrot.slane %v1870_v19, 5  ;;  %v1853_v29 = vor.u32 %v1852_v22, %v1849_v21  ;;  %v4030_v31 = vcombine.low %v1831_v24, %v1845_v28  ;;  %v4044_v19 = vld [vmem:[%s5151_s14 + $0x18] sm:$0xe]  ;;  %v4045_v24 = vld [vmem:[%s5151_s14 + $0x1c] sm:$0x1] }
  0x40   : > { %4585 = vmatprep.subr.bf16.mxu1 %v5018_v48  ;;  %v2187_v11 = vsel %vm5314_vm5, %v4073_v0, %v2186_v1  ;;  %v542_v12 = vshll.u32 %v474_v2, 16  ;;  %v535_v17 = vrot.slane %v533_v8, 4  ;;  %v531_v20 = vsel %vm5172_vm2, %v526_v10, %v530_v54  ;;  %v4046_v28 = vld [vmem:[%s5151_s14 + $0x20] sm:$0xe]  ;;  %v4048_v56 = vld [vmem:[%s5151_s14 + $0x28] sm:$0xe] }
  0x41   : > { %4712 = vmatpush3.bf16.msra.mxu0 %v5017_v39  ;;  %v1867_v32 = vor.u32 %v1866_v26, %v1863_v25  ;;  %v1854_v36 = vrot.slane %v1853_v29, 4  ;;  %v508_v39 = vshll.u32 %v469_v33, 16  ;;  %4695 = vmatprep.mubr.bf16.mxu0 %v4030_v31  ;;  %v549_v22 = vrot.slane %v547_v13, 4  ;;  %v4047_v29 = vld [vmem:[%s5151_s14 + $0x24] sm:$0x1] }
  0x42   : > { %4713 = vmatprep.subr.bf16.mxu0 %v5019_v61  ;;  %v544_v21 = vrot.slane %v542_v12, 5  ;;  %v539_v26 = vor.u32 %v538_v18, %v535_v17  ;;  %v4074_v31 = vrot.slane %v4044_v19, 9  ;;  %v2190_v33 = vrot.slane %v4045_v24, 5  ;;  %v4050_v2 = vld [vmem:[%s5151_s14 + $0x30] sm:$0xe] }
  0x43   : > { %4586 = vmatpush3.bf16.msra.mxu1 %v5018_v48  ;;  %v1868_v41 = vrot.slane %v1867_v32, 4  ;;  %v1859_v46 = vsel %vm5172_vm2, %v1854_v36, %v1858_v23  ;;  %v510_v48 = vrot.slane %v508_v39, 5  ;;  %v550_v23 = vshll.u32 %v475_v4, 16  ;;  %v5025_v4 = vld [vmem:[%s5871_s1 + $0x190] sm:$0xff]   ;;  %v483_v18 = vld [vmem:[%s5151_s14 + $0x38] sm:$0xf] }
  0x44   : > { %4603 = vmatprep.subr.bf16.mxu1 %v5285_v3  ;;  %v4075_v34 = vrot.slane %v4046_v28, 9  ;;  %v2194_v35 = vrot.slane %v4047_v29, 5  ;;  %v540_v36 = vrot.slane %v539_v26, 4  ;;  %v2191_v40 = vsel %vm5314_vm5, %v4074_v31, %v2190_v33  ;;  %v481_v12 = vld [vmem:[%s5151_s14 + $0x30] sm:$0xf] }
  0x45   : > { %4714 = vmatpush3.bf16.msra.mxu0 %v5019_v61  ;;  %v1873_v51 = vsel %vm5172_vm2, %v1868_v41, %v1872_v27  ;;  %v511_v58 = vor.u32 %v510_v48, %v507_v47  ;;  %v2182_v61 = vrot.slane %v4041_v50, 5  ;;  %v556_v27 = vshll.u32 %v476_v7, 16  ;;  %v480_v48 = vld [vmem:[%s5151_s14 + $0x2c] sm:$0x1]  ;;  %v482_v13 = vld [vmem:[%s5151_s14 + $0x34] sm:$0x1] }
  0x46   : > { %4731 = vmatprep.subr.bf16.mxu0 %v5294_v15  ;;  %v4031_v57 = vcombine.low %v1859_v46, %v1873_v51  ;;  %v552_v32 = vrot.slane %v550_v23, 5  ;;  %v2195_v41 = vsel %vm5314_vm5, %v4075_v34, %v2194_v35  ;;  %v545_v42 = vsel %vm5172_vm2, %v540_v36, %v544_v21  ;;  %v479_v46 = vld [vmem:[%s5151_s14 + $0x28] sm:$0xf]  ;;  %v484_v19 = vld [vmem:[%s5151_s14 + $0x3c] sm:$0x1] }
  0x47   : > { %v512_v5 = vrot.slane %v511_v58, 4  ;;  %v2183_v6 = vsel %vm5314_vm5, %v4072_v60, %v2182_v61  ;;  %v558_v37 = vrot.slane %v556_v27, 5  ;;  %v4105_v43 = vcombine.low %v2191_v40, %v2195_v41  ;;  %v5022_v58 = vld [vmem:[%s5871_s1 + $0x88] sm:$0xff]   ;;  %v4052_v29 = vld [vmem:[%s5151_s14 + $0x38] sm:$0xe] }
  0x48   : > { %4696 = vmatmul.mubr.bf16.gmra.mrb[12].mxu0 %v4031_v57  ;;  %v4104_v16 = vcombine.low %v2183_v6, %v2187_v11  ;;  %v553_v39 = vor.u32 %v552_v32, %v549_v22  ;;  %v564_v50 = vshll.u32 %v477_v44, 16  ;;  %v570_v51 = vshll.u32 %v478_v45, 16  ;;  %v4049_v61 = vld [vmem:[%s5151_s14 + $0x2c] sm:$0x1]  ;;  %v4053_v35 = vld [vmem:[%s5151_s14 + $0x3c] sm:$0x1] }
  0x49   : > { %v517_v14 = vsel %vm5172_vm2, %v512_v5, %v516_v49  ;;  %v561_v49 = vshrl.u32 %v477_v44, 16  ;;  %v575_v52 = vshrl.u32 %v479_v46, 16  ;;  %v578_v53 = vshll.u32 %v479_v46, 16  ;;  %v4051_v5 = vld [vmem:[%s5151_s14 + $0x34] sm:$0x1]  ;;  %v5026_v45 = vld [vmem:[%s5871_s1 + $0x98] sm:$0xff]  }
  0x4a   : > { %v3864_v25 = vcombine.low %v517_v14, %v531_v20  ;;  %4715 = vmatprep.mubr.bf16.mxu0 %v4104_v16  ;;  %v554_v47 = vrot.slane %v553_v39, 4  ;;  %v584_v54 = vshll.u32 %v480_v48, 16  ;;  %v566_v60 = vrot.slane %v564_v50, 5  ;;  %v5024_v14 = vld [vmem:[%s5871_s1 + $0x90] sm:$0xff]   ;;  %v4054_v39 = vld [vmem:[%s5151_s14 + $0x40] sm:$0xe] }
  0x4b   : > { %v563_v59 = vrot.slane %v561_v49, 4  ;;  %v572_v63 = vrot.slane %v570_v51, 5  ;;  %v577_v0 = vrot.slane %v575_v52, 4  ;;  %v580_v1 = vrot.slane %v578_v53, 5  ;;  %v4055_v40 = vld [vmem:[%s5151_s14 + $0x44] sm:$0x1] }
  0x4c   : > { %4587 = vmatprep.mubr.bf16.mxu1 %v3864_v25  ;;  %v559_v57 = vsel %vm5172_vm2, %v554_v47, %v558_v37  ;;  %v4076_v6 = vrot.slane %v4048_v56, 9  ;;  %v2198_v7 = vrot.slane %v4049_v61, 5  ;;  %v4077_v8 = vrot.slane %v4050_v2, 9  ;;  %v5029_v48 = vld [vmem:[%s5871_s1 + $0x1a0] sm:$0xff]   ;;  %v485_v56 = vld [vmem:[%s5151_s14 + $0x50] sm:$0xf] }
  0x4d   : > { %v3865_v62 = vcombine.low %v545_v42, %v559_v57  ;;  %v581_v9 = vor.u32 %v580_v1, %v577_v0  ;;  %v586_v10 = vrot.slane %v584_v54, 5  ;;  %v2202_v11 = vrot.slane %v4051_v5, 5  ;;  %v5028_v53 = vld [vmem:[%s5871_s1 + $0xa0] sm:$0xff]   ;;  %v5031_v57 = vld [vmem:[%s5871_s1 + $0x1a8] sm:$0xff]   ;;  %v486_v61 = vld [vmem:[%s5151_s14 + $0x54] sm:$0x1] }
  0x4e   : > { %v2199_v17 = vsel %vm5314_vm5, %v4076_v6, %v2198_v7  ;;  %v589_v20 = vshrl.u32 %v481_v12, 16  ;;  %v592_v23 = vshll.u32 %v481_v12, 16  ;;  %v598_v24 = vshll.u32 %v482_v13, 16  ;;  %v488_v0 = vld [vmem:[%s5151_s14 + $0x5c] sm:$0x1] }
  0x4f   : > { %4588 = vmatmul.mubr.bf16.vlgmr.msra.gmra.mrb[0].mxu1 %v3865_v62  ;;  %v582_v21 = vrot.slane %v581_v9, 4  ;;  %v2203_v22 = vsel %vm5314_vm5, %v4077_v8, %v2202_v11  ;;  %v603_v28 = vshrl.u32 %v483_v18, 16  ;;  %v606_v34 = vshll.u32 %v483_v18, 16  ;;  %v487_v62 = vld [vmem:[%s5151_s14 + $0x58] sm:$0xf] }
  0x50   : > { %4716 = vmatmul.mubr.bf16.vlgmr.msra.gmra.mrb[0].mxu0 %v4105_v43  ;;  %4604 = vmatpush3.bf16.msra.mxu1 %v5285_v3  ;;  %v5027_v3 = vld [vmem:[%s5871_s1 + $0x198] sm:$0xff]   ;;  %v4106_v26 = vcombine.low %v2199_v17, %v2203_v22  ;;  %v591_v27 = vrot.slane %v589_v20, 4  ;;  %v594_v32 = vrot.slane %v592_v23, 5  ;;  %v600_v33 = vrot.slane %v598_v24, 5  ;;  %v5033_v17 = vld [vmem:[%s5871_s1 + $0x1b0] sm:$0xff]  }
  0x51   : > { %4732 = vmatpush3.bf16.msra.mxu0 %v5294_v15  ;;  %v567_v15 = vor.u32 %v566_v60, %v563_v59  ;;  %4605 = vmatprep.subr.bf16.mxu1 %v5022_v58  ;;  %v587_v31 = vsel %vm5172_vm2, %v582_v21, %v586_v10  ;;  %v605_v37 = vrot.slane %v603_v28, 4  ;;  %v608_v42 = vrot.slane %v606_v34, 5  ;;  %v4056_v8 = vld [vmem:[%s5151_s14 + $0x58] sm:$0xe]  ;;  %v4057_v9 = vld [vmem:[%s5151_s14 + $0x5c] sm:$0x1] }
  0x52   : > { %4733 = vmatprep.subr.bf16.mxu0 %v5023_v38  ;;  %4719 = vmatprep.mubr.bf16.mxu0 %v4106_v26  ;;  %v595_v41 = vor.u32 %v594_v32, %v591_v27  ;;  %v4078_v43 = vrot.slane %v4052_v29, 9  ;;  %v2206_v44 = vrot.slane %v4053_v35, 5  ;;  %v4079_v46 = vrot.slane %v4054_v39, 9  ;;  %v5030_v10 = vld [vmem:[%s5871_s1 + $0xa8] sm:$0xff]   ;;  %v4059_v20 = vld [vmem:[%s5151_s14 + $0x64] sm:$0x1] }
  0x53   : > { %v568_v16 = vrot.slane %v567_v15, 4  ;;  %v2210_v47 = vrot.slane %v4055_v40, 5  ;;  %v609_v50 = vor.u32 %v608_v42, %v605_v37  ;;  %v620_v1 = vshll.u32 %v485_v56, 16  ;;  %v490_v26 = vld [vmem:[%s5151_s14 + $0x64] sm:$0x1]  ;;  %v5032_v42 = vld [vmem:[%s5871_s1 + $0xb0] sm:$0xff]  }
  0x54   : > { %4606 = vmatpush3.bf16.msra.mxu1 %v5022_v58  ;;  %v596_v49 = vrot.slane %v595_v41, 4  ;;  %v2207_v52 = vsel %vm5314_vm5, %v4078_v43, %v2206_v44  ;;  %v626_v2 = vshll.u32 %v486_v61, 16  ;;  %v634_v15 = vshll.u32 %v487_v62, 16  ;;  %v491_v29 = vld [vmem:[%s5151_s14 + $0x68] sm:$0xf]  ;;  %v5034_v61 = vld [vmem:[%s5871_s1 + $0xb8] sm:$0xff]  }
  0x55   : > { %4734 = vmatpush3.bf16.msra.mxu0 %v5023_v38  ;;  %v573_v25 = vsel %vm5172_vm2, %v568_v16, %v572_v63  ;;  %v612_v38 = vshll.u32 %v484_v19, 16  ;;  %4607 = vmatprep.subr.bf16.mxu1 %v5024_v14  ;;  %v2211_v54 = vsel %vm5314_vm5, %v4079_v46, %v2210_v47  ;;  %v610_v59 = vrot.slane %v609_v50, 4  ;;  %v4058_v16 = vld [vmem:[%s5151_s14 + $0x60] sm:$0xe]  ;;  %v4060_v47 = vld [vmem:[%s5151_s14 + $0x68] sm:$0xe] }
  0x56   : > { %4735 = vmatprep.subr.bf16.mxu0 %v5025_v4  ;;  %v3866_v36 = vcombine.low %v573_v25, %v587_v31  ;;  %v601_v58 = vsel %vm5172_vm2, %v596_v49, %v600_v33  ;;  %v4107_v60 = vcombine.low %v2207_v52, %v2211_v54  ;;  %v617_v63 = vshrl.u32 %v485_v56, 16  ;;  %v489_v25 = vld [vmem:[%s5151_s14 + $0x60] sm:$0xf]  ;;  %v492_v31 = vld [vmem:[%s5151_s14 + $0x6c] sm:$0x1] }
  0x57   : > { %v614_v51 = vrot.slane %v612_v38, 5  ;;  %v640_v7 = vshll.u32 %v488_v0, 16  ;;  %v622_v12 = vrot.slane %v620_v1, 5  ;;  %v628_v13 = vrot.slane %v626_v2, 5  ;;  %v4061_v52 = vld [vmem:[%s5151_s14 + $0x6c] sm:$0x1] }
  0x58   : > { %4591 = vmatprep.mubr.bf16.mxu1 %v3866_v36  ;;  %4608 = vmatpush3.bf16.msra.mxu1 %v5024_v14  ;;  %v619_v6 = vrot.slane %v617_v63, 4  ;;  %v636_v18 = vrot.slane %v634_v15, 5  ;;  %v4080_v21 = vrot.slane %v4056_v8, 9  ;;  %v2214_v22 = vrot.slane %v4057_v9, 5  ;;  %v5447_v1 = vld [vmem:[%s5871_s1 + $0x1c0] sm:$0xff]  }
  0x59   : > { %4736 = vmatpush3.bf16.msra.mxu0 %v5025_v4  ;;  %4609 = vmatprep.subr.bf16.mxu1 %v5026_v45  ;;  %v631_v4 = vshrl.u32 %v487_v62, 16  ;;  %v615_v5 = vsel %vm5172_vm2, %v610_v59, %v614_v51  ;;  %v642_v19 = vrot.slane %v640_v7, 5  ;;  %v4081_v24 = vrot.slane %v4058_v16, 9 }
  0x5a   : > { %4737 = vmatprep.subr.bf16.mxu0 %v5027_v3  ;;  %4720 = vmatmul.mubr.bf16.gmra.mrb[4].mxu0 %v4107_v60  ;;  %v3867_v11 = vcombine.low %v601_v58, %v615_v5  ;;  %v623_v23 = vor.u32 %v622_v12, %v619_v6  ;;  %v2215_v28 = vsel %vm5314_vm5, %v4080_v21, %v2214_v22  ;;  %v645_v32 = vshrl.u32 %v489_v25, 16  ;;  %v4063_v58 = vld [vmem:[%s5151_s14 + $0x74] sm:$0x1]  ;;  %v493_v5 = vld [vmem:[%s5151_s14 + $0x70] sm:$0xf]  ;;  %v5457_v6 = vld [vmem:[%s5871_s1 + $0xc0] sm:$0xff]  }
  0x5b   : > { %v633_v14 = vrot.slane %v631_v4, 4  ;;  %v648_v33 = vshll.u32 %v489_v25, 16  ;;  %v654_v36 = vshll.u32 %v490_v26, 16  ;;  %v659_v37 = vshrl.u32 %v491_v29, 16  ;;  %v4064_v22 = vld [vmem:[%s5151_s14 + $0x78] sm:$0xe] }
  0x5c   : > { %4610 = vmatpush3.bf16.msra.mxu1 %v5026_v45  ;;  %v624_v34 = vrot.slane %v623_v23, 4  ;;  %v647_v40 = vrot.slane %v645_v32, 4  ;;  %v662_v46 = vshll.u32 %v491_v29, 16  ;;  %v668_v51 = vshll.u32 %v492_v31, 16  ;;  %v4065_v23 = vld [vmem:[%s5151_s14 + $0x7c] sm:$0x1] }
  0x5d   : > { %4738 = vmatpush3.bf16.msra.mxu0 %v5027_v3  ;;  %4611 = vmatprep.subr.bf16.mxu1 %v5028_v53  ;;  %v2218_v3 = vrot.slane %v4059_v20, 5  ;;  %v637_v27 = vor.u32 %v636_v18, %v633_v14  ;;  %v650_v41 = vrot.slane %v648_v33, 5  ;;  %v656_v44 = vrot.slane %v654_v36, 5  ;;  %v4067_v31 = vld [vmem:[%s5151_s14 + $0x84] sm:$0x1] }
  0x5e   : > { %4739 = vmatprep.subr.bf16.mxu0 %v5029_v48  ;;  %4592 = vmatmul.mubr.bf16.gmra.mrb[4].mxu1 %v3867_v11  ;;  %v629_v43 = vsel %vm5172_vm2, %v624_v34, %v628_v13  ;;  %v661_v45 = vrot.slane %v659_v37, 4  ;;  %v4082_v54 = vrot.slane %v4060_v47, 9  ;;  %v2222_v59 = vrot.slane %v4061_v52, 5  ;;  %v495_v11 = vld [vmem:[%s5151_s14 + $0x78] sm:$0xf] }
  0x5f   : > { %v2219_v35 = vsel %vm5314_vm5, %v4081_v24, %v2218_v3  ;;  %v638_v38 = vrot.slane %v637_v27, 4  ;;  %v651_v50 = vor.u32 %v650_v41, %v647_v40  ;;  %v670_v63 = vrot.slane %v668_v51, 5  ;;  %v496_v13 = vld [vmem:[%s5151_s14 + $0x7c] sm:$0x1]  ;;  %v4066_v27 = vld [vmem:[%s5151_s14 + $0x80] sm:$0xe] }
  0x60   : > { %4612 = vmatpush3.bf16.msra.mxu1 %v5028_v53  ;;  %v4108_v39 = vcombine.low %v2215_v28, %v2219_v35  ;;  %v4062_v53 = vld [vmem:[%s5151_s14 + $0x70] sm:$0xe]  ;;  %v2226_v0 = vrot.slane %v4063_v58, 5  ;;  %v2223_v4 = vsel %vm5314_vm5, %v4082_v54, %v2222_v59  ;;  %v673_v12 = vshrl.u32 %v493_v5, 16  ;;  %v497_v37 = vld [vmem:[%s5151_s14 + $0x80] sm:$0xf] }
  0x61   : > { %4740 = vmatpush3.bf16.msra.mxu0 %v5029_v48  ;;  %4613 = vmatprep.subr.bf16.mxu1 %v5030_v10  ;;  %v5035_v48 = vld [vmem:[%s5871_s1 + $0x1b8] sm:$0xff]   ;;  %v643_v49 = vsel %vm5172_vm2, %v638_v38, %v642_v19  ;;  %v4083_v60 = vrot.slane %v4062_v53, 9  ;;  %v652_v62 = vrot.slane %v651_v50, 4  ;;  %v676_v14 = vshll.u32 %v493_v5, 16  ;;  %v498_v38 = vld [vmem:[%s5151_s14 + $0x84] sm:$0x1] }
  0x62   : > { %4741 = vmatprep.subr.bf16.mxu0 %v5031_v57  ;;  %4723 = vmatprep.mubr.bf16.mxu0 %v4108_v39  ;;  %v3868_v56 = vcombine.low %v629_v43, %v643_v49  ;;  %v690_v18 = vshll.u32 %v495_v11, 16  ;;  %v675_v20 = vrot.slane %v673_v12, 4  ;;  %v696_v21 = vshll.u32 %v496_v13, 16  ;;  %v499_v41 = vld [vmem:[%s5151_s14 + $0x88] sm:$0xf] }
  0x63   : > { %v2227_v15 = vsel %vm5314_vm5, %v4083_v60, %v2226_v0  ;;  %v657_v7 = vsel %vm5172_vm2, %v652_v62, %v656_v44  ;;  %v678_v3 = vrot.slane %v676_v14, 5  ;;  %v4084_v32 = vrot.slane %v4064_v22, 9  ;;  %v4068_v58 = vld [vmem:[%s5151_s14 + $0x88] sm:$0xe]  ;;  %v4069_v62 = vld [vmem:[%s5151_s14 + $0x8c] sm:$0x1] }
  0x64   : > { %4614 = vmatpush3.bf16.msra.mxu1 %v5030_v10  ;;  %4595 = vmatprep.mubr.bf16.mxu1 %v3868_v56  ;;  %v4109_v9 = vcombine.low %v2223_v4, %v2227_v15  ;;  %v494_v10 = vld [vmem:[%s5151_s14 + $0x74] sm:$0x1]  ;;  %v692_v28 = vrot.slane %v690_v18, 5  ;;  %v698_v29 = vrot.slane %v696_v21, 5  ;;  %v2230_v33 = vrot.slane %v4065_v23, 5 }
  0x65   : > { %4742 = vmatpush3.bf16.msra.mxu0 %v5031_v57  ;;  %v664_v57 = vrot.slane %v662_v46, 5  ;;  %4615 = vmatprep.subr.bf16.mxu1 %v5032_v42  ;;  %v682_v16 = vshll.u32 %v494_v10, 16  ;;  %v679_v34 = vor.u32 %v678_v3, %v675_v20  ;;  %v4085_v35 = vrot.slane %v4066_v27, 9  ;;  %v4071_v15 = vld [vmem:[%s5151_s14 + $0x94] sm:$0x1] }
  0x66   : > { %4743 = vmatprep.subr.bf16.mxu0 %v5033_v17  ;;  %4724 = vmatmul.mubr.bf16.gmra.mrb[8].mxu0 %v4109_v9  ;;  %v2234_v36 = vrot.slane %v4067_v31, 5  ;;  %v2231_v40 = vsel %vm5314_vm5, %v4084_v32, %v2230_v33  ;;  %v701_v43 = vshrl.u32 %v497_v37, 16  ;;  %v704_v44 = vshll.u32 %v497_v37, 16  ;;  %v970_v14 = vld [vmem:[%s5151_s14] sm:$0xe] }
  0x67   : > { %v665_v2 = vor.u32 %v664_v57, %v661_v45  ;;  %v684_v25 = vrot.slane %v682_v16, 5  ;;  %v680_v45 = vrot.slane %v679_v34, 4  ;;  %v710_v47 = vshll.u32 %v498_v38, 16  ;;  %v972_v20 = vld [vmem:[%s5151_s14 + $0x8] sm:$0xe] }
  0x68   : > { %4616 = vmatpush3.bf16.msra.mxu1 %v5032_v42  ;;  %v500_v42 = vld [vmem:[%s5151_s14 + $0x8c] sm:$0x1]  ;;  %v2235_v46 = vsel %vm5314_vm5, %v4085_v35, %v2234_v36  ;;  %v703_v51 = vrot.slane %v701_v43, 4  ;;  %v706_v52 = vrot.slane %v704_v44, 5  ;;  %v718_v57 = vshll.u32 %v499_v41, 16 }
  0x69   : > { %4744 = vmatpush3.bf16.msra.mxu0 %v5033_v17  ;;  %v666_v8 = vrot.slane %v665_v2, 4  ;;  %v687_v17 = vshrl.u32 %v495_v11, 16  ;;  %4617 = vmatprep.subr.bf16.mxu1 %v5034_v61  ;;  %v4110_v50 = vcombine.low %v2231_v40, %v2235_v46  ;;  %v685_v53 = vsel %vm5172_vm2, %v680_v45, %v684_v25  ;;  %v973_v22 = vld [vmem:[%s5151_s14 + $0xc] sm:$0x1]  ;;  %v975_v31 = vld [vmem:[%s5151_s14 + $0x14] sm:$0x1] }
  0x6a   : > { %4745 = vmatprep.subr.bf16.mxu0 %v5035_v48  ;;  %v712_v54 = vrot.slane %v710_v47, 5  ;;  %v707_v60 = vor.u32 %v706_v52, %v703_v51  ;;  %v4086_v0 = vrot.slane %v4068_v58, 9  ;;  %v720_v4 = vrot.slane %v718_v57, 5  ;;  %v976_v32 = vld [vmem:[%s5151_s14 + $0x18] sm:$0xe] }
  0x6b   : > { %v671_v19 = vsel %vm5172_vm2, %v666_v8, %v670_v63  ;;  %v689_v26 = vrot.slane %v687_v17, 4  ;;  %4727 = vmatprep.mubr.bf16.mxu0 %v4110_v50  ;;  %v4070_v63 = vld [vmem:[%s5151_s14 + $0x90] sm:$0xe]  ;;  %v2238_v5 = vrot.slane %v4069_v62, 5  ;;  %v2242_v10 = vrot.slane %v4071_v15, 5 }
  0x6c   : > { %v3869_v24 = vcombine.low %v657_v7, %v671_v19  ;;  %4618 = vmatpush3.bf16.msra.mxu1 %v5034_v61  ;;  %v724_v61 = vshll.u32 %v500_v42, 16  ;;  %v4087_v7 = vrot.slane %v4070_v63, 9  ;;  %v708_v8 = vrot.slane %v707_v60, 4  ;;  %v971_v19 = vld [vmem:[%s5151_s14 + $0x4] sm:$0x1]  ;;  %v5041_v42 = vld [vmem:[%s5871_s1 + $0x1c8] sm:$0xff]  }
  0x6d   : > { %4746 = vmatpush3.bf16.msra.mxu0 %v5035_v48  ;;  %4635 = vmatprep.subr.bf16.mxu1 %v5457_v6  ;;  %v693_v39 = vor.u32 %v692_v28, %v689_v26  ;;  %v715_v48 = vshrl.u32 %v499_v41, 16  ;;  %v2239_v12 = vsel %vm5314_vm5, %v4086_v0, %v2238_v5  ;;  %v3880_v21 = vrot.slane %v970_v14, 9  ;;  %v5036_v26 = vld [vmem:[%s5151_s14 + $0x10] ss:$8 sps:$4 sm:$0xff]   ;;  %v977_v34 = vld [vmem:[%s5151_s14 + $0x1c] sm:$0x1] }
  0x6e   : > { %4763 = vmatprep.subr.bf16.mxu0 %v5447_v1  ;;  %4596 = vmatmul.mubr.bf16.gmra.mrb[8].mxu1 %v3869_v24  ;;  %v726_v9 = vrot.slane %v724_v61, 5  ;;  %v2243_v13 = vsel %vm5314_vm5, %v4087_v7, %v2242_v10  ;;  %v713_v16 = vsel %vm5172_vm2, %v708_v8, %v712_v54  ;;  %v1039_v23 = vrot.slane %v971_v19, 5  ;;  %v5038_v41 = vld [vmem:[%s5151_s14 + $0x20] ss:$8 sps:$4 sm:$0xff]   ;;  %v979_v46 = vld [vmem:[%s5151_s14 + $0x24] sm:$0x1] }
  0x6f   : > { %v694_v49 = vrot.slane %v693_v39, 4  ;;  %v717_v56 = vrot.slane %v715_v48, 4  ;;  %v4111_v18 = vcombine.low %v2239_v12, %v2243_v13  ;;  %v3881_v24 = vrot.slane %v972_v20, 9  ;;  %v978_v45 = vld [vmem:[%s5151_s14 + $0x20] sm:$0xe]  ;;  %v5040_v48 = vld [vmem:[%s5871_s1 + $0xc8] sm:$0xff]  }
  0x70   : > { %v1043_v25 = vrot.slane %v973_v22, 5  ;;  %v1040_v28 = vsel %vm5314_vm5, %v3880_v21, %v1039_v23  ;;  %v1047_v36 = vrot.slane %v975_v31, 5  ;;  %v3883_v37 = vrot.slane %v976_v32, 9  ;;  %v980_v47 = vld [vmem:[%s5151_s14 + $0x28] sm:$0xe]  ;;  %v5045_v54 = vld [vmem:[%s5871_s1 + $0x1d0] sm:$0xff]  }
  0x71   : > { %v699_v59 = vsel %vm5172_vm2, %v694_v49, %v698_v29  ;;  %v721_v11 = vor.u32 %v720_v4, %v717_v56  ;;  %4728 = vmatmul.mubr.bf16.gmra.mrb[12].mxu0 %v4111_v18  ;;  %v974_v29 = vld [vmem:[%s5151_s14 + $0x10] sm:$0xe]  ;;  %v1051_v39 = vrot.slane %v977_v34, 5  ;;  %v981_v49 = vld [vmem:[%s5151_s14 + $0x2c] sm:$0x1]  ;;  %v3884_v50 = vrot.slane %v978_v45, 9 }
  0x72   : > { %v3870_v2 = vcombine.low %v685_v53, %v699_v59  ;;  %v1044_v33 = vsel %vm5314_vm5, %v3881_v24, %v1043_v25  ;;  %4747 = vmatprep.mubr.bf16.mxu0 %v5036_v26  ;;  %v3882_v35 = vrot.slane %v974_v29, 9  ;;  %v1055_v51 = vrot.slane %v979_v46, 5  ;;  %v5042_v57 = vld [vmem:[%s5151_s14 + $0x30] ss:$8 sps:$4 sm:$0xff]   ;;  %v983_v59 = vld [vmem:[%s5151_s14 + $0x34] sm:$0x1] }
  0x73   : > { %v722_v17 = vrot.slane %v721_v11, 4  ;;  %v3912_v38 = vcombine.low %v1040_v28, %v1044_v33  ;;  %v1052_v43 = vsel %vm5314_vm5, %v3883_v37, %v1051_v39  ;;  %v3885_v52 = vrot.slane %v980_v47, 9  ;;  %v982_v58 = vld [vmem:[%s5151_s14 + $0x30] sm:$0xe]  ;;  %v984_v61 = vld [vmem:[%s5151_s14 + $0x38] sm:$0xe] }
  0x74   : > { %4599 = vmatprep.mubr.bf16.mxu1 %v3870_v2  ;;  %v1048_v40 = vsel %vm5314_vm5, %v3882_v35, %v1047_v36  ;;  %v1059_v53 = vrot.slane %v981_v49, 5  ;;  %v1056_v56 = vsel %vm5314_vm5, %v3884_v50, %v1055_v51  ;;  %v985_v62 = vld [vmem:[%s5151_s14 + $0x3c] sm:$0x1]  ;;  %v1063_v63 = vrot.slane %v983_v59, 5  ;;  %v5043_v0 = vld [vmem:[%s5871_s1 + $0xd0] sm:$0xff]   ;;  %v5051_v20 = vld [vmem:[%s5871_s1 + $0x1e0] sm:$0xff]  }
  0x75   : > { %v727_v3 = vsel %vm5172_vm2, %v722_v17, %v726_v9  ;;  %v3913_v44 = vcombine.low %v1048_v40, %v1052_v43  ;;  %v3887_v4 = vrot.slane %v984_v61, 9  ;;  %v1067_v15 = vrot.slane %v985_v62, 5  ;;  %v5047_v5 = vld [vmem:[%s5871_s1 + $0x1d8] sm:$0xff]   ;;  %v5044_v8 = vld [vmem:[%s5151_s14 + $0x40] ss:$8 sps:$4 sm:$0xff]   ;;  %v5057_v47 = vld [vmem:[%s5871_s1 + $0x1f0] sm:$0xff]  }
  0x76   : > { %v3871_v27 = vcombine.low %v713_v16, %v727_v3  ;;  %v1060_v60 = vsel %vm5314_vm5, %v3885_v52, %v1059_v53  ;;  %v986_v10 = vld [vmem:[%s5151_s14 + $0x50] sm:$0xe]  ;;  %v987_v11 = vld [vmem:[%s5151_s14 + $0x54] sm:$0x1]  ;;  %v988_v12 = vld [vmem:[%s5151_s14 + $0x58] sm:$0xe] }
  0x77   : > { %v3914_v2 = vcombine.low %v1056_v56, %v1060_v60  ;;  %v5046_v13 = vld [vmem:[%s5871_s1 + $0xd8] sm:$0xff]   ;;  %v3888_v16 = vrot.slane %v986_v10, 9  ;;  %v1071_v17 = vrot.slane %v987_v11, 5  ;;  %v3889_v18 = vrot.slane %v988_v12, 9  ;;  %v5048_v22 = vld [vmem:[%s5151_s14 + $0x60] ss:$8 sps:$4 sm:$0xff]  }
  0x78   : > { %4600 = vmatmul.mubr.bf16.gmra.mrb[12].mxu1 %v3871_v27  ;;  %v989_v14 = vld [vmem:[%s5151_s14 + $0x5c] sm:$0x1]  ;;  %v990_v23 = vld [vmem:[%s5151_s14 + $0x60] sm:$0xe]  ;;  %v991_v24 = vld [vmem:[%s5151_s14 + $0x64] sm:$0x1] }
  0x79   : > { %4619 = vmatprep.mubr.bf16.mxu1 %v3912_v38  ;;  %4748 = vmatmul.mubr.bf16.vlgmr.msra.gmra.mrb[0].mxu0 %v5038_v41  ;;  %v1075_v19 = vrot.slane %v989_v14, 5  ;;  %v1072_v21 = vsel %vm5314_vm5, %v3888_v16, %v1071_v17  ;;  %v5049_v3 = vld [vmem:[%s5871_s1 + $0xe0] sm:$0xff]   ;;  %v992_v26 = vld [vmem:[%s5151_s14 + $0x68] sm:$0xe]  ;;  %v993_v27 = vld [vmem:[%s5151_s14 + $0x6c] sm:$0x1] }
  0x7a   : > { %4764 = vmatpush3.bf16.msra.mxu0 %v5447_v1  ;;  %v3886_v1 = vrot.slane %v982_v58, 9  ;;  %4751 = vmatprep.mubr.bf16.mxu0 %v5042_v57  ;;  %v3890_v28 = vrot.slane %v990_v23, 9  ;;  %v1079_v29 = vrot.slane %v991_v24, 5  ;;  %v5053_v31 = vld [vmem:[%s5871_s1 + $0x1e8] sm:$0xff]   ;;  %v3891_v33 = vrot.slane %v992_v26, 9  ;;  %v5055_v49 = vld [vmem:[%s5871_s1 + $0xf0] sm:$0xff]  }
  0x7b   : > { %4765 = vmatprep.subr.bf16.mxu0 %v5041_v42  ;;  %v1076_v25 = vsel %vm5314_vm5, %v3889_v18, %v1075_v19  ;;  %v1083_v34 = vrot.slane %v993_v27, 5  ;;  %v5050_v36 = vld [vmem:[%s5151_s14 + $0x70] ss:$8 sps:$4 sm:$0xff]   ;;  %v5052_v38 = vld [vmem:[%s5871_s1 + $0xe8] sm:$0xff]   ;;  %v995_v41 = vld [vmem:[%s5151_s14 + $0x74] sm:$0x1] }
  0x7c   : > { %v1064_v7 = vsel %vm5314_vm5, %v3886_v1, %v1063_v63  ;;  %v3916_v32 = vcombine.low %v1072_v21, %v1076_v25  ;;  %v1080_v35 = vsel %vm5314_vm5, %v3890_v28, %v1079_v29  ;;  %v994_v40 = vld [vmem:[%s5151_s14 + $0x70] sm:$0xe]  ;;  %v997_v43 = vld [vmem:[%s5151_s14 + $0x7c] sm:$0x1]  ;;  %v1087_v45 = vrot.slane %v995_v41, 5 }
  0x7d   : > { %v1084_v37 = vsel %vm5314_vm5, %v3891_v33, %v1083_v34  ;;  %v5054_v51 = vld [vmem:[%s5151_s14 + $0x80] ss:$8 sps:$4 sm:$0xff]   ;;  %v999_v53 = vld [vmem:[%s5151_s14 + $0x84] sm:$0x1]  ;;  %v1001_v57 = vld [vmem:[%s5151_s14 + $0x8c] sm:$0x1] }
  0x7e   : > { %4766 = vmatpush3.bf16.msra.mxu0 %v5041_v42  ;;  %v3917_v39 = vcombine.low %v1080_v35, %v1084_v37  ;;  %v996_v42 = vld [vmem:[%s5151_s14 + $0x78] sm:$0xe]  ;;  %v998_v52 = vld [vmem:[%s5151_s14 + $0x80] sm:$0xe]  ;;  %v1000_v56 = vld [vmem:[%s5151_s14 + $0x88] sm:$0xe] }
  0x7f   : > { %4767 = vmatprep.subr.bf16.mxu0 %v5045_v54  ;;  %v3893_v46 = vrot.slane %v996_v42, 9  ;;  %v3894_v58 = vrot.slane %v998_v52, 9  ;;  %v1095_v59 = vrot.slane %v999_v53, 5  ;;  %v5059_v60 = vld [vmem:[%s5871_s1 + $0x1f8] sm:$0xff]   ;;  %v3895_v62 = vrot.slane %v1000_v56, 9 }
  0x80   : > { %4620 = vmatmul.mubr.bf16.vlgmr.msra.gmra.mrb[0].mxu1 %v3913_v44  ;;  %v3892_v44 = vrot.slane %v994_v40, 9  ;;  %v1099_v1 = vrot.slane %v1001_v57, 5  ;;  %v4171_v10 = vld [vmem:[%s5151_s14 + $0x1c] sm:$0x1]  ;;  %v4173_v25 = vld [vmem:[%s5151_s14 + $0x24] sm:$0x1] }
  0x81   : > { %4636 = vmatpush3.bf16.msra.mxu1 %v5457_v6  ;;  %4623 = vmatprep.mubr.bf16.mxu1 %v3914_v2  ;;  %v1068_v6 = vsel %vm5314_vm5, %v3887_v4, %v1067_v15  ;;  %v1096_v63 = vsel %vm5314_vm5, %v3894_v58, %v1095_v59  ;;  %v5058_v2 = vld [vmem:[%s5871_s1 + $0xf8] sm:$0xff]   ;;  %v2817_v17 = vshll.u32 %v4171_v10, 16  ;;  %v4174_v27 = vld [vmem:[%s5151_s14 + $0x28] sm:$0xf]  ;;  %v4175_v28 = vld [vmem:[%s5151_s14 + $0x2c] sm:$0x1] }
  0x82   : > { %4637 = vmatprep.subr.bf16.mxu1 %v5040_v48  ;;  %v3915_v9 = vcombine.low %v1064_v7, %v1068_v6  ;;  %4752 = vmatmul.mubr.bf16.gmra.mrb[4].mxu0 %v5044_v8  ;;  %v1088_v50 = vsel %vm5314_vm5, %v3892_v44, %v1087_v45  ;;  %v1100_v4 = vsel %vm5314_vm5, %v3895_v62, %v1099_v1  ;;  %v5060_v7 = vld [vmem:[%s5151_s14 + $0x8] ss:$8 sps:$4 sm:$0xff]   ;;  %v4169_v6 = vld [vmem:[%s5151_s14 + $0x14] sm:$0x1]  ;;  %v2831_v33 = vshll.u32 %v4173_v25, 16 }
  0x83   : > { %4768 = vmatpush3.bf16.msra.mxu0 %v5045_v54  ;;  %4755 = vmatprep.mubr.bf16.mxu0 %v5048_v22  ;;  %v3919_v15 = vcombine.low %v1096_v63, %v1100_v4  ;;  %v4168_v8 = vld [vmem:[%s5151_s14 + $0x10] sm:$0xf]  ;;  %v5061_v22 = vld [vmem:[%s5151_s14 + $0x18] ss:$8 sps:$4 sm:$0xff]   ;;  %v2819_v24 = vrot.slane %v2817_v17, 5  ;;  %v2836_v34 = vshrl.u32 %v4174_v27, 16 }
  0x84   : > { %4769 = vmatprep.subr.bf16.mxu0 %v5047_v5  ;;  %v2794_v11 = vshrl.u32 %v4168_v8, 16  ;;  %v2797_v12 = vshll.u32 %v4168_v8, 16  ;;  %v2839_v35 = vshll.u32 %v4174_v27, 16  ;;  %v2845_v40 = vshll.u32 %v4175_v28, 16  ;;  %v5637_v44 = vld [vmem:[%s5871_s1 + $0x210] sm:$0xff]  }
  0x85   : > { %4638 = vmatpush3.bf16.msra.mxu1 %v5040_v48  ;;  %v1091_v48 = vrot.slane %v997_v43, 5  ;;  %v2838_v42 = vrot.slane %v2836_v34, 4  ;;  %v4176_v52 = vld [vmem:[%s5151_s14 + $0x30] sm:$0xf]  ;;  %v4177_v56 = vld [vmem:[%s5151_s14 + $0x34] sm:$0x1] }
  0x86   : > { %4639 = vmatprep.subr.bf16.mxu1 %v5043_v0  ;;  %v2796_v18 = vrot.slane %v2794_v11, 4  ;;  %v2799_v19 = vrot.slane %v2797_v12, 5  ;;  %v2841_v43 = vrot.slane %v2839_v35, 5  ;;  %v4178_v57 = vld [vmem:[%s5151_s14 + $0x38] sm:$0xf]  ;;  %v2850_v58 = vshrl.u32 %v4176_v52, 16 }
  0x87   : > { %4770 = vmatpush3.bf16.msra.mxu0 %v5047_v5  ;;  %v1092_v54 = vsel %vm5314_vm5, %v3893_v46, %v1091_v48  ;;  %v5615_v5 = vld [vmem:[%s5871_s1 + $0x200] sm:$0xff]   ;;  %v2847_v48 = vrot.slane %v2845_v40, 5  ;;  %v2859_v62 = vshll.u32 %v4177_v56, 16  ;;  %v2864_v1 = vshrl.u32 %v4178_v57, 16  ;;  %v5683_v40 = vld [vmem:[%s5871_s1 + $0x228] sm:$0xff]  }
  0x88   : > { %4624 = vmatmul.mubr.bf16.gmra.mrb[4].mxu1 %v3915_v9  ;;  %4771 = vmatprep.subr.bf16.mxu0 %v5051_v20  ;;  %v3918_v61 = vcombine.low %v1088_v50, %v1092_v54  ;;  %v4170_v9 = vld [vmem:[%s5151_s14 + $0x18] sm:$0xf]  ;;  %v2800_v26 = vor.u32 %v2799_v19, %v2796_v18  ;;  %v2842_v50 = vor.u32 %v2841_v43, %v2838_v42  ;;  %v4181_v17 = vld [vmem:[%s5151_s14 + $0x44] sm:$0x1]  ;;  %v4182_v18 = vld [vmem:[%s5151_s14 + $0x48] sm:$0xf] }
  0x89   : > { %4640 = vmatpush3.bf16.msra.mxu1 %v5043_v0  ;;  %4627 = vmatprep.mubr.bf16.mxu1 %v3916_v32  ;;  %v5056_v0 = vld [vmem:[%s5151_s14 + $0x90] ss:$8 sps:$4 sm:$0xff]   ;;  %v2808_v14 = vshrl.u32 %v4170_v9, 16  ;;  %v2811_v16 = vshll.u32 %v4170_v9, 16  ;;  %v2861_v8 = vrot.slane %v2859_v62, 5  ;;  %v2895_v25 = vshll.u32 %v4182_v18, 16 }
  0x8a   : > { %4641 = vmatprep.subr.bf16.mxu1 %v5046_v13  ;;  %4756 = vmatmul.mubr.bf16.gmra.mrb[8].mxu0 %v5050_v36  ;;  %v5632_v36 = vld [vmem:[%s5871_s1 + $0x208] sm:$0xff]   ;;  %v2801_v37 = vrot.slane %v2800_v26, 4  ;;  %v2843_v59 = vrot.slane %v2842_v50, 4  ;;  %v5659_v9 = vld [vmem:[%s5871_s1 + $0x218] sm:$0xff]   ;;  %v5675_v35 = vld [vmem:[%s5871_s1 + $0x220] sm:$0xff]  }
  0x8b   : > { %4772 = vmatpush3.bf16.msra.mxu0 %v5051_v20  ;;  %4759 = vmatprep.mubr.bf16.mxu0 %v5054_v51  ;;  %v2810_v21 = vrot.slane %v2808_v14, 4  ;;  %v2813_v23 = vrot.slane %v2811_v16, 5  ;;  %v5064_v51 = vld [vmem:[%s5151_s14 + $0x28] ss:$8 sps:$4 sm:$0xff]   ;;  %v4180_v14 = vld [vmem:[%s5151_s14 + $0x40] sm:$0xf] }
  0x8c   : > { %4773 = vmatprep.subr.bf16.mxu0 %v5053_v31  ;;  %v4183_v19 = vld [vmem:[%s5151_s14 + $0x4c] sm:$0x1]  ;;  %v4184_v43 = vld [vmem:[%s5151_s14 + $0x60] sm:$0xf] }
  0x8d   : > { %4642 = vmatpush3.bf16.msra.mxu1 %v5046_v13  ;;  %v2803_v13 = vshll.u32 %v4169_v6, 16  ;;  %v2814_v32 = vor.u32 %v2813_v23, %v2810_v21  ;;  %v2866_v6 = vrot.slane %v2864_v1, 4  ;;  %v2878_v21 = vshrl.u32 %v4180_v14, 16 }
  0x8e   : > { %4643 = vmatprep.subr.bf16.mxu1 %v5049_v3  ;;  %v2887_v23 = vshll.u32 %v4181_v17, 16  ;;  %v2901_v26 = vshll.u32 %v4183_v19, 16  ;;  %v2909_v50 = vshll.u32 %v4184_v43, 16 }
  0x8f   : > { %4774 = vmatpush3.bf16.msra.mxu0 %v5053_v31  ;;  %v2805_v20 = vrot.slane %v2803_v13, 5  ;;  %v2815_v41 = vrot.slane %v2814_v32, 4  ;;  %v5065_v13 = vld [vmem:[%s5151_s14 + $0x38] ss:$8 sps:$4 sm:$0xff]   ;;  %v2880_v28 = vrot.slane %v2878_v21, 4 }
  0x90   : > { %4628 = vmatmul.mubr.bf16.gmra.mrb[8].mxu1 %v3917_v39  ;;  %4775 = vmatprep.subr.bf16.mxu0 %v5057_v47  ;;  %v2903_v34 = vrot.slane %v2901_v26, 5 }
  0x91   : > { %4644 = vmatpush3.bf16.msra.mxu1 %v5049_v3  ;;  %4631 = vmatprep.mubr.bf16.mxu1 %v3918_v61  ;;  %v4172_v3 = vld [vmem:[%s5151_s14 + $0x20] sm:$0xf]  ;;  %v2806_v45 = vsel %vm5172_vm2, %v2801_v37, %v2805_v20  ;;  %v2853_v61 = vshll.u32 %v4176_v52, 16 }
  0x92   : > { %4645 = vmatprep.subr.bf16.mxu1 %v5052_v38  ;;  %4760 = vmatmul.mubr.bf16.gmra.mrb[12].mxu0 %v5056_v0  ;;  %v2822_v29 = vshrl.u32 %v4172_v3, 16  ;;  %v2825_v31 = vshll.u32 %v4172_v3, 16  ;;  %v2852_v0 = vrot.slane %v2850_v58, 4  ;;  %v2892_v3 = vshrl.u32 %v4182_v18, 16 }
  0x93   : > { %4776 = vmatpush3.bf16.msra.mxu0 %v5057_v47  ;;  %v2833_v47 = vrot.slane %v2831_v33, 5  ;;  %v2897_v33 = vrot.slane %v2895_v25, 5  ;;  %v2911_v58 = vrot.slane %v2909_v50, 5 }
  0x94   : > { %4777 = vmatprep.subr.bf16.mxu0 %v5059_v60  ;;  %v2827_v39 = vrot.slane %v2825_v31, 5  ;;  %v2889_v31 = vrot.slane %v2887_v23, 5  ;;  %v2894_v32 = vrot.slane %v2892_v3, 4 }
  0x95   : > { %4646 = vmatpush3.bf16.msra.mxu1 %v5052_v38  ;;  %v2824_v38 = vrot.slane %v2822_v29, 4 }
  0x96   : > { %4647 = vmatprep.subr.bf16.mxu1 %v5055_v49  ;;  %v2898_v42 = vor.u32 %v2897_v33, %v2894_v32  ;;  %v4194_v33 = vld [vmem:[%s5151_s14 + $0x88] sm:$0xf] }
  0x97   : > { %4778 = vmatpush3.bf16.msra.mxu0 %v5059_v60  ;;  %v2828_v46 = vor.u32 %v2827_v39, %v2824_v38  ;;  %v4179_v60 = vld [vmem:[%s5151_s14 + $0x3c] sm:$0x1]  ;;  %v5068_v39 = vld [vmem:[%s5151_s14 + $0x58] ss:$8 sps:$4 sm:$0xff]  }
  0x98   : > { %4632 = vmatmul.mubr.bf16.gmra.mrb[12].mxu1 %v3919_v15  ;;  %4795 = vmatprep.subr.bf16.mxu0 %v5615_v5  ;;  %v2873_v4 = vshll.u32 %v4179_v60, 16  ;;  %v2848_v15 = vsel %vm5172_vm2, %v2843_v59, %v2847_v48  ;;  %v4187_v48 = vld [vmem:[%s5151_s14 + $0x6c] sm:$0x1]  ;;  %v2899_v52 = vrot.slane %v2898_v42, 4  ;;  %v2976_v42 = vshrl.u32 %v4194_v33, 16 }
  0x99   : > { %4648 = vmatpush3.bf16.msra.mxu1 %v5055_v49  ;;  %4651 = vmatprep.mubr.bf16.mxu1 %v5060_v7  ;;  %v2820_v49 = vsel %vm5172_vm2, %v2815_v41, %v2819_v24  ;;  %v2829_v54 = vrot.slane %v2828_v46, 4  ;;  %v2855_v7 = vrot.slane %v2853_v61, 5  ;;  %v4186_v46 = vld [vmem:[%s5151_s14 + $0x68] sm:$0xf] }
  0x9a   : > { %4649 = vmatprep.subr.bf16.mxu1 %v5058_v2  ;;  %v4216_v53 = vcombine.low %v2806_v45, %v2820_v49  ;;  %v2875_v12 = vrot.slane %v2873_v4, 5  ;;  %v4185_v45 = vld [vmem:[%s5151_s14 + $0x64] sm:$0x1]  ;;  %v2906_v49 = vshrl.u32 %v4184_v43, 16  ;;  %v2904_v60 = vsel %vm5172_vm2, %v2899_v52, %v2903_v34  ;;  %v4195_v34 = vld [vmem:[%s5151_s14 + $0x8c] sm:$0x1] }
  0x9b   : > { %v2834_v63 = vsel %vm5172_vm2, %v2829_v54, %v2833_v47  ;;  %v2856_v16 = vor.u32 %v2855_v7, %v2852_v0  ;;  %v2929_v54 = vshll.u32 %v4187_v48, 16  ;;  %v5703_v0 = vld [vmem:[%s5871_s1 + $0x230] sm:$0xff]   ;;  %v2978_v50 = vrot.slane %v2976_v42, 4 }
  0x9c   : > { %4779 = vmatprep.mubr.bf16.mxu0 %v4216_v53  ;;  %v4217_v10 = vcombine.low %v2834_v63, %v2848_v15  ;;  %v2920_v53 = vshrl.u32 %v4186_v46, 16  ;;  %v5069_v63 = vld [vmem:[%s5151_s14 + $0x68] ss:$8 sps:$4 sm:$0xff]   ;;  %v4189_v7 = vld [vmem:[%s5151_s14 + $0x74] sm:$0x1] }
  0x9d   : > { %4650 = vmatpush3.bf16.msra.mxu1 %v5058_v2  ;;  %v2867_v2 = vshll.u32 %v4178_v57, 16  ;;  %v2857_v24 = vrot.slane %v2856_v16, 4  ;;  %v2908_v57 = vrot.slane %v2906_v49, 4  ;;  %v2931_v1 = vrot.slane %v2929_v54, 5  ;;  %v4188_v15 = vld [vmem:[%s5151_s14 + $0x70] sm:$0xf] }
  0x9e   : > { %4827 = vmatprep.subr.bf16.mxu1 %v5615_v5  ;;  %4780 = vmatmul.mubr.bf16.vlgmr.msra.gmra.mrb[0].mxu0 %v4217_v10  ;;  %v2922_v61 = vrot.slane %v2920_v53, 4  ;;  %v2934_v10 = vshrl.u32 %v4188_v15, 16  ;;  %v4196_v54 = vld [vmem:[%s5151_s14 + $0x90] sm:$0xf] }
  0x9f   : > { %v2869_v11 = vrot.slane %v2867_v2, 5  ;;  %4796 = vmatpush3.bf16.msra.mxu0 %v5615_v5  ;;  %v2912_v4 = vor.u32 %v2911_v58, %v2908_v57  ;;  %v4198_v58 = vld [vmem:[%s5151_s14 + $0x98] sm:$0xf] }
  0xa0   : > { %4652 = vmatmul.mubr.bf16.vlgmr.msra.gmra.mrb[0].mxu1 %v5061_v22  ;;  %v2881_v22 = vshll.u32 %v4180_v14, 16  ;;  %4797 = vmatprep.subr.bf16.mxu0 %v5632_v36  ;;  %v2936_v19 = vrot.slane %v2934_v10, 4 }
  0xa1   : > { %4835 = vmatpush3.bf16.msra.mxu1 %v5615_v5  ;;  %4655 = vmatprep.mubr.bf16.mxu1 %v5064_v51  ;;  %v2870_v20 = vor.u32 %v2869_v11, %v2866_v6  ;;  %v2862_v5 = vsel %vm5172_vm2, %v2857_v24, %v2861_v8  ;;  %v2915_v51 = vshll.u32 %v4185_v45, 16  ;;  %v4190_v8 = vld [vmem:[%s5151_s14 + $0x78] sm:$0xf]  ;;  %v4191_v6 = vld [vmem:[%s5151_s14 + $0x7c] sm:$0x1]  ;;  %v2937_v11 = vshll.u32 %v4188_v15, 16 }
  0xa2   : > { %4828 = vmatprep.subr.bf16.mxu1 %v5632_v36  ;;  %v2883_v29 = vrot.slane %v2881_v22, 5  ;;  %v2948_v14 = vshrl.u32 %v4190_v8, 16  ;;  %v2951_v16 = vshll.u32 %v4190_v8, 16  ;;  %v2957_v17 = vshll.u32 %v4191_v6, 16 }
  0xa3   : > { %v2871_v27 = vrot.slane %v2870_v20, 4  ;;  %4798 = vmatpush3.bf16.msra.mxu0 %v5632_v36  ;;  %v2917_v59 = vrot.slane %v2915_v51, 5  ;;  %v2939_v20 = vrot.slane %v2937_v11, 5  ;;  %v2979_v45 = vshll.u32 %v4194_v33, 16  ;;  %v5073_v51 = vld [vmem:[%s5151_s14 + $0x88] ss:$8 sps:$4 sm:$0xff]  }
  0xa4   : > { %v2884_v38 = vor.u32 %v2883_v29, %v2880_v28  ;;  %4799 = vmatprep.subr.bf16.mxu0 %v5637_v44  ;;  %v2950_v23 = vrot.slane %v2948_v14, 4  ;;  %v2953_v24 = vrot.slane %v2951_v16, 5  ;;  %v2959_v3 = vrot.slane %v2957_v17, 5  ;;  %v5072_v29 = vld [vmem:[%s5151_s14 + $0x78] ss:$8 sps:$4 sm:$0xff]  }
  0xa5   : > { %4836 = vmatpush3.bf16.msra.mxu1 %v5632_v36  ;;  %v2876_v37 = vsel %vm5172_vm2, %v2871_v27, %v2875_v12  ;;  %v2923_v36 = vshll.u32 %v4186_v46, 16  ;;  %v2943_v12 = vshll.u32 %v4189_v7, 16  ;;  %v2940_v26 = vor.u32 %v2939_v20, %v2936_v19  ;;  %v4232_v14 = vld [vmem:[%s5151_s14 + $0x10] sm:$0xe]  ;;  %v4234_v19 = vld [vmem:[%s5151_s14 + $0x18] sm:$0xe] }
  0xa6   : > { %4829 = vmatprep.subr.bf16.mxu1 %v5637_v44  ;;  %v4218_v41 = vcombine.low %v2862_v5, %v2876_v37  ;;  %v2885_v47 = vrot.slane %v2884_v38, 4  ;;  %v2954_v28 = vor.u32 %v2953_v24, %v2950_v23  ;;  %v4193_v5 = vld [vmem:[%s5151_s14 + $0x84] sm:$0x1]  ;;  %v2985_v46 = vshll.u32 %v4195_v34, 16  ;;  %v4235_v20 = vld [vmem:[%s5151_s14 + $0x1c] sm:$0x1] }
  0xa7   : > { %4800 = vmatpush3.bf16.msra.mxu0 %v5637_v44  ;;  %v2925_v62 = vrot.slane %v2923_v36, 5  ;;  %v2945_v21 = vrot.slane %v2943_v12, 5  ;;  %v2941_v32 = vrot.slane %v2940_v26, 4  ;;  %v2981_v53 = vrot.slane %v2979_v45, 5  ;;  %v4248_v24 = vld [vmem:[%s5151_s14 + $0x60] sm:$0xe] }
  0xa8   : > { %4656 = vmatmul.mubr.bf16.gmra.mrb[4].mxu1 %v5065_v13  ;;  %4783 = vmatprep.mubr.bf16.mxu0 %v4218_v41  ;;  %v2890_v56 = vsel %vm5172_vm2, %v2885_v47, %v2889_v31  ;;  %v2913_v13 = vrot.slane %v2912_v4, 4  ;;  %v4192_v31 = vld [vmem:[%s5151_s14 + $0x80] sm:$0xf]  ;;  %v2955_v38 = vrot.slane %v2954_v28, 4  ;;  %v2971_v41 = vshll.u32 %v4193_v5, 16 }
  0xa9   : > { %4837 = vmatpush3.bf16.msra.mxu1 %v5637_v44  ;;  %4659 = vmatprep.mubr.bf16.mxu1 %v5068_v39  ;;  %v4219_v2 = vcombine.low %v2890_v56, %v2904_v60  ;;  %v2926_v44 = vor.u32 %v2925_v62, %v2922_v61  ;;  %v2962_v37 = vshrl.u32 %v4192_v31, 16  ;;  %v2965_v39 = vshll.u32 %v4192_v31, 16  ;;  %v4197_v56 = vld [vmem:[%s5151_s14 + $0x94] sm:$0x1]  ;;  %v4250_v5 = vld [vmem:[%s5151_s14 + $0x68] sm:$0xe] }
  0xaa   : > { %4830 = vmatprep.subr.bf16.mxu1 %v5659_v9  ;;  %4801 = vmatprep.subr.bf16.mxu0 %v5659_v9  ;;  %v2918_v22 = vsel %vm5172_vm2, %v2913_v13, %v2917_v59  ;;  %v2946_v43 = vsel %vm5172_vm2, %v2941_v32, %v2945_v21  ;;  %v2960_v47 = vsel %vm5172_vm2, %v2955_v38, %v2959_v3  ;;  %v2973_v49 = vrot.slane %v2971_v41, 5  ;;  %v4199_v59 = vld [vmem:[%s5151_s14 + $0x9c] sm:$0x1]  ;;  %v4251_v32 = vld [vmem:[%s5151_s14 + $0x6c] sm:$0x1] }
  0xab   : > { %4784 = vmatmul.mubr.bf16.gmra.mrb[4].mxu0 %v4219_v2  ;;  %v2927_v18 = vrot.slane %v2926_v44, 4  ;;  %v2967_v48 = vrot.slane %v2965_v39, 5  ;;  %v4221_v52 = vcombine.low %v2946_v43, %v2960_v47  ;;  %v2987_v36 = vrot.slane %v2985_v46, 5  ;;  %v4236_v39 = vld [vmem:[%s5151_s14 + $0x20] sm:$0xe] }
  0xac   : > { %4802 = vmatpush3.bf16.msra.mxu0 %v5659_v9  ;;  %v2990_v60 = vshrl.u32 %v4196_v54, 16  ;;  %v2993_v61 = vshll.u32 %v4196_v54, 16  ;;  %v2982_v62 = vor.u32 %v2981_v53, %v2978_v50  ;;  %v3013_v7 = vshll.u32 %v4199_v59, 16  ;;  %v4237_v41 = vld [vmem:[%s5151_s14 + $0x24] sm:$0x1] }
  0xad   : > { %4838 = vmatpush3.bf16.msra.mxu1 %v5659_v9  ;;  %4803 = vmatprep.subr.bf16.mxu0 %v5675_v35  ;;  %v5720_v9 = vld [vmem:[%s5871_s1 + $0x238] sm:$0xff]   ;;  %v2932_v25 = vsel %vm5172_vm2, %v2927_v18, %v2931_v1  ;;  %v2999_v1 = vshll.u32 %v4197_v56, 16  ;;  %v4233_v18 = vld [vmem:[%s5151_s14 + $0x14] sm:$0x1]  ;;  %v3329_v26 = vrot.slane %v4235_v20, 5  ;;  %v4272_v28 = vrot.slane %v4248_v24, 9 }
  0xae   : > { %4831 = vmatprep.subr.bf16.mxu1 %v5675_v35  ;;  %v4220_v27 = vcombine.low %v2918_v22, %v2932_v25  ;;  %v2992_v4 = vrot.slane %v2990_v60, 4  ;;  %v2995_v15 = vrot.slane %v2993_v61, 5  ;;  %v2983_v8 = vrot.slane %v2982_v62, 4  ;;  %v4238_v45 = vld [vmem:[%s5151_s14 + $0x28] sm:$0xe] }
  0xaf   : > { %v3001_v12 = vrot.slane %v2999_v1, 5  ;;  %v3015_v13 = vrot.slane %v3013_v7, 5  ;;  %v4264_v22 = vrot.slane %v4232_v14, 9  ;;  %v3325_v23 = vrot.slane %v4233_v18, 5  ;;  %v4239_v46 = vld [vmem:[%s5151_s14 + $0x2c] sm:$0x1] }
  0xb0   : > { %4660 = vmatmul.mubr.bf16.gmra.mrb[8].mxu1 %v5069_v63  ;;  %4804 = vmatpush3.bf16.msra.mxu0 %v5675_v35  ;;  %v3004_v63 = vshrl.u32 %v4198_v58, 16  ;;  %v2996_v11 = vor.u32 %v2995_v15, %v2992_v4  ;;  %v2988_v16 = vsel %vm5172_vm2, %v2983_v8, %v2987_v36  ;;  %v4265_v25 = vrot.slane %v4234_v19, 9  ;;  %v4253_v53 = vld [vmem:[%s5151_s14 + $0x74] sm:$0x1]  ;;  %v4254_v36 = vld [vmem:[%s5151_s14 + $0x78] sm:$0xe] }
  0xb1   : > { %4839 = vmatpush3.bf16.msra.mxu1 %v5675_v35  ;;  %4787 = vmatprep.mubr.bf16.mxu0 %v4220_v27  ;;  %v2964_v35 = vrot.slane %v2962_v37, 4  ;;  %v4249_v27 = vld [vmem:[%s5151_s14 + $0x64] sm:$0x1]  ;;  %v3326_v31 = vsel %vm5314_vm5, %v4264_v22, %v3325_v23  ;;  %v4273_v37 = vrot.slane %v4250_v5, 9  ;;  %v3361_v38 = vrot.slane %v4251_v32, 5 }
  0xb2   : > { %4832 = vmatprep.subr.bf16.mxu1 %v5683_v40  ;;  %4805 = vmatprep.subr.bf16.mxu0 %v5683_v40  ;;  %v3006_v44 = vrot.slane %v3004_v63, 4  ;;  %v2997_v21 = vrot.slane %v2996_v11, 4  ;;  %v3357_v33 = vrot.slane %v4249_v27, 5  ;;  %v3330_v34 = vsel %vm5314_vm5, %v4265_v25, %v3329_v26  ;;  %v4255_v54 = vld [vmem:[%s5151_s14 + $0x7c] sm:$0x1] }
  0xb3   : > { %4663 = vmatprep.mubr.bf16.mxu1 %v5072_v29  ;;  %v2968_v57 = vor.u32 %v2967_v48, %v2964_v35  ;;  %4788 = vmatmul.mubr.bf16.gmra.mrb[8].mxu0 %v4221_v52  ;;  %v4296_v43 = vcombine.low %v3326_v31, %v3330_v34  ;;  %v4266_v30 = vrot.slane %v4236_v39, 9  ;;  %v3362_v47 = vsel %vm5314_vm5, %v4273_v37, %v3361_v38  ;;  %v4240_v60 = vld [vmem:[%s5151_s14 + $0x30] sm:$0xe]  ;;  %v4241_v61 = vld [vmem:[%s5151_s14 + $0x34] sm:$0x1] }
  0xb4   : > { %4806 = vmatpush3.bf16.msra.mxu0 %v5683_v40  ;;  %v3002_v29 = vsel %vm5172_vm2, %v2997_v21, %v3001_v12  ;;  %v3358_v35 = vsel %vm5314_vm5, %v4272_v28, %v3357_v33  ;;  %v3333_v48 = vrot.slane %v4237_v41, 5  ;;  %v3337_v50 = vrot.slane %v4239_v46, 5  ;;  %v4242_v63 = vld [vmem:[%s5151_s14 + $0x38] sm:$0xe]  ;;  %v4256_v8 = vld [vmem:[%s5151_s14 + $0x80] sm:$0xe] }
  0xb5   : > { %4840 = vmatpush3.bf16.msra.mxu1 %v5683_v40  ;;  %4807 = vmatprep.subr.bf16.mxu0 %v5703_v0  ;;  %v3007_v40 = vshll.u32 %v4198_v58, 16  ;;  %v2969_v2 = vrot.slane %v2968_v57, 4  ;;  %v4300_v52 = vcombine.low %v3358_v35, %v3362_v47  ;;  %v3365_v59 = vrot.slane %v4253_v53, 5  ;;  %v4257_v11 = vld [vmem:[%s5151_s14 + $0x84] sm:$0x1] }
  0xb6   : > { %4833 = vmatprep.subr.bf16.mxu1 %v5703_v0  ;;  %v3334_v56 = vsel %vm5314_vm5, %v4266_v30, %v3333_v48  ;;  %v4275_v62 = vrot.slane %v4254_v36, 9  ;;  %v3369_v1 = vrot.slane %v4255_v54, 5  ;;  %v4268_v4 = vrot.slane %v4240_v60, 9  ;;  %v4258_v12 = vld [vmem:[%s5151_s14 + $0x88] sm:$0xe] }
  0xb7   : > { %v3009_v6 = vrot.slane %v3007_v40, 5  ;;  %v2974_v10 = vsel %vm5172_vm2, %v2969_v2, %v2973_v49  ;;  %v4267_v49 = vrot.slane %v4238_v45, 9  ;;  %v4243_v40 = vld [vmem:[%s5151_s14 + $0x3c] sm:$0x1]  ;;  %v3341_v15 = vrot.slane %v4241_v61, 5 }
  0xb8   : > { %4664 = vmatmul.mubr.bf16.gmra.mrb[12].mxu1 %v5073_v51  ;;  %4808 = vmatpush3.bf16.msra.mxu0 %v5703_v0  ;;  %v4252_v51 = vld [vmem:[%s5151_s14 + $0x70] sm:$0xe]  ;;  %v4269_v7 = vrot.slane %v4242_v63, 9  ;;  %v3373_v18 = vrot.slane %v4257_v11, 5  ;;  %v4277_v19 = vrot.slane %v4258_v12, 9 }
  0xb9   : > { %4841 = vmatpush3.bf16.msra.mxu1 %v5703_v0  ;;  %4809 = vmatprep.subr.bf16.mxu0 %v5720_v9  ;;  %v3010_v17 = vor.u32 %v3009_v6, %v3006_v44  ;;  %v4222_v0 = vcombine.low %v2974_v10, %v2988_v16  ;;  %v3338_v57 = vsel %vm5314_vm5, %v4267_v49, %v3337_v50  ;;  %v4274_v58 = vrot.slane %v4252_v51, 9  ;;  %v4244_v20 = vld [vmem:[%s5151_s14 + $0x40] sm:$0xe]  ;;  %v4245_v22 = vld [vmem:[%s5151_s14 + $0x44] sm:$0x1] }
  0xba   : > { %4834 = vmatprep.subr.bf16.mxu1 %v5720_v9  ;;  %4819 = vmatprep.mubr.bf16.mxu1 %v4300_v52  ;;  %v4297_v44 = vcombine.low %v3334_v56, %v3338_v57  ;;  %v3370_v6 = vsel %vm5314_vm5, %v4275_v62, %v3369_v1  ;;  %v3345_v10 = vrot.slane %v4243_v40, 5  ;;  %v3342_v16 = vsel %vm5314_vm5, %v4268_v4, %v3341_v15  ;;  %v4246_v23 = vld [vmem:[%s5151_s14 + $0x48] sm:$0xe]  ;;  %v4247_v26 = vld [vmem:[%s5151_s14 + $0x4c] sm:$0x1] }
  0xbb   : > { %v3011_v3 = vrot.slane %v3010_v17, 4  ;;  %4791 = vmatprep.mubr.bf16.mxu0 %v4222_v0  ;;  %v3366_v2 = vsel %vm5314_vm5, %v4274_v58, %v3365_v59  ;;  %v4259_v17 = vld [vmem:[%s5151_s14 + $0x8c] sm:$0x1]  ;;  %v4270_v24 = vrot.slane %v4244_v20, 9  ;;  %v3349_v27 = vrot.slane %v4245_v22, 5 }
  0xbc   : > { %4810 = vmatpush3.bf16.msra.mxu0 %v5720_v9  ;;  %v4301_v14 = vcombine.low %v3366_v2, %v3370_v6  ;;  %v3346_v0 = vsel %vm5314_vm5, %v4269_v7, %v3345_v10  ;;  %v3377_v21 = vrot.slane %v4259_v17, 5  ;;  %v4271_v28 = vrot.slane %v4246_v23, 9  ;;  %v4261_v32 = vld [vmem:[%s5151_s14 + $0x94] sm:$0x1]  ;;  %v4262_v33 = vld [vmem:[%s5151_s14 + $0x98] sm:$0xe] }
  0xbd   : > { %4842 = vmatpush3.bf16.msra.mxu1 %v5720_v9  ;;  %v3016_v9 = vsel %vm5172_vm2, %v3011_v3, %v3015_v13  ;;  %v4276_v13 = vrot.slane %v4256_v8, 9  ;;  %v4298_v3 = vcombine.low %v3342_v16, %v3346_v0  ;;  %v3353_v5 = vrot.slane %v4247_v26, 5  ;;  %v4263_v38 = vld [vmem:[%s5151_s14 + $0x9c] sm:$0x1]  ;;  %v5831_v16 = vld [vmem:[%s5872_s2] ss:$0 sm:$0xff] }
  0xbe   : > { %v4223_v42 = vcombine.low %v3002_v29, %v3016_v9  ;;  %v4260_v29 = vld [vmem:[%s5151_s14 + $0x90] sm:$0xe]  ;;  %v3378_v31 = vsel %vm5314_vm5, %v4277_v19, %v3377_v21  ;;  %v3350_v37 = vsel %vm5314_vm5, %v4270_v24, %v3349_v27  ;;  %v3381_v39 = vrot.slane %v4261_v32, 5 }
  0xbf   : > { %v3374_v25 = vsel %vm5314_vm5, %v4276_v13, %v3373_v18  ;;  %v4278_v9 = vrot.slane %v4260_v29, 9  ;;  %v4279_v41 = vrot.slane %v4262_v33, 9 }
  0xc0   : > { %4792 = vmatmul.mubr.bf16.gmra.mrb[12].mxu0 %v4223_v42  ;;  %4820 = vmatmul.mubr.bf16.vlgmr.msra.gmra.mrb[16].mxu1 %v4301_v14  ;;  %v4302_v34 = vcombine.low %v3374_v25, %v3378_v31  ;;  %v3354_v42 = vsel %vm5314_vm5, %v4271_v28, %v3353_v5 }
  0xc1   : > { %4811 = vmatprep.mubr.bf16.mxu0 %v4296_v43  ;;  %v3385_v43 = vrot.slane %v4263_v38, 5  ;;  %v3382_v35 = vsel %vm5314_vm5, %v4278_v9, %v3381_v39  ;;  %v4299_v45 = vcombine.low %v3350_v37, %v3354_v42 }
  0xc2   : > { %4823 = vmatprep.mubr.bf16.mxu1 %v4302_v34 }
  0xc3   : > { %v3386_v46 = vsel %vm5314_vm5, %v4279_v41, %v3385_v43 }
  0xc4   : > { %v4303_v30 = vcombine.low %v3382_v35, %v3386_v46 }
  0xc8   : > { %4812 = vmatmul.mubr.bf16.vlgmr.msra.gmra.mrb[0].mxu0 %v4297_v44  ;;  %4824 = vmatmul.mubr.bf16.gmra.mrb[20].mxu1 %v4303_v30 }
  0xc9   : > { %4815 = vmatprep.mubr.bf16.mxu0 %v4298_v3 }
  0xd0   : > { %4816 = vmatmul.mubr.bf16.gmra.mrb[4].mxu0 %v4299_v45 }
 0x173   : > { %v4653_v47 = vpop.f32.mrb[0].mxu1 }
 0x174   : > { %v1523_v48 = vpop.f32.mrb[1].mxu1 }
 0x175   : > { %v4654_v49 = vpop.f32.mrb[2].mxu1 }
 0x176   : > { %v1526_v50 = vpop.f32.mrb[3].mxu1 }
 0x17b   : > { %v5820_v51 = vpop.f32.mrb[4].mxu1 }
 0x17c   : > { %v5822_v52 = vpop.f32.mrb[5].mxu1 }
 0x17d   : > { %v5824_v53 = vpop.f32.mrb[6].mxu1 }
 0x17e   : > { %v5826_v36 = vpop.f32.mrb[7].mxu1 }
 0x183   : > { %v4661_v54 = vpop.f32.mrb[8].mxu1 }
 0x184   : > { %v1555_v56 = vpop.f32.mrb[9].mxu1 }
 0x185   : > { %v4662_v57 = vpop.f32.mrb[10].mxu1 }
 0x186   : > { %v1558_v55 = vpop.f32.mrb[11].mxu1  ;;  %v4789_v59 = vpop.f32.mrb[8].mxu0 }
 0x187   : > { %v4851_v61 = vadd.f32 %v4789_v59, %v4661_v54  ;;  %v3196_v62 = vpop.f32.mrb[9].mxu0 }
 0x188   : > { %v4853_v63 = vadd.f32 %v3196_v62, %v1555_v56  ;;  %v4790_v40 = vpop.f32.mrb[10].mxu0 }
 0x189   : > { %v4855_v4 = vadd.f32 %v4790_v40, %v4662_v57  ;;  %v3199_v15 = vpop.f32.mrb[11].mxu0 }
 0x18a   : > { %v4857_v7 = vadd.f32 %v3199_v15, %v1558_v55 }
 0x18b   : > { %v4665_v58 = vpop.f32.mrb[12].mxu1 }
 0x18c   : > { %v1571_v60 = vpop.f32.mrb[13].mxu1 }
 0x18d   : > { %v4666_v1 = vpop.f32.mrb[14].mxu1 }
 0x18e   : > { %v1574_v2 = vpop.f32.mrb[15].mxu1 }
 0x193   : > { %v4793_v8 = vpop.f32.mrb[12].mxu0  ;;  %v4821_v17 = vpop.f32.mrb[16].mxu1 }
 0x194   : > { %v4859_v44 = vadd.f32 %v4793_v8, %v4665_v58  ;;  %v3212_v6 = vpop.f32.mrb[13].mxu0  ;;  %v4852_v19 = vadd.f32 %v4851_v61, %v4821_v17  ;;  %v3566_v20 = vpop.f32.mrb[17].mxu1 }
 0x195   : > { %v4861_v10 = vadd.f32 %v3212_v6, %v1571_v60  ;;  %v4794_v11 = vpop.f32.mrb[14].mxu0  ;;  %v4854_v22 = vadd.f32 %v4853_v63, %v3566_v20  ;;  %v4822_v23 = vpop.f32.mrb[18].mxu1 }
 0x196   : > { %v4863_v12 = vadd.f32 %v4794_v11, %v4666_v1  ;;  %v3215_v13 = vpop.f32.mrb[15].mxu0  ;;  %v3662_v24 = vadd.f32 %v4852_v19, %v5831_v16  ;;  %v4856_v26 = vadd.f32 %v4855_v4, %v4822_v23  ;;  %v3569_v27 = vpop.f32.mrb[19].mxu1 }
 0x197   : > { %v4865_v14 = vadd.f32 %v3215_v13, %v1574_v2  ;;  %v3660_v29 = vadd.f32 %v4854_v22, %v5831_v16  ;;  %v4858_v32 = vadd.f32 %v4857_v7, %v3569_v27 }
 0x198   : > { %v3663_v9 = vadd.f32 %v4856_v26, %v5831_v16  ;;  %v3678_v39 = vmax.f32 %v3662_v24, 0.0 }
 0x199   : > { %v3661_v38 = vadd.f32 %v4858_v32, %v5831_v16  ;;  %v3676_v35 = vmax.f32 %v3660_v29, 0.0 }
 0x19a   : > { %v3679_v41 = vmax.f32 %v3663_v9, 0.0 }
 0x19b   : > { %v4813_v18 = vpop.f32.mrb[0].mxu0  ;;  %v3677_v46 = vmax.f32 %v3661_v38, 0.0  ;;  %v4825_v30 = vpop.f32.mrb[20].mxu1 }
 0x19c   : > { %v4843_v0 = vadd.f32 %v4813_v18, %v4653_v47  ;;  %v3534_v21 = vpop.f32.mrb[1].mxu0  ;;  %v4860_v54 = vadd.f32 %v4859_v44, %v4825_v30  ;;  %v3582_v56 = vpop.f32.mrb[21].mxu1 }
 0x19d   : > { %v4844_v3 = vadd.f32 %v3534_v21, %v1523_v48  ;;  %v4814_v25 = vpop.f32.mrb[2].mxu0  ;;  %v4376_v48 = vpack.c.bf16 %v3679_v41, %v3678_v39  ;;  %v4371_v55 = vpack.c.bf16 %v3677_v46, %v3676_v35  ;;  %v4862_v60 = vadd.f32 %v4861_v10, %v3582_v56  ;;  %v4826_v61 = vpop.f32.mrb[22].mxu1 }
 0x19e   : > { %v3654_v28 = vadd.f32 %v4843_v0, %v5831_v16  ;;  %v4845_v31 = vadd.f32 %v4814_v25, %v4654_v49  ;;  %v3537_v5 = vpop.f32.mrb[3].mxu0  ;;  %v3666_v1 = vadd.f32 %v4860_v54, %v5831_v16  ;;  %v4864_v2 = vadd.f32 %v4863_v12, %v4826_v61  ;;  %v3585_v4 = vpop.f32.mrb[23].mxu1 }
 0x19f   : > { %v3652_v33 = vadd.f32 %v4844_v3, %v5831_v16  ;;  %v4846_v34 = vadd.f32 %v3537_v5, %v1526_v50  ;;  %v3664_v7 = vadd.f32 %v4862_v60, %v5831_v16  ;;  %v4866_v44 = vadd.f32 %v4865_v14, %v3585_v4  ;;  %4392 = vst [vmem:[%s5845_s22 + $0x28] sm:$0xff] %v4376_v48  }
 0x1a0   : > { %v3655_v37 = vadd.f32 %v4845_v31, %v5831_v16  ;;  %v3670_v43 = vmax.f32 %v3654_v28, 0.0  ;;  %v3667_v10 = vadd.f32 %v4864_v2, %v5831_v16  ;;  %4391 = vst [vmem:[%s5845_s22 + $0x20] sm:$0xff] %v4371_v55   ;;  %v3682_v13 = vmax.f32 %v3666_v1, 0.0 }
 0x1a1   : > { %v3653_v42 = vadd.f32 %v4846_v34, %v5831_v16  ;;  %v3668_v47 = vmax.f32 %v3652_v33, 0.0  ;;  %v3665_v12 = vadd.f32 %v4866_v44, %v5831_v16  ;;  %v3680_v18 = vmax.f32 %v3664_v7, 0.0 }
 0x1a2   : > { %v3671_v45 = vmax.f32 %v3655_v37, 0.0 }
 0x1a3   : > { %v3669_v49 = vmax.f32 %v3653_v42, 0.0  ;;  %v4817_v50 = vpop.f32.mrb[4].mxu0  ;;  %v3681_v20 = vmax.f32 %v3665_v12, 0.0 }
 0x1a4   : > { %v4356_v57 = vpack.c.bf16 %v3671_v45, %v3670_v43  ;;  %v4847_v58 = vadd.f32 %v4817_v50, %v5820_v51  ;;  %v3550_v59 = vpop.f32.mrb[5].mxu0 }
 0x1a5   : > { %v4351_v62 = vpack.c.bf16 %v3669_v49, %v3668_v47  ;;  %v4848_v63 = vadd.f32 %v3550_v59, %v5822_v52  ;;  %v4818_v40 = vpop.f32.mrb[6].mxu0  ;;  %v4381_v23 = vpack.c.bf16 %v3681_v20, %v3680_v18 }
 0x1a6   : > { %4388 = vst [vmem:[%s5845_s22 + $0x8] sm:$0xff] %v4356_v57   ;;  %v3658_v15 = vadd.f32 %v4847_v58, %v5831_v16  ;;  %v4849_v51 = vadd.f32 %v4818_v40, %v5824_v53  ;;  %v3553_v8 = vpop.f32.mrb[7].mxu0  ;;  %v3683_v53 = vmax.f32 %v3667_v10, 0.0 }
 0x1a7   : > { %4352 = vst [vmem:[%s5845_s22] sm:$0xff] %v4351_v62   ;;  %v3656_v6 = vadd.f32 %v4848_v63, %v5831_v16  ;;  %v4850_v52 = vadd.f32 %v3553_v8, %v5826_v36  ;;  %4393 = vst [vmem:[%s5845_s22 + $0x30] sm:$0xff] %v4381_v23  }
 0x1a8   : > { %v3659_v11 = vadd.f32 %v4849_v51, %v5831_v16  ;;  %v3674_v17 = vmax.f32 %v3658_v15, 0.0  ;;  %v4386_v21 = vpack.c.bf16 %v3683_v53, %v3682_v13 }
 0x1a9   : > { %v3657_v14 = vadd.f32 %v4850_v52, %v5831_v16  ;;  %v3672_v0 = vmax.f32 %v3656_v6, 0.0 }
 0x1aa   : > { %v3675_v19 = vmax.f32 %v3659_v11, 0.0  ;;  %4394 = vst [vmem:[%s5845_s22 + $0x38] sm:$0xff] %v4386_v21  }
 0x1ab   : > { %v3673_v36 = vmax.f32 %v3657_v14, 0.0 }
 0x1ac   : > { %v4366_v22 = vpack.c.bf16 %v3675_v19, %v3674_v17 }
 0x1ad   : > { %v4361_v24 = vpack.c.bf16 %v3673_v36, %v3672_v0 }
 0x1ae   : > { %4390 = vst [vmem:[%s5845_s22 + $0x18] sm:$0xff] %v4366_v22  }
 0x1af   : > { %4389 = vst [vmem:[%s5845_s22 + $0x10] sm:$0xff] %v4361_v24  }
 0x1b0 PF: > { %s13_s12 = sadd.s32 1, %s5082_s12  }
 0x1b1   : > { %p10_p4 = scmp.ge.s32.totalorder %s13_s12, 4  }
 0x1b3   :  { %12 = sbr.rel (!%p10_p4) target bundleno = 1 (0x1), region = 72 }

// kernel: loss_gf.10
= control target key start
LH: loop header
LB: loop body
LE: loop exit
PB: predicated region body
PF: predicated region fallthrough
CT: control target
= control target key end

     0   :  { %s3504_s12 = smov 0   ;;  %s3976_s0 = inlined_call_operand.vmem [shape: bf16[4,6,6,128], index: 0, kind: input, shape index: {}]   ;;  %s3977_s1 = inlined_call_operand.vmem [shape: bf16[9,128,128], index: 1, kind: input, shape index: {}]   ;;  %s3978_s2 = inlined_call_operand.vmem [shape: f32[1,128], index: 2, kind: input, shape index: {}]   ;;  %s3979_s3 = inlined_call_operand.vmem [shape: bf16[4,16,128], index: 3, kind: output, shape index: {}]  }
   0x1 LB: > { %s2714_s13 = sadd.s32 4294967295, %s3481_s12   ;;  %p2718_p0 = scmp.ge.s32.totalorder %s3481_s12, 1  ;;  %s3481_s12 = sphi %s3504_s12, %s13_s12  }
   0x2   : > { %p139_p1 = scmp.lt.s32.totalorder %s3481_s12, 3 }
   0x4   : > { %p140_p2 = pnand %p2718_p0, %p139_p1 }
   0x5   : > { %v3379_v0 = vld [vmem:[%s3977_s1] sm:$0xff] (!%p140_p2)   ;;  %s2719_s16 = sshll.u32 (!%p140_p2), %s2714_s13, 1  ;;  %v3381_v2 = vld [vmem:[%s3977_s1 + $0x8] sm:$0xff] (!%p140_p2)   ;;  %v3383_v4 = vld [vmem:[%s3977_s1 + $0x10] sm:$0xff] (!%p140_p2)   ;;  %v225_v10 = vlaneseq (!%p140_p2)  ;;  %v3483_v18 = vmov (!%p140_p2), 1983009808  }
   0x6   : > { %143 = sbr.rel (%p140_p2) target bundleno = 406 (0x196), region = 32  ;;  %v3380_v1 = vld [vmem:[%s3977_s1 + $0x100] sm:$0xff] (!%p140_p2)   ;;  %3157 = vmatprep.subr.bf16.mxu1 (!%p140_p2), %v3379_v0  ;;  %v3382_v3 = vld [vmem:[%s3977_s1 + $0x108] sm:$0xff] (!%p140_p2)   ;;  %p166_p3 = scmp.lt.s32.totalorder (!%p140_p2), %s2719_s16, 3  ;;  %v3384_v5 = vld [vmem:[%s3977_s1 + $0x110] sm:$0xff] (!%p140_p2)   ;;  %v223_v19 = vunpack.c.l.s4 (!%p140_p2), %v3483_v18  ;;  %vm802_vm7 = vcmask (!%p140_p2), 1040384  }
   0x7   : > { %3237 = vmatprep.subr.bf16.mxu0 (!%p140_p2), %v3380_v1  ;;  %3158 = vmatpush3.bf16.msra.mxu1 (!%p140_p2), %v3379_v0  ;;  %v3385_v6 = vld [vmem:[%s3977_s1 + $0x18] sm:$0xff] (!%p140_p2)   ;;  %v3387_v8 = vld [vmem:[%s3977_s1 + $0x20] sm:$0xff] (!%p140_p2)   ;;  %v3389_v11 = vld [vmem:[%s3977_s1 + $0x28] sm:$0xff] (!%p140_p2)   ;;  %v226_v13 = vshrl.u32 (!%p140_p2), %v225_v10, 7  ;;  %vm441_vm0 = vsmask.f32 (!%p140_p2), 1280 }
   0x8   : > { %3238 = vmatpush3.bf16.msra.mxu0 (!%p140_p2), %v3380_v1  ;;  %3159 = vmatprep.subr.bf16.mxu1 (!%p140_p2), %v3381_v2  ;;  %v3386_v7 = vld [vmem:[%s3977_s1 + $0x118] sm:$0xff] (!%p140_p2)   ;;  %v3388_v9 = vld [vmem:[%s3977_s1 + $0x120] sm:$0xff] (!%p140_p2)   ;;  %v3390_v12 = vld [vmem:[%s3977_s1 + $0x128] sm:$0xff] (!%p140_p2)   ;;  %vm442_vm1 = vsmask.f32 (!%p140_p2), 3336  ;;  %v224_v20 = vunpack.c.0.s8 (!%p140_p2), %v223_v19  ;;  %vm803_vm8 = vcmask (!%p140_p2), 1042434  }
   0x9   : > { %3239 = vmatprep.subr.bf16.mxu0 (!%p140_p2), %v3382_v3  ;;  %v3391_v14 = vld [vmem:[%s3977_s1 + $0x30] sm:$0xff] (!%p140_p2)   ;;  %vm444_vm2 = vsmask.f32 (!%p140_p2), 5392  ;;  %vm446_vm3 = vsmask.f32 (!%p140_p2), 7448  ;;  %vm3564_vm4 = vmor (!%p140_p2), %vm441_vm0, %vm442_vm1  ;;  %v3393_v23 = vld [vmem:[%s3977_s1 + $0x38] sm:$0xff] (!%p140_p2)  }
   0xa   : > { %v3392_v15 = vld [vmem:[%s3977_s1 + $0x130] sm:$0xff] (!%p140_p2)   ;;  %v3573_v28 = vsub.s32 (!%p140_p2), %v224_v20, %v226_v13  ;;  %vm3579_vm5 = vmor (!%p140_p2), %vm3564_vm4, %vm444_vm2  ;;  %v3394_v38 = vld [vmem:[%s3977_s1 + $0x138] sm:$0xff] (!%p140_p2)   ;;  %vm805_vm10 = vcmask (!%p140_p2), 1044484   ;;  %vm807_vm12 = vcmask (!%p140_p2), 1046534  }
   0xb   : > { %3160 = vmatpush3.bf16.msra.mxu1 (!%p140_p2), %v3381_v2  ;;  %v3397_v46 = vld [vmem:[%s3977_s1 + $0x40] sm:$0xff] (!%p140_p2)   ;;  %vm3593_vm6 = vmor (!%p140_p2), %vm3579_vm5, %vm446_vm3  ;;  %v3450_v47 = vld [vmem:[%s3977_s1 + $0x1f8] sm:$0xff] (!%p140_p2)  }
   0xc   : > { %3240 = vmatpush3.bf16.msra.mxu0 (!%p140_p2), %v3382_v3  ;;  %3161 = vmatprep.subr.bf16.mxu1 (!%p140_p2), %v3383_v4  ;;  %v3600_v55 = vld [vmem:[%s3977_s1 + $0x140] sm:$0xff] (!%p140_p2)   ;;  %vm804_vm9 = vmor (!%p140_p2), %vm802_vm7, %vm803_vm8 }
   0xd   : > { %s3989_s16 = smov (!%p166_p3, %s2719_s16), 3  ;;  %3241 = vmatprep.subr.bf16.mxu0 %v3384_v5  ;;  %vm806_vm11 = vmor %vm804_vm9, %vm805_vm10 }
   0xe   : > { %s3369_s4 = smul.u32 24, %s3989_s16  ;;  %vm3677_vm13 = vmor %vm806_vm11, %vm807_vm12 }
   0xf   : > { %3162 = vmatpush3.bf16.msra.mxu1 %v3383_v4 }
  0x10   : > { %3242 = vmatpush3.bf16.msra.mxu0 %v3384_v5  ;;  %3163 = vmatprep.subr.bf16.mxu1 %v3385_v6  ;;  %s3551_s14 = scalar_lea.vmem %s3976_s0, %s3369_s4 }
  0x11   : > { %3243 = vmatprep.subr.bf16.mxu0 %v3386_v7  ;;  %v3463_v16 = vld.sshfl [vmem:[%s3551_s14] sm:$0xf pattern:$0x76325410] }
  0x12   : > { %v3464_v17 = vld.sshfl [vmem:[%s3551_s14 + $0x8] sm:$0xf pattern:$0x76325410] }
  0x13   : > { %3164 = vmatpush3.bf16.msra.mxu1 %v3385_v6  ;;  %v2844_v22 = vld.sshfl [vmem:[%s3551_s14 + $0x4] sm:$0x13 pattern:$0x76325410]  ;;  %v236_v45 = vcombine.low %v3463_v16, %v3464_v17 }
  0x14   : > { %3244 = vmatpush3.bf16.msra.mxu0 %v3386_v7  ;;  %3165 = vmatprep.subr.bf16.mxu1 %v3387_v8  ;;  %v2845_v24 = vld.sshfl [vmem:[%s3551_s14 + $0x8] sm:$0x13 pattern:$0x76325410]  ;;  %v1205_v25 = vcombine.high %v2844_v22, %v2844_v22  ;;  %v1263_v26 = vshrl.u32 %v2844_v22, 16  ;;  %v1266_v27 = vshll.u32 %v2844_v22, 16 }
  0x15   : > { %3245 = vmatprep.subr.bf16.mxu0 %v3388_v9  ;;  %v2846_v29 = vld.sshfl [vmem:[%s3551_s14 + $0xc] sm:$0x13 pattern:$0x76325410]  ;;  %v1213_v30 = vcombine.high %v2845_v24, %v2845_v24  ;;  %v1277_v31 = vshrl.u32 %v2845_v24, 16  ;;  %v1280_v32 = vshll.u32 %v2845_v24, 16  ;;  %3173 = vmatprep.mubr.bf16.mxu1 %v236_v45 }
  0x16   : > { %v2847_v34 = vld.sshfl [vmem:[%s3551_s14 + $0x10] sm:$0x13 pattern:$0x76325410]  ;;  %v1221_v35 = vcombine.high %v2846_v29, %v2846_v29  ;;  %v1265_v36 = vrot.slane %v1263_v26, 6  ;;  %v1268_v37 = vrot.slane %v1266_v27, 7 }
  0x17   : > { %3166 = vmatpush3.bf16.msra.mxu1 %v3387_v8  ;;  %v1229_v39 = vcombine.high %v2847_v34, %v2847_v34  ;;  %v1272_v40 = vshll.u32 %v1205_v25, 16  ;;  %v1279_v42 = vrot.slane %v1277_v31, 6  ;;  %v1282_v43 = vrot.slane %v1280_v32, 7 }
  0x18   : > { %3246 = vmatpush3.bf16.msra.mxu0 %v3388_v9  ;;  %3167 = vmatprep.subr.bf16.mxu1 %v3389_v11  ;;  %v1269_v41 = vor.u32 %v1268_v37, %v1265_v36  ;;  %v1286_v44 = vshll.u32 %v1213_v30, 16  ;;  %v1291_v49 = vshrl.u32 %v2846_v29, 16  ;;  %v1294_v50 = vshll.u32 %v2846_v29, 16 }
  0x19   : > { %3247 = vmatprep.subr.bf16.mxu0 %v3390_v12  ;;  %v1274_v48 = vrot.slane %v1272_v40, 7  ;;  %v1283_v52 = vor.u32 %v1282_v43, %v1279_v42  ;;  %v1300_v54 = vshll.u32 %v1221_v35, 16  ;;  %v3465_v56 = vld.sshfl [vmem:[%s3551_s14 + $0x18] sm:$0xf pattern:$0x76325410] }
  0x1a   : > { %v1270_v51 = vrot.slane %v1269_v41, 2  ;;  %v1288_v53 = vrot.slane %v1286_v44, 7  ;;  %v1293_v57 = vrot.slane %v1291_v49, 6  ;;  %v1296_v58 = vrot.slane %v1294_v50, 7 }
  0x1b   : > { %3168 = vmatpush3.bf16.msra.mxu1 %v3389_v11  ;;  %v1305_v59 = vshrl.u32 %v2847_v34, 16  ;;  %v1308_v60 = vshll.u32 %v2847_v34, 16  ;;  %v3466_v61 = vld.sshfl [vmem:[%s3551_s14 + $0x20] sm:$0xf pattern:$0x76325410] }
  0x1c   : > { %3248 = vmatpush3.bf16.msra.mxu0 %v3390_v12  ;;  %3169 = vmatprep.subr.bf16.mxu1 %v3391_v14  ;;  %v3606_v62 = vsel %vm3593_vm6, %v1270_v51, %v1274_v48  ;;  %v1284_v63 = vrot.slane %v1283_v52, 2  ;;  %v1302_v0 = vrot.slane %v1300_v54, 7  ;;  %v1314_v1 = vshll.u32 %v1229_v39, 16  ;;  %v3403_v34 = vld [vmem:[%s3977_s1 + $0x50] sm:$0xff]  }
  0x1d   : > { %3249 = vmatprep.subr.bf16.mxu0 %v3392_v15  ;;  %v1297_v2 = vor.u32 %v1296_v58, %v1293_v57  ;;  %v1307_v3 = vrot.slane %v1305_v59, 6  ;;  %v1310_v4 = vrot.slane %v1308_v60, 7  ;;  %v2848_v5 = vld.sshfl [vmem:[%s3551_s14 + $0x1c] sm:$0x13 pattern:$0x76325410]  ;;  %v253_v16 = vcombine.low %v3465_v56, %v3466_v61 }
  0x1e   : > { %v3611_v6 = vsel %vm3593_vm6, %v1284_v63, %v1288_v53  ;;  %v1316_v7 = vrot.slane %v1314_v1, 7  ;;  %v2849_v8 = vld.sshfl [vmem:[%s3551_s14 + $0x20] sm:$0x13 pattern:$0x76325410]  ;;  %v1237_v9 = vcombine.high %v2848_v5, %v2848_v5  ;;  %v1319_v19 = vshrl.u32 %v2848_v5, 16 }
  0x1f   : > { %3170 = vmatpush3.bf16.msra.mxu1 %v3391_v14  ;;  %v1298_v10 = vrot.slane %v1297_v2, 2  ;;  %v1311_v11 = vor.u32 %v1310_v4, %v1307_v3  ;;  %v1395_v12 = vcombine.low %v3606_v62, %v3611_v6  ;;  %v2850_v13 = vld.sshfl [vmem:[%s3551_s14 + $0x24] sm:$0x13 pattern:$0x76325410]  ;;  %v1245_v14 = vcombine.high %v2849_v8, %v2849_v8  ;;  %v3405_v56 = vld [vmem:[%s3977_s1 + $0x58] sm:$0xff]  }
  0x20   : > { %3250 = vmatpush3.bf16.msra.mxu0 %v3392_v15  ;;  %3171 = vmatprep.subr.bf16.mxu1 %v3393_v23  ;;  %v3401_v15 = vld [vmem:[%s3977_s1 + $0x48] sm:$0xff]   ;;  %v1253_v18 = vcombine.high %v2850_v13, %v2850_v13  ;;  %v1322_v20 = vshll.u32 %v2848_v5, 16  ;;  %v1321_v25 = vrot.slane %v1319_v19, 6  ;;  %v1328_v27 = vshll.u32 %v1237_v9, 16  ;;  %v3407_v61 = vld [vmem:[%s3977_s1 + $0x60] sm:$0xff]  }
  0x21   : > { %3251 = vmatprep.subr.bf16.mxu0 %v3394_v38  ;;  %v2851_v17 = vld.sshfl [vmem:[%s3551_s14 + $0x28] sm:$0x13 pattern:$0x76325410]  ;;  %v3624_v21 = vsel %vm3593_vm6, %v1298_v10, %v1302_v0  ;;  %v1312_v22 = vrot.slane %v1311_v11, 2  ;;  %v1333_v29 = vshrl.u32 %v2849_v8, 16 }
  0x22   : > { %v1261_v24 = vcombine.high %v2851_v17, %v2851_v17  ;;  %v1324_v26 = vrot.slane %v1322_v20, 7  ;;  %v1336_v31 = vshll.u32 %v2849_v8, 16  ;;  %v1342_v32 = vshll.u32 %v1245_v14, 16 }
  0x23   : > { %3172 = vmatpush3.bf16.msra.mxu1 %v3393_v23  ;;  %v1403_v23 = vrot.slane %v1395_v12, %v3573_v28  ;;  %v1317_v30 = vsel %vm3593_vm6, %v1312_v22, %v1316_v7  ;;  %v1347_v33 = vshrl.u32 %v2850_v13, 16  ;;  %v1330_v37 = vrot.slane %v1328_v27, 7  ;;  %v3409_v7 = vld [vmem:[%s3977_s1 + $0x68] sm:$0xff]  }
  0x24   : > { %3252 = vmatpush3.bf16.msra.mxu0 %v3394_v38  ;;  %3177 = vmatprep.subr.bf16.mxu1 %v3397_v46  ;;  %v1396_v35 = vcombine.low %v3624_v21, %v1317_v30  ;;  %v1325_v36 = vor.u32 %v1324_v26, %v1321_v25  ;;  %v1335_v38 = vrot.slane %v1333_v29, 6  ;;  %v1338_v39 = vrot.slane %v1336_v31, 7  ;;  %v2732_v11 = vld.sshfl [vmem:[%s3551_s14] sm:$0x13 pattern:$0x76325410] }
  0x25   : > { %3257 = vmatprep.subr.bf16.mxu0 %v3600_v55  ;;  %v1344_v40 = vrot.slane %v1342_v32, 7  ;;  %v1349_v41 = vrot.slane %v1347_v33, 6  ;;  %v1350_v42 = vshll.u32 %v2850_v13, 16  ;;  %v1356_v45 = vshll.u32 %v1253_v18, 16  ;;  %v3402_v18 = vld [vmem:[%s3977_s1 + $0x148] sm:$0xff]   ;;  %v3455_v25 = vld [vmem:[%s3977_s1 + $0x200] sm:$0xff]  }
  0x26   : > { %3174 = vmatmul.mubr.bf16.vlgmr.msra.gmra.mrb[0].mxu1 %v253_v16  ;;  %v1410_v43 = vrot.slane %v1396_v35, %v3573_v28  ;;  %v1326_v44 = vrot.slane %v1325_v36, 2  ;;  %v1339_v48 = vor.u32 %v1338_v39, %v1335_v38  ;;  %v1364_v50 = vshll.u32 %v2851_v17, 16  ;;  %v2885_v26 = vld.sshfl [vmem:[%s3551_s14 + $0x8] sm:$0x12 pattern:$0x76325410] }
  0x27   : > { %3178 = vmatpush3.bf16.msra.mxu1 %v3397_v46  ;;  %v1361_v46 = vshrl.u32 %v2851_v17, 16  ;;  %v1352_v49 = vrot.slane %v1350_v42, 7  ;;  %v1370_v51 = vshll.u32 %v1261_v24, 16  ;;  %v1358_v59 = vrot.slane %v1356_v45, 7  ;;  %v3413_v45 = vld [vmem:[%s3977_s1 + $0x78] sm:$0xff]  }
  0x28   : > { %3179 = vmatprep.subr.bf16.mxu1 %v3401_v15  ;;  %v1411_v52 = vcombine.low %v1403_v23, %v1410_v43  ;;  %v3636_v53 = vsel %vm3593_vm6, %v1326_v44, %v1330_v37  ;;  %v1340_v57 = vrot.slane %v1339_v48, 2  ;;  %v1366_v60 = vrot.slane %v1364_v50, 7  ;;  %v2884_v17 = vld.sshfl [vmem:[%s3551_s14 + $0x4] sm:$0x12 pattern:$0x76325410] }
  0x29   : > { %v1363_v54 = vrot.slane %v1361_v46, 6  ;;  %v1353_v58 = vor.u32 %v1352_v49, %v1349_v41  ;;  %v1372_v2 = vrot.slane %v1370_v51, 7  ;;  %v582_v12 = vcombine.low %v3611_v6, %v3624_v21  ;;  %v3411_v23 = vld [vmem:[%s3977_s1 + $0x70] sm:$0xff]  }
  0x2a   : > { %3253 = vmatprep.mubr.bf16.mxu0 %v1411_v52  ;;  %v3646_v63 = vsel %vm3593_vm6, %v1340_v57, %v1344_v40  ;;  %v384_v13 = vcombine.high %v2732_v11, %v2732_v11  ;;  %v449_v14 = vshrl.u32 %v2732_v11, 16  ;;  %v1559_v6 = vcombine.high %v2884_v17, %v2884_v17  ;;  %v2886_v31 = vld.sshfl [vmem:[%s3551_s14 + $0xc] sm:$0x12 pattern:$0x76325410] }
  0x2b   : > { %3180 = vmatpush3.bf16.msra.mxu1 %v3401_v15  ;;  %v1354_v0 = vrot.slane %v1353_v58, 2  ;;  %v1367_v1 = vor.u32 %v1366_v60, %v1363_v54  ;;  %v1412_v3 = vcombine.low %v3636_v53, %v3646_v63  ;;  %v452_v15 = vshll.u32 %v2732_v11, 16  ;;  %v2887_v35 = vld.sshfl [vmem:[%s3551_s14 + $0x10] sm:$0x12 pattern:$0x76325410] }
  0x2c   : > { %3181 = vmatprep.subr.bf16.mxu1 %v3403_v34  ;;  %v451_v19 = vrot.slane %v449_v14, 6  ;;  %v458_v22 = vshll.u32 %v384_v13, 16  ;;  %v3675_v24 = vrot.slane %v582_v12, %v3573_v28  ;;  %v2892_v27 = vrot.slane %v2884_v17, 9  ;;  %v3415_v11 = vld [vmem:[%s3977_s1 + $0x80] sm:$0xff]  }
  0x2d   : > { %v3652_v4 = vsel %vm3593_vm6, %v1354_v0, %v1358_v59  ;;  %v1368_v5 = vrot.slane %v1367_v1, 2  ;;  %v1420_v10 = vrot.slane %v1412_v3, %v3573_v28  ;;  %v454_v20 = vrot.slane %v452_v15, 7  ;;  %v2736_v44 = vld.sshfl [vmem:[%s3551_s14 + $0x18] sm:$0x13 pattern:$0x76325410] }
  0x2e   : > { %v460_v30 = vrot.slane %v458_v22, 7  ;;  %v1567_v32 = vcombine.high %v2885_v26, %v2885_v26  ;;  %v1618_v33 = vrot.slane %v1559_v6, 7  ;;  %v1575_v36 = vcombine.high %v2886_v31, %v2886_v31  ;;  %v2890_v3 = vld.sshfl [vmem:[%s3551_s14 + $0x24] sm:$0x12 pattern:$0x76325410] }
  0x2f   : > { %3182 = vmatpush3.bf16.msra.mxu1 %v3403_v34  ;;  %v1373_v8 = vsel %vm3593_vm6, %v1368_v5, %v1372_v2  ;;  %v455_v29 = vor.u32 %v454_v20, %v451_v19  ;;  %v3404_v34 = vld [vmem:[%s3977_s1 + $0x150] sm:$0xff]   ;;  %v2893_v37 = vrot.slane %v2885_v26, 9  ;;  %v2894_v38 = vrot.slane %v2886_v31, 9  ;;  %v3406_v5 = vld [vmem:[%s3977_s1 + $0x158] sm:$0xff]  }
  0x30   : > { %3183 = vmatprep.subr.bf16.mxu1 %v3405_v56  ;;  %v1413_v9 = vcombine.low %v3652_v4, %v1373_v8  ;;  %v599_v39 = vcombine.low %v3646_v63, %v3652_v4  ;;  %v1583_v41 = vcombine.high %v2887_v35, %v2887_v35  ;;  %v3692_v42 = vsel %vm3677_vm13, %v2892_v27, %v1618_v33 }
  0x31   : > { %v456_v40 = vrot.slane %v455_v29, 2  ;;  %v1622_v43 = vrot.slane %v1567_v32, 7  ;;  %v1626_v46 = vrot.slane %v1575_v36, 7  ;;  %v2895_v48 = vrot.slane %v2887_v35, 9 }
  0x32   : > { %v1427_v16 = vrot.slane %v1413_v9, %v3573_v28  ;;  %v505_v49 = vshrl.u32 %v2736_v44, 16  ;;  %v1630_v52 = vrot.slane %v1583_v41, 7  ;;  %v508_v54 = vshll.u32 %v2736_v44, 16  ;;  %v3412_v41 = vld [vmem:[%s3977_s1 + $0x170] sm:$0xff]  }
  0x33   : > { %3184 = vmatpush3.bf16.msra.mxu1 %v3405_v56  ;;  %v461_v50 = vsel %vm3593_vm6, %v456_v40, %v460_v30  ;;  %v3702_v51 = vsel %vm3677_vm13, %v2893_v37, %v1622_v43  ;;  %v2888_v56 = vld.sshfl [vmem:[%s3551_s14 + $0x1c] sm:$0x12 pattern:$0x76325410]  ;;  %v3708_v58 = vsel %vm3677_vm13, %v2894_v38, %v1626_v46  ;;  %v1607_v15 = vcombine.high %v2890_v3, %v2890_v3  ;;  %v3417_v38 = vld [vmem:[%s3977_s1 + $0x88] sm:$0xff]   ;;  %v3419_v43 = vld [vmem:[%s3977_s1 + $0x90] sm:$0xff]  }
  0x34   : > { %3185 = vmatprep.subr.bf16.mxu1 %v3407_v61  ;;  %v1428_v21 = vcombine.low %v1420_v10, %v1427_v16  ;;  %v581_v57 = vcombine.low %v461_v50, %v3606_v62  ;;  %v1669_v59 = vcombine.low %v3692_v42, %v3702_v51  ;;  %v507_v60 = vrot.slane %v505_v49, 6  ;;  %v2891_v10 = vld.sshfl [vmem:[%s3551_s14 + $0x28] sm:$0x12 pattern:$0x76325410]  ;;  %v3408_v16 = vld [vmem:[%s3977_s1 + $0x160] sm:$0xff]  }
  0x35   : > { %v3715_v0 = vsel %vm3677_vm13, %v2895_v48, %v1630_v52  ;;  %v510_v1 = vrot.slane %v508_v54, 7  ;;  %v1591_v62 = vcombine.high %v2888_v56, %v2888_v56  ;;  %v1615_v19 = vcombine.high %v2891_v10, %v2891_v10  ;;  %v2764_v46 = vld.sshfl [vmem:[%s3551_s14] sm:$0x12 pattern:$0x76325410]  ;;  %v3414_v48 = vld [vmem:[%s3977_s1 + $0x178] sm:$0xff]  }
  0x36   : > { %3254 = vmatmul.mubr.bf16.vlgmr.msra.gmra.mrb[0].mxu0 %v1428_v21  ;;  %v1670_v8 = vcombine.low %v3708_v58, %v3715_v0  ;;  %v1677_v9 = vrot.slane %v1669_v59, %v3573_v28  ;;  %v2896_v20 = vrot.slane %v2888_v56, 9  ;;  %v1642_v29 = vrot.slane %v1607_v15, 7  ;;  %v3467_v50 = vld.sshfl [vmem:[%s3551_s14 + $0x8] sm:$0xf pattern:$0x76325410] }
  0x37   : > { %3186 = vmatpush3.bf16.msra.mxu1 %v3407_v61  ;;  %3258 = vmatpush3.bf16.msra.mxu0 %v3600_v55  ;;  %v416_v55 = vcombine.high %v2736_v44, %v2736_v44  ;;  %v2889_v61 = vld.sshfl [vmem:[%s3551_s14 + $0x20] sm:$0x12 pattern:$0x76325410]  ;;  %v511_v12 = vor.u32 %v510_v1, %v507_v60  ;;  %v1634_v27 = vrot.slane %v1591_v62, 7  ;;  %v2899_v31 = vrot.slane %v2891_v10, 9 }
  0x38   : > { %3187 = vmatprep.subr.bf16.mxu1 %v3409_v7  ;;  %3259 = vmatprep.subr.bf16.mxu0 %v3402_v18  ;;  %v1599_v14 = vcombine.high %v2889_v61, %v2889_v61  ;;  %v2897_v6 = vrot.slane %v2889_v61, 9  ;;  %v1646_v32 = vrot.slane %v1615_v19, 7  ;;  %v2476_v36 = vcombine.low %v3702_v51, %v3708_v58  ;;  %v3421_v51 = vld [vmem:[%s3977_s1 + $0x98] sm:$0xff]   ;;  %v3416_v60 = vld [vmem:[%s3977_s1 + $0x180] sm:$0xff]  }
  0x39   : > { %v514_v2 = vshll.u32 %v416_v55, 16  ;;  %v512_v22 = vrot.slane %v511_v12, 2  ;;  %v745_v55 = vcombine.high %v2764_v46, %v2764_v46  ;;  %v2772_v49 = vrot.slane %v2764_v46, 9  ;;  %v3420_v12 = vld [vmem:[%s3977_s1 + $0x190] sm:$0xff]   ;;  %v3422_v15 = vld [vmem:[%s3977_s1 + $0x198] sm:$0xff]  }
  0x3a   : > { %v1638_v21 = vrot.slane %v1599_v14, 7  ;;  %v3766_v40 = vsel %vm3677_vm13, %v2899_v31, %v1646_v32  ;;  %v3468_v54 = vld.sshfl [vmem:[%s3551_s14 + $0x10] sm:$0xf pattern:$0x76325410]  ;;  %v3797_v1 = vrot.slane %v2476_v36, %v3573_v28 }
  0x3b   : > { %3188 = vmatpush3.bf16.msra.mxu1 %v3409_v7  ;;  %3260 = vmatpush3.bf16.msra.mxu0 %v3402_v18  ;;  %v589_v7 = vrot.slane %v581_v57, %v3573_v28  ;;  %v516_v13 = vrot.slane %v514_v2, 7  ;;  %v1684_v18 = vrot.slane %v1670_v8, %v3573_v28  ;;  %v811_v52 = vrot.slane %v745_v55, 7  ;;  %v2768_v58 = vld.sshfl [vmem:[%s3551_s14 + $0x18] sm:$0x12 pattern:$0x76325410] }
  0x3c   : > { %3189 = vmatprep.subr.bf16.mxu1 %v3411_v23  ;;  %3261 = vmatprep.subr.bf16.mxu0 %v3404_v34  ;;  %v3423_v2 = vld [vmem:[%s3977_s1 + $0xa0] sm:$0xff]   ;;  %v1864_v8 = vcombine.low %v3467_v50, %v3468_v54  ;;  %v3427_v14 = vld [vmem:[%s3977_s1 + $0xb0] sm:$0xff]  }
  0x3d   : > { %v597_v17 = vcombine.low %v589_v7, %v3675_v24  ;;  %v1685_v26 = vcombine.low %v1677_v9, %v1684_v18  ;;  %v517_v30 = vsel %vm3593_vm6, %v512_v22, %v516_v13  ;;  %v613_v24 = vrot.slane %v599_v39, %v3573_v28  ;;  %v3418_v7 = vld [vmem:[%s3977_s1 + $0x188] sm:$0xff]   ;;  %v3429_v18 = vld [vmem:[%s3977_s1 + $0xb8] sm:$0xff]   ;;  %v2966_v32 = vld.sshfl [vmem:[%s3551_s14 + $0x10] sm:$0x13 pattern:$0x76325410] }
  0x3e   : > { %v598_v33 = vcombine.low %v517_v30, %v3636_v53  ;;  %v3410_v53 = vld [vmem:[%s3977_s1 + $0x168] sm:$0xff]   ;;  %v3762_v39 = vsel %vm3677_vm13, %v2896_v20, %v1634_v27  ;;  %v812_v59 = vsel %vm3677_vm13, %v2772_v49, %v811_v52  ;;  %v2776_v9 = vrot.slane %v2768_v58, 9  ;;  %v2967_v36 = vld.sshfl [vmem:[%s3551_s14 + $0x14] sm:$0x13 pattern:$0x76325410] }
  0x3f   : > { %3190 = vmatpush3.bf16.msra.mxu1 %v3411_v23  ;;  %3262 = vmatpush3.bf16.msra.mxu0 %v3404_v34  ;;  %v2898_v23 = vrot.slane %v2890_v3, 9  ;;  %v3743_v34 = vsel %vm3677_vm13, %v2897_v6, %v1638_v21  ;;  %v862_v61 = vcombine.low %v812_v59, %v3692_v42  ;;  %v777_v3 = vcombine.high %v2768_v58, %v2768_v58  ;;  %v3469_v22 = vld.sshfl [vmem:[%s3551_s14 + $0x4] sm:$0xf pattern:$0x76325410] }
  0x40   : > { %3191 = vmatprep.subr.bf16.mxu1 %v3413_v45  ;;  %3263 = vmatprep.subr.bf16.mxu0 %v3406_v5  ;;  %v606_v4 = vrot.slane %v598_v33, %v3573_v28  ;;  %v1686_v44 = vcombine.low %v3762_v39, %v3743_v34  ;;  %v3470_v6 = vld.sshfl [vmem:[%s3551_s14 + $0xc] sm:$0xf pattern:$0x76325410]  ;;  %v2098_v49 = vshrl.u32 %v2966_v32, 16  ;;  %v2101_v52 = vshll.u32 %v2966_v32, 16 }
  0x41   : > { %3193 = vmatprep.mubr.bf16.mxu1 %v597_v17  ;;  %3273 = vmatprep.mubr.bf16.mxu0 %v1685_v26  ;;  %v3747_v35 = vsel %vm3677_vm13, %v2898_v23, %v1642_v29  ;;  %v827_v10 = vrot.slane %v777_v3, 7  ;;  %v3424_v17 = vld [vmem:[%s3977_s1 + $0x1a0] sm:$0xff]   ;;  %v3426_v21 = vld [vmem:[%s3977_s1 + $0x1a8] sm:$0xff]   ;;  %v1057_v31 = vcombine.low %v3469_v22, %v3470_v6  ;;  %v2112_v58 = vshrl.u32 %v2967_v36, 16 }
  0x42   : > { %v2493_v63 = vcombine.low %v3743_v34, %v3747_v35  ;;  %v614_v37 = vcombine.low %v606_v4, %v613_v24  ;;  %v1694_v56 = vrot.slane %v1686_v44, %v3573_v28  ;;  %v3431_v23 = vld [vmem:[%s3977_s1 + $0xc0] sm:$0xff]   ;;  %v2964_v26 = vld.sshfl [vmem:[%s3551_s14 + $0x8] sm:$0x13 pattern:$0x76325410]  ;;  %v2115_v59 = vshll.u32 %v2967_v36, 16 }
  0x43   : > { %3192 = vmatpush3.bf16.msra.mxu1 %v3413_v45  ;;  %3264 = vmatpush3.bf16.msra.mxu0 %v3406_v5  ;;  %v1687_v45 = vcombine.low %v3747_v35, %v3766_v40  ;;  %v870_v5 = vrot.slane %v862_v61, %v3573_v28  ;;  %v828_v13 = vsel %vm3677_vm13, %v2776_v9, %v827_v10  ;;  %v3437_v29 = vld [vmem:[%s3977_s1 + $0xc8] sm:$0xff]   ;;  %v2070_v34 = vshrl.u32 %v2964_v26, 16  ;;  %v3471_v44 = vld.sshfl [vmem:[%s3551_s14 + $0x20] sm:$0xf pattern:$0x76325410] }
  0x44   : > { %3197 = vmatprep.subr.bf16.mxu1 %v3415_v11  ;;  %3265 = vmatprep.subr.bf16.mxu0 %v3408_v16  ;;  %v3833_v20 = vrot.slane %v2493_v63, %v3573_v28  ;;  %v2965_v30 = vld.sshfl [vmem:[%s3551_s14 + $0xc] sm:$0x13 pattern:$0x76325410]  ;;  %v2012_v24 = vcombine.high %v2964_v26, %v2964_v26  ;;  %v2073_v35 = vshll.u32 %v2964_v26, 16  ;;  %v2028_v63 = vcombine.high %v2966_v32, %v2966_v32 }
  0x45   : > { %v1701_v57 = vrot.slane %v1687_v45, %v3573_v28  ;;  %v878_v42 = vcombine.low %v870_v5, %v3797_v1  ;;  %v2020_v33 = vcombine.high %v2965_v30, %v2965_v30  ;;  %v2084_v4 = vshrl.u32 %v2965_v30, 16  ;;  %v3472_v45 = vld.sshfl [vmem:[%s3551_s14 + $0x28] sm:$0xf pattern:$0x76325410] }
  0x46   : > { %3194 = vmatmul.mubr.bf16.vlgmr.msra.gmra.mrb[0].mxu1 %v614_v37  ;;  %v3428_v37 = vld [vmem:[%s3977_s1 + $0x1b0] sm:$0xff]   ;;  %v2107_v54 = vshll.u32 %v2028_v63, 16  ;;  %v2103_v3 = vrot.slane %v2101_v52, 7  ;;  %v2114_v5 = vrot.slane %v2112_v58, 6  ;;  %v3438_v26 = vld [vmem:[%s3977_s1 + $0x1c8] sm:$0xff]  }
  0x47   : > { %3266 = vmatpush3.bf16.msra.mxu0 %v3408_v16  ;;  %3198 = vmatpush3.bf16.msra.mxu1 %v3415_v11  ;;  %v1702_v62 = vcombine.low %v1694_v56, %v1701_v57  ;;  %v3425_v11 = vld [vmem:[%s3977_s1 + $0xa8] sm:$0xff]   ;;  %v879_v16 = vcombine.low %v828_v13, %v3762_v39  ;;  %v2072_v39 = vrot.slane %v2070_v34, 6  ;;  %v2093_v55 = vshll.u32 %v2020_v33, 16  ;;  %v3439_v56 = vld [vmem:[%s3977_s1 + $0xd0] sm:$0xff]  }
  0x48   : > { %3267 = vmatprep.subr.bf16.mxu0 %v3410_v53  ;;  %3199 = vmatprep.subr.bf16.mxu1 %v3417_v38  ;;  %v2100_v57 = vrot.slane %v2098_v49, 6  ;;  %v2968_v22 = vld.sshfl [vmem:[%s3551_s14 + $0x20] sm:$0x13 pattern:$0x76325410] }
  0x49   : > { %3213 = vmatprep.mubr.bf16.mxu1 %v878_v42  ;;  %v887_v19 = vrot.slane %v879_v16, %v3573_v28  ;;  %v2971_v32 = vld.sshfl [vmem:[%s3551_s14 + $0x2c] sm:$0x13 pattern:$0x76325410]  ;;  %v2126_v34 = vshrl.u32 %v2968_v22, 16 }
  0x4a   : > { %v2104_v10 = vor.u32 %v2103_v3, %v2100_v57  ;;  %v3473_v3 = vld.sshfl [vmem:[%s3551_s14 + $0x1c] sm:$0xf pattern:$0x76325410] }
  0x4b   : > { %3268 = vmatpush3.bf16.msra.mxu0 %v3410_v53  ;;  %3200 = vmatpush3.bf16.msra.mxu1 %v3417_v38  ;;  %v895_v27 = vcombine.low %v887_v19, %v3833_v20  ;;  %v2079_v53 = vshll.u32 %v2012_v24, 16  ;;  %v2036_v38 = vcombine.high %v2967_v36, %v2967_v36  ;;  %v3445_v36 = vld [vmem:[%s3977_s1 + $0xe8] sm:$0xff]  }
  0x4c   : > { %3269 = vmatprep.subr.bf16.mxu0 %v3412_v41  ;;  %3201 = vmatprep.subr.bf16.mxu1 %v3419_v43  ;;  %v2105_v16 = vrot.slane %v2104_v10, 2 }
  0x4d   : > { %v2081_v46 = vrot.slane %v2079_v53, 7  ;;  %v2121_v42 = vshll.u32 %v2036_v38, 16 }
  0x4f   : > { %3270 = vmatpush3.bf16.msra.mxu0 %v3412_v41  ;;  %3202 = vmatpush3.bf16.msra.mxu1 %v3419_v43  ;;  %v2075_v41 = vrot.slane %v2073_v35, 7  ;;  %v2087_v43 = vshll.u32 %v2965_v30, 16  ;;  %v2129_v35 = vshll.u32 %v2968_v22, 16 }
  0x50   : > { %3271 = vmatprep.subr.bf16.mxu0 %v3414_v48  ;;  %3203 = vmatprep.subr.bf16.mxu1 %v3421_v51 }
  0x51   : > { %v2076_v50 = vor.u32 %v2075_v41, %v2072_v39  ;;  %v2168_v39 = vshrl.u32 %v2971_v32, 16  ;;  %v2171_v41 = vshll.u32 %v2971_v32, 16  ;;  %v2131_v49 = vrot.slane %v2129_v35, 7 }
  0x53   : > { %3272 = vmatpush3.bf16.msra.mxu0 %v3414_v48  ;;  %3204 = vmatpush3.bf16.msra.mxu1 %v3421_v51  ;;  %v2086_v48 = vrot.slane %v2084_v4, 6  ;;  %v2089_v51 = vrot.slane %v2087_v43, 7  ;;  %v3440_v43 = vld [vmem:[%s3977_s1 + $0x1d0] sm:$0xff]  }
  0x54   : > { %3277 = vmatprep.subr.bf16.mxu0 %v3416_v60  ;;  %3205 = vmatprep.subr.bf16.mxu1 %v3423_v2 }
  0x55   : > { %v2090_v61 = vor.u32 %v2089_v51, %v2086_v48  ;;  %v2068_v48 = vcombine.high %v2971_v32, %v2971_v32  ;;  %v3447_v51 = vld [vmem:[%s3977_s1 + $0xf0] sm:$0xff]  }
  0x56   : > { %3274 = vmatmul.mubr.bf16.vlgmr.msra.gmra.mrb[0].mxu0 %v1702_v62  ;;  %v3430_v62 = vld [vmem:[%s3977_s1 + $0x1b8] sm:$0xff]  }
  0x57   : > { %3278 = vmatpush3.bf16.msra.mxu0 %v3416_v60  ;;  %3293 = vmatprep.mubr.bf16.mxu0 %v1864_v8  ;;  %v2077_v60 = vrot.slane %v2076_v50, 2  ;;  %v2091_v9 = vrot.slane %v2090_v61, 2  ;;  %v3011_v50 = vld.sshfl [vmem:[%s3551_s14 + $0x2c] sm:$0x12 pattern:$0x76325410] }
  0x58   : > { %3279 = vmatprep.subr.bf16.mxu0 %v3418_v7  ;;  %3206 = vmatpush3.bf16.msra.mxu1 %v3423_v2  ;;  %v2095_v2 = vrot.slane %v2093_v55, 7  ;;  %v2128_v55 = vrot.slane %v2126_v34, 6  ;;  %v2422_v57 = vcombine.high %v3011_v50, %v3011_v50  ;;  %v3019_v61 = vrot.slane %v3011_v50, 9  ;;  %v3462_v50 = vld [vmem:[%s3977_s1 + $0x238] sm:$0xff]  }
  0x59   : > { %3207 = vmatprep.subr.bf16.mxu1 %v3425_v11  ;;  %v2082_v8 = vsel %vm3593_vm6, %v2077_v60, %v2081_v46  ;;  %v2173_v60 = vrot.slane %v2171_v41, 7 }
  0x5b   : > { %3280 = vmatpush3.bf16.msra.mxu0 %v3418_v7  ;;  %v2117_v7 = vrot.slane %v2115_v59, 7  ;;  %v2170_v59 = vrot.slane %v2168_v39, 6 }
  0x5c   : > { %3281 = vmatprep.subr.bf16.mxu0 %v3420_v12  ;;  %3208 = vmatpush3.bf16.msra.mxu1 %v3425_v11  ;;  %v2109_v11 = vrot.slane %v2107_v54, 7 }
  0x5d   : > { %3209 = vmatprep.subr.bf16.mxu1 %v3427_v14  ;;  %v2118_v13 = vor.u32 %v2117_v7, %v2114_v5  ;;  %v2453_v5 = vrot.slane %v2422_v57, 7  ;;  %v2132_v7 = vor.u32 %v2131_v49, %v2128_v55  ;;  %v3460_v55 = vld [vmem:[%s3977_s1 + $0x228] sm:$0xff]   ;;  %v3461_v49 = vld [vmem:[%s3977_s1 + $0x230] sm:$0xff]  }
  0x5e   : > { %v2110_v6 = vsel %vm3593_vm6, %v2105_v16, %v2109_v11  ;;  %v2177_v16 = vshll.u32 %v2068_v48, 16  ;;  %v3458_v48 = vld [vmem:[%s3977_s1 + $0x218] sm:$0xff]  }
  0x5f   : > { %3282 = vmatpush3.bf16.msra.mxu0 %v3420_v12  ;;  %v3441_v12 = vld [vmem:[%s3977_s1 + $0xd8] sm:$0xff]  }
  0x60   : > { %3283 = vmatprep.subr.bf16.mxu0 %v3422_v15  ;;  %3210 = vmatpush3.bf16.msra.mxu1 %v3427_v14  ;;  %v2123_v14 = vrot.slane %v2121_v42, 7 }
  0x61   : > { %3211 = vmatprep.subr.bf16.mxu1 %v3429_v18 }
  0x63   : > { %3284 = vmatpush3.bf16.msra.mxu0 %v3422_v15  ;;  %v2096_v15 = vsel %vm3593_vm6, %v2091_v9, %v2095_v2  ;;  %v3442_v2 = vld [vmem:[%s3977_s1 + $0x1d8] sm:$0xff]  }
  0x64   : > { %3285 = vmatprep.subr.bf16.mxu0 %v3424_v17  ;;  %3212 = vmatpush3.bf16.msra.mxu1 %v3429_v18  ;;  %v2119_v18 = vrot.slane %v2118_v13, 2  ;;  %v2202_v19 = vcombine.low %v2082_v8, %v2096_v15  ;;  %v3007_v8 = vld.sshfl [vmem:[%s3551_s14 + $0x14] sm:$0x12 pattern:$0x76325410]  ;;  %v3449_v9 = vld [vmem:[%s3977_s1 + $0xf8] sm:$0xff]   ;;  %v2454_v13 = vsel %vm3677_vm13, %v3019_v61, %v2453_v5  ;;  %v2174_v15 = vor.u32 %v2173_v60, %v2170_v59 }
  0x65   : > { %3217 = vmatprep.subr.bf16.mxu1 %v3431_v23 }
  0x66   : > { %v2210_v24 = vrot.slane %v2202_v19, %v3573_v28  ;;  %v2390_v19 = vcombine.high %v3007_v8, %v3007_v8 }
  0x67   : > { %3286 = vmatpush3.bf16.msra.mxu0 %v3424_v17  ;;  %3214 = vmatmul.mubr.bf16.vlgmr.msra.gmra.mrb[0].mxu1 %v895_v27  ;;  %v3434_v17 = vld [vmem:[%s3977_s1 + $0x1c0] sm:$0xff]  }
  0x68   : > { %3287 = vmatprep.subr.bf16.mxu0 %v3426_v21  ;;  %3218 = vmatpush3.bf16.msra.mxu1 %v3431_v23  ;;  %v1881_v23 = vcombine.low %v3471_v44, %v3472_v45  ;;  %v3443_v27 = vld [vmem:[%s3977_s1 + $0xe0] sm:$0xff]   ;;  %v2044_v44 = vcombine.high %v2968_v22, %v2968_v22  ;;  %v2437_v34 = vrot.slane %v2390_v19, 7 }
  0x69   : > { %3233 = vmatprep.mubr.bf16.mxu1 %v1057_v31  ;;  %3219 = vmatprep.subr.bf16.mxu1 %v3437_v29  ;;  %v2970_v31 = vld.sshfl [vmem:[%s3551_s14 + $0x28] sm:$0x13 pattern:$0x76325410] }
  0x6a   : > { %v2154_v4 = vshrl.u32 %v2970_v31, 16  ;;  %v2157_v38 = vshll.u32 %v2970_v31, 16  ;;  %v2060_v46 = vcombine.high %v2970_v31, %v2970_v31  ;;  %v2135_v42 = vshll.u32 %v2044_v44, 16  ;;  %v3446_v31 = vld [vmem:[%s3977_s1 + $0x1e8] sm:$0xff]  }
  0x6b   : > { %3288 = vmatpush3.bf16.msra.mxu0 %v3426_v21  ;;  %v2969_v21 = vld.sshfl [vmem:[%s3551_s14 + $0x24] sm:$0x13 pattern:$0x76325410] }
  0x6c   : > { %3289 = vmatprep.subr.bf16.mxu0 %v3428_v37  ;;  %3220 = vmatpush3.bf16.msra.mxu1 %v3437_v29  ;;  %v2124_v29 = vsel %vm3593_vm6, %v2119_v18, %v2123_v14  ;;  %v2140_v63 = vshrl.u32 %v2969_v21, 16  ;;  %v2143_v53 = vshll.u32 %v2969_v21, 16  ;;  %v2052_v45 = vcombine.high %v2969_v21, %v2969_v21  ;;  %v3444_v18 = vld [vmem:[%s3977_s1 + $0x1e0] sm:$0xff]  }
  0x6d   : > { %3221 = vmatprep.subr.bf16.mxu1 %v3439_v56  ;;  %v2203_v30 = vcombine.low %v2110_v6, %v2124_v29  ;;  %v2159_v58 = vrot.slane %v2157_v38, 7  ;;  %v2137_v22 = vrot.slane %v2135_v42, 7  ;;  %v2133_v21 = vrot.slane %v2132_v7, 2 }
  0x6e   : > { %v2142_v52 = vrot.slane %v2140_v63, 6  ;;  %v2145_v54 = vrot.slane %v2143_v53, 7  ;;  %v2149_v11 = vshll.u32 %v2052_v45, 16  ;;  %v3448_v53 = vld [vmem:[%s3977_s1 + $0x1f0] sm:$0xff]  }
  0x6f   : > { %3290 = vmatpush3.bf16.msra.mxu0 %v3428_v37  ;;  %v2217_v33 = vrot.slane %v2203_v30, %v3573_v28  ;;  %v2175_v30 = vrot.slane %v2174_v15, 2  ;;  %v2138_v35 = vsel %vm3593_vm6, %v2133_v21, %v2137_v22 }
  0x70   : > { %3291 = vmatprep.subr.bf16.mxu0 %v3430_v62  ;;  %3222 = vmatpush3.bf16.msra.mxu1 %v3439_v56  ;;  %v2156_v56 = vrot.slane %v2154_v4, 6  ;;  %v2146_v10 = vor.u32 %v2145_v54, %v2142_v52 }
  0x71   : > { %3223 = vmatprep.subr.bf16.mxu1 %v3441_v12  ;;  %v2218_v37 = vcombine.low %v2210_v24, %v2217_v33  ;;  %v3015_v33 = vrot.slane %v3007_v8, 9 }
  0x72   : > { %v2160_v14 = vor.u32 %v2159_v58, %v2156_v56  ;;  %v3044_v58 = vld [vmem:[%s3978_s2] ss:$0 sm:$0xff] }
  0x73   : > { %3292 = vmatpush3.bf16.msra.mxu0 %v3430_v62  ;;  %v3474_v62 = vld.sshfl [vmem:[%s3551_s14 + $0x24] sm:$0xf pattern:$0x76325410]  ;;  %v2438_v4 = vsel %vm3677_vm13, %v3015_v33, %v2437_v34  ;;  %s3051_s14 = sshll.u32 %s3989_s16, 3 }
  0x74   : > { %3297 = vmatprep.subr.bf16.mxu0 %v3434_v17  ;;  %3224 = vmatpush3.bf16.msra.mxu1 %v3441_v12  ;;  %v2163_v12 = vshll.u32 %v2060_v46, 16  ;;  %v2161_v29 = vrot.slane %v2160_v14, 2  ;;  %v1074_v32 = vcombine.low %v3473_v3, %v3474_v62  ;;  %v2477_v39 = vcombine.low %v3715_v0, %v2438_v4  ;;  %v3456_v46 = vld [vmem:[%s3977_s1 + $0x208] sm:$0xff]   ;;  %s177_s21 = scalar_lea.vmem %s3979_s3, %s3051_s14 }
  0x75   : > { %3225 = vmatprep.subr.bf16.mxu1 %v3443_v27 }
  0x76   : > { %3294 = vmatmul.mubr.bf16.vlgmr.msra.gmra.mrb[0].mxu0 %v1881_v23  ;;  %v2147_v23 = vrot.slane %v2146_v10, 2  ;;  %v2491_v44 = vrot.slane %v2477_v39, %v3573_v28 }
  0x77   : > { %3298 = vmatpush3.bf16.msra.mxu0 %v3434_v17  ;;  %3313 = vmatprep.mubr.bf16.mxu0 %v2218_v37  ;;  %v2494_v17 = vcombine.low %v3766_v40, %v2454_v13  ;;  %v2179_v40 = vrot.slane %v2177_v16, 7 }
  0x78   : > { %3299 = vmatprep.subr.bf16.mxu0 %v3438_v26  ;;  %3226 = vmatpush3.bf16.msra.mxu1 %v3443_v27  ;;  %v2165_v27 = vrot.slane %v2163_v12, 7  ;;  %v2492_v0 = vcombine.low %v3797_v1, %v2491_v44  ;;  %v3459_v1 = vld [vmem:[%s3977_s1 + $0x220] sm:$0xff]  }
  0x79   : > { %3227 = vmatprep.subr.bf16.mxu1 %v3445_v36  ;;  %v3914_v6 = vrot.slane %v2494_v17, %v3573_v28 }
  0x7a   : > { %v2166_v63 = vsel %vm3593_vm6, %v2161_v29, %v2165_v27 }
  0x7b   : > { %3300 = vmatpush3.bf16.msra.mxu0 %v3438_v26  ;;  %v2151_v26 = vrot.slane %v2149_v11, 7  ;;  %v2509_v24 = vcombine.low %v3833_v20, %v3914_v6  ;;  %v2180_v20 = vsel %vm3593_vm6, %v2175_v30, %v2179_v40 }
  0x7c   : > { %3301 = vmatprep.subr.bf16.mxu0 %v3440_v43  ;;  %3228 = vmatpush3.bf16.msra.mxu1 %v3445_v36  ;;  %v2220_v38 = vcombine.low %v2166_v63, %v2180_v20 }
  0x7d   : > { %3229 = vmatprep.subr.bf16.mxu1 %v3447_v51  ;;  %v2152_v36 = vsel %vm3593_vm6, %v2147_v23, %v2151_v26 }
  0x7e   : > { %v2219_v37 = vcombine.low %v2138_v35, %v2152_v36 }
  0x7f   : > { %3302 = vmatpush3.bf16.msra.mxu0 %v3440_v43  ;;  %v2234_v43 = vrot.slane %v2220_v38, %v3573_v28 }
  0x80   : > { %3303 = vmatprep.subr.bf16.mxu0 %v3442_v2  ;;  %3230 = vmatpush3.bf16.msra.mxu1 %v3447_v51  ;;  %v2227_v41 = vrot.slane %v2219_v37, %v3573_v28  ;;  %v3457_v28 = vld [vmem:[%s3977_s1 + $0x210] sm:$0xff]  }
  0x81   : > { %3231 = vmatprep.subr.bf16.mxu1 %v3449_v9 }
  0x82   : > { %v2235_v45 = vcombine.low %v2227_v41, %v2234_v43 }
  0x83   : > { %3304 = vmatpush3.bf16.msra.mxu0 %v3442_v2 }
  0x84   : > { %3305 = vmatprep.subr.bf16.mxu0 %v3444_v18  ;;  %3232 = vmatpush3.bf16.msra.mxu1 %v3449_v9 }
  0x87   : > { %3306 = vmatpush3.bf16.msra.mxu0 %v3444_v18  ;;  %3234 = vmatmul.mubr.bf16.vlgmr.msra.gmra.mrb[0].mxu1 %v1074_v32 }
  0x88   : > { %3307 = vmatprep.subr.bf16.mxu0 %v3446_v31 }
  0x8b   : > { %3308 = vmatpush3.bf16.msra.mxu0 %v3446_v31 }
  0x8c   : > { %3309 = vmatprep.subr.bf16.mxu0 %v3448_v53 }
  0x8f   : > { %3310 = vmatpush3.bf16.msra.mxu0 %v3448_v53 }
  0x90   : > { %3311 = vmatprep.subr.bf16.mxu0 %v3450_v47 }
  0x93   : > { %3312 = vmatpush3.bf16.msra.mxu0 %v3450_v47 }
  0x94   : > { %3317 = vmatprep.subr.bf16.mxu0 %v3455_v25 }
  0x96   : > { %3314 = vmatmul.mubr.bf16.vlgmr.msra.gmra.mrb[0].mxu0 %v2235_v45 }
  0x97   : > { %3318 = vmatpush3.bf16.msra.mxu0 %v3455_v25  ;;  %3333 = vmatprep.mubr.bf16.mxu0 %v2492_v0 }
  0x98   : > { %3319 = vmatprep.subr.bf16.mxu0 %v3456_v46 }
  0x9b   : > { %3320 = vmatpush3.bf16.msra.mxu0 %v3456_v46 }
  0x9c   : > { %3321 = vmatprep.subr.bf16.mxu0 %v3457_v28 }
  0x9f   : > { %3322 = vmatpush3.bf16.msra.mxu0 %v3457_v28 }
  0xa0   : > { %3323 = vmatprep.subr.bf16.mxu0 %v3458_v48 }
  0xa3   : > { %3324 = vmatpush3.bf16.msra.mxu0 %v3458_v48 }
  0xa4   : > { %3325 = vmatprep.subr.bf16.mxu0 %v3459_v1 }
  0xa7   : > { %3326 = vmatpush3.bf16.msra.mxu0 %v3459_v1 }
  0xa8   : > { %3327 = vmatprep.subr.bf16.mxu0 %v3460_v55 }
  0xab   : > { %3328 = vmatpush3.bf16.msra.mxu0 %v3460_v55 }
  0xac   : > { %3329 = vmatprep.subr.bf16.mxu0 %v3461_v49 }
  0xaf   : > { %3330 = vmatpush3.bf16.msra.mxu0 %v3461_v49 }
  0xb0   : > { %3331 = vmatprep.subr.bf16.mxu0 %v3462_v50 }
  0xb3   : > { %3332 = vmatpush3.bf16.msra.mxu0 %v3462_v50 }
  0xb6   : > { %3334 = vmatmul.mubr.bf16.vlgmr.msra.gmra.mrb[0].mxu0 %v2509_v24 }
 0x15a   : > { %v3235_v51 = vpop.f32.mrb[0].mxu1 }
 0x15b   : > { %v1159_v52 = vpop.f32.mrb[1].mxu1 }
 0x15c   : > { %v3236_v54 = vpop.f32.mrb[2].mxu1 }
 0x15d   : > { %v1162_v56 = vpop.f32.mrb[3].mxu1 }
 0x189   : > { %v3335_v57 = vpop.f32.mrb[0].mxu0 }
 0x18a   : > { %v3337_v59 = vadd.f32 %v3335_v57, %v3235_v51  ;;  %v2594_v60 = vpop.f32.mrb[1].mxu0 }
 0x18b   : > { %v3338_v61 = vadd.f32 %v2594_v60, %v1159_v52  ;;  %v3336_v2 = vpop.f32.mrb[2].mxu0 }
 0x18c   : > { %v2630_v3 = vadd.f32 %v3337_v59, %v3044_v58  ;;  %v3339_v62 = vadd.f32 %v3336_v2, %v3236_v54  ;;  %v2597_v5 = vpop.f32.mrb[3].mxu0 }
 0x18d   : > { %v2628_v7 = vadd.f32 %v3338_v61, %v3044_v58  ;;  %v3340_v42 = vadd.f32 %v2597_v5, %v1162_v56 }
 0x18e   : > { %v2631_v8 = vadd.f32 %v3339_v62, %v3044_v58  ;;  %v2634_v10 = vmax.f32 %v2630_v3, 0.0 }
 0x18f   : > { %v2629_v9 = vadd.f32 %v3340_v42, %v3044_v58  ;;  %v2632_v12 = vmax.f32 %v2628_v7, 0.0 }
 0x190   : > { %v2635_v11 = vmax.f32 %v2631_v8, 0.0 }
 0x191   : > { %v2633_v13 = vmax.f32 %v2629_v9, 0.0 }
 0x192   : > { %v3064_v14 = vpack.c.bf16 %v2635_v11, %v2634_v10 }
 0x193   : > { %v3059_v15 = vpack.c.bf16 %v2633_v13, %v2632_v12 }
 0x194   : > { %3066 = vst [vmem:[%s177_s21 + $0x8] sm:$0xff] %v3064_v14  }
 0x195   : > { %3060 = vst [vmem:[%s177_s21] sm:$0xff] %v3059_v15  }
 0x196 PF: > { %s13_s12 = sadd.s32 1, %s3481_s12  }
 0x197   : > { %p10_p4 = scmp.ge.s32.totalorder %s13_s12, 4  }
 0x199   :  { %12 = sbr.rel (!%p10_p4) target bundleno = 1 (0x1), region = 72 }

// kernel: loss_gf.11
= control target key start
LH: loop header
LB: loop body
LE: loop exit
PB: predicated region body
PF: predicated region fallthrough
CT: control target
= control target key end

     0   :  { %s1011_s9 = smov 0   ;;  %s1013_s10 = smov 0   ;;  %s1952_s0 = inlined_call_operand.vmem [shape: f32[10,512,128], index: 0, kind: input, shape index: {}]   ;;  %s1953_s1 = inlined_call_operand.vmem [shape: f32[10,512,128], index: 1, kind: input, shape index: {}]   ;;  %s1954_s2 = inlined_call_operand.vmem [shape: f32[10,4,128], index: 2, kind: output, shape index: {}]  }
   0x1   :  { %s1015_s11 = smov 0  }
   0x2 LB: > { %s24_s12 = sadd.s32 1, %s989_s10  ;;  %p928_p0 = scmp.ge.s32.totalorder %s993_s11, 1  ;;  %s993_s11 = sphi %s1015_s11, %s12_s11   ;;  %s989_s10 = sphi %s1013_s10, %s2310_s10   ;;  %s985_s9 = sphi %s1011_s9, %s2309_s9  }
   0x3   : > { %p26_p1 = scmp.ge.s32.totalorder %s24_s12, 10  ;;  %p148_p2 = scmp.lt.s32.totalorder %s993_s11, 11 }
   0x5   : > { %s2312_s12 = smov (%p26_p1, %s24_s12), 0  ;;  %p149_p3 = pnand %p928_p0, %p148_p2 }
   0x7   : > { %152 = sbr.rel (%p149_p3) target bundleno = 440 (0x1b8), region = 28 }
   0xe   : > { %p183_p4 = scmp.lt.s32.totalorder %s985_s9, 9 }
  0x10   : > { %s2314_s9 = smov (!%p183_p4, %s985_s9), 9 }
  0x11   : > { %s936_s13 = sshll.u32 %s2314_s9, 9  ;;  %s933_s20 = sshll.u32 %s2314_s9, 2 }
  0x12   : > { %s1037_s16 = scalar_lea.vmem %s1953_s1, %s936_s13  ;;  %s1116_s19 = scalar_lea.vmem %s1952_s0, %s936_s13 }
  0x13   : > { %v1040_v0 = vld [vmem:[%s1037_s16] sm:$0xff]  ;;  %v1043_v1 = vld [vmem:[%s1037_s16 + $0x8] sm:$0xff]  ;;  %v1048_v3 = vld [vmem:[%s1037_s16 + $0x10] sm:$0xff]  ;;  %s1938_s23 = scalar_lea.vmem %s1954_s2, %s933_s20 }
  0x14   : > { %v611_v2 = vadd.f32 %v1043_v1, %v1040_v0  ;;  %2084 = vst [vmem:[#allocation2_spill] sm:$0xff] %v1048_v3  ;;  %v1052_v5 = vld [vmem:[%s1037_s16 + $0x18] sm:$0xff]  ;;  %v1056_v7 = vld [vmem:[%s1037_s16 + $0x20] sm:$0xff]  ;;  %v1060_v9 = vld [vmem:[%s1037_s16 + $0x28] sm:$0xff] }
  0x15   : > { %2085 = vst [vmem:[#allocation3_spill] sm:$0xff] %v1052_v5  ;;  %2086 = vst [vmem:[#allocation4_spill] sm:$0xff] %v1056_v7  ;;  %v1064_v11 = vld [vmem:[%s1037_s16 + $0x30] sm:$0xff]  ;;  %v1068_v13 = vld [vmem:[%s1037_s16 + $0x38] sm:$0xff] }
  0x16   : > { %v612_v4 = vadd.f32 %v611_v2, %v1048_v3  ;;  %2087 = vst [vmem:[#allocation5_spill] sm:$0xff] %v1060_v9  ;;  %2088 = vst [vmem:[#allocation6_spill] sm:$0xff] %v1064_v11  ;;  %v1072_v15 = vld [vmem:[%s1037_s16 + $0x40] sm:$0xff]  ;;  %v1076_v17 = vld [vmem:[%s1037_s16 + $0x48] sm:$0xff] }
  0x17   : > { %2089 = vst [vmem:[#allocation7_spill] sm:$0xff] %v1068_v13  ;;  %2090 = vst [vmem:[#allocation8_spill] sm:$0xff] %v1072_v15  ;;  %v1080_v19 = vld [vmem:[%s1037_s16 + $0x50] sm:$0xff]  ;;  %v1084_v21 = vld [vmem:[%s1037_s16 + $0x58] sm:$0xff] }
  0x18   : > { %v613_v6 = vadd.f32 %v612_v4, %v1052_v5  ;;  %2091 = vst [vmem:[#allocation9_spill] sm:$0xff] %v1076_v17  ;;  %2092 = vst [vmem:[#allocation10_spill] sm:$0xff] %v1080_v19  ;;  %v1088_v23 = vld [vmem:[%s1037_s16 + $0x60] sm:$0xff]  ;;  %v1092_v25 = vld [vmem:[%s1037_s16 + $0x68] sm:$0xff] }
  0x19   : > { %2093 = vst [vmem:[#allocation11_spill] sm:$0xff] %v1084_v21  ;;  %2094 = vst [vmem:[#allocation12_spill] sm:$0xff] %v1088_v23  ;;  %v1096_v27 = vld [vmem:[%s1037_s16 + $0x70] sm:$0xff]  ;;  %v1099_v28 = vld [vmem:[%s1037_s16 + $0x78] sm:$0xff] }
  0x1a   : > { %v614_v8 = vadd.f32 %v613_v6, %v1056_v7  ;;  %2095 = vst [vmem:[#allocation13_spill] sm:$0xff] %v1092_v25  ;;  %2096 = vst [vmem:[#allocation14_spill] sm:$0xff] %v1096_v27  ;;  %v1103_v30 = vld [vmem:[%s1037_s16 + $0x80] sm:$0xff]  ;;  %v1106_v31 = vld [vmem:[%s1037_s16 + $0x108] sm:$0xff] }
  0x1b   : > { %2097 = vst [vmem:[#allocation15_spill] sm:$0xff] %v1099_v28  ;;  %v1109_v32 = vld [vmem:[%s1037_s16 + $0x110] sm:$0xff]  ;;  %v1119_v33 = vld [vmem:[%s1037_s16 + $0x118] sm:$0xff]  ;;  %v1122_v34 = vld [vmem:[%s1037_s16 + $0x120] sm:$0xff] }
  0x1c   : > { %v615_v10 = vadd.f32 %v614_v8, %v1060_v9  ;;  %v1125_v35 = vld [vmem:[%s1037_s16 + $0x128] sm:$0xff]  ;;  %v1132_v38 = vld [vmem:[%s1037_s16 + $0x130] sm:$0xff]  ;;  %v1135_v39 = vld [vmem:[%s1037_s16 + $0x138] sm:$0xff] }
  0x1d   : > { %v1129_v37 = vld [vmem:[%s1037_s16 + $0x88] sm:$0xff]  ;;  %2099 = vst [vmem:[#allocation17_spill] sm:$0xff] %v1132_v38  ;;  %2100 = vst [vmem:[#allocation18_spill] sm:$0xff] %v1135_v39  ;;  %v1138_v40 = vld [vmem:[%s1037_s16 + $0x140] sm:$0xff] }
  0x1e   : > { %v616_v12 = vadd.f32 %v615_v10, %v1064_v11  ;;  %2098 = vst [vmem:[#allocation16_spill] sm:$0xff] %v1129_v37  ;;  %2101 = vst [vmem:[#allocation19_spill] sm:$0xff] %v1138_v40  ;;  %v1141_v41 = vld [vmem:[%s1037_s16 + $0x148] sm:$0xff]  ;;  %v1144_v42 = vld [vmem:[%s1037_s16 + $0x150] sm:$0xff] }
  0x1f   : > { %v1147_v43 = vld [vmem:[%s1037_s16 + $0x158] sm:$0xff]  ;;  %v1151_v45 = vld [vmem:[%s1116_s19] sm:$0xff]  ;;  %v1154_v46 = vld [vmem:[%s1037_s16 + $0x90] sm:$0xff] }
  0x20   : > { %v617_v14 = vadd.f32 %v616_v12, %v1068_v13  ;;  %2102 = vst [vmem:[#allocation20_spill] sm:$0xff] %v1147_v43  ;;  %2103 = vst [vmem:[#allocation21_spill] sm:$0xff] %v1154_v46  ;;  %v1157_v47 = vld [vmem:[%s1037_s16 + $0x160] sm:$0xff]  ;;  %v1160_v48 = vld [vmem:[%s1037_s16 + $0x168] sm:$0xff] }
  0x21   : > { %2104 = vst [vmem:[#allocation22_spill] sm:$0xff] %v1160_v48  ;;  %v1163_v49 = vld [vmem:[%s1037_s16 + $0x170] sm:$0xff]  ;;  %v1166_v50 = vld [vmem:[%s1116_s19 + $0x8] sm:$0xff]  ;;  %v1175_v53 = vld [vmem:[%s1037_s16 + $0x178] sm:$0xff] }
  0x22   : > { %v618_v16 = vadd.f32 %v617_v14, %v1072_v15  ;;  %2105 = vst [vmem:[#allocation23_spill] sm:$0xff] %v1163_v49  ;;  %v1169_v51 = vld [vmem:[%s1116_s19 + $0x108] sm:$0xff]  ;;  %v1172_v52 = vld [vmem:[%s1116_s19 + $0x110] sm:$0xff]  ;;  %v1178_v54 = vld [vmem:[%s1037_s16 + $0x180] sm:$0xff]  ;;  %v339_v14 = vsub.f32 %v1151_v45, %v1040_v0 }
  0x23   : > { %2106 = vst [vmem:[#allocation24_spill] sm:$0xff] %v1178_v54  ;;  %v1181_v55 = vld [vmem:[%s1037_s16 + $0x188] sm:$0xff]  ;;  %v1185_v57 = vld [vmem:[%s1116_s19 + $0x10] sm:$0xff]  ;;  %v1188_v58 = vld [vmem:[%s1116_s19 + $0x118] sm:$0xff] }
  0x24   : > { %v619_v18 = vadd.f32 %v618_v16, %v1076_v17  ;;  %2107 = vst [vmem:[#allocation25_spill] sm:$0xff] %v1181_v55  ;;  %2108 = vst [vmem:[#allocation26_spill] sm:$0xff] %v1185_v57  ;;  %v1191_v59 = vld [vmem:[%s1116_s19 + $0x120] sm:$0xff]  ;;  %v1194_v60 = vld [vmem:[%s1116_s19 + $0x128] sm:$0xff] }
  0x25   : > { %v1201_v63 = vld [vmem:[%s1037_s16 + $0x98] sm:$0xff]  ;;  %v1204_v2 = vld [vmem:[%s1037_s16 + $0x190] sm:$0xff]  ;;  %v1210_v6 = vld [vmem:[%s1037_s16 + $0x1a0] sm:$0xff] }
  0x26   : > { %v620_v20 = vadd.f32 %v619_v18, %v1080_v19  ;;  %2109 = vst [vmem:[#allocation27_spill] sm:$0xff] %v1201_v63  ;;  %v1207_v4 = vld [vmem:[%s1037_s16 + $0x198] sm:$0xff]  ;;  %2111 = vst [vmem:[#allocation29_spill] sm:$0xff] %v1210_v6  ;;  %v1213_v8 = vld [vmem:[%s1116_s19 + $0x130] sm:$0xff] }
  0x27   : > { %2110 = vst [vmem:[#allocation28_spill] sm:$0xff] %v1207_v4  ;;  %2112 = vst [vmem:[#allocation30_spill] sm:$0xff] %v1213_v8  ;;  %v1216_v10 = vld [vmem:[%s1116_s19 + $0x138] sm:$0xff]  ;;  %v1219_v12 = vld [vmem:[%s1116_s19 + $0x140] sm:$0xff] }
  0x28   : > { %v621_v22 = vadd.f32 %v620_v20, %v1084_v21  ;;  %2113 = vst [vmem:[#allocation31_spill] sm:$0xff] %v1216_v10  ;;  %2114 = vst [vmem:[#allocation32_spill] sm:$0xff] %v1219_v12  ;;  %v1249_v20 = vld [vmem:[%s1037_s16 + $0xa0] sm:$0xff]  ;;  %v1255_v62 = vld [vmem:[%s1116_s19 + $0x168] sm:$0xff] }
  0x29   : > { %2119 = vst [vmem:[#allocation37_spill] sm:$0xff] %v1249_v20  ;;  %v1252_v16 = vld [vmem:[%s1116_s19 + $0x160] sm:$0xff]  ;;  %2121 = vst [vmem:[#allocation39_spill] sm:$0xff] %v1255_v62  ;;  %v1258_v61 = vld [vmem:[%s1116_s19 + $0x170] sm:$0xff] }
  0x2a   : > { %v622_v24 = vadd.f32 %v621_v22, %v1088_v23  ;;  %2120 = vst [vmem:[#allocation38_spill] sm:$0xff] %v1252_v16  ;;  %2122 = vst [vmem:[#allocation40_spill] sm:$0xff] %v1258_v61  ;;  %v1270_v39 = vld [vmem:[%s1116_s19 + $0x178] sm:$0xff]  ;;  %v1273_v10 = vld [vmem:[%s1116_s19 + $0x180] sm:$0xff] }
  0x2b   : > { %2123 = vst [vmem:[#allocation41_spill] sm:$0xff] %v1270_v39  ;;  %2124 = vst [vmem:[#allocation42_spill] sm:$0xff] %v1273_v10  ;;  %v1276_v38 = vld [vmem:[%s1116_s19 + $0x188] sm:$0xff]  ;;  %v1285_v40 = vld [vmem:[%s1116_s19 + $0x190] sm:$0xff] }
  0x2c   : > { %v623_v26 = vadd.f32 %v622_v24, %v1092_v25  ;;  %v1231_v24 = vld [vmem:[%s1116_s19 + $0x18] sm:$0xff]  ;;  %2125 = vst [vmem:[#allocation43_spill] sm:$0xff] %v1276_v38  ;;  %2126 = vst [vmem:[#allocation44_spill] sm:$0xff] %v1285_v40  ;;  %v1303_v61 = vld [vmem:[%s1116_s19 + $0x20] sm:$0xff] }
  0x2d   : > { %2115 = vst [vmem:[#allocation33_spill] sm:$0xff] %v1231_v24  ;;  %v1288_v43 = vld [vmem:[%s1116_s19 + $0x198] sm:$0xff]  ;;  %2129 = vst [vmem:[#allocation47_spill] sm:$0xff] %v1303_v61  ;;  %v1318_v38 = vld [vmem:[%s1116_s19 + $0x28] sm:$0xff] }
  0x2e   : > { %v624_v29 = vadd.f32 %v623_v26, %v1096_v27  ;;  %v1234_v26 = vld [vmem:[%s1116_s19 + $0x148] sm:$0xff]  ;;  %2127 = vst [vmem:[#allocation45_spill] sm:$0xff] %v1288_v43  ;;  %2131 = vst [vmem:[#allocation49_spill] sm:$0xff] %v1318_v38  ;;  %v1321_v48 = vld [vmem:[%s1037_s16 + $0xb0] sm:$0xff] }
  0x2f   : > { %2116 = vst [vmem:[#allocation34_spill] sm:$0xff] %v1234_v26  ;;  %2132 = vst [vmem:[#allocation50_spill] sm:$0xff] %v1321_v48  ;;  %v1336_v4 = vld [vmem:[%s1116_s19 + $0x38] sm:$0xff] }
  0x30   : > { %v625_v36 = vadd.f32 %v624_v29, %v1099_v28  ;;  %v1237_v29 = vld [vmem:[%s1116_s19 + $0x150] sm:$0xff]  ;;  %2135 = vst [vmem:[#allocation53_spill] sm:$0xff] %v1336_v4 }
  0x31   : > { %2117 = vst [vmem:[#allocation35_spill] sm:$0xff] %v1237_v29 }
  0x32   : > { %v626_v44 = vadd.f32 %v625_v36, %v1103_v30  ;;  %v1240_v36 = vld [vmem:[%s1116_s19 + $0x158] sm:$0xff] }
  0x33   : > { %2118 = vst [vmem:[#allocation36_spill] sm:$0xff] %v1240_v36  ;;  %v341_v36 = vsub.f32 %v1185_v57, %v1048_v3  ;;  %v1312_v57 = vld [vmem:[%s1037_s16 + $0xa8] sm:$0xff]  ;;  %v343_v3 = vsub.f32 %v1303_v61, %v1056_v7  ;;  %v1339_v7 = vld [vmem:[%s1037_s16 + $0xc0] sm:$0xff] }
  0x34   : > { %v627_v56 = vadd.f32 %v626_v44, %v1129_v37  ;;  %v340_v44 = vsub.f32 %v1166_v50, %v1043_v1  ;;  %2130 = vst [vmem:[#allocation48_spill] sm:$0xff] %v1312_v57  ;;  %2136 = vst [vmem:[#allocation54_spill] sm:$0xff] %v1339_v7 }
  0x35   : > { %v405_v8 = vand.u32 2147483647, %v341_v36  ;;  %v407_v36 = vand.u32 2147483647, %v343_v3  ;;  %v1357_v3 = vld [vmem:[%s1037_s16 + $0xd0] sm:$0xff] }
  0x36   : > { %v628_v22 = vadd.f32 %v627_v56, %v1154_v46  ;;  %v342_v56 = vsub.f32 %v1231_v24, %v1052_v5  ;;  %v404_v18 = vand.u32 2147483647, %v340_v44  ;;  %v1330_v5 = vld [vmem:[%s1037_s16 + $0xb8] sm:$0xff]  ;;  %2140 = vst [vmem:[#allocation58_spill] sm:$0xff] %v1357_v3 }
  0x37   : > { %2134 = vst [vmem:[#allocation52_spill] sm:$0xff] %v1330_v5 }
  0x38   : > { %v629_v12 = vadd.f32 %v628_v22, %v1201_v63  ;;  %v1291_v22 = vld [vmem:[%s1116_s19 + $0x1a0] sm:$0xff] }
  0x39   : > { %2128 = vst [vmem:[#allocation46_spill] sm:$0xff] %v1291_v22  ;;  %v1327_v22 = vld [vmem:[%s1116_s19 + $0x30] sm:$0xff] }
  0x3a   : > { %v630_v49 = vadd.f32 %v629_v12, %v1249_v20  ;;  %v403_v12 = vand.u32 2147483647, %v339_v14  ;;  %2133 = vst [vmem:[#allocation51_spill] sm:$0xff] %v1327_v22  ;;  %v344_v14 = vsub.f32 %v1318_v38, %v1060_v9  ;;  %v1345_v9 = vld [vmem:[%s1116_s19 + $0x40] sm:$0xff] }
  0x3b   : > { %2137 = vst [vmem:[#allocation55_spill] sm:$0xff] %v1345_v9 }
  0x3c   : > { %v631_v55 = vadd.f32 %v630_v49, %v1312_v57  ;;  %v406_v49 = vand.u32 2147483647, %v342_v56  ;;  %v467_v44 = vadd.f32 %v404_v18, %v403_v12  ;;  %v1348_v56 = vld [vmem:[%s1037_s16 + $0xc8] sm:$0xff]  ;;  %v408_v18 = vand.u32 2147483647, %v344_v14  ;;  %v1366_v14 = vld [vmem:[%s1037_s16 + $0xd8] sm:$0xff] }
  0x3d   : > { %2138 = vst [vmem:[#allocation56_spill] sm:$0xff] %v1348_v56  ;;  %2142 = vst [vmem:[#allocation60_spill] sm:$0xff] %v1366_v14 }
  0x3e   : > { %v632_v6 = vadd.f32 %v631_v55, %v1321_v48  ;;  %v345_v55 = vsub.f32 %v1327_v22, %v1064_v11  ;;  %v468_v61 = vadd.f32 %v467_v44, %v405_v8  ;;  %v1354_v11 = vld [vmem:[%s1116_s19 + $0x48] sm:$0xff]  ;;  %v347_v8 = vsub.f32 %v1345_v9, %v1072_v15  ;;  %v1372_v15 = vld [vmem:[%s1116_s19 + $0x58] sm:$0xff] }
  0x3f   : > { %2139 = vst [vmem:[#allocation57_spill] sm:$0xff] %v1354_v11  ;;  %2143 = vst [vmem:[#allocation61_spill] sm:$0xff] %v1372_v15 }
  0x40   : > { %v633_v24 = vadd.f32 %v632_v6, %v1330_v5  ;;  %v346_v6 = vsub.f32 %v1336_v4, %v1068_v13  ;;  %v469_v12 = vadd.f32 %v468_v61, %v406_v49  ;;  %v1363_v13 = vld [vmem:[%s1116_s19 + $0x50] sm:$0xff] }
  0x41   : > { %2141 = vst [vmem:[#allocation59_spill] sm:$0xff] %v1363_v13 }
  0x42   : > { %v634_v43 = vadd.f32 %v633_v24, %v1339_v7  ;;  %v409_v24 = vand.u32 2147483647, %v345_v55  ;;  %v470_v44 = vadd.f32 %v469_v12, %v407_v36  ;;  %v410_v61 = vand.u32 2147483647, %v346_v6  ;;  %v1375_v55 = vld [vmem:[%s1037_s16 + $0xe0] sm:$0xff]  ;;  %v1384_v6 = vld [vmem:[%s1037_s16 + $0xe8] sm:$0xff] }
  0x43   : > { %2144 = vst [vmem:[#allocation62_spill] sm:$0xff] %v1375_v55  ;;  %v411_v36 = vand.u32 2147483647, %v347_v8  ;;  %2146 = vst [vmem:[#allocation64_spill] sm:$0xff] %v1384_v6  ;;  %v1393_v8 = vld [vmem:[%s1037_s16 + $0xf0] sm:$0xff] }
  0x44   : > { %v635_v38 = vadd.f32 %v634_v43, %v1348_v56  ;;  %v348_v43 = vsub.f32 %v1354_v11, %v1076_v17  ;;  %v471_v49 = vadd.f32 %v470_v44, %v408_v18  ;;  %v1381_v17 = vld [vmem:[%s1116_s19 + $0x60] sm:$0xff]  ;;  %2148 = vst [vmem:[#allocation66_spill] sm:$0xff] %v1393_v8 }
  0x45   : > { %2145 = vst [vmem:[#allocation63_spill] sm:$0xff] %v1381_v17 }
  0x46   : > { %v636_v22 = vadd.f32 %v635_v38, %v1357_v3  ;;  %v349_v38 = vsub.f32 %v1363_v13, %v1080_v19  ;;  %v472_v12 = vadd.f32 %v471_v49, %v409_v24  ;;  %v412_v18 = vand.u32 2147483647, %v348_v43  ;;  %v1390_v19 = vld [vmem:[%s1116_s19 + $0x68] sm:$0xff]  ;;  %v1399_v43 = vld [vmem:[%s1116_s19 + $0x70] sm:$0xff] }
  0x47   : > { %2147 = vst [vmem:[#allocation65_spill] sm:$0xff] %v1390_v19  ;;  %2149 = vst [vmem:[#allocation67_spill] sm:$0xff] %v1399_v43 }
  0x48   : > { %v637_v4 = vadd.f32 %v636_v22, %v1366_v14  ;;  %v350_v22 = vsub.f32 %v1372_v15, %v1084_v21  ;;  %v473_v44 = vadd.f32 %v472_v12, %v410_v61  ;;  %v413_v24 = vand.u32 2147483647, %v349_v38  ;;  %v1402_v61 = vld [vmem:[%s1037_s16 + $0xf8] sm:$0xff]  ;;  %v1411_v38 = vld [vmem:[%s1037_s16 + $0x100] sm:$0xff] }
  0x49   : > { %2150 = vst [vmem:[#allocation68_spill] sm:$0xff] %v1402_v61  ;;  %2151 = vst [vmem:[#allocation69_spill] sm:$0xff] %v1411_v38 }
  0x4a   : > { %v638_v9 = vadd.f32 %v637_v4, %v1375_v55  ;;  %v351_v4 = vsub.f32 %v1381_v17, %v1088_v23  ;;  %v474_v49 = vadd.f32 %v473_v44, %v411_v36  ;;  %v414_v12 = vand.u32 2147483647, %v350_v22  ;;  %v1408_v17 = vld [vmem:[%s1116_s19 + $0x78] sm:$0xff]  ;;  %v1420_v22 = vld [vmem:[%s1116_s19 + $0x88] sm:$0xff] }
  0x4c   : > { %v639_v11 = vadd.f32 %v638_v9, %v1384_v6  ;;  %v352_v9 = vsub.f32 %v1390_v19, %v1092_v25  ;;  %v475_v15 = vadd.f32 %v474_v49, %v412_v18  ;;  %v415_v36 = vand.u32 2147483647, %v351_v4  ;;  %v1423_v18 = vld [vmem:[%s1116_s19 + $0x90] sm:$0xff] }
  0x4d   : > { %v354_v49 = vsub.f32 %v1408_v17, %v1099_v28  ;;  %v356_v28 = vsub.f32 %v1420_v22, %v1129_v37 }
  0x4e   : > { %v640_v21 = vadd.f32 %v639_v11, %v1393_v8  ;;  %v353_v11 = vsub.f32 %v1399_v43, %v1096_v27  ;;  %v476_v44 = vadd.f32 %v475_v15, %v413_v24  ;;  %v1417_v8 = vld [vmem:[%s1116_s19 + $0x80] sm:$0xff]  ;;  %v416_v25 = vand.u32 2147483647, %v352_v9 }
  0x4f   : > { %v1432_v27 = vld [vmem:[%s1116_s19 + $0xa0] sm:$0xff]  ;;  %v355_v15 = vsub.f32 %v1417_v8, %v1103_v30  ;;  %v357_v9 = vsub.f32 %v1423_v18, %v1154_v46 }
  0x50   : > { %v641_v23 = vadd.f32 %v640_v21, %v1402_v61  ;;  %v1426_v21 = vld [vmem:[%s1116_s19 + $0x98] sm:$0xff]  ;;  %v477_v19 = vadd.f32 %v476_v44, %v414_v12  ;;  %2153 = vst [vmem:[#allocation71_spill] sm:$0xff] %v1432_v27  ;;  %v1441_v61 = vld [vmem:[%s1116_s19 + $0xb0] sm:$0xff]  ;;  %v418_v12 = vand.u32 2147483647, %v354_v49 }
  0x51   : > { %2152 = vst [vmem:[#allocation70_spill] sm:$0xff] %v1426_v21  ;;  %2155 = vst [vmem:[#allocation73_spill] sm:$0xff] %v1441_v61  ;;  %v361_v46 = vsub.f32 %v1441_v61, %v1321_v48  ;;  %v1471_v48 = vmul.f32 %v1119_v33, %v1188_v58  ;;  %v1501_v61 = vmul.f32 %v1144_v42, %v1237_v29 }
  0x52   : > { %v642_v13 = vadd.f32 %v641_v23, %v1411_v38  ;;  %v417_v23 = vand.u32 2147483647, %v353_v11  ;;  %v478_v24 = vadd.f32 %v477_v19, %v415_v36  ;;  %v1438_v38 = vld [vmem:[%s1116_s19 + $0xa8] sm:$0xff]  ;;  %v359_v19 = vsub.f32 %v1432_v27, %v1249_v20 }
  0x53   : > { %2154 = vst [vmem:[#allocation72_spill] sm:$0xff] %v1438_v38  ;;  %v683_v36 = vmul.f32 %v1040_v0, %v1151_v45  ;;  %v360_v37 = vsub.f32 %v1438_v38, %v1312_v57  ;;  %v1463_v0 = vmul.f32 %v1106_v31, %v1169_v51  ;;  %2158 = vst [vmem:[#allocation76_spill] sm:$0xff] %v1471_v48  ;;  %v2167_v48 = vld [vmem:[#allocation32_spill] sm:$0xff]  ;;  %v1512_v57 = vld [vmem:[%s1116_s19 + $0xb8] sm:$0xff] }
  0x54   : > { %v643_v4 = vadd.f32 %v642_v13, %v1106_v31  ;;  %v358_v13 = vsub.f32 %v1426_v21, %v1201_v63  ;;  %v479_v44 = vadd.f32 %v478_v24, %v416_v25  ;;  %v419_v63 = vand.u32 2147483647, %v355_v15  ;;  %2171 = vst [vmem:[#allocation79_spill] sm:$0xff] %v1501_v61  ;;  %2176 = vst [vmem:[#allocation81_spill] sm:$0xff] %v1512_v57  ;;  %v2180_v38 = vld [vmem:[#allocation23_spill] sm:$0xff] }
  0x55   : > { %v421_v24 = vand.u32 2147483647, %v357_v9  ;;  %2156 = vst [vmem:[#allocation74_spill] sm:$0xff] %v1463_v0  ;;  %v2161_v9 = vld [vmem:[#allocation30_spill] sm:$0xff]  ;;  %v2168_v0 = vld [vmem:[#allocation19_spill] sm:$0xff]  ;;  %v1524_v61 = vmul.f32 %v1175_v53, %v1270_v39 }
  0x56   : > { %v644_v43 = vadd.f32 %v643_v4, %v1109_v32  ;;  %v684_v4 = vmul.f32 %v1043_v1, %v1166_v50  ;;  %v480_v49 = vadd.f32 %v479_v44, %v417_v23  ;;  %v422_v21 = vand.u32 2147483647, %v358_v13  ;;  %v2162_v13 = vld [vmem:[#allocation17_spill] sm:$0xff] }
  0x57   : > { %v1467_v1 = vmul.f32 %v1109_v32, %v1172_v52  ;;  %v1480_v23 = vmul.f32 %v1125_v35, %v1194_v60  ;;  %2182 = vst [vmem:[#allocation82_spill] sm:$0xff] %v1524_v61  ;;  %v2189_v61 = vld [vmem:[#allocation45_spill] sm:$0xff] }
  0x58   : > { %v645_v11 = vadd.f32 %v644_v43, %v1119_v33  ;;  %v420_v43 = vand.u32 2147483647, %v356_v28  ;;  %v481_v20 = vadd.f32 %v480_v49, %v418_v12  ;;  %v1476_v28 = vmul.f32 %v1122_v34, %v1191_v59  ;;  %v2165_v49 = vld [vmem:[#allocation18_spill] sm:$0xff] }
  0x59   : > { %2157 = vst [vmem:[#allocation75_spill] sm:$0xff] %v1467_v1  ;;  %2160 = vst [vmem:[#allocation78_spill] sm:$0xff] %v1480_v23  ;;  %v1484_v12 = vmul.f32 %v2162_v13, %v2161_v9  ;;  %v747_v27 = vadd.f32 %v684_v4, %v683_v36 }
  0x5a   : > { %v646_v25 = vadd.f32 %v645_v11, %v1122_v34  ;;  %2159 = vst [vmem:[#allocation77_spill] sm:$0xff] %v1476_v28  ;;  %v482_v44 = vadd.f32 %v481_v20, %v419_v63  ;;  %v2164_v11 = vld [vmem:[#allocation31_spill] sm:$0xff]  ;;  %v1496_v28 = vmul.f32 %v1141_v41, %v1234_v26  ;;  %v2172_v63 = vld [vmem:[#allocation36_spill] sm:$0xff] }
  0x5b   : > { %2163 = vst [vmem:[#allocation30_spill] sm:$0xff] %v1484_v12  ;;  %v1488_v1 = vmul.f32 %v2165_v49, %v2164_v11  ;;  %v2173_v20 = vld [vmem:[#allocation20_spill] sm:$0xff] }
  0x5c   : > { %v647_v15 = vadd.f32 %v646_v25, %v1125_v35  ;;  %v1492_v25 = vmul.f32 %v2168_v0, %v2167_v48  ;;  %2170 = vst [vmem:[#allocation18_spill] sm:$0xff] %v1496_v28  ;;  %v1505_v12 = vmul.f32 %v2173_v20, %v2172_v63  ;;  %v2177_v28 = vld [vmem:[#allocation22_spill] sm:$0xff] }
  0x5d   : > { %2166 = vst [vmem:[#allocation17_spill] sm:$0xff] %v1488_v1  ;;  %v1509_v1 = vmul.f32 %v1157_v47, %v1252_v16  ;;  %v1516_v26 = vmul.f32 %v2177_v28, %v1255_v62  ;;  %v2184_v16 = vld [vmem:[#allocation43_spill] sm:$0xff]  ;;  %v2190_v62 = vld [vmem:[#allocation28_spill] sm:$0xff]  ;;  %v2192_v63 = vld [vmem:[#allocation46_spill] sm:$0xff] }
  0x5e   : > { %2169 = vst [vmem:[#allocation31_spill] sm:$0xff] %v1492_v25  ;;  %v648_v23 = vadd.f32 %v647_v15, %v2162_v13  ;;  %2174 = vst [vmem:[#allocation20_spill] sm:$0xff] %v1505_v12  ;;  %v483_v25 = vadd.f32 %v482_v44, %v420_v43  ;;  %v2179_v15 = vld [vmem:[#allocation40_spill] sm:$0xff]  ;;  %v2185_v43 = vld [vmem:[#allocation25_spill] sm:$0xff] }
  0x5f   : > { %2175 = vst [vmem:[#allocation80_spill] sm:$0xff] %v1509_v1  ;;  %2178 = vst [vmem:[#allocation22_spill] sm:$0xff] %v1516_v26  ;;  %v1520_v29 = vmul.f32 %v2180_v38, %v2179_v15  ;;  %v1529_v1 = vmul.f32 %v1178_v54, %v1273_v10  ;;  %v1533_v44 = vmul.f32 %v2185_v43, %v2184_v16  ;;  %v423_v15 = vand.u32 2147483647, %v359_v19  ;;  %v2193_v10 = vld [vmem:[#allocation29_spill] sm:$0xff]  ;;  %v2196_v19 = vld [vmem:[#allocation26_spill] sm:$0xff] }
  0x60   : > { %v649_v12 = vadd.f32 %v648_v23, %v2165_v49  ;;  %v1537_v26 = vmul.f32 %v1204_v2, %v1285_v40  ;;  %v484_v39 = vadd.f32 %v483_v25, %v421_v24  ;;  %v1544_v23 = vmul.f32 %v2190_v62, %v2189_v61  ;;  %v1554_v40 = vld [vmem:[%s1116_s19 + $0xc8] sm:$0xff]  ;;  %v2197_v24 = vld [vmem:[#allocation2_spill] sm:$0xff] }
  0x61   : > { %2181 = vst [vmem:[#allocation23_spill] sm:$0xff] %v1520_v29  ;;  %2183 = vst [vmem:[#allocation83_spill] sm:$0xff] %v1529_v1  ;;  %v1540_v29 = vld [vmem:[%s1116_s19 + $0xc0] sm:$0xff]  ;;  %v1548_v1 = vmul.f32 %v2193_v10, %v2192_v63  ;;  %v685_v25 = vmul.f32 %v2197_v24, %v2196_v19  ;;  %v425_v63 = vand.u32 2147483647, %v361_v46  ;;  %v1572_v24 = vld [vmem:[%s1116_s19 + $0xd8] sm:$0xff] }
  0x62   : > { %2186 = vst [vmem:[#allocation25_spill] sm:$0xff] %v1533_v44  ;;  %2187 = vst [vmem:[#allocation84_spill] sm:$0xff] %v1537_v26  ;;  %v650_v16 = vadd.f32 %v649_v12, %v2168_v0  ;;  %v362_v44 = vsub.f32 %v1512_v57, %v1330_v5  ;;  %v424_v26 = vand.u32 2147483647, %v360_v37  ;;  %v485_v48 = vadd.f32 %v484_v39, %v422_v21  ;;  %v2198_v0 = vld [vmem:[#allocation33_spill] sm:$0xff]  ;;  %v2199_v5 = vld [vmem:[#allocation3_spill] sm:$0xff] }
  0x63   : > { %2188 = vst [vmem:[#allocation85_spill] sm:$0xff] %v1540_v29  ;;  %2191 = vst [vmem:[#allocation28_spill] sm:$0xff] %v1544_v23  ;;  %v363_v23 = vsub.f32 %v1540_v29, %v1339_v7  ;;  %v686_v57 = vmul.f32 %v2199_v5, %v2198_v0  ;;  %v539_v37 = vadd.f32 %v1166_v50, %v1151_v45  ;;  %v2200_v7 = vld [vmem:[#allocation47_spill] sm:$0xff]  ;;  %v2201_v29 = vld [vmem:[#allocation4_spill] sm:$0xff] }
  0x64   : > { %2194 = vst [vmem:[#allocation29_spill] sm:$0xff] %v1548_v1  ;;  %2195 = vst [vmem:[#allocation86_spill] sm:$0xff] %v1554_v40  ;;  %v651_v61 = vadd.f32 %v650_v16, %v1141_v41  ;;  %v1562_v1 = vld [vmem:[%s1116_s19 + $0xd0] sm:$0xff]  ;;  %v486_v12 = vadd.f32 %v485_v48, %v423_v15  ;;  %v364_v16 = vsub.f32 %v1554_v40, %v1348_v56  ;;  %v426_v21 = vand.u32 2147483647, %v362_v44  ;;  %v2203_v44 = vld [vmem:[#allocation49_spill] sm:$0xff] }
  0x65   : > { %v687_v48 = vmul.f32 %v2201_v29, %v2200_v7  ;;  %v748_v15 = vadd.f32 %v747_v27, %v685_v25  ;;  %v540_v5 = vadd.f32 %v539_v37, %v2196_v19  ;;  %v365_v45 = vsub.f32 %v1562_v1, %v1357_v3  ;;  %v2204_v56 = vld [vmem:[#allocation5_spill] sm:$0xff]  ;;  %v1590_v25 = vld [vmem:[%s1116_s19 + $0xe8] sm:$0xff] }
  0x66   : > { %v652_v39 = vadd.f32 %v651_v61, %v1144_v42  ;;  %v487_v46 = vadd.f32 %v486_v12, %v424_v26  ;;  %v427_v50 = vand.u32 2147483647, %v363_v23  ;;  %v1581_v61 = vld [vmem:[%s1116_s19 + $0xe0] sm:$0xff]  ;;  %v688_v40 = vmul.f32 %v2204_v56, %v2203_v44  ;;  %2205 = vst [vmem:[#allocation2_spill] sm:$0xff] %v1590_v25  ;;  %v2206_v37 = vld [vmem:[#allocation51_spill] sm:$0xff] }
  0x67   : > { %2202 = vst [vmem:[#allocation26_spill] sm:$0xff] %v1581_v61  ;;  %v749_v26 = vadd.f32 %v748_v15, %v686_v57  ;;  %v541_v12 = vadd.f32 %v540_v5, %v2198_v0  ;;  %v366_v29 = vsub.f32 %v1572_v24, %v1366_v14  ;;  %v428_v19 = vand.u32 2147483647, %v364_v16  ;;  %v1599_v15 = vld [vmem:[%s1116_s19 + $0xf0] sm:$0xff]  ;;  %v2209_v5 = vld [vmem:[#allocation53_spill] sm:$0xff] }
  0x68   : > { %v653_v36 = vadd.f32 %v652_v39, %v2173_v20  ;;  %v488_v4 = vadd.f32 %v487_v46, %v425_v63  ;;  %v2207_v39 = vld [vmem:[#allocation6_spill] sm:$0xff]  ;;  %v367_v56 = vsub.f32 %v1581_v61, %v1375_v55  ;;  %v429_v0 = vand.u32 2147483647, %v365_v45  ;;  %2208 = vst [vmem:[#allocation33_spill] sm:$0xff] %v1599_v15  ;;  %v2211_v45 = vld [vmem:[#allocation55_spill] sm:$0xff] }
  0x69   : > { %v689_v3 = vmul.f32 %v2207_v39, %v2206_v37  ;;  %v750_v63 = vadd.f32 %v749_v26, %v687_v48  ;;  %v542_v46 = vadd.f32 %v541_v12, %v2200_v7  ;;  %v368_v7 = vsub.f32 %v1590_v25, %v1384_v6  ;;  %v1608_v12 = vld [vmem:[%s1116_s19 + $0xf8] sm:$0xff]  ;;  %v2212_v39 = vld [vmem:[#allocation8_spill] sm:$0xff] }
  0x6a   : > { %v654_v27 = vadd.f32 %v653_v36, %v1157_v47  ;;  %v489_v23 = vadd.f32 %v488_v4, %v426_v21  ;;  %v2210_v36 = vld [vmem:[#allocation7_spill] sm:$0xff]  ;;  %v430_v26 = vand.u32 2147483647, %v366_v29  ;;  %v691_v55 = vmul.f32 %v2212_v39, %v2211_v45  ;;  %v2215_v29 = vld [vmem:[#allocation9_spill] sm:$0xff]  ;;  %v2218_v39 = vld [vmem:[#allocation10_spill] sm:$0xff] }
  0x6b   : > { %v690_v14 = vmul.f32 %v2210_v36, %v2209_v5  ;;  %v751_v21 = vadd.f32 %v750_v63, %v688_v40  ;;  %v543_v4 = vadd.f32 %v542_v46, %v2203_v44  ;;  %v2213_v40 = vld [vmem:[#allocation66_spill] sm:$0xff]  ;;  %v431_v63 = vand.u32 2147483647, %v367_v56  ;;  %v2214_v36 = vld [vmem:[#allocation57_spill] sm:$0xff] }
  0x6c   : > { %v655_v57 = vadd.f32 %v654_v27, %v2177_v28  ;;  %v490_v16 = vadd.f32 %v489_v23, %v427_v50  ;;  %v369_v44 = vsub.f32 %v1599_v15, %v2213_v40  ;;  %v1617_v46 = vld [vmem:[%s1116_s19 + $0x100] sm:$0xff]  ;;  %v692_v6 = vmul.f32 %v2215_v29, %v2214_v36 }
  0x6d   : > { %v752_v61 = vadd.f32 %v751_v21, %v689_v3  ;;  %v544_v50 = vadd.f32 %v543_v4, %v2206_v37  ;;  %v2216_v3 = vld [vmem:[#allocation68_spill] sm:$0xff]  ;;  %v432_v21 = vand.u32 2147483647, %v368_v7 }
  0x6e   : > { %v656_v48 = vadd.f32 %v655_v57, %v2180_v38  ;;  %v491_v27 = vadd.f32 %v490_v16, %v428_v19  ;;  %v370_v37 = vsub.f32 %v1608_v12, %v2216_v3 }
  0x6f   : > { %v753_v25 = vadd.f32 %v752_v61, %v690_v14  ;;  %v545_v19 = vadd.f32 %v544_v50, %v2209_v5  ;;  %v433_v61 = vand.u32 2147483647, %v369_v44  ;;  %v2220_v50 = vld [vmem:[#allocation61_spill] sm:$0xff] }
  0x70   : > { %v657_v23 = vadd.f32 %v656_v48, %v1175_v53  ;;  %v492_v57 = vadd.f32 %v491_v27, %v429_v0  ;;  %v2217_v48 = vld [vmem:[#allocation59_spill] sm:$0xff]  ;;  %v2219_v27 = vld [vmem:[#allocation69_spill] sm:$0xff] }
  0x71   : > { %v693_v40 = vmul.f32 %v2218_v39, %v2217_v48  ;;  %v754_v56 = vadd.f32 %v753_v25, %v691_v55  ;;  %v546_v15 = vadd.f32 %v545_v19, %v2211_v45  ;;  %v371_v14 = vsub.f32 %v1617_v46, %v2219_v27  ;;  %v2222_v25 = vld [vmem:[#allocation63_spill] sm:$0xff]  ;;  %v2223_v45 = vld [vmem:[#allocation12_spill] sm:$0xff] }
  0x72   : > { %v658_v16 = vadd.f32 %v657_v23, %v1178_v54  ;;  %v493_v4 = vadd.f32 %v492_v57, %v430_v26  ;;  %v2221_v23 = vld [vmem:[#allocation11_spill] sm:$0xff]  ;;  %v434_v57 = vand.u32 2147483647, %v370_v37  ;;  %v695_v19 = vmul.f32 %v2223_v45, %v2222_v25 }
  0x73   : > { %v694_v29 = vmul.f32 %v2221_v23, %v2220_v50  ;;  %v755_v54 = vadd.f32 %v754_v56, %v692_v6  ;;  %v547_v7 = vadd.f32 %v546_v15, %v2214_v36  ;;  %v2224_v23 = vld [vmem:[#allocation65_spill] sm:$0xff]  ;;  %v2226_v37 = vsub.f32 %v1169_v51, %v1106_v31 }
  0x74   : > { %v659_v0 = vadd.f32 %v658_v16, %v2185_v43  ;;  %v494_v5 = vadd.f32 %v493_v4, %v431_v63  ;;  %v435_v63 = vand.u32 2147483647, %v371_v14  ;;  %v2225_v6 = vld [vmem:[#allocation13_spill] sm:$0xff] }
  0x75   : > { %v756_v16 = vadd.f32 %v755_v54, %v693_v40  ;;  %v548_v39 = vadd.f32 %v547_v7, %v2217_v48  ;;  %v696_v56 = vmul.f32 %v2225_v6, %v2224_v23  ;;  %v436_v54 = vand.u32 2147483647, %v2226_v37  ;;  %v1647_v40 = vld [vmem:[%s1037_s16 + $0x1a8] sm:$0xff] }
  0x76   : > { %v660_v26 = vadd.f32 %v659_v0, %v1204_v2  ;;  %v495_v55 = vadd.f32 %v494_v5, %v432_v21  ;;  %v2227_v48 = vld [vmem:[#allocation67_spill] sm:$0xff]  ;;  %v2228_v0 = vld [vmem:[#allocation14_spill] sm:$0xff] }
  0x77   : > { %v757_v27 = vadd.f32 %v756_v16, %v694_v29  ;;  %v549_v15 = vadd.f32 %v548_v39, %v2220_v50  ;;  %v697_v14 = vmul.f32 %v2228_v0, %v2227_v48  ;;  %v2229_v50 = vsub.f32 %v1172_v52, %v1109_v32  ;;  %v1667_v39 = vld [vmem:[%s1037_s16 + $0x1b8] sm:$0xff] }
  0x78   : > { %v661_v44 = vadd.f32 %v660_v26, %v2190_v62  ;;  %v496_v4 = vadd.f32 %v495_v55, %v433_v61  ;;  %v1657_v26 = vld [vmem:[%s1037_s16 + $0x1b0] sm:$0xff]  ;;  %v2230_v55 = vld [vmem:[#allocation15_spill] sm:$0xff] }
  0x79   : > { %v758_v61 = vadd.f32 %v757_v27, %v695_v19  ;;  %v550_v5 = vadd.f32 %v549_v15, %v2222_v25  ;;  %v437_v7 = vand.u32 2147483647, %v2229_v50  ;;  %v698_v45 = vmul.f32 %v2230_v55, %v1408_v17  ;;  %v1677_v15 = vld [vmem:[%s1037_s16 + $0x1c0] sm:$0xff]  ;;  %v1697_v55 = vld [vmem:[%s1037_s16 + $0x1d0] sm:$0xff] }
  0x7a   : > { %v662_v36 = vadd.f32 %v661_v44, %v2193_v10  ;;  %v497_v21 = vadd.f32 %v496_v4, %v434_v57  ;;  %v2231_v25 = vsub.f32 %v1188_v58, %v1119_v33  ;;  %v699_v44 = vmul.f32 %v1103_v30, %v1417_v8 }
  0x7b   : > { %v759_v57 = vadd.f32 %v758_v61, %v696_v56  ;;  %v551_v16 = vadd.f32 %v550_v5, %v2224_v23  ;;  %v2232_v23 = vsub.f32 %v1191_v59, %v1122_v34  ;;  %v2235_v61 = vld [vmem:[#allocation21_spill] sm:$0xff] }
  0x7c   : > { %v663_v29 = vadd.f32 %v662_v36, %v1647_v40  ;;  %v498_v31 = vadd.f32 %v497_v21, %v435_v63  ;;  %v438_v19 = vand.u32 2147483647, %v2231_v25  ;;  %v2233_v36 = vld [vmem:[#allocation16_spill] sm:$0xff]  ;;  %v701_v5 = vmul.f32 %v2235_v61, %v1423_v18 }
  0x7d   : > { %v760_v63 = vadd.f32 %v759_v57, %v697_v14  ;;  %v552_v4 = vadd.f32 %v551_v16, %v2227_v48  ;;  %v439_v56 = vand.u32 2147483647, %v2232_v23  ;;  %v700_v37 = vmul.f32 %v2233_v36, %v1420_v22  ;;  %v1687_v14 = vld [vmem:[%s1037_s16 + $0x1c8] sm:$0xff]  ;;  %v2242_v36 = vld [vmem:[#allocation32_spill] sm:$0xff] }
  0x7e   : > { %v664_v27 = vadd.f32 %v663_v29, %v1657_v26  ;;  %v499_v32 = vadd.f32 %v498_v31, %v436_v54  ;;  %v2234_v48 = vsub.f32 %v1194_v60, %v1125_v35  ;;  %v2238_v57 = vld [vmem:[#allocation27_spill] sm:$0xff] }
  0x7f   : > { %v761_v54 = vadd.f32 %v760_v63, %v698_v45  ;;  %v553_v21 = vadd.f32 %v552_v4, %v1408_v17  ;;  %v2236_v17 = vsub.f32 %v2161_v9, %v2162_v13  ;;  %v2237_v45 = vld [vmem:[#allocation70_spill] sm:$0xff]  ;;  %v2240_v63 = vld [vmem:[#allocation71_spill] sm:$0xff]  ;;  %v2241_v4 = vld [vmem:[#allocation37_spill] sm:$0xff] }
  0x80   : > { %v665_v6 = vadd.f32 %v664_v27, %v1667_v39  ;;  %v500_v33 = vadd.f32 %v499_v32, %v437_v7  ;;  %v440_v0 = vand.u32 2147483647, %v2234_v48  ;;  %v702_v16 = vmul.f32 %v2238_v57, %v2237_v45  ;;  %v2246_v48 = vld [vmem:[#allocation48_spill] sm:$0xff]  ;;  %v2250_v57 = vld [vmem:[#allocation50_spill] sm:$0xff] }
  0x81   : > { %v762_v29 = vadd.f32 %v761_v54, %v699_v44  ;;  %v554_v50 = vadd.f32 %v553_v21, %v1417_v8  ;;  %v441_v31 = vand.u32 2147483647, %v2236_v17  ;;  %v2239_v8 = vsub.f32 %v2164_v11, %v2165_v49  ;;  %v1707_v44 = vld [vmem:[%s1037_s16 + $0x1d8] sm:$0xff]  ;;  %v1717_v21 = vld [vmem:[%s1037_s16 + $0x1e0] sm:$0xff] }
  0x82   : > { %v666_v30 = vadd.f32 %v665_v6, %v1677_v15  ;;  %v501_v34 = vadd.f32 %v500_v33, %v438_v19  ;;  %v703_v6 = vmul.f32 %v2241_v4, %v2240_v63  ;;  %v2253_v4 = vld [vmem:[#allocation81_spill] sm:$0xff] }
  0x83   : > { %v763_v27 = vadd.f32 %v762_v29, %v700_v37  ;;  %v555_v25 = vadd.f32 %v554_v50, %v1420_v22  ;;  %v442_v32 = vand.u32 2147483647, %v2239_v8  ;;  %v2243_v22 = vld [vmem:[#allocation19_spill] sm:$0xff]  ;;  %v2247_v29 = vld [vmem:[#allocation34_spill] sm:$0xff] }
  0x84   : > { %v667_v7 = vadd.f32 %v666_v30, %v1687_v14  ;;  %v502_v35 = vadd.f32 %v501_v34, %v439_v56  ;;  %v2244_v37 = vsub.f32 %v2242_v36, %v2243_v22  ;;  %v2245_v30 = vld [vmem:[#allocation72_spill] sm:$0xff] }
  0x85   : > { %v764_v23 = vadd.f32 %v763_v27, %v701_v5  ;;  %v556_v56 = vadd.f32 %v555_v25, %v1423_v18  ;;  %v704_v34 = vmul.f32 %v2246_v48, %v2245_v30  ;;  %v2248_v18 = vsub.f32 %v2247_v29, %v1141_v41 }
  0x86   : > { %v668_v19 = vadd.f32 %v667_v7, %v1697_v55  ;;  %v503_v13 = vadd.f32 %v502_v35, %v440_v0  ;;  %v443_v54 = vand.u32 2147483647, %v2244_v37  ;;  %v1727_v7 = vld [vmem:[%s1037_s16 + $0x1e8] sm:$0xff]  ;;  %v2249_v35 = vld [vmem:[#allocation73_spill] sm:$0xff] }
  0x87   : > { %v765_v0 = vadd.f32 %v764_v23, %v702_v16  ;;  %v557_v61 = vadd.f32 %v556_v56, %v2237_v45  ;;  %v444_v50 = vand.u32 2147483647, %v2248_v18  ;;  %v705_v27 = vmul.f32 %v2250_v57, %v2249_v35  ;;  %v2254_v23 = vld [vmem:[#allocation52_spill] sm:$0xff] }
  0x88   : > { %v669_v33 = vadd.f32 %v668_v19, %v1707_v44  ;;  %v504_v49 = vadd.f32 %v503_v13, %v441_v31  ;;  %v2251_v19 = vld [vmem:[#allocation35_spill] sm:$0xff]  ;;  %v1737_v13 = vld [vmem:[%s1037_s16 + $0x1f0] sm:$0xff]  ;;  %v706_v56 = vmul.f32 %v2254_v23, %v2253_v4 }
  0x89   : > { %v766_v31 = vadd.f32 %v765_v0, %v703_v6  ;;  %v558_v25 = vadd.f32 %v557_v61, %v2240_v63  ;;  %v2252_v45 = vsub.f32 %v2251_v19, %v1144_v42  ;;  %v2255_v6 = vld [vmem:[#allocation36_spill] sm:$0xff]  ;;  %v2257_v42 = vld [vmem:[#allocation85_spill] sm:$0xff]  ;;  %v2258_v0 = vld [vmem:[#allocation54_spill] sm:$0xff] }
  0x8a   : > { %v670_v5 = vadd.f32 %v669_v33, %v1717_v21  ;;  %v505_v17 = vadd.f32 %v504_v49, %v442_v32  ;;  %v2256_v63 = vsub.f32 %v2255_v6, %v2173_v20  ;;  %v1747_v49 = vld [vmem:[%s1037_s16 + $0x1f8] sm:$0xff]  ;;  %v707_v61 = vmul.f32 %v2258_v0, %v2257_v42 }
  0x8b   : > { %v445_v8 = vand.u32 2147483647, %v2252_v45  ;;  %v767_v33 = vadd.f32 %v766_v31, %v704_v34  ;;  %v559_v32 = vadd.f32 %v558_v25, %v2245_v30  ;;  %v2259_v34 = vld [vmem:[#allocation38_spill] sm:$0xff]  ;;  %v2262_v25 = vld [vmem:[#allocation56_spill] sm:$0xff] }
  0x8c   : > { %v671_v16 = vadd.f32 %v670_v5, %v1727_v7  ;;  %v506_v41 = vadd.f32 %v505_v17, %v443_v54  ;;  %v446_v37 = vand.u32 2147483647, %v2256_v63  ;;  %v2260_v30 = vsub.f32 %v2259_v34, %v1157_v47  ;;  %v2261_v31 = vld [vmem:[#allocation86_spill] sm:$0xff] }
  0x8d   : > { %v768_v5 = vadd.f32 %v767_v33, %v705_v27  ;;  %v560_v54 = vadd.f32 %v559_v32, %v2249_v35  ;;  %v708_v20 = vmul.f32 %v2262_v25, %v2261_v31  ;;  %v2265_v35 = vld [vmem:[#allocation58_spill] sm:$0xff] }
  0x8e   : > { %v672_v22 = vadd.f32 %v671_v16, %v1737_v13  ;;  %v507_v48 = vadd.f32 %v506_v41, %v444_v50  ;;  %v447_v17 = vand.u32 2147483647, %v2260_v30  ;;  %v2263_v50 = vld [vmem:[#allocation39_spill] sm:$0xff]  ;;  %v709_v33 = vmul.f32 %v2265_v35, %v1562_v1  ;;  %v2272_v30 = vld [vmem:[#allocation62_spill] sm:$0xff] }
  0x8f   : > { %v769_v16 = vadd.f32 %v768_v5, %v706_v56  ;;  %v561_v45 = vadd.f32 %v560_v54, %v2253_v4  ;;  %v2264_v41 = vsub.f32 %v2263_v50, %v2177_v28  ;;  %v2268_v4 = vld [vmem:[#allocation60_spill] sm:$0xff]  ;;  %v2269_v5 = vld [vmem:[#allocation41_spill] sm:$0xff]  ;;  %v2273_v25 = vld [vmem:[#allocation42_spill] sm:$0xff] }
  0x90   : > { %v673_v18 = vadd.f32 %v672_v22, %v1747_v49  ;;  %v508_v57 = vadd.f32 %v507_v48, %v445_v8  ;;  %v2266_v22 = vld [vmem:[#allocation40_spill] sm:$0xff]  ;;  %v710_v48 = vmul.f32 %v2268_v4, %v1572_v24 }
  0x91   : > { %v448_v27 = vand.u32 2147483647, %v2264_v41  ;;  %v770_v32 = vadd.f32 %v769_v16, %v707_v61  ;;  %v562_v47 = vadd.f32 %v561_v45, %v2257_v42  ;;  %v2267_v8 = vsub.f32 %v2266_v22, %v2180_v38  ;;  %v2271_v61 = vld [vmem:[#allocation26_spill] sm:$0xff] }
  0x92   : > { %674 = vadd.xlane.f32.xlu1 %v673_v18  ;;  %v509_v23 = vadd.f32 %v508_v57, %v446_v37  ;;  %v2270_v37 = vsub.f32 %v2269_v5, %v1175_v53  ;;  %v711_v42 = vmul.f32 %v2272_v30, %v2271_v61 }
  0x93   : > { %v449_v63 = vand.u32 2147483647, %v2267_v8  ;;  %v771_v0 = vadd.f32 %v770_v32, %v708_v20  ;;  %v563_v28 = vadd.f32 %v562_v47, %v2261_v31  ;;  %v2276_v20 = vld [vmem:[#allocation2_spill] sm:$0xff]  ;;  %v1787_v8 = vld [vmem:[%s1116_s19 + $0x1a8] sm:$0xff] }
  0x94   : > { %v510_v56 = vadd.f32 %v509_v23, %v447_v17  ;;  %v450_v54 = vand.u32 2147483647, %v2270_v37  ;;  %v2274_v17 = vld [vmem:[#allocation24_spill] sm:$0xff] }
  0x95   : > { %v772_v57 = vadd.f32 %v771_v0, %v709_v33  ;;  %v564_v38 = vadd.f32 %v563_v28, %v1562_v1  ;;  %v2275_v16 = vsub.f32 %v2273_v25, %v2274_v17  ;;  %v2277_v23 = vld [vmem:[#allocation64_spill] sm:$0xff]  ;;  %v2280_v1 = vld [vmem:[#allocation33_spill] sm:$0xff] }
  0x96   : > { %v511_v18 = vadd.f32 %v510_v56, %v448_v27  ;;  %v712_v31 = vmul.f32 %v2277_v23, %v2276_v20  ;;  %v2278_v27 = vld [vmem:[#allocation43_spill] sm:$0xff]  ;;  %v2281_v56 = vld [vmem:[#allocation66_spill] sm:$0xff]  ;;  %v2282_v28 = vld [vmem:[#allocation44_spill] sm:$0xff] }
  0x97   : > { %v451_v45 = vand.u32 2147483647, %v2275_v16  ;;  %v773_v35 = vadd.f32 %v772_v57, %v710_v48  ;;  %v565_v53 = vadd.f32 %v564_v38, %v1572_v24  ;;  %v2279_v32 = vsub.f32 %v2278_v27, %v2185_v43  ;;  %v2284_v57 = vld [vmem:[#allocation45_spill] sm:$0xff]  ;;  %v1815_v23 = vld [vmem:[%s1116_s19 + $0x1c0] sm:$0xff] }
  0x98   : > { %v512_v41 = vadd.f32 %v511_v18, %v449_v63  ;;  %v713_v4 = vmul.f32 %v2281_v56, %v2280_v1  ;;  %v2283_v48 = vsub.f32 %v2282_v28, %v1204_v2  ;;  %v1796_v18 = vld [vmem:[%s1116_s19 + $0x1b0] sm:$0xff]  ;;  %v714_v43 = vmul.f32 %v2216_v3, %v1608_v12  ;;  %v1807_v17 = vld [vmem:[%s1116_s19 + $0x1b8] sm:$0xff]  ;;  %v1824_v56 = vld [vmem:[%s1116_s19 + $0x1c8] sm:$0xff] }
  0x99   : > { %v452_v47 = vand.u32 2147483647, %v2279_v32  ;;  %v774_v0 = vadd.f32 %v773_v35, %v711_v42  ;;  %v566_v63 = vadd.f32 %v565_v53, %v2271_v61  ;;  %v392_v42 = vsub.f32 %v1787_v8, %v1647_v40  ;;  %v2286_v16 = vld [vmem:[#allocation69_spill] sm:$0xff] }
  0x9a   : > { %v513_v33 = vadd.f32 %v512_v41, %v450_v54  ;;  %v453_v37 = vand.u32 2147483647, %v2283_v48  ;;  %v2285_v61 = vsub.f32 %v2284_v57, %v2190_v62  ;;  %v1830_v48 = vld [vmem:[%s1116_s19 + $0x1d0] sm:$0xff] }
  0x9b   : > { %v775_v30 = vadd.f32 %v774_v0, %v712_v31  ;;  %v567_v54 = vadd.f32 %v566_v63, %v2276_v20  ;;  %v393_v20 = vsub.f32 %v1796_v18, %v1657_v26  ;;  %v2287_v31 = vld [vmem:[#allocation46_spill] sm:$0xff] }
  0x9c   : > { %v514_v24 = vadd.f32 %v513_v33, %v451_v45  ;;  %v454_v38 = vand.u32 2147483647, %v2285_v61  ;;  %v715_v45 = vmul.f32 %v2286_v16, %v1617_v46  ;;  %v2288_v35 = vsub.f32 %v2287_v31, %v2193_v10 }
  0x9d   : > { %v776_v41 = vadd.f32 %v775_v30, %v713_v4  ;;  %v568_v3 = vadd.f32 %v567_v54, %v2280_v1  ;;  %v394_v33 = vsub.f32 %v1807_v17, %v1667_v39  ;;  %v456_v1 = vand.u32 2147483647, %v392_v42  ;;  %v1837_v42 = vld [vmem:[%s1116_s19 + $0x1d8] sm:$0xff] }
  0x9e   : > { %v515_v2 = vadd.f32 %v514_v24, %v452_v47  ;;  %v455_v62 = vand.u32 2147483647, %v2288_v35  ;;  %v395_v10 = vsub.f32 %v1815_v23, %v1677_v15  ;;  %v396_v54 = vsub.f32 %v1824_v56, %v1687_v14 }
  0x9f   : > { %v777_v32 = vadd.f32 %v776_v41, %v714_v43  ;;  %v569_v47 = vadd.f32 %v568_v3, %v1608_v12  ;;  %v2289_v43 = vld [vmem:[#allocation74_spill] sm:$0xff]  ;;  %v458_v61 = vand.u32 2147483647, %v394_v33 }
  0xa0   : > { %v516_v53 = vadd.f32 %v515_v2, %v453_v37  ;;  %v457_v37 = vand.u32 2147483647, %v393_v20  ;;  %v1844_v41 = vld [vmem:[%s1116_s19 + $0x1e0] sm:$0xff]  ;;  %v459_v3 = vand.u32 2147483647, %v395_v10 }
  0xa1   : > { %v778_v0 = vadd.f32 %v777_v32, %v715_v45  ;;  %v570_v63 = vadd.f32 %v569_v47, %v1617_v46  ;;  %v2290_v46 = vld [vmem:[#allocation75_spill] sm:$0xff]  ;;  %v397_v45 = vsub.f32 %v1830_v48, %v1697_v55  ;;  %v460_v47 = vand.u32 2147483647, %v396_v54 }
  0xa2   : > { %v517_v4 = vadd.f32 %v516_v53, %v454_v38  ;;  %v398_v53 = vsub.f32 %v1837_v42, %v1707_v44  ;;  %v1851_v32 = vld [vmem:[%s1116_s19 + $0x1e8] sm:$0xff] }
  0xa3   : > { %v779_v12 = vadd.f32 %v778_v0, %v2289_v43  ;;  %v571_v30 = vadd.f32 %v570_v63, %v1169_v51  ;;  %v2291_v51 = vld [vmem:[#allocation76_spill] sm:$0xff]  ;;  %v399_v0 = vsub.f32 %v1844_v41, %v1717_v21  ;;  %v461_v10 = vand.u32 2147483647, %v397_v45 }
  0xa4   : > { %v518_v24 = vadd.f32 %v517_v4, %v455_v62  ;;  %v1858_v63 = vld [vmem:[%s1116_s19 + $0x1f0] sm:$0xff]  ;;  %v462_v54 = vand.u32 2147483647, %v398_v53  ;;  %v2296_v53 = vld [vmem:[#allocation31_spill] sm:$0xff] }
  0xa5   : > { %v780_v2 = vadd.f32 %v779_v12, %v2290_v46  ;;  %v572_v16 = vadd.f32 %v571_v30, %v1172_v52  ;;  %v2292_v52 = vld [vmem:[#allocation77_spill] sm:$0xff]  ;;  %v400_v12 = vsub.f32 %v1851_v32, %v1727_v7 }
  0xa6   : > { %v519_v38 = vadd.f32 %v518_v24, %v456_v1  ;;  %v2293_v24 = vld [vmem:[#allocation78_spill] sm:$0xff]  ;;  %v1865_v30 = vld [vmem:[%s1116_s19 + $0x1f8] sm:$0xff] }
  0xa7   : > { %v781_v35 = vadd.f32 %v780_v2, %v2291_v51  ;;  %v573_v62 = vadd.f32 %v572_v16, %v1188_v58  ;;  %v401_v2 = vsub.f32 %v1858_v63, %v1737_v13  ;;  %v463_v16 = vand.u32 2147483647, %v399_v0 }
  0xa8   : > { %v520_v20 = vadd.f32 %v519_v38, %v457_v37  ;;  %v2294_v38 = vld [vmem:[#allocation30_spill] sm:$0xff]  ;;  %v402_v51 = vsub.f32 %v1865_v30, %v1747_v49 }
  0xa9   : > { %v782_v1 = vadd.f32 %v781_v35, %v2292_v52  ;;  %v574_v4 = vadd.f32 %v573_v62, %v1191_v59  ;;  %v464_v35 = vand.u32 2147483647, %v400_v12  ;;  %v465_v52 = vand.u32 2147483647, %v401_v2  ;;  %v2301_v2 = vld [vmem:[#allocation22_spill] sm:$0xff] }
  0xaa   : > { %v521_v33 = vadd.f32 %v520_v20, %v458_v61 }
  0xab   : > { %v783_v58 = vadd.f32 %v782_v1, %v2293_v24  ;;  %v575_v43 = vadd.f32 %v574_v4, %v1194_v60  ;;  %v2297_v1 = vld [vmem:[#allocation18_spill] sm:$0xff]  ;;  %v2298_v24 = vld [vmem:[#allocation79_spill] sm:$0xff] }
  0xac   : > { %v522_v37 = vadd.f32 %v521_v33, %v459_v3  ;;  %v2295_v3 = vld [vmem:[#allocation17_spill] sm:$0xff] }
  0xad   : > { %v784_v59 = vadd.f32 %v783_v58, %v2294_v38  ;;  %v576_v46 = vadd.f32 %v575_v43, %v2161_v9 }
  0xae   : > { %v523_v61 = vadd.f32 %v522_v37, %v460_v47 }
  0xaf   : > { %v785_v20 = vadd.f32 %v784_v59, %v2295_v3  ;;  %v577_v60 = vadd.f32 %v576_v46, %v2164_v11  ;;  %v2300_v59 = vld [vmem:[#allocation80_spill] sm:$0xff] }
  0xb0   : > { %v524_v45 = vadd.f32 %v523_v61, %v461_v10  ;;  %v466_v10 = vand.u32 2147483647, %v402_v51  ;;  %v2299_v61 = vld [vmem:[#allocation20_spill] sm:$0xff] }
  0xb1   : > { %v786_v47 = vadd.f32 %v785_v20, %v2296_v53  ;;  %v578_v33 = vadd.f32 %v577_v60, %v2242_v36  ;;  %v2305_v53 = vld [vmem:[#allocation25_spill] sm:$0xff] }
  0xb2   : > { %v525_v62 = vadd.f32 %v524_v45, %v462_v54  ;;  %v2302_v45 = vld [vmem:[#allocation23_spill] sm:$0xff] }
  0xb3   : > { %v787_v4 = vadd.f32 %v786_v47, %v2297_v1  ;;  %v579_v0 = vadd.f32 %v578_v33, %v2247_v29  ;;  %v2306_v33 = vld [vmem:[#allocation84_spill] sm:$0xff] }
  0xb4   : > { %v526_v9 = vadd.f32 %v525_v62, %v463_v16 }
  0xb5   : > { %v788_v58 = vadd.f32 %v787_v4, %v2298_v24  ;;  %v580_v11 = vadd.f32 %v579_v0, %v2251_v19  ;;  %v2303_v19 = vld [vmem:[#allocation82_spill] sm:$0xff]  ;;  %v2308_v0 = vld [vmem:[#allocation29_spill] sm:$0xff] }
  0xb6   : > { %v527_v37 = vadd.f32 %v526_v9, %v464_v35  ;;  %v2304_v35 = vld [vmem:[#allocation83_spill] sm:$0xff]  ;;  %v736_v9 = vmul.f32 %v1647_v40, %v1787_v8  ;;  %v739_v40 = vmul.f32 %v1677_v15, %v1815_v23 }
  0xb7   : > { %v789_v12 = vadd.f32 %v788_v58, %v2299_v61  ;;  %v581_v54 = vadd.f32 %v580_v11, %v2255_v6 }
  0xb8   : > { %v528_v43 = vadd.f32 %v527_v37, %v465_v52 }
  0xb9   : > { %v790_v36 = vadd.f32 %v789_v12, %v2300_v59  ;;  %v582_v46 = vadd.f32 %v581_v54, %v2259_v34 }
  0xba   : > { %v529_v38 = vadd.f32 %v528_v43, %v466_v10 }
  0xbb   : > { %v791_v16 = vadd.f32 %v790_v36, %v2301_v2  ;;  %v583_v29 = vadd.f32 %v582_v46, %v2263_v50 }
  0xbc   : > { %530 = vadd.xlane.f32.xlu0 %v529_v38 }
  0xbd   : > { %v792_v3 = vadd.f32 %v791_v16, %v2302_v45  ;;  %v584_v20 = vadd.f32 %v583_v29, %v2266_v22  ;;  %v2307_v22 = vld [vmem:[#allocation28_spill] sm:$0xff] }
  0xbf   : > { %v793_v60 = vadd.f32 %v792_v3, %v2303_v19  ;;  %v585_v51 = vadd.f32 %v584_v20, %v2269_v5  ;;  %v737_v5 = vmul.f32 %v1657_v26, %v1796_v18 }
  0xc1   : > { %v794_v6 = vadd.f32 %v793_v60, %v2304_v35  ;;  %v586_v62 = vadd.f32 %v585_v51, %v2273_v25 }
  0xc3   : > { %v795_v47 = vadd.f32 %v794_v6, %v2305_v53  ;;  %v587_v34 = vadd.f32 %v586_v62, %v2278_v27  ;;  %v738_v27 = vmul.f32 %v1667_v39, %v1807_v17 }
  0xc5   : > { %v796_v52 = vadd.f32 %v795_v47, %v2306_v33  ;;  %v588_v50 = vadd.f32 %v587_v34, %v2282_v28 }
  0xc7   : > { %v797_v1 = vadd.f32 %v796_v52, %v2307_v22  ;;  %v589_v4 = vadd.f32 %v588_v50, %v2284_v57  ;;  %v740_v57 = vmul.f32 %v1687_v14, %v1824_v56 }
  0xc9   : > { %v798_v25 = vadd.f32 %v797_v1, %v2308_v0  ;;  %v590_v10 = vadd.f32 %v589_v4, %v2287_v31  ;;  %v741_v31 = vmul.f32 %v1697_v55, %v1830_v48 }
  0xcb   : > { %v799_v37 = vadd.f32 %v798_v25, %v736_v9  ;;  %v591_v28 = vadd.f32 %v590_v10, %v1787_v8  ;;  %v742_v8 = vmul.f32 %v1707_v44, %v1837_v42 }
  0xcd   : > { %v800_v24 = vadd.f32 %v799_v37, %v737_v5  ;;  %v592_v58 = vadd.f32 %v591_v28, %v1796_v18  ;;  %v743_v18 = vmul.f32 %v1717_v21, %v1844_v41  ;;  %v819_v5 = vlaneseq }
  0xcf   : > { %v801_v26 = vadd.f32 %v800_v24, %v738_v27  ;;  %v593_v11 = vadd.f32 %v592_v58, %v1807_v17  ;;  %v744_v17 = vmul.f32 %v1727_v7, %v1851_v32  ;;  %v820_v0 = vshrl.u32 %v819_v5, 7 }
  0xd1   : > { %v802_v43 = vadd.f32 %v801_v26, %v739_v40  ;;  %v594_v39 = vadd.f32 %v593_v11, %v1815_v23  ;;  %v745_v23 = vmul.f32 %v1737_v13, %v1858_v63  ;;  %v995_v13 = vmov 0.0  }
  0xd2   : > { %210 = vst [vmem:[%s1938_s23] sm:$0xf] %v995_v13  ;;  %vm821_vm0 = vcmp.eq.s32.totalorder %v820_v0, 0  ;;  %vm824_vm1 = vcmp.eq.s32.totalorder %v820_v0, 1  ;;  %vm828_vm2 = vcmp.eq.s32.totalorder %v820_v0, 2  ;;  %vm832_vm3 = vcmp.eq.s32.totalorder %v820_v0, 3 }
  0xd3   : > { %v803_v61 = vadd.f32 %v802_v43, %v740_v57  ;;  %v595_v15 = vadd.f32 %v594_v39, %v1824_v56  ;;  %v746_v56 = vmul.f32 %v1747_v49, %v1865_v30 }
  0xd5   : > { %v804_v12 = vadd.f32 %v803_v61, %v741_v31  ;;  %v596_v14 = vadd.f32 %v595_v15, %v1830_v48 }
  0xd7   : > { %v805_v55 = vadd.f32 %v804_v12, %v742_v8  ;;  %v597_v54 = vadd.f32 %v596_v14, %v1837_v42 }
  0xd9   : > { %v806_v44 = vadd.f32 %v805_v55, %v743_v18  ;;  %v598_v38 = vadd.f32 %v597_v54, %v1844_v41  ;;  %v836_v11 = vld [vmem:[%s1938_s23] sm:$0xf] }
  0xdb   : > { %v807_v21 = vadd.f32 %v806_v44, %v744_v17  ;;  %v599_v59 = vadd.f32 %v598_v38, %v1851_v32 }
  0xdd   : > { %v808_v48 = vadd.f32 %v807_v21, %v745_v23  ;;  %v600_v36 = vadd.f32 %v599_v59, %v1858_v63 }
  0xdf   : > { %v809_v46 = vadd.f32 %v808_v48, %v746_v56  ;;  %v601_v7 = vadd.f32 %v600_v36, %v1865_v30 }
  0xe1   : > { %810 = vadd.xlane.f32.xlu1 %v809_v46  ;;  %602 = vadd.xlane.f32.xlu0 %v601_v7 }
 0x11f   : > { %v675_v30 = vpop.xlane.xlu1 %674 }
 0x120   : > { %v676_v29 = vrot.slane %v675_v30, 4 }
 0x122   : > { %v677_v45 = vadd.f32 %v676_v29, %v675_v30 }
 0x124   : > { %v678_v3 = vrot.slane %v677_v45, 2 }
 0x126   : > { %v679_v62 = vadd.f32 %v678_v3, %v677_v45 }
 0x128   : > { %v680_v52 = vrot.slane %v679_v62, 1 }
 0x12a   : > { %v681_v1 = vadd.f32 %v680_v52, %v679_v62 }
 0x149   : > { %v531_v49 = vpop.xlane.xlu0 %530 }
 0x14a   : > { %v532_v42 = vrot.slane %v531_v49, 4 }
 0x14c   : > { %v533_v41 = vadd.f32 %v532_v42, %v531_v49 }
 0x14e   : > { %v534_v32 = vrot.slane %v533_v41, 2 }
 0x150   : > { %v535_v2 = vadd.f32 %v534_v32, %v533_v41 }
 0x152   : > { %v536_v63 = vrot.slane %v535_v2, 1 }
 0x154   : > { %v537_v16 = vadd.f32 %v536_v63, %v535_v2 }
 0x156   : > { %938 = vpush %v537_v16 }
 0x16e   : > { %v811_v20 = vpop.xlane.xlu1 %810  ;;  %v603_v19 = vpop.xlane.xlu0 %602 }
 0x16f   : > { %v812_v60 = vrot.slane %v811_v20, 4  ;;  %v604_v51 = vrot.slane %v603_v19, 4 }
 0x171   : > { %v813_v35 = vadd.f32 %v812_v60, %v811_v20  ;;  %v605_v6 = vadd.f32 %v604_v51, %v603_v19 }
 0x173   : > { %v814_v53 = vrot.slane %v813_v35, 2  ;;  %v606_v47 = vrot.slane %v605_v6, 2 }
 0x175   : > { %v815_v34 = vadd.f32 %v814_v53, %v813_v35  ;;  %v607_v33 = vadd.f32 %v606_v47, %v605_v6 }
 0x177   : > { %v608_v50 = vrot.slane %v607_v33, 1  ;;  %v816_v9 = vrot.slane %v815_v34, 1 }
 0x179   : > { %v609_v22 = vadd.f32 %v608_v50, %v607_v33  ;;  %v817_v4 = vadd.f32 %v816_v9, %v815_v34 }
 0x17b   : > { %940 = vpush %v609_v22 }
 0x17c   : > { %942 = vpush %v681_v1 }
 0x17d   : > { %944 = vpush %v817_v4 }
 0x187   : > { %s939_s24 = spop %938 }
 0x188   : > { %v822_v25 = vstv %s939_s24 }
 0x189   : > { %v823_v27 = vsel %vm821_vm0, %v822_v25, 0.0 }
 0x1ac   : > { %s941_s25 = spop %940 }
 0x1ad   : > { %v825_v10 = vstv %s941_s25  ;;  %s943_s26 = spop %942 }
 0x1ae   : > { %v826_v37 = vsel %vm824_vm1, %v825_v10, 0.0  ;;  %v829_v28 = vstv %s943_s26  ;;  %s945_s27 = spop %944 }
 0x1af   : > { %v827_v40 = vadd.f32 %v826_v37, %v823_v27  ;;  %v833_v24 = vstv %s945_s27  ;;  %v830_v58 = vsel %vm828_vm2, %v829_v28, 0.0 }
 0x1b0   : > { %v834_v26 = vsel %vm832_vm3, %v833_v24, 0.0 }
 0x1b1   : > { %v831_v57 = vadd.f32 %v830_v58, %v827_v40 }
 0x1b3   : > { %v835_v31 = vadd.f32 %v834_v26, %v831_v57 }
 0x1b5   : > { %v837_v43 = vadd.f32 %v836_v11, %v835_v31 }
 0x1b7   : > { %838 = vst [vmem:[%s1938_s23] sm:$0xf] %v837_v43 }
 0x1b8 PF: > { %s12_s11 = sadd.s32 1, %s993_s11   ;;  %s2309_s9 = smov %s989_s10 }
 0x1b9   : > { %p9_p5 = scmp.ge.s32.totalorder %s12_s11, 12   ;;  %s2310_s10 = smov %s2312_s12 }
 0x1bb   :  { %11 = sbr.rel (!%p9_p5) target bundleno = 2 (0x2), region = 65 }

// kernel: loss_gf.6
= control target key start
LH: loop header
LB: loop body
LE: loop exit
PB: predicated region body
PF: predicated region fallthrough
CT: control target
= control target key end

     0   :  { %s14372_s12 = smov 0   ;;  %s16811_s0 = inlined_call_operand.vmem [shape: bf16[4,18,18,128], index: 0, kind: input, shape index: {}]   ;;  %s16812_s1 = inlined_call_operand.vmem [shape: bf16[9,128,128], index: 1, kind: input, shape index: {}]   ;;  %s16813_s2 = inlined_call_operand.vmem [shape: f32[1,128], index: 2, kind: input, shape index: {}]   ;;  %s16814_s3 = inlined_call_operand.vmem [shape: bf16[4,256,128], index: 3, kind: output, shape index: {}]  }
   0x1 LB: > { %s11118_s13 = sadd.s32 4294967295, %s14350_s12   ;;  %p11122_p0 = scmp.ge.s32.totalorder %s14350_s12, 1  ;;  %s14350_s12 = sphi %s14372_s12, %s13_s12  }
   0x2   : > { %p139_p1 = scmp.lt.s32.totalorder %s14350_s12, 3 }
   0x4   : > { %p140_p2 = pnand %p11122_p0, %p139_p1 }
   0x5   : > { %v14164_v0 = vld [vmem:[%s16812_s1] sm:$0xff] (!%p140_p2)   ;;  %s11123_s16 = sshll.u32 (!%p140_p2), %s11118_s13, 1  ;;  %v14166_v2 = vld [vmem:[%s16812_s1 + $0x8] sm:$0xff] (!%p140_p2)   ;;  %v14168_v4 = vld [vmem:[%s16812_s1 + $0x10] sm:$0xff] (!%p140_p2)   ;;  %vm1141_vm0 = vsmask.f32 (!%p140_p2), 3328 }
   0x6   : > { %143 = sbr.rel (%p140_p2) target bundleno = 853 (0x355), region = 32  ;;  %v14165_v1 = vld [vmem:[%s16812_s1 + $0x100] sm:$0xff] (!%p140_p2)   ;;  %12907 = vmatprep.subr.bf16.mxu1 (!%p140_p2), %v14164_v0  ;;  %p166_p3 = scmp.lt.s32.totalorder (!%p140_p2), %s11123_s16, 3  ;;  %v14167_v3 = vld [vmem:[%s16812_s1 + $0x108] sm:$0xff] (!%p140_p2)   ;;  %v14169_v5 = vld [vmem:[%s16812_s1 + $0x110] sm:$0xff] (!%p140_p2)   ;;  %vm2778_vm3 = vcmask (!%p140_p2), 1042432  }
   0x7   : > { %13227 = vmatprep.subr.bf16.mxu0 (!%p140_p2), %v14165_v1  ;;  %12908 = vmatpush3.bf16.msra.mxu1 (!%p140_p2), %v14164_v0  ;;  %v14170_v6 = vld [vmem:[%s16812_s1 + $0x18] sm:$0xff] (!%p140_p2)   ;;  %v14172_v8 = vld [vmem:[%s16812_s1 + $0x20] sm:$0xff] (!%p140_p2)   ;;  %v14174_v10 = vld [vmem:[%s16812_s1 + $0x28] sm:$0xff] (!%p140_p2)   ;;  %vm1142_vm1 = vsmask.f32 (!%p140_p2), 7440  ;;  %vm2779_vm4 = vcmask (!%p140_p2), 1046532  }
   0x8   : > { %13228 = vmatpush3.bf16.msra.mxu0 (!%p140_p2), %v14165_v1  ;;  %12909 = vmatprep.subr.bf16.mxu1 (!%p140_p2), %v14166_v2  ;;  %v14171_v7 = vld [vmem:[%s16812_s1 + $0x118] sm:$0xff] (!%p140_p2)   ;;  %v14173_v9 = vld [vmem:[%s16812_s1 + $0x120] sm:$0xff] (!%p140_p2)   ;;  %v14175_v11 = vld [vmem:[%s16812_s1 + $0x128] sm:$0xff] (!%p140_p2)  }
   0x9   : > { %13229 = vmatprep.subr.bf16.mxu0 (!%p140_p2), %v14167_v3  ;;  %v14176_v18 = vld [vmem:[%s16812_s1 + $0x30] sm:$0xff] (!%p140_p2)   ;;  %v14178_v32 = vld [vmem:[%s16812_s1 + $0x38] sm:$0xff] (!%p140_p2)   ;;  %vm14442_vm2 = vmor (!%p140_p2), %vm1141_vm0, %vm1142_vm1 }
   0xa   : > { %v14177_v24 = vld [vmem:[%s16812_s1 + $0x130] sm:$0xff] (!%p140_p2)   ;;  %v14179_v38 = vld [vmem:[%s16812_s1 + $0x138] sm:$0xff] (!%p140_p2)   ;;  %v14182_v47 = vld [vmem:[%s16812_s1 + $0x40] sm:$0xff] (!%p140_p2)  }
   0xb   : > { %12910 = vmatpush3.bf16.msra.mxu1 (!%p140_p2), %v14166_v2  ;;  %v14183_v63 = vld [vmem:[%s16812_s1 + $0x140] sm:$0xff] (!%p140_p2)   ;;  %vm14609_vm5 = vmor (!%p140_p2), %vm2778_vm3, %vm2779_vm4 }
   0xc   : > { %13230 = vmatpush3.bf16.msra.mxu0 (!%p140_p2), %v14167_v3  ;;  %12911 = vmatprep.subr.bf16.mxu1 (!%p140_p2), %v14168_v4 }
   0xd   : > { %s16820_s16 = smov (!%p166_p3, %s11123_s16), 3  ;;  %13231 = vmatprep.subr.bf16.mxu0 %v14169_v5 }
   0xe   : > { %s14155_s4 = smul.u32 216, %s16820_s16  ;;  %s12291_s19 = sshll.u32 %s16820_s16, 7 }
   0xf   : > { %12912 = vmatpush3.bf16.msra.mxu1 %v14168_v4  ;;  %s16690_s22 = scalar_lea.vmem %s16814_s3, %s12291_s19 }
  0x10   : > { %13232 = vmatpush3.bf16.msra.mxu0 %v14169_v5  ;;  %12913 = vmatprep.subr.bf16.mxu1 %v14170_v6  ;;  %s14419_s14 = scalar_lea.vmem %s16811_s0, %s14155_s4 }
  0x11   : > { %13233 = vmatprep.subr.bf16.mxu0 %v14171_v7  ;;  %v14180_v12 = vld [vmem:[%s14419_s14] sm:$0xff]   ;;  %v11432_v13 = vld [vmem:[%s14419_s14 + $0xc] sm:$0xf]  ;;  %v11433_v14 = vld [vmem:[%s14419_s14 + $0x10] sm:$0xf] }
  0x12   : > { %12923 = vmatprep.mubr.bf16.mxu1 %v14180_v12  ;;  %v11434_v15 = vld [vmem:[%s14419_s14 + $0x14] sm:$0x1]  ;;  %v4579_v16 = vshrl.u32 %v11432_v13, 16  ;;  %v4582_v17 = vshll.u32 %v11432_v13, 16  ;;  %v4588_v19 = vshll.u32 %v11433_v14, 16  ;;  %v4592_v20 = vshrl.u32 %v11433_v14, 16 }
  0x13   : > { %12914 = vmatpush3.bf16.msra.mxu1 %v14170_v6  ;;  %v4598_v21 = vshll.u32 %v11434_v15, 16  ;;  %v11435_v29 = vld [vmem:[%s14419_s14 + $0x18] sm:$0xf]  ;;  %v11436_v30 = vld [vmem:[%s14419_s14 + $0x1c] sm:$0xf]  ;;  %v14181_v61 = vld [vmem:[%s14419_s14 + $0xc] sm:$0xff]  }
  0x14   : > { %13234 = vmatpush3.bf16.msra.mxu0 %v14171_v7  ;;  %12915 = vmatprep.subr.bf16.mxu1 %v14172_v8  ;;  %v4581_v22 = vrot.slane %v4579_v16, 4  ;;  %v4584_v23 = vrot.slane %v4582_v17, 5  ;;  %v4590_v25 = vrot.slane %v4588_v19, 5  ;;  %v4594_v26 = vrot.slane %v4592_v20, 4  ;;  %v11437_v31 = vld [vmem:[%s14419_s14 + $0x20] sm:$0x1] }
  0x15   : > { %13235 = vmatprep.subr.bf16.mxu0 %v14173_v9  ;;  %v4600_v27 = vrot.slane %v4598_v21, 5  ;;  %v4603_v35 = vshrl.u32 %v11435_v29, 16  ;;  %v4606_v36 = vshll.u32 %v11435_v29, 16  ;;  %v4612_v37 = vshll.u32 %v11436_v30, 16  ;;  %v11438_v50 = vld [vmem:[%s14419_s14 + $0x24] sm:$0xf] }
  0x16   : > { %v4585_v28 = vor.u32 %v4584_v23, %v4581_v22  ;;  %v4595_v34 = vor.u32 %v4594_v26, %v4590_v25  ;;  %v4616_v40 = vshrl.u32 %v11436_v30, 16  ;;  %v4622_v41 = vshll.u32 %v11437_v31, 16  ;;  %v11439_v53 = vld [vmem:[%s14419_s14 + $0x28] sm:$0xf]  ;;  %v11440_v54 = vld [vmem:[%s14419_s14 + $0x2c] sm:$0x1] }
  0x17   : > { %12916 = vmatpush3.bf16.msra.mxu1 %v14172_v8  ;;  %v4605_v43 = vrot.slane %v4603_v35, 4  ;;  %v4608_v44 = vrot.slane %v4606_v36, 5  ;;  %v4614_v45 = vrot.slane %v4612_v37, 5  ;;  %v4627_v55 = vshrl.u32 %v11438_v50, 16  ;;  %v14184_v4 = vld [vmem:[%s14419_s14 + $0x18] sm:$0xff]   ;;  %v14186_v22 = vld [vmem:[%s16812_s1 + $0x148] sm:$0xff]  }
  0x18   : > { %13236 = vmatpush3.bf16.msra.mxu0 %v14173_v9  ;;  %12917 = vmatprep.subr.bf16.mxu1 %v14174_v10  ;;  %v4586_v39 = vrot.slane %v4585_v28, 4  ;;  %v4596_v42 = vrot.slane %v4595_v34, 4  ;;  %v4618_v48 = vrot.slane %v4616_v40, 4  ;;  %v4624_v49 = vrot.slane %v4622_v41, 5  ;;  %v11441_v7 = vld [vmem:[%s14419_s14 + $0x30] sm:$0xf] }
  0x19   : > { %13237 = vmatprep.subr.bf16.mxu0 %v14175_v11  ;;  %v4609_v52 = vor.u32 %v4608_v44, %v4605_v43  ;;  %v4630_v56 = vshll.u32 %v11438_v50, 16  ;;  %v4636_v59 = vshll.u32 %v11439_v53, 16  ;;  %v4640_v60 = vshrl.u32 %v11439_v53, 16  ;;  %v11443_v12 = vld [vmem:[%s14419_s14 + $0x38] sm:$0x1]  ;;  %v14189_v31 = vld [vmem:[%s16812_s1 + $0x48] sm:$0xff]  }
  0x1a   : > { %v4591_v46 = vsel %vm14442_vm2, %v4586_v39, %v4590_v25  ;;  %v4601_v51 = vsel %vm14442_vm2, %v4596_v42, %v4600_v27  ;;  %v4619_v58 = vor.u32 %v4618_v48, %v4614_v45  ;;  %v4629_v0 = vrot.slane %v4627_v55, 4  ;;  %v11444_v29 = vld [vmem:[%s14419_s14 + $0x3c] sm:$0xf]  ;;  %v11445_v30 = vld [vmem:[%s14419_s14 + $0x40] sm:$0xf]  ;;  %v14185_v34 = vld [vmem:[%s14419_s14 + $0x24] sm:$0xff]  }
  0x1b   : > { %12918 = vmatpush3.bf16.msra.mxu1 %v14174_v10  ;;  %v11544_v57 = vcombine.low %v4591_v46, %v4601_v51  ;;  %v4610_v62 = vrot.slane %v4609_v52, 4  ;;  %v4632_v1 = vrot.slane %v4630_v56, 5  ;;  %v4646_v2 = vshll.u32 %v11440_v54, 16  ;;  %v11446_v37 = vld [vmem:[%s14419_s14 + $0x44] sm:$0x1]  ;;  %v14187_v41 = vld [vmem:[%s14419_s14 + $0x30] sm:$0xff]  }
  0x1c   : > { %13238 = vmatpush3.bf16.msra.mxu0 %v14175_v11  ;;  %12919 = vmatprep.subr.bf16.mxu1 %v14176_v18  ;;  %v4620_v3 = vrot.slane %v4619_v58, 4  ;;  %v4638_v5 = vrot.slane %v4636_v59, 5  ;;  %v4642_v6 = vrot.slane %v4640_v60, 4  ;;  %v11442_v11 = vld [vmem:[%s14419_s14 + $0x34] sm:$0xf]  ;;  %v4651_v13 = vshrl.u32 %v11441_v7, 16 }
  0x1d   : > { %13239 = vmatprep.subr.bf16.mxu0 %v14177_v24  ;;  %13243 = vmatprep.mubr.bf16.mxu0 %v11544_v57  ;;  %v4615_v8 = vsel %vm14442_vm2, %v4610_v62, %v4614_v45  ;;  %v4633_v9 = vor.u32 %v4632_v1, %v4629_v0  ;;  %v4648_v10 = vrot.slane %v4646_v2, 5  ;;  %v4654_v16 = vshll.u32 %v11441_v7, 16  ;;  %v11447_v51 = vld [vmem:[%s14419_s14 + $0x48] sm:$0xf]  ;;  %v14190_v52 = vld [vmem:[%s16812_s1 + $0x150] sm:$0xff]   ;;  %v14188_v7 = vld [vmem:[%s14419_s14 + $0x3c] sm:$0xff]  }
  0x1e   : > { %v4625_v14 = vsel %vm14442_vm2, %v4620_v3, %v4624_v49  ;;  %v4643_v15 = vor.u32 %v4642_v6, %v4638_v5  ;;  %v4660_v17 = vshll.u32 %v11442_v11, 16  ;;  %v4653_v20 = vrot.slane %v4651_v13, 4  ;;  %v11448_v56 = vld [vmem:[%s14419_s14 + $0x4c] sm:$0xf]  ;;  %v11449_v57 = vld [vmem:[%s14419_s14 + $0x50] sm:$0x1] }
  0x1f   : > { %12920 = vmatpush3.bf16.msra.mxu1 %v14176_v18  ;;  %v11545_v18 = vcombine.low %v4615_v8, %v4625_v14  ;;  %v4634_v19 = vrot.slane %v4633_v9, 4  ;;  %v4664_v21 = vshrl.u32 %v11442_v11, 16  ;;  %v4670_v26 = vshll.u32 %v11443_v12, 16  ;;  %v14193_v11 = vld [vmem:[%s16812_s1 + $0x158] sm:$0xff]  }
  0x20   : > { %13240 = vmatpush3.bf16.msra.mxu0 %v14177_v24  ;;  %12921 = vmatprep.subr.bf16.mxu1 %v14178_v32  ;;  %v4644_v23 = vrot.slane %v4643_v15, 4  ;;  %v4656_v24 = vrot.slane %v4654_v16, 5  ;;  %v4662_v25 = vrot.slane %v4660_v17, 5  ;;  %v4678_v42 = vshll.u32 %v11444_v29, 16  ;;  %v11451_v15 = vld [vmem:[%s14419_s14 + $0x58] sm:$0xf] }
  0x21   : > { %13241 = vmatprep.subr.bf16.mxu0 %v14179_v38  ;;  %v4639_v27 = vsel %vm14442_vm2, %v4634_v19, %v4638_v5  ;;  %v4666_v28 = vrot.slane %v4664_v21, 4  ;;  %v4672_v36 = vrot.slane %v4670_v26, 5  ;;  %v4684_v43 = vshll.u32 %v11445_v30, 16  ;;  %v11452_v16 = vld [vmem:[%s14419_s14 + $0x5c] sm:$0x1] }
  0x22   : > { %v4657_v35 = vor.u32 %v4656_v24, %v4653_v20  ;;  %v4688_v46 = vshrl.u32 %v11445_v30, 16  ;;  %v4680_v49 = vrot.slane %v4678_v42, 5  ;;  %v4699_v60 = vshrl.u32 %v11447_v51, 16  ;;  %v14191_v24 = vld [vmem:[%s14419_s14 + $0x48] sm:$0xff]  }
  0x23   : > { %12922 = vmatpush3.bf16.msra.mxu1 %v14178_v32  ;;  %v4649_v32 = vsel %vm14442_vm2, %v4644_v23, %v4648_v10  ;;  %v4667_v40 = vor.u32 %v4666_v28, %v4662_v25  ;;  %v4686_v50 = vrot.slane %v4684_v43, 5  ;;  %v4708_v0 = vshll.u32 %v11448_v56, 16  ;;  %v11450_v10 = vld [vmem:[%s14419_s14 + $0x54] sm:$0xf] }
  0x24   : > { %13242 = vmatpush3.bf16.msra.mxu0 %v14179_v38  ;;  %12987 = vmatprep.subr.bf16.mxu1 %v14182_v47  ;;  %v4675_v38 = vshrl.u32 %v11444_v29, 16  ;;  %v11546_v39 = vcombine.low %v4639_v27, %v4649_v32  ;;  %v4658_v44 = vrot.slane %v4657_v35, 4  ;;  %v4690_v54 = vrot.slane %v4688_v46, 4  ;;  %v11453_v27 = vld [vmem:[%s14419_s14 + $0x60] sm:$0xf] }
  0x25   : > { %13307 = vmatprep.subr.bf16.mxu0 %v14183_v63  ;;  %v4668_v48 = vrot.slane %v4667_v40, 4  ;;  %v4712_v1 = vshrl.u32 %v11448_v56, 16  ;;  %v4701_v3 = vrot.slane %v4699_v60, 4  ;;  %v4718_v5 = vshll.u32 %v11449_v57, 16  ;;  %v11454_v32 = vld [vmem:[%s14419_s14 + $0x64] sm:$0xf] }
  0x26   : > { %12924 = vmatmul.mubr.bf16.vlgmr.msra.gmra.mrb[0].mxu1 %v14181_v61  ;;  %v4677_v45 = vrot.slane %v4675_v38, 4  ;;  %v4663_v53 = vsel %vm14442_vm2, %v4658_v44, %v4662_v25  ;;  %v4702_v61 = vshll.u32 %v11447_v51, 16  ;;  %v4710_v8 = vrot.slane %v4708_v0, 5  ;;  %v11457_v56 = vld [vmem:[%s14419_s14 + $0x70] sm:$0xf] }
  0x27   : > { %13244 = vmatmul.mubr.bf16.vlgmr.msra.gmra.mrb[0].mxu0 %v11545_v18  ;;  %12988 = vmatpush3.bf16.msra.mxu1 %v14182_v47  ;;  %v4694_v47 = vshll.u32 %v11446_v37, 16  ;;  %v4673_v58 = vsel %vm14442_vm2, %v4668_v48, %v4672_v36  ;;  %v4714_v9 = vrot.slane %v4712_v1, 4  ;;  %v4720_v14 = vrot.slane %v4718_v5, 5  ;;  %v11455_v36 = vld [vmem:[%s14419_s14 + $0x68] sm:$0x1]  ;;  %v14192_v48 = vld [vmem:[%s14419_s14 + $0x54] sm:$0xff]  }
  0x28   : > { %13308 = vmatpush3.bf16.msra.mxu0 %v14183_v63  ;;  %12927 = vmatprep.mubr.bf16.mxu1 %v14184_v4  ;;  %v4681_v59 = vor.u32 %v4680_v49, %v4677_v45  ;;  %v11547_v62 = vcombine.low %v4663_v53, %v4673_v58  ;;  %v4691_v63 = vor.u32 %v4690_v54, %v4686_v50  ;;  %v4704_v4 = vrot.slane %v4702_v61, 5  ;;  %v11458_v57 = vld [vmem:[%s14419_s14 + $0x74] sm:$0x1] }
  0x29   : > { %13309 = vmatprep.subr.bf16.mxu0 %v14186_v22  ;;  %12989 = vmatprep.subr.bf16.mxu1 %v14189_v31  ;;  %v4696_v55 = vrot.slane %v4694_v47, 5  ;;  %v4723_v17 = vshrl.u32 %v11450_v10, 16  ;;  %v4715_v19 = vor.u32 %v4714_v9, %v4710_v8  ;;  %v4726_v20 = vshll.u32 %v11450_v10, 16 }
  0x2a   : > { %13247 = vmatprep.mubr.bf16.mxu0 %v11546_v39  ;;  %v4682_v2 = vrot.slane %v4681_v59, 4  ;;  %v4692_v6 = vrot.slane %v4691_v63, 4  ;;  %v4705_v13 = vor.u32 %v4704_v4, %v4701_v3  ;;  %v4732_v21 = vshll.u32 %v11451_v15, 16  ;;  %v14196_v63 = vld [vmem:[%s16812_s1 + $0x50] sm:$0xff]   ;;  %v14197_v4 = vld [vmem:[%s16812_s1 + $0x160] sm:$0xff]  }
  0x2b   : > { %12990 = vmatpush3.bf16.msra.mxu1 %v14189_v31  ;;  %v4725_v25 = vrot.slane %v4723_v17, 4  ;;  %v4736_v26 = vshrl.u32 %v11451_v15, 16  ;;  %v4716_v28 = vrot.slane %v4715_v19, 4  ;;  %v4728_v29 = vrot.slane %v4726_v20, 5  ;;  %v11461_v17 = vld [vmem:[%s14419_s14 + $0x80] sm:$0x1] }
  0x2c   : > { %13310 = vmatpush3.bf16.msra.mxu0 %v14186_v22  ;;  %v4687_v12 = vsel %vm14442_vm2, %v4682_v2, %v4686_v50  ;;  %v4697_v18 = vsel %vm14442_vm2, %v4692_v6, %v4696_v55  ;;  %v4706_v23 = vrot.slane %v4705_v13, 4  ;;  %v4734_v30 = vrot.slane %v4732_v21, 5  ;;  %v14194_v55 = vld [vmem:[%s14419_s14 + $0x60] sm:$0xff]   ;;  %12991 = vmatprep.subr.bf16.mxu1 %v14196_v63  ;;  %v11460_v13 = vld [vmem:[%s14419_s14 + $0x7c] sm:$0xf] }
  0x2d   : > { %13311 = vmatprep.subr.bf16.mxu0 %v14190_v52  ;;  %v11548_v22 = vcombine.low %v4687_v12, %v4697_v18  ;;  %v4742_v31 = vshll.u32 %v11452_v16, 16  ;;  %v4738_v35 = vrot.slane %v4736_v26, 4  ;;  %v4747_v37 = vshrl.u32 %v11453_v27, 16  ;;  %v11459_v12 = vld [vmem:[%s14419_s14 + $0x78] sm:$0xf]  ;;  %v14195_v26 = vld [vmem:[%s14419_s14 + $0x6c] sm:$0xff]  }
  0x2e   : > { %12928 = vmatmul.mubr.bf16.gmra.mrb[4].mxu1 %v14185_v34  ;;  %v4711_v34 = vsel %vm14442_vm2, %v4706_v23, %v4710_v8  ;;  %v4750_v38 = vshll.u32 %v11453_v27, 16  ;;  %v4721_v39 = vsel %vm14442_vm2, %v4716_v28, %v4720_v14  ;;  %v4729_v40 = vor.u32 %v4728_v29, %v4725_v25 }
  0x2f   : > { %12931 = vmatprep.mubr.bf16.mxu1 %v14187_v41  ;;  %13248 = vmatmul.mubr.bf16.gmra.mrb[4].mxu0 %v11547_v62  ;;  %v4744_v41 = vrot.slane %v4742_v31, 5  ;;  %v4756_v42 = vshll.u32 %v11454_v32, 16  ;;  %v11549_v43 = vcombine.low %v4711_v34, %v4721_v39  ;;  %v4739_v44 = vor.u32 %v4738_v35, %v4734_v30 }
  0x30   : > { %13312 = vmatpush3.bf16.msra.mxu0 %v14190_v52  ;;  %13251 = vmatprep.mubr.bf16.mxu0 %v11548_v22  ;;  %v4749_v45 = vrot.slane %v4747_v37, 4  ;;  %v4752_v46 = vrot.slane %v4750_v38, 5  ;;  %v4730_v47 = vrot.slane %v4729_v40, 4  ;;  %v4760_v50 = vshrl.u32 %v11454_v32, 16  ;;  %v11456_v52 = vld [vmem:[%s14419_s14 + $0x6c] sm:$0xf] }
  0x31   : > { %13313 = vmatprep.subr.bf16.mxu0 %v14193_v11  ;;  %v4758_v49 = vrot.slane %v4756_v42, 5  ;;  %v4766_v51 = vshll.u32 %v11455_v36, 16  ;;  %v4740_v53 = vrot.slane %v4739_v44, 4  ;;  %v4771_v58 = vshrl.u32 %v11456_v52, 16  ;;  %12992 = vmatpush3.bf16.msra.mxu1 %v14196_v63  ;;  %v14198_v32 = vld [vmem:[%s14419_s14 + $0x78] sm:$0xff]  }
  0x32   : > { %v4753_v54 = vor.u32 %v4752_v46, %v4749_v45  ;;  %v4735_v59 = vsel %vm14442_vm2, %v4730_v47, %v4734_v30  ;;  %v4762_v60 = vrot.slane %v4760_v50, 4  ;;  %v4774_v62 = vshll.u32 %v11456_v52, 16  ;;  %v11462_v37 = vld [vmem:[%s14419_s14 + $0x84] sm:$0xf]  ;;  %v11463_v38 = vld [vmem:[%s14419_s14 + $0x88] sm:$0xf] }
  0x33   : > { %v4768_v61 = vrot.slane %v4766_v51, 5  ;;  %v4745_v0 = vsel %vm14442_vm2, %v4740_v53, %v4744_v41  ;;  %v4773_v2 = vrot.slane %v4771_v58, 4  ;;  %v4780_v3 = vshll.u32 %v11457_v56, 16  ;;  %v11464_v41 = vld [vmem:[%s14419_s14 + $0x8c] sm:$0x1] }
  0x34   : > { %13314 = vmatpush3.bf16.msra.mxu0 %v14193_v11  ;;  %v4754_v1 = vrot.slane %v4753_v54, 4  ;;  %v11550_v5 = vcombine.low %v4735_v59, %v4745_v0  ;;  %v4763_v6 = vor.u32 %v4762_v60, %v4758_v49  ;;  %v4784_v8 = vshrl.u32 %v11457_v56, 16  ;;  %v11465_v53 = vld [vmem:[%s14419_s14 + $0x90] sm:$0xf]  ;;  %v11466_v58 = vld [vmem:[%s14419_s14 + $0x94] sm:$0xf] }
  0x35   : > { %v4782_v10 = vrot.slane %v4780_v3, 5  ;;  %v4790_v11 = vshll.u32 %v11458_v57, 16  ;;  %13315 = vmatprep.subr.bf16.mxu0 %v14197_v4  ;;  %v4795_v18 = vshrl.u32 %v11459_v12, 16  ;;  %v4798_v20 = vshll.u32 %v11459_v12, 16 }
  0x36   : > { %12932 = vmatmul.mubr.bf16.gmra.mrb[8].mxu1 %v14188_v7  ;;  %v4776_v7 = vrot.slane %v4774_v62, 5  ;;  %v4759_v9 = vsel %vm14442_vm2, %v4754_v1, %v4758_v49  ;;  %v4764_v14 = vrot.slane %v4763_v6, 4  ;;  %v4786_v16 = vrot.slane %v4784_v8, 4 }
  0x37   : > { %12935 = vmatprep.mubr.bf16.mxu1 %v14191_v24  ;;  %13252 = vmatmul.mubr.bf16.gmra.mrb[8].mxu0 %v11549_v43  ;;  %v4792_v19 = vrot.slane %v4790_v11, 5  ;;  %v4804_v21 = vshll.u32 %v11460_v13, 16  ;;  %v4808_v22 = vshrl.u32 %v11460_v13, 16  ;;  %v4797_v27 = vrot.slane %v4795_v18, 4  ;;  %v11468_v13 = vld [vmem:[%s14419_s14 + $0x9c] sm:$0xf] }
  0x38   : > { %13255 = vmatprep.mubr.bf16.mxu0 %v11550_v5  ;;  %v4777_v15 = vor.u32 %v4776_v7, %v4773_v2  ;;  %13316 = vmatpush3.bf16.msra.mxu0 %v14197_v4  ;;  %v4769_v23 = vsel %vm14442_vm2, %v4764_v14, %v4768_v61  ;;  %v4787_v25 = vor.u32 %v4786_v16, %v4782_v10  ;;  %v4800_v29 = vrot.slane %v4798_v20, 5  ;;  %v11467_v61 = vld [vmem:[%s14419_s14 + $0x98] sm:$0x1]  ;;  %v14199_v4 = vld [vmem:[%s14419_s14 + $0x84] sm:$0xff]   ;;  %v11469_v18 = vld [vmem:[%s14419_s14 + $0xa0] sm:$0xf] }
  0x39   : > { %v11551_v28 = vcombine.low %v4759_v9, %v4769_v23  ;;  %v4806_v30 = vrot.slane %v4804_v21, 5  ;;  %v4810_v31 = vrot.slane %v4808_v22, 4  ;;  %v4814_v36 = vshll.u32 %v11461_v17, 16  ;;  %v14201_v9 = vld [vmem:[%s14419_s14 + $0x90] sm:$0xff]   ;;  %v14203_v14 = vld [vmem:[%s16812_s1 + $0x58] sm:$0xff]  }
  0x3a   : > { %v4778_v24 = vrot.slane %v4777_v15, 4  ;;  %v4788_v35 = vrot.slane %v4787_v25, 4  ;;  %v4801_v39 = vor.u32 %v4800_v29, %v4797_v27  ;;  %v4819_v42 = vshrl.u32 %v11462_v37, 16  ;;  %12993 = vmatprep.subr.bf16.mxu1 %v14203_v14 }
  0x3b   : > { %v4811_v40 = vor.u32 %v4810_v31, %v4806_v30  ;;  %v4822_v43 = vshll.u32 %v11462_v37, 16  ;;  %v4816_v45 = vrot.slane %v4814_v36, 5  ;;  %v4828_v46 = vshll.u32 %v11463_v38, 16  ;;  %12994 = vmatpush3.bf16.msra.mxu1 %v14203_v14  ;;  %v11472_v37 = vld [vmem:[%s14419_s14 + $0xac] sm:$0xf] }
  0x3c   : > { %v4783_v34 = vsel %vm14442_vm2, %v4778_v24, %v4782_v10  ;;  %v4793_v44 = vsel %vm14442_vm2, %v4788_v35, %v4792_v19  ;;  %v4832_v47 = vshrl.u32 %v11463_v38, 16  ;;  %v4802_v50 = vrot.slane %v4801_v39, 4  ;;  %v11470_v19 = vld [vmem:[%s14419_s14 + $0xa4] sm:$0x1]  ;;  %v11473_v38 = vld [vmem:[%s14419_s14 + $0xb0] sm:$0x1] }
  0x3d   : > { %v11552_v49 = vcombine.low %v4783_v34, %v4793_v44  ;;  %v4812_v51 = vrot.slane %v4811_v40, 4  ;;  %v4821_v52 = vrot.slane %v4819_v42, 4  ;;  %v4824_v54 = vrot.slane %v4822_v43, 5  ;;  %v14202_v42 = vld [vmem:[%s14419_s14 + $0x9c] sm:$0xff]  }
  0x3e   : > { %12936 = vmatmul.mubr.bf16.gmra.mrb[12].mxu1 %v14192_v48  ;;  %v14200_v48 = vld [vmem:[%s16812_s1 + $0x168] sm:$0xff]   ;;  %v4834_v56 = vrot.slane %v4832_v47, 4  ;;  %v4838_v57 = vshll.u32 %v11464_v41, 16  ;;  %v4807_v59 = vsel %vm14442_vm2, %v4802_v50, %v4806_v30  ;;  %v4843_v62 = vshrl.u32 %v11465_v53, 16 }
  0x3f   : > { %12939 = vmatprep.mubr.bf16.mxu1 %v14194_v55  ;;  %13256 = vmatmul.mubr.bf16.gmra.mrb[12].mxu0 %v11551_v28  ;;  %v4830_v55 = vrot.slane %v4828_v46, 5  ;;  %v4817_v60 = vsel %vm14442_vm2, %v4812_v51, %v4816_v45  ;;  %v4846_v63 = vshll.u32 %v11465_v53, 16  ;;  %v4825_v1 = vor.u32 %v4824_v54, %v4821_v52 }
  0x40   : > { %13317 = vmatprep.subr.bf16.mxu0 %v14200_v48  ;;  %13259 = vmatprep.mubr.bf16.mxu0 %v11552_v49  ;;  %v11553_v0 = vcombine.low %v4807_v59, %v4817_v60  ;;  %v4840_v3 = vrot.slane %v4838_v57, 5  ;;  %v4845_v5 = vrot.slane %v4843_v62, 4  ;;  %v4852_v7 = vshll.u32 %v11466_v58, 16  ;;  %v14205_v49 = vld [vmem:[%s14419_s14 + $0xa8] sm:$0xff]   ;;  %v11476_v62 = vld [vmem:[%s14419_s14 + $0xbc] sm:$0x1] }
  0x41   : > { %v4835_v2 = vor.u32 %v4834_v56, %v4830_v55  ;;  %13318 = vmatpush3.bf16.msra.mxu0 %v14200_v48  ;;  %v4848_v6 = vrot.slane %v4846_v63, 5  ;;  %v4856_v8 = vshrl.u32 %v11466_v58, 16  ;;  %v4826_v10 = vrot.slane %v4825_v1, 4  ;;  %v14204_v48 = vld [vmem:[%s16812_s1 + $0x170] sm:$0xff]  }
  0x42   : > { %v4862_v12 = vshll.u32 %v11467_v61, 16  ;;  %v4854_v16 = vrot.slane %v4852_v7, 5  ;;  %v4867_v23 = vshrl.u32 %v11468_v13, 16  ;;  %v4870_v27 = vshll.u32 %v11468_v13, 16  ;;  %13319 = vmatprep.subr.bf16.mxu0 %v14204_v48  ;;  %v11474_v58 = vld [vmem:[%s14419_s14 + $0xb4] sm:$0xf] }
  0x43   : > { %v4836_v11 = vrot.slane %v4835_v2, 4  ;;  %v4849_v15 = vor.u32 %v4848_v6, %v4845_v5  ;;  %v4858_v17 = vrot.slane %v4856_v8, 4  ;;  %v4831_v20 = vsel %vm14442_vm2, %v4826_v10, %v4830_v55  ;;  %v11475_v61 = vld [vmem:[%s14419_s14 + $0xb8] sm:$0xf]  ;;  %v11477_v7 = vld [vmem:[%s14419_s14 + $0xc0] sm:$0xf] }
  0x44   : > { %v4864_v22 = vrot.slane %v4862_v12, 5  ;;  %v4869_v28 = vrot.slane %v4867_v23, 4  ;;  %v4876_v29 = vshll.u32 %v11469_v18, 16  ;;  %v4880_v30 = vshrl.u32 %v11469_v18, 16  ;;  %v14207_v8 = vld [vmem:[%s16812_s1 + $0x178] sm:$0xff]  }
  0x45   : > { %v4841_v21 = vsel %vm14442_vm2, %v4836_v11, %v4840_v3  ;;  %v4850_v25 = vrot.slane %v4849_v15, 4  ;;  %v4886_v31 = vshll.u32 %v11470_v19, 16  ;;  %v4872_v36 = vrot.slane %v4870_v27, 5  ;;  %13320 = vmatpush3.bf16.msra.mxu0 %v14204_v48  ;;  %v11478_v13 = vld [vmem:[%s14419_s14 + $0xc4] sm:$0xf]  ;;  %v14206_v18 = vld [vmem:[%s14419_s14 + $0xb4] sm:$0xff]  }
  0x46   : > { %12940 = vmatmul.mubr.bf16.gmra.mrb[16].mxu1 %v14195_v26  ;;  %v11554_v24 = vcombine.low %v4831_v20, %v4841_v21  ;;  %v4859_v26 = vor.u32 %v4858_v17, %v4854_v16  ;;  %v4878_v39 = vrot.slane %v4876_v29, 5  ;;  %v4882_v40 = vrot.slane %v4880_v30, 4  ;;  %v11479_v19 = vld [vmem:[%s14419_s14 + $0xc8] sm:$0x1]  ;;  %13321 = vmatprep.subr.bf16.mxu0 %v14207_v8 }
  0x47   : > { %12943 = vmatprep.mubr.bf16.mxu1 %v14198_v32  ;;  %13260 = vmatmul.mubr.bf16.gmra.mrb[16].mxu0 %v11553_v0  ;;  %v11471_v32 = vld [vmem:[%s14419_s14 + $0xa8] sm:$0xf]  ;;  %v4855_v34 = vsel %vm14442_vm2, %v4850_v25, %v4854_v16  ;;  %v4888_v41 = vrot.slane %v4886_v31, 5  ;;  %v4873_v45 = vor.u32 %v4872_v36, %v4869_v28  ;;  %v4900_v47 = vshll.u32 %v11472_v37, 16 }
  0x48   : > { %13263 = vmatprep.mubr.bf16.mxu0 %v11554_v24  ;;  %v4860_v35 = vrot.slane %v4859_v26, 4  ;;  %v4891_v43 = vshrl.u32 %v11471_v32, 16  ;;  %v4894_v46 = vshll.u32 %v11471_v32, 16  ;;  %v4883_v51 = vor.u32 %v4882_v40, %v4878_v39  ;;  %v14208_v24 = vld [vmem:[%s14419_s14 + $0xd8] sm:$0xff]  }
  0x49   : > { %v4904_v53 = vshrl.u32 %v11472_v37, 16  ;;  %v4874_v54 = vrot.slane %v4873_v45, 4  ;;  %v4902_v56 = vrot.slane %v4900_v47, 5  ;;  %v4910_v57 = vshll.u32 %v11473_v38, 16  ;;  %13322 = vmatpush3.bf16.msra.mxu0 %v14207_v8  ;;  %v14210_v45 = vld [vmem:[%s16812_s1 + $0x60] sm:$0xff]  }
  0x4a   : > { %v4865_v44 = vsel %vm14442_vm2, %v4860_v35, %v4864_v22  ;;  %v4893_v52 = vrot.slane %v4891_v43, 4  ;;  %v4896_v55 = vrot.slane %v4894_v46, 5  ;;  %v4884_v59 = vrot.slane %v4883_v51, 4  ;;  %v14616_v51 = vld [vmem:[%s16812_s1 + $0x180] sm:$0xff]   ;;  %12995 = vmatprep.subr.bf16.mxu1 %v14210_v45 }
  0x4b   : > { %v11555_v50 = vcombine.low %v4855_v34, %v4865_v44  ;;  %v4906_v60 = vrot.slane %v4904_v53, 4  ;;  %v4879_v63 = vsel %vm14442_vm2, %v4874_v54, %v4878_v39  ;;  %v4912_v1 = vrot.slane %v4910_v57, 5  ;;  %v11584_v34 = vld [vmem:[%s14419_s14 + $0xc] sm:$0xe]  ;;  %v11585_v39 = vld [vmem:[%s14419_s14 + $0x10] sm:$0xf]  ;;  %13387 = vmatprep.subr.bf16.mxu0 %v14616_v51  ;;  %12996 = vmatpush3.bf16.msra.mxu1 %v14210_v45 }
  0x4c   : > { %v4897_v0 = vor.u32 %v4896_v55, %v4893_v52  ;;  %v4915_v2 = vshrl.u32 %v11474_v58, 16  ;;  %v4889_v3 = vsel %vm14442_vm2, %v4884_v59, %v4888_v41  ;;  %v4918_v5 = vshll.u32 %v11474_v58, 16  ;;  %v11587_v57 = vld [vmem:[%s14419_s14 + $0x18] sm:$0xe]  ;;  %v11588_v58 = vld [vmem:[%s14419_s14 + $0x1c] sm:$0xf] }
  0x4d   : > { %v4924_v6 = vshll.u32 %v11475_v61, 16  ;;  %v4928_v12 = vshrl.u32 %v11475_v61, 16  ;;  %v4934_v17 = vshll.u32 %v11476_v62, 16  ;;  %v4939_v22 = vshrl.u32 %v11477_v7, 16  ;;  %v14209_v61 = vld [vmem:[%s14419_s14 + $0xe4] sm:$0xff]  }
  0x4e   : > { %12944 = vmatmul.mubr.bf16.gmra.mrb[20].mxu1 %v14199_v4  ;;  %v4907_v4 = vor.u32 %v4906_v60, %v4902_v56  ;;  %v4898_v10 = vrot.slane %v4897_v0, 4  ;;  %v4917_v11 = vrot.slane %v4915_v2, 4  ;;  %v4920_v15 = vrot.slane %v4918_v5, 5  ;;  %v11589_v62 = vld [vmem:[%s14419_s14 + $0x20] sm:$0x1] }
  0x4f   : > { %12947 = vmatprep.mubr.bf16.mxu1 %v14201_v9  ;;  %13264 = vmatmul.mubr.bf16.gmra.mrb[20].mxu0 %v11555_v50  ;;  %v11556_v9 = vcombine.low %v4879_v63, %v4889_v3  ;;  %v4926_v16 = vrot.slane %v4924_v6, 5  ;;  %v4930_v21 = vrot.slane %v4928_v12, 4  ;;  %v4942_v23 = vshll.u32 %v11477_v7, 16  ;;  %v11590_v5 = vld [vmem:[%s14419_s14 + $0x24] sm:$0xe] }
  0x50   : > { %v4908_v14 = vrot.slane %v4907_v4, 4  ;;  %v4903_v20 = vsel %vm14442_vm2, %v4898_v10, %v4902_v56  ;;  %v4921_v26 = vor.u32 %v4920_v15, %v4917_v11  ;;  %v4936_v27 = vrot.slane %v4934_v17, 5  ;;  %v14212_v4 = vld [vmem:[%s14419_s14 + $0xf0] sm:$0xff]   ;;  %v11592_v10 = vld [vmem:[%s14419_s14 + $0x2c] sm:$0x1] }
  0x51   : > { %13267 = vmatprep.mubr.bf16.mxu0 %v11556_v9  ;;  %v4948_v28 = vshll.u32 %v11478_v13, 16  ;;  %v4931_v30 = vor.u32 %v4930_v21, %v4926_v16  ;;  %v4941_v31 = vrot.slane %v4939_v22, 4  ;;  %v4944_v32 = vrot.slane %v4942_v23, 5  ;;  %v11591_v9 = vld [vmem:[%s14419_s14 + $0x28] sm:$0xf] }
  0x52   : > { %v4913_v25 = vsel %vm14442_vm2, %v4908_v14, %v4912_v1  ;;  %v4922_v35 = vrot.slane %v4921_v26, 4  ;;  %v4952_v37 = vshrl.u32 %v11478_v13, 16  ;;  %v4958_v38 = vshll.u32 %v11479_v19, 16  ;;  %v11594_v15 = vld [vmem:[%s14419_s14 + $0x34] sm:$0xf] }
  0x53   : > { %v11557_v29 = vcombine.low %v4903_v20, %v4913_v25  ;;  %v4950_v36 = vrot.slane %v4948_v28, 5  ;;  %v4932_v40 = vrot.slane %v4931_v30, 4  ;;  %v4945_v41 = vor.u32 %v4944_v32, %v4941_v31  ;;  %v11593_v17 = vld [vmem:[%s14419_s14 + $0x30] sm:$0xe]  ;;  %v14213_v20 = vld [vmem:[%s14419_s14 + $0xfc] sm:$0xff]   ;;  %v14214_v28 = vld [vmem:[%s14419_s14 + $0x108] sm:$0xff]  }
  0x54   : > { %v11680_v43 = vrot.slane %v11584_v34, 9  ;;  %v6214_v44 = vrot.slane %v11585_v39, 5  ;;  %v4927_v46 = vsel %vm14442_vm2, %v4922_v35, %v4926_v16  ;;  %v4954_v47 = vrot.slane %v4952_v37, 4  ;;  %v11595_v21 = vld [vmem:[%s14419_s14 + $0x38] sm:$0x1]  ;;  %v14216_v31 = vld [vmem:[%s16812_s1 + $0x68] sm:$0xff]  }
  0x55   : > { %v4960_v48 = vrot.slane %v4958_v38, 5  ;;  %v4937_v52 = vsel %vm14442_vm2, %v4932_v40, %v4936_v27  ;;  %v4946_v53 = vrot.slane %v4945_v41, 4  ;;  %v6221_v63 = vrot.slane %v11588_v58, 5  ;;  %v11596_v25 = vld [vmem:[%s14419_s14 + $0x3c] sm:$0xe]  ;;  %12997 = vmatprep.subr.bf16.mxu1 %v14216_v31  ;;  %v14217_v41 = vld [vmem:[%s16812_s1 + $0x188] sm:$0xff]  }
  0x56   : > { %12948 = vmatmul.mubr.bf16.gmra.mrb[24].mxu1 %v14202_v42  ;;  %v11586_v42 = vld [vmem:[%s14419_s14 + $0x14] sm:$0x1]  ;;  %v6216_v54 = vrot.slane %v6214_v44, 4  ;;  %v11558_v55 = vcombine.low %v4927_v46, %v4937_v52  ;;  %v4955_v56 = vor.u32 %v4954_v47, %v4950_v36  ;;  %v6215_v59 = vsel %vm14609_vm5, %v11680_v43, %v6214_v44  ;;  %v11597_v26 = vld [vmem:[%s14419_s14 + $0x40] sm:$0xf] }
  0x57   : > { %12951 = vmatprep.mubr.bf16.mxu1 %v14205_v49  ;;  %13268 = vmatmul.mubr.bf16.gmra.mrb[24].mxu0 %v11557_v29  ;;  %v6217_v50 = vrot.slane %v11586_v42, 5  ;;  %v4951_v0 = vsel %vm14442_vm2, %v4946_v53, %v4950_v36  ;;  %v11681_v2 = vrot.slane %v11587_v57, 9  ;;  %v6224_v3 = vrot.slane %v11589_v62, 5  ;;  %v11598_v27 = vld [vmem:[%s14419_s14 + $0x44] sm:$0x1] }
  0x58   : > { %13271 = vmatprep.mubr.bf16.mxu0 %v11558_v55  ;;  %v4956_v1 = vrot.slane %v4955_v56, 4  ;;  %v6223_v8 = vrot.slane %v6221_v63, 4  ;;  %v11682_v11 = vrot.slane %v11590_v5, 9  ;;  %v6228_v13 = vrot.slane %v11591_v9, 5  ;;  %v11600_v37 = vld [vmem:[%s14419_s14 + $0x4c] sm:$0xf]  ;;  %12998 = vmatpush3.bf16.msra.mxu1 %v14216_v31 }
  0x59   : > { %v6218_v60 = vsel %vm14609_vm5, %v6216_v54, %v6217_v50  ;;  %v6231_v14 = vrot.slane %v11592_v10, 5  ;;  %v6235_v22 = vrot.slane %v11594_v15, 5  ;;  %v6242_v29 = vrot.slane %v11597_v26, 5  ;;  %v11599_v42 = vld [vmem:[%s14419_s14 + $0x48] sm:$0xe]  ;;  %v14215_v54 = vld [vmem:[%s14419_s14 + $0x114] sm:$0xff]  }
  0x5a   : > { %v4961_v6 = vsel %vm14442_vm2, %v4956_v1, %v4960_v48  ;;  %v11728_v7 = vcombine.low %v6215_v59, %v6218_v60  ;;  %v6230_v16 = vrot.slane %v6228_v13, 4  ;;  %v6225_v19 = vsel %vm14609_vm5, %v6223_v8, %v6224_v3  ;;  %v11601_v43 = vld [vmem:[%s14419_s14 + $0x50] sm:$0x1]  ;;  %v11602_v47 = vld [vmem:[%s14419_s14 + $0x54] sm:$0xe] }
  0x5b   : > { %v11559_v12 = vcombine.low %v4951_v0, %v4961_v6  ;;  %v6229_v23 = vsel %vm14609_vm5, %v11682_v11, %v6228_v13  ;;  %v11683_v34 = vrot.slane %v11593_v17, 9  ;;  %v6237_v35 = vrot.slane %v6235_v22, 4  ;;  %v11603_v48 = vld [vmem:[%s14419_s14 + $0x58] sm:$0xf]  ;;  %v11604_v50 = vld [vmem:[%s14419_s14 + $0x5c] sm:$0x1] }
  0x5c   : > { %v6238_v36 = vrot.slane %v11595_v21, 5  ;;  %v11684_v38 = vrot.slane %v11596_v25, 9  ;;  %v6244_v39 = vrot.slane %v6242_v29, 4  ;;  %v6245_v40 = vrot.slane %v11598_v27, 5  ;;  %v14676_v55 = vld [vmem:[%s14419_s14 + $0x60] sm:$0xe] }
  0x5d   : > { %v6249_v44 = vrot.slane %v11600_v37, 5  ;;  %v6236_v45 = vsel %vm14609_vm5, %v11683_v34, %v6235_v22  ;;  %v14679_v56 = vld [vmem:[%s14419_s14 + $0x64] sm:$0xf]  ;;  %v14682_v57 = vld [vmem:[%s14419_s14 + $0x68] sm:$0x1]  ;;  %v11685_v59 = vrot.slane %v11599_v42, 9 }
  0x5e   : > { %12952 = vmatmul.mubr.bf16.gmra.mrb[28].mxu1 %v14206_v18  ;;  %v6222_v18 = vsel %vm14609_vm5, %v11681_v2, %v6221_v63  ;;  %v6239_v46 = vsel %vm14609_vm5, %v6237_v35, %v6238_v36  ;;  %v6243_v52 = vsel %vm14609_vm5, %v11684_v38, %v6242_v29  ;;  %v6246_v53 = vsel %vm14609_vm5, %v6244_v39, %v6245_v40  ;;  %v14222_v2 = vld [vmem:[%s16812_s1 + $0x70] sm:$0xff]   ;;  %v11608_v8 = vld [vmem:[%s14419_s14 + $0x6c] sm:$0xe]  ;;  %v14700_v15 = vld [vmem:[%s14419_s14 + $0x78] sm:$0xe] }
  0x5f   : > { %12955 = vmatprep.mubr.bf16.mxu1 %v14208_v24  ;;  %13272 = vmatmul.mubr.bf16.gmra.mrb[28].mxu0 %v11559_v12  ;;  %v6232_v24 = vsel %vm14609_vm5, %v6230_v16, %v6231_v14  ;;  %v11729_v30 = vcombine.low %v6222_v18, %v6225_v19  ;;  %v11731_v58 = vcombine.low %v6236_v45, %v6239_v46  ;;  %v6252_v60 = vrot.slane %v11601_v43, 5  ;;  %v11610_v9 = vld [vmem:[%s14419_s14 + $0x74] sm:$0x1]  ;;  %v14219_v12 = vld [vmem:[%s14419_s14 + $0x12c] sm:$0xff]   ;;  %v14703_v16 = vld [vmem:[%s14419_s14 + $0x7c] sm:$0xf] }
  0x60   : > { %13323 = vmatprep.mubr.bf16.mxu0 %v11728_v7  ;;  %v11730_v32 = vcombine.low %v6229_v23, %v6232_v24  ;;  %v11732_v62 = vcombine.low %v6243_v52, %v6246_v53  ;;  %v6251_v63 = vrot.slane %v6249_v44, 4  ;;  %v11686_v0 = vrot.slane %v11602_v47, 9  ;;  %v11609_v7 = vld [vmem:[%s14419_s14 + $0x70] sm:$0xf]  ;;  %12999 = vmatprep.subr.bf16.mxu1 %v14222_v2  ;;  %v14220_v19 = vld [vmem:[%s14419_s14 + $0x138] sm:$0xff]  }
  0x61   : > { %v6263_v1 = vrot.slane %v14679_v56, 5  ;;  %v11687_v5 = vrot.slane %v14676_v55, 9  ;;  %v6266_v6 = vrot.slane %v14682_v57, 5  ;;  %v6250_v10 = vsel %vm14609_vm5, %v11685_v59, %v6249_v44  ;;  %13000 = vmatpush3.bf16.msra.mxu1 %v14222_v2  ;;  %v14223_v22 = vld [vmem:[%s16812_s1 + $0x190] sm:$0xff]   ;;  %v11614_v26 = vld [vmem:[%s14419_s14 + $0x84] sm:$0xe] }
  0x62   : > { %v6253_v11 = vsel %vm14609_vm5, %v6251_v63, %v6252_v60  ;;  %v6270_v14 = vrot.slane %v11609_v7, 5  ;;  %v6277_v21 = vrot.slane %v14703_v16, 5  ;;  %v11688_v24 = vrot.slane %v11608_v8, 9  ;;  %v11615_v27 = vld [vmem:[%s14419_s14 + $0x88] sm:$0xf]  ;;  %v14224_v53 = vld [vmem:[%s14419_s14 + $0x150] sm:$0xff]  }
  0x63   : > { %v6265_v13 = vrot.slane %v6263_v1, 4  ;;  %v11733_v23 = vcombine.low %v6250_v10, %v6253_v11  ;;  %v6273_v25 = vrot.slane %v11610_v9, 5  ;;  %v6284_v31 = vrot.slane %v11615_v27, 5  ;;  %v11617_v35 = vld [vmem:[%s14419_s14 + $0x90] sm:$0xe]  ;;  %v14221_v44 = vld [vmem:[%s14419_s14 + $0x144] sm:$0xff]  }
  0x64   : > { %v6272_v29 = vrot.slane %v6270_v14, 4  ;;  %v6279_v36 = vrot.slane %v6277_v21, 4  ;;  %v11690_v37 = vrot.slane %v11614_v26, 9  ;;  %v11618_v38 = vld [vmem:[%s14419_s14 + $0x94] sm:$0xf]  ;;  %v6264_v42 = vsel %vm14609_vm5, %v11687_v5, %v6263_v1  ;;  %v14228_v59 = vld [vmem:[%s16812_s1 + $0x78] sm:$0xff]  }
  0x65   : > { %v11619_v39 = vld [vmem:[%s14419_s14 + $0x98] sm:$0x1]  ;;  %v6267_v43 = vsel %vm14609_vm5, %v6265_v13, %v6266_v6  ;;  %v6286_v45 = vrot.slane %v6284_v31, 4  ;;  %v11691_v46 = vrot.slane %v11617_v35, 9  ;;  %v11620_v47 = vld [vmem:[%s14419_s14 + $0x9c] sm:$0xe]  ;;  %13001 = vmatprep.subr.bf16.mxu1 %v14228_v59 }
  0x66   : > { %12956 = vmatmul.mubr.bf16.gmra.mrb[32].mxu1 %v14209_v61  ;;  %v14218_v61 = vld [vmem:[%s14419_s14 + $0x120] sm:$0xff]   ;;  %v6274_v52 = vsel %vm14609_vm5, %v6272_v29, %v6273_v25  ;;  %v11692_v56 = vrot.slane %v11620_v47, 9  ;;  %v11735_v60 = vcombine.low %v6264_v42, %v6267_v43  ;;  %v11625_v1 = vld [vmem:[%s14419_s14 + $0xb0] sm:$0x1]  ;;  %v14747_v7 = vsel %vm14609_vm5, %v11690_v37, %v6284_v31  ;;  %v14229_v9 = vld [vmem:[%s16812_s1 + $0x198] sm:$0xff]  }
  0x67   : > { %12959 = vmatprep.mubr.bf16.mxu1 %v14212_v4  ;;  %13324 = vmatmul.mubr.bf16.vlgmr.msra.gmra.mrb[0].mxu0 %v11729_v30  ;;  %v6259_v4 = vrot.slane %v11604_v50, 5  ;;  %v11616_v30 = vld [vmem:[%s14419_s14 + $0x8c] sm:$0x1]  ;;  %v6271_v50 = vsel %vm14609_vm5, %v11688_v24, %v6270_v14  ;;  %v11622_v55 = vld [vmem:[%s14419_s14 + $0xa4] sm:$0x1]  ;;  %v14225_v16 = vld [vmem:[%s14419_s14 + $0x15c] sm:$0xff]  }
  0x68   : > { %13388 = vmatpush3.bf16.msra.mxu0 %v14616_v51  ;;  %13327 = vmatprep.mubr.bf16.mxu0 %v11730_v32  ;;  %v6256_v51 = vrot.slane %v11603_v48, 5  ;;  %v11689_v32 = vrot.slane %v14700_v15, 9  ;;  %v6287_v40 = vrot.slane %v11616_v30, 5  ;;  %v11621_v48 = vld [vmem:[%s14419_s14 + $0xa0] sm:$0xf]  ;;  %v14226_v24 = vld [vmem:[%s14419_s14 + $0x168] sm:$0xff]  }
  0x69   : > { %13389 = vmatprep.subr.bf16.mxu0 %v14217_v41  ;;  %v6298_v57 = vrot.slane %v11621_v48, 5  ;;  %13002 = vmatpush3.bf16.msra.mxu1 %v14228_v59  ;;  %v11626_v14 = vld [vmem:[%s14419_s14 + $0xb4] sm:$0xe]  ;;  %v11627_v15 = vld [vmem:[%s14419_s14 + $0xb8] sm:$0xf] }
  0x6a   : > { %v6258_v3 = vrot.slane %v6256_v51, 4  ;;  %v6257_v17 = vsel %vm14609_vm5, %v11686_v0, %v6256_v51  ;;  %v6294_v51 = vrot.slane %v11619_v39, 5  ;;  %v11624_v0 = vld [vmem:[%s14419_s14 + $0xac] sm:$0xf]  ;;  %v6278_v5 = vsel %vm14609_vm5, %v11689_v32, %v6277_v21  ;;  %v11629_v27 = vld [vmem:[%s14419_s14 + $0xc0] sm:$0xe] }
  0x6b   : > { %v6300_v63 = vrot.slane %v6298_v57, 4  ;;  %v14751_v8 = vsel %vm14609_vm5, %v6286_v45, %v6287_v40  ;;  %v6312_v21 = vrot.slane %v11627_v15, 5  ;;  %v11630_v31 = vld [vmem:[%s14419_s14 + $0xc4] sm:$0xf]  ;;  %v11631_v32 = vld [vmem:[%s14419_s14 + $0xc8] sm:$0x1] }
  0x6c   : > { %13390 = vmatpush3.bf16.msra.mxu0 %v14217_v41  ;;  %v6260_v18 = vsel %vm14609_vm5, %v6258_v3, %v6259_v4  ;;  %v6291_v41 = vrot.slane %v11618_v38, 5  ;;  %v6305_v3 = vrot.slane %v11624_v0, 5  ;;  %v6308_v4 = vrot.slane %v11625_v1, 5  ;;  %v1045_v39 = vld [vmem:[%s14419_s14] sm:$0xf]  ;;  %v14227_v1 = vld [vmem:[%s14419_s14 + $0x174] sm:$0xff]  }
  0x6d   : > { %13391 = vmatprep.subr.bf16.mxu0 %v14223_v22  ;;  %v6314_v30 = vrot.slane %v6312_v21, 4  ;;  %v6319_v37 = vrot.slane %v11630_v31, 5  ;;  %v6322_v38 = vrot.slane %v11631_v32, 5  ;;  %v1046_v40 = vld [vmem:[%s14419_s14 + $0x4] sm:$0xf]  ;;  %v1145_v43 = vshrl.u32 %v1045_v39, 16 }
  0x6e   : > { %12960 = vmatmul.mubr.bf16.gmra.mrb[36].mxu1 %v14213_v20  ;;  %v11613_v20 = vld [vmem:[%s14419_s14 + $0x80] sm:$0x1]  ;;  %v14758_v10 = vsel %vm14609_vm5, %v11691_v46, %v6291_v41  ;;  %v6307_v13 = vrot.slane %v6305_v3, 4  ;;  %v1047_v42 = vld [vmem:[%s14419_s14 + $0x8] sm:$0x1]  ;;  %v1154_v45 = vshll.u32 %v1046_v40, 16 }
  0x6f   : > { %12963 = vmatprep.mubr.bf16.mxu1 %v14214_v28  ;;  %13328 = vmatmul.mubr.bf16.gmra.mrb[4].mxu0 %v11731_v58  ;;  %v11734_v28 = vcombine.low %v6257_v17, %v6260_v18  ;;  %v6280_v34 = vrot.slane %v11613_v20, 5  ;;  %v6301_v58 = vrot.slane %v11622_v55, 5  ;;  %v11694_v20 = vrot.slane %v11626_v14, 9  ;;  %v14810_v46 = vld [vmem:[%s16812_s1 + $0x80] sm:$0xff]  }
  0x70   : > { %13331 = vmatprep.mubr.bf16.mxu0 %v11732_v62  ;;  %13392 = vmatpush3.bf16.msra.mxu0 %v14223_v22  ;;  %v11736_v62 = vcombine.low %v6271_v50, %v6274_v52  ;;  %v14785_v25 = vsel %vm14609_vm5, %v6307_v13, %v6308_v4  ;;  %v6321_v50 = vrot.slane %v6319_v37, 4  ;;  %v1158_v52 = vshrl.u32 %v1046_v40, 16  ;;  %v14233_v0 = vld [vmem:[%s16812_s1 + $0x1a0] sm:$0xff]  }
  0x71   : > { %v6281_v6 = vsel %vm14609_vm5, %v6279_v36, %v6280_v34  ;;  %v14773_v17 = vsel %vm14609_vm5, %v6300_v63, %v6301_v58  ;;  %13393 = vmatprep.subr.bf16.mxu0 %v14229_v9  ;;  %v14792_v29 = vsel %vm14609_vm5, %v11694_v20, %v6312_v21  ;;  %v11695_v34 = vrot.slane %v11629_v27, 9  ;;  %v11634_v58 = vld [vmem:[%s14419_s14 + $0xec] sm:$0x1]  ;;  %13067 = vmatprep.subr.bf16.mxu1 %v14810_v46  ;;  %v11635_v21 = vld [vmem:[%s14419_s14 + $0xf0] sm:$0xe] }
  0x72   : > { %v11737_v22 = vcombine.low %v6278_v5, %v6281_v6  ;;  %v14824_v59 = vsel %vm14609_vm5, %v6321_v50, %v6322_v38  ;;  %v1048_v63 = vld [vmem:[%s14419_s14 + $0xc] sm:$0xf]  ;;  %v6329_v5 = vrot.slane %v11634_v58, 5  ;;  %v1049_v6 = vld [vmem:[%s14419_s14 + $0x10] sm:$0xf] }
  0x73   : > { %v14816_v48 = vsel %vm14609_vm5, %v11695_v34, %v6319_v37  ;;  %v1169_v14 = vshrl.u32 %v1048_v63, 16  ;;  %v1182_v20 = vshrl.u32 %v1049_v6, 16  ;;  %v11637_v38 = vld [vmem:[%s14419_s14 + $0xf8] sm:$0x1] }
  0x74   : > { %13394 = vmatpush3.bf16.msra.mxu0 %v14229_v9 }
  0x75   : > { %13395 = vmatprep.subr.bf16.mxu0 %v14233_v0  ;;  %v1184_v40 = vrot.slane %v1182_v20, 4  ;;  %v1055_v20 = vld [vmem:[%s14419_s14 + $0x28] sm:$0xf] }
  0x76   : > { %12964 = vmatmul.mubr.bf16.gmra.mrb[40].mxu1 %v14215_v54  ;;  %v6293_v54 = vrot.slane %v6291_v41, 4 }
  0x77   : > { %12967 = vmatprep.mubr.bf16.mxu1 %v14218_v61  ;;  %13332 = vmatmul.mubr.bf16.gmra.mrb[8].mxu0 %v11733_v23  ;;  %v11623_v61 = vld [vmem:[%s14419_s14 + $0xa8] sm:$0xe]  ;;  %v11738_v23 = vcombine.low %v14747_v7, %v14751_v8  ;;  %v1050_v7 = vld [vmem:[%s14419_s14 + $0x14] sm:$0x1] }
  0x78   : > { %13335 = vmatprep.mubr.bf16.mxu0 %v11734_v28  ;;  %v11693_v2 = vrot.slane %v11623_v61, 9  ;;  %v14762_v11 = vsel %vm14609_vm5, %v6293_v54, %v6294_v51  ;;  %v11633_v54 = vld [vmem:[%s14419_s14 + $0xe8] sm:$0xf]  ;;  %v1147_v51 = vrot.slane %v1145_v43, 4  ;;  %13396 = vmatpush3.bf16.msra.mxu0 %v14233_v0  ;;  %v1188_v27 = vshll.u32 %v1050_v7, 16  ;;  %v14237_v0 = vld [vmem:[%s16812_s1 + $0x1b0] sm:$0xff]  }
  0x79   : > { %v11739_v28 = vcombine.low %v14758_v10, %v14762_v11  ;;  %v11697_v43 = vrot.slane %v11635_v21, 9 }
  0x7a   : > { %v14777_v18 = vsel %vm14609_vm5, %v11693_v2, %v6305_v3  ;;  %v11743_v2 = vcombine.low %v14816_v48, %v14824_v59 }
  0x7b   : > { %v11741_v36 = vcombine.low %v14777_v18, %v14785_v25 }
  0x7e   : > { %12968 = vmatmul.mubr.bf16.gmra.mrb[44].mxu1 %v14219_v12  ;;  %v14766_v12 = vsel %vm14609_vm5, %v11692_v56, %v6298_v57  ;;  %v1156_v56 = vrot.slane %v1154_v45, 5  ;;  %v1164_v57 = vshll.u32 %v1047_v42, 16  ;;  %v1190_v42 = vrot.slane %v1188_v27, 5  ;;  %v1056_v27 = vld [vmem:[%s14419_s14 + $0x2c] sm:$0x1] }
  0x7f   : > { %12971 = vmatprep.mubr.bf16.mxu1 %v14220_v19  ;;  %13336 = vmatmul.mubr.bf16.gmra.mrb[12].mxu0 %v11735_v60  ;;  %v11628_v19 = vld [vmem:[%s14419_s14 + $0xbc] sm:$0x1]  ;;  %v11740_v35 = vcombine.low %v14766_v12, %v14773_v17  ;;  %v1160_v60 = vrot.slane %v1158_v52, 4 }
  0x80   : > { %13339 = vmatprep.mubr.bf16.mxu0 %v11736_v62  ;;  %v6315_v26 = vrot.slane %v11628_v19, 5  ;;  %v6326_v62 = vrot.slane %v11633_v54, 5  ;;  %v1166_v4 = vrot.slane %v1164_v57, 5  ;;  %v1178_v19 = vshll.u32 %v1049_v6, 16  ;;  %v1051_v54 = vld [vmem:[%s14419_s14 + $0x18] sm:$0xf] }
  0x81   : > { %v1161_v8 = vor.u32 %v1160_v60, %v1156_v56  ;;  %v1193_v57 = vshrl.u32 %v1051_v54, 16  ;;  %v1196_v58 = vshll.u32 %v1051_v54, 16 }
  0x82   : > { %v14804_v41 = vsel %vm14609_vm5, %v6314_v30, %v6315_v26  ;;  %v6328_v13 = vrot.slane %v6326_v62, 4  ;;  %v1171_v26 = vrot.slane %v1169_v14, 4  ;;  %v11636_v30 = vld [vmem:[%s14419_s14 + $0xf4] sm:$0xf]  ;;  %v1180_v37 = vrot.slane %v1178_v19, 5 }
  0x83   : > { %v11742_v47 = vcombine.low %v14792_v29, %v14804_v41  ;;  %v6333_v52 = vrot.slane %v11636_v30, 5  ;;  %v1198_v12 = vrot.slane %v1196_v58, 5  ;;  %v1058_v41 = vld [vmem:[%s14419_s14 + $0x34] sm:$0xf] }
  0x85   : > { %v6335_v10 = vrot.slane %v6333_v52, 4 }
  0x86   : > { %12972 = vmatmul.mubr.bf16.gmra.mrb[48].mxu1 %v14221_v44  ;;  %v1148_v44 = vshll.u32 %v1045_v39, 16 }
  0x87   : > { %12975 = vmatprep.mubr.bf16.mxu1 %v14224_v53  ;;  %v11632_v53 = vld [vmem:[%s14419_s14 + $0xe4] sm:$0xe]  ;;  %13340 = vmatmul.mubr.bf16.gmra.mrb[16].mxu0 %v11737_v22 }
  0x88   : > { %v1150_v55 = vrot.slane %v1148_v44, 5  ;;  %v11696_v61 = vrot.slane %v11632_v53, 9  ;;  %13343 = vmatprep.mubr.bf16.mxu0 %v11738_v23  ;;  %v14230_v22 = vld [vmem:[%s14419_s14 + $0x180] sm:$0xff]   ;;  %v1162_v23 = vrot.slane %v1161_v8, 4  ;;  %v14235_v44 = vld [vmem:[%s16812_s1 + $0x1a8] sm:$0xff]   ;;  %v6336_v53 = vrot.slane %v11637_v38, 5 }
  0x89   : > { %13397 = vmatprep.subr.bf16.mxu0 %v14235_v44  ;;  %v11640_v8 = vld [vmem:[%s14419_s14 + $0x104] sm:$0x1]  ;;  %v11641_v38 = vld [vmem:[%s14419_s14 + $0x108] sm:$0xe] }
  0x8a   : > { %v1151_v3 = vor.u32 %v1150_v55, %v1147_v51  ;;  %v14837_v9 = vsel %vm14609_vm5, %v11696_v61, %v6326_v62  ;;  %v1167_v39 = vsel %vm14442_vm2, %v1162_v23, %v1166_v4  ;;  %v1052_v51 = vld [vmem:[%s14419_s14 + $0x1c] sm:$0xf]  ;;  %v1185_v55 = vor.u32 %v1184_v40, %v1180_v37  ;;  %v14231_v61 = vld [vmem:[%s14419_s14 + $0x18c] sm:$0xff]   ;;  %13398 = vmatpush3.bf16.msra.mxu0 %v14235_v44 }
  0x8b   : > { %v1202_v60 = vshll.u32 %v1052_v51, 16  ;;  %v1206_v11 = vshrl.u32 %v1052_v51, 16  ;;  %13399 = vmatprep.subr.bf16.mxu0 %v14237_v0  ;;  %v11642_v44 = vld [vmem:[%s14419_s14 + $0x10c] sm:$0xf]  ;;  %v1230_v51 = vshrl.u32 %v1055_v20, 16 }
  0x8c   : > { %v1152_v15 = vrot.slane %v1151_v3, 4  ;;  %v1195_v3 = vrot.slane %v1193_v57, 4 }
  0x8d   : > { %v1204_v17 = vrot.slane %v1202_v60, 5  ;;  %v1208_v6 = vrot.slane %v1206_v11, 4  ;;  %v1232_v29 = vrot.slane %v1230_v51, 4 }
  0x8e   : > { %12976 = vmatmul.mubr.bf16.gmra.mrb[52].mxu1 %v14225_v16  ;;  %v1172_v16 = vshll.u32 %v1048_v63, 16  ;;  %v1157_v31 = vsel %vm14442_vm2, %v1152_v15, %v1156_v56  ;;  %v1053_v56 = vld [vmem:[%s14419_s14 + $0x20] sm:$0x1]  ;;  %v14868_v63 = vsel %vm14609_vm5, %v11697_v43, %v6333_v52  ;;  %13400 = vmatpush3.bf16.msra.mxu0 %v14237_v0  ;;  %v1226_v43 = vshll.u32 %v1055_v20, 16 }
  0x8f   : > { %12979 = vmatprep.mubr.bf16.mxu1 %v14226_v24  ;;  %v14843_v24 = vsel %vm14609_vm5, %v6328_v13, %v6329_v5  ;;  %v11184_v45 = vcombine.low %v1157_v31, %v1167_v39  ;;  %13344 = vmatmul.mubr.bf16.gmra.mrb[20].mxu0 %v11739_v28  ;;  %v11638_v28 = vld [vmem:[%s14419_s14 + $0xfc] sm:$0xe]  ;;  %v14879_v5 = vsel %vm14609_vm5, %v6335_v10, %v6336_v53  ;;  %v1212_v7 = vshll.u32 %v1053_v56, 16  ;;  %v1054_v13 = vld [vmem:[%s14419_s14 + $0x24] sm:$0xf] }
  0x90   : > { %v11744_v32 = vcombine.low %v14837_v9, %v14843_v24  ;;  %v1174_v34 = vrot.slane %v1172_v16, 5  ;;  %13347 = vmatprep.mubr.bf16.mxu0 %v11740_v35  ;;  %v11639_v35 = vld [vmem:[%s14419_s14 + $0x100] sm:$0xf]  ;;  %v11745_v15 = vcombine.low %v14868_v63, %v14879_v5  ;;  %v1199_v16 = vor.u32 %v1198_v12, %v1195_v3  ;;  %v11651_v5 = vld [vmem:[%s14419_s14 + $0x130] sm:$0xf] }
  0x91   : > { %v11698_v19 = vrot.slane %v11638_v28, 9  ;;  %v1214_v23 = vrot.slane %v1212_v7, 5  ;;  %v6343_v31 = vrot.slane %v11640_v8, 5  ;;  %v1228_v25 = vrot.slane %v1226_v43, 5  ;;  %v11644_v28 = vld [vmem:[%s14419_s14 + $0x114] sm:$0xe] }
  0x92   : > { %v1175_v50 = vor.u32 %v1174_v34, %v1171_v26  ;;  %v6340_v26 = vrot.slane %v11639_v35, 5  ;;  %v1200_v30 = vrot.slane %v1199_v16, 4  ;;  %v1217_v34 = vshrl.u32 %v1054_v13, 16  ;;  %v11646_v8 = vld [vmem:[%s14419_s14 + $0x11c] sm:$0x1] }
  0x93   : > { %v6347_v10 = vrot.slane %v11642_v44, 5  ;;  %v1254_v7 = vshrl.u32 %v1058_v41, 16  ;;  %v1062_v43 = vld [vmem:[%s14419_s14 + $0x44] sm:$0x1] }
  0x94   : > { %v1176_v62 = vrot.slane %v1175_v50, 4  ;;  %v14892_v40 = vsel %vm14609_vm5, %v11698_v19, %v6340_v26  ;;  %v14239_v50 = vld [vmem:[%s16812_s1 + $0x1b8] sm:$0xff]   ;;  %v1205_v52 = vsel %vm14442_vm2, %v1200_v30, %v1204_v17  ;;  %v1219_v53 = vrot.slane %v1217_v34, 4 }
  0x95   : > { %13401 = vmatprep.subr.bf16.mxu0 %v14239_v50  ;;  %v1256_v30 = vrot.slane %v1254_v7, 4 }
  0x96   : > { %12980 = vmatmul.mubr.bf16.gmra.mrb[56].mxu1 %v14227_v1  ;;  %v1186_v1 = vrot.slane %v1185_v55, 4  ;;  %v1181_v4 = vsel %vm14442_vm2, %v1176_v62, %v1180_v37  ;;  %v1220_v37 = vshll.u32 %v1054_v13, 16  ;;  %v11643_v55 = vld [vmem:[%s14419_s14 + $0x110] sm:$0x1]  ;;  %13402 = vmatpush3.bf16.msra.mxu0 %v14239_v50  ;;  %v11699_v62 = vrot.slane %v11641_v38, 9 }
  0x97   : > { %12983 = vmatprep.mubr.bf16.mxu1 %v14230_v22  ;;  %v1209_v22 = vor.u32 %v1208_v6, %v1204_v17  ;;  %13348 = vmatmul.mubr.bf16.gmra.mrb[24].mxu0 %v11741_v36  ;;  %v1236_v36 = vshll.u32 %v1056_v27, 16  ;;  %v6350_v11 = vrot.slane %v11643_v55, 5  ;;  %v11645_v17 = vld [vmem:[%s14419_s14 + $0x118] sm:$0xf]  ;;  %v1250_v6 = vshll.u32 %v1058_v41, 16 }
  0x98   : > { %v1191_v14 = vsel %vm14442_vm2, %v1186_v1, %v1190_v42  ;;  %v6342_v42 = vrot.slane %v6340_v26, 4  ;;  %v1222_v54 = vrot.slane %v1220_v37, 5  ;;  %13351 = vmatprep.mubr.bf16.mxu0 %v11742_v47  ;;  %v1059_v47 = vld [vmem:[%s14419_s14 + $0x38] sm:$0x1]  ;;  %v1233_v1 = vor.u32 %v1232_v29, %v1228_v25  ;;  %v1060_v13 = vld [vmem:[%s14419_s14 + $0x3c] sm:$0xf] }
  0x99   : > { %v11185_v21 = vcombine.low %v1181_v4, %v1191_v14  ;;  %v1210_v39 = vrot.slane %v1209_v22, 4  ;;  %v14922_v35 = vsel %vm14609_vm5, %v11699_v62, %v6347_v10  ;;  %v6349_v4 = vrot.slane %v6347_v10, 4  ;;  %v14243_v14 = vld [vmem:[%s16812_s1 + $0x1c0] sm:$0xff]  }
  0x9a   : > { %v14911_v18 = vsel %vm14609_vm5, %v6342_v42, %v6343_v31  ;;  %v1223_v60 = vor.u32 %v1222_v54, %v1219_v53  ;;  %v1234_v19 = vrot.slane %v1233_v1, 4  ;;  %v1252_v27 = vrot.slane %v1250_v6, 5  ;;  %13467 = vmatprep.subr.bf16.mxu0 %v14243_v14  ;;  %v14236_v42 = vld [vmem:[%s16812_s1 + $0x90] sm:$0xff]   ;;  %v11647_v54 = vld [vmem:[%s14419_s14 + $0x120] sm:$0xe]  ;;  %v14238_v1 = vld [vmem:[%s16812_s1 + $0x98] sm:$0xff]  }
  0x9b   : > { %v1215_v56 = vsel %vm14442_vm2, %v1210_v39, %v1214_v23  ;;  %v11746_v58 = vcombine.low %v14892_v40, %v14911_v18  ;;  %v14234_v23 = vld [vmem:[%s16812_s1 + $0x88] sm:$0xff]   ;;  %v14936_v26 = vsel %vm14609_vm5, %v6349_v4, %v6350_v11  ;;  %v1260_v31 = vshll.u32 %v1059_v47, 16  ;;  %v1061_v39 = vld [vmem:[%s14419_s14 + $0x40] sm:$0xf]  ;;  %v11648_v55 = vld [vmem:[%s14419_s14 + $0x124] sm:$0xf] }
  0x9c   : > { %v11186_v57 = vcombine.low %v1205_v52, %v1215_v56  ;;  %v1224_v0 = vrot.slane %v1223_v60, 4  ;;  %v11700_v38 = vrot.slane %v11644_v28, 9  ;;  %v1257_v48 = vor.u32 %v1256_v30, %v1252_v27  ;;  %v1065_v6 = vld [vmem:[%s14419_s14 + $0x50] sm:$0x1]  ;;  %v14241_v40 = vld [vmem:[%s16812_s1 + $0xa0] sm:$0xff]  }
  0x9d   : > { %v1262_v59 = vrot.slane %v1260_v31, 5  ;;  %v6357_v50 = vrot.slane %v11646_v8, 5  ;;  %v1265_v52 = vshrl.u32 %v1060_v13, 16  ;;  %v1268_v53 = vshll.u32 %v1060_v13, 16  ;;  %v11652_v31 = vld [vmem:[%s14419_s14 + $0x134] sm:$0x1] }
  0x9e   : > { %12984 = vmatmul.mubr.bf16.gmra.mrb[60].mxu1 %v14231_v61  ;;  %v1238_v61 = vrot.slane %v1236_v36, 5  ;;  %v1229_v16 = vsel %vm14442_vm2, %v1224_v0, %v1228_v25  ;;  %v1258_v51 = vrot.slane %v1257_v48, 4  ;;  %v1284_v47 = vshll.u32 %v1062_v43, 16  ;;  %v1064_v0 = vld [vmem:[%s14419_s14 + $0x4c] sm:$0xf] }
  0x9f   : > { %13003 = vmatprep.mubr.bf16.mxu1 %v11184_v45  ;;  %v1057_v45 = vld [vmem:[%s14419_s14 + $0x30] sm:$0xf]  ;;  %13352 = vmatmul.mubr.bf16.gmra.mrb[28].mxu0 %v11743_v2  ;;  %v6354_v2 = vrot.slane %v11645_v17, 5  ;;  %v1267_v25 = vrot.slane %v1265_v52, 4  ;;  %v1270_v36 = vrot.slane %v1268_v53, 5  ;;  %v6361_v17 = vrot.slane %v11648_v55, 5 }
  0xa0   : > { %v1241_v3 = vshrl.u32 %v1057_v45, 16  ;;  %v1244_v12 = vshll.u32 %v1057_v45, 16  ;;  %v1239_v34 = vsel %vm14442_vm2, %v1234_v19, %v1238_v61  ;;  %13355 = vmatprep.mubr.bf16.mxu0 %v11744_v32  ;;  %v1274_v32 = vshll.u32 %v1061_v39, 16  ;;  %v1063_v61 = vld [vmem:[%s14419_s14 + $0x48] sm:$0xf] }
  0xa1   : > { %v14957_v9 = vsel %vm14609_vm5, %v11700_v38, %v6354_v2  ;;  %v6356_v24 = vrot.slane %v6354_v2, 4  ;;  %v1278_v45 = vshrl.u32 %v1061_v39, 16  ;;  %v1263_v60 = vsel %vm14442_vm2, %v1258_v51, %v1262_v59  ;;  %v1066_v38 = vld [vmem:[%s14419_s14 + $0x54] sm:$0xf]  ;;  %v1067_v59 = vld [vmem:[%s14419_s14 + $0x58] sm:$0xf] }
  0xa2   : > { %v1243_v20 = vrot.slane %v1241_v3, 4  ;;  %v1246_v22 = vrot.slane %v1244_v12, 5  ;;  %v1276_v41 = vrot.slane %v1274_v32, 5  ;;  %v1271_v11 = vor.u32 %v1270_v36, %v1267_v25  ;;  %v1068_v52 = vld [vmem:[%s14419_s14 + $0x5c] sm:$0x1]  ;;  %v14247_v53 = vld [vmem:[%s16812_s1 + $0xa8] sm:$0xff]  }
  0xa3   : > { %v14967_v29 = vsel %vm14609_vm5, %v6356_v24, %v6357_v50  ;;  %v1280_v28 = vrot.slane %v1278_v45, 4  ;;  %v1286_v3 = vrot.slane %v1284_v47, 5  ;;  %v11701_v12 = vrot.slane %v11647_v54, 9  ;;  %v11653_v55 = vld [vmem:[%s14419_s14 + $0x138] sm:$0xe] }
  0xa4   : > { %v1247_v37 = vor.u32 %v1246_v22, %v1243_v20  ;;  %v11748_v10 = vcombine.low %v14957_v9, %v14967_v29  ;;  %v1272_v7 = vrot.slane %v1271_v11, 4  ;;  %v1289_v13 = vshrl.u32 %v1063_v61, 16  ;;  %v14253_v9 = vld [vmem:[%s16812_s1 + $0xb0] sm:$0xff]  }
  0xa5   : > { %v1281_v8 = vor.u32 %v1280_v28, %v1276_v41  ;;  %v1292_v14 = vshll.u32 %v1063_v61, 16  ;;  %v14986_v19 = vsel %vm14609_vm5, %v11701_v12, %v6361_v17  ;;  %v6363_v20 = vrot.slane %v6361_v17, 4 }
  0xa6   : > { %13004 = vmatmul.mubr.bf16.vlgmr.msra.gmra.mrb[0].mxu1 %v11185_v21  ;;  %v11747_v21 = vcombine.low %v14922_v35, %v14936_v26  ;;  %v1248_v44 = vrot.slane %v1247_v37, 4  ;;  %v1298_v22 = vshll.u32 %v1064_v0, 16  ;;  %v1302_v63 = vshrl.u32 %v1064_v0, 16  ;;  %v1070_v0 = vld [vmem:[%s14419_s14 + $0x64] sm:$0xf] }
  0xa7   : > { %13068 = vmatpush3.bf16.msra.mxu1 %v14810_v46  ;;  %13007 = vmatprep.mubr.bf16.mxu1 %v11186_v57  ;;  %v11187_v46 = vcombine.low %v1229_v16, %v1239_v34  ;;  %v11649_v57 = vld [vmem:[%s14419_s14 + $0x128] sm:$0x1]  ;;  %v11650_v16 = vld [vmem:[%s14419_s14 + $0x12c] sm:$0xe]  ;;  %v1294_v30 = vrot.slane %v1292_v14, 5  ;;  %v1308_v37 = vshll.u32 %v1065_v6, 16 }
  0xa8   : > { %13069 = vmatprep.subr.bf16.mxu1 %v14234_v23  ;;  %v1253_v56 = vsel %vm14442_vm2, %v1248_v44, %v1252_v27  ;;  %v6364_v4 = vrot.slane %v11649_v57, 5  ;;  %13356 = vmatmul.mubr.bf16.gmra.mrb[32].mxu0 %v11745_v15  ;;  %v1277_v15 = vsel %vm14442_vm2, %v1272_v7, %v1276_v41  ;;  %v1291_v27 = vrot.slane %v1289_v13, 4  ;;  %v11654_v57 = vld [vmem:[%s14419_s14 + $0x13c] sm:$0xf] }
  0xa9   : > { %v11188_v62 = vcombine.low %v1253_v56, %v1263_v60  ;;  %13359 = vmatprep.mubr.bf16.mxu0 %v11746_v58  ;;  %v1300_v58 = vrot.slane %v1298_v22, 5  ;;  %v1304_v34 = vrot.slane %v1302_v63, 4  ;;  %v11702_v48 = vrot.slane %v11650_v16, 9  ;;  %v11657_v22 = vld [vmem:[%s14419_s14 + $0x148] sm:$0xf] }
  0xaa   : > { %v14997_v18 = vsel %vm14609_vm5, %v6363_v20, %v6364_v4  ;;  %v1310_v44 = vrot.slane %v1308_v37, 5  ;;  %v6368_v50 = vrot.slane %v11651_v5, 5  ;;  %v6371_v51 = vrot.slane %v11652_v31, 5  ;;  %v1071_v4 = vld [vmem:[%s14419_s14 + $0x68] sm:$0x1]  ;;  %v14259_v37 = vld [vmem:[%s16812_s1 + $0xb8] sm:$0xff]  }
  0xab   : > { %13070 = vmatpush3.bf16.msra.mxu1 %v14234_v23  ;;  %v1282_v23 = vrot.slane %v1281_v8, 4  ;;  %v1305_v43 = vor.u32 %v1304_v34, %v1300_v58  ;;  %v1313_v24 = vshrl.u32 %v1066_v38, 16  ;;  %v1316_v32 = vshll.u32 %v1066_v38, 16  ;;  %v11656_v8 = vld [vmem:[%s14419_s14 + $0x144] sm:$0xe] }
  0xac   : > { %13071 = vmatprep.subr.bf16.mxu1 %v14236_v42  ;;  %v6369_v25 = vsel %vm14609_vm5, %v11702_v48, %v6368_v50  ;;  %v6370_v36 = vrot.slane %v6368_v50, 4  ;;  %v1322_v45 = vshll.u32 %v1067_v59, 16  ;;  %v1326_v61 = vshrl.u32 %v1067_v59, 16  ;;  %v1072_v34 = vld [vmem:[%s14419_s14 + $0x6c] sm:$0xf] }
  0xad   : > { %v1287_v39 = vsel %vm14442_vm2, %v1282_v23, %v1286_v3  ;;  %v1306_v56 = vrot.slane %v1305_v43, 4  ;;  %v1315_v41 = vrot.slane %v1313_v24, 4  ;;  %v1318_v47 = vrot.slane %v1316_v32, 5  ;;  %v1073_v50 = vld [vmem:[%s14419_s14 + $0x70] sm:$0xf] }
  0xae   : > { %13008 = vmatmul.mubr.bf16.gmra.mrb[4].mxu1 %v11187_v46  ;;  %v1295_v46 = vor.u32 %v1294_v30, %v1291_v27  ;;  %v11189_v2 = vcombine.low %v1277_v15, %v1287_v39  ;;  %v6372_v28 = vsel %vm14609_vm5, %v6370_v36, %v6371_v51  ;;  %v1324_v35 = vrot.slane %v1322_v45, 5  ;;  %v11658_v27 = vld [vmem:[%s14419_s14 + $0x14c] sm:$0x1]  ;;  %v1074_v24 = vld [vmem:[%s14419_s14 + $0x74] sm:$0x1] }
  0xaf   : > { %13011 = vmatprep.mubr.bf16.mxu1 %v11188_v62  ;;  %13072 = vmatpush3.bf16.msra.mxu1 %v14236_v42  ;;  %v11749_v42 = vcombine.low %v14986_v19, %v14997_v18  ;;  %v11655_v62 = vld [vmem:[%s14419_s14 + $0x140] sm:$0x1]  ;;  %v1311_v11 = vsel %vm14442_vm2, %v1306_v56, %v1310_v44  ;;  %v1332_v26 = vshll.u32 %v1068_v52, 16  ;;  %v11750_v3 = vcombine.low %v6369_v25, %v6372_v28 }
  0xb0   : > { %13073 = vmatprep.subr.bf16.mxu1 %v14238_v1  ;;  %v1296_v54 = vrot.slane %v1295_v46, 4  ;;  %13360 = vmatmul.mubr.bf16.gmra.mrb[36].mxu0 %v11747_v21  ;;  %v1069_v21 = vld [vmem:[%s14419_s14 + $0x60] sm:$0xf]  ;;  %v1319_v12 = vor.u32 %v1318_v47, %v1315_v41  ;;  %v1328_v17 = vrot.slane %v1326_v61, 4  ;;  %v6375_v6 = vrot.slane %v11654_v57, 5 }
  0xb1   : > { %13363 = vmatprep.mubr.bf16.mxu0 %v11748_v10  ;;  %v1334_v29 = vrot.slane %v1332_v26, 5  ;;  %v11703_v10 = vrot.slane %v11653_v55, 9  ;;  %v6378_v7 = vrot.slane %v11655_v62, 5  ;;  %v1337_v16 = vshrl.u32 %v1069_v21, 16  ;;  %v11659_v55 = vld [vmem:[%s14419_s14 + $0x150] sm:$0xe] }
  0xb2   : > { %v1301_v60 = vsel %vm14442_vm2, %v1296_v54, %v1300_v58  ;;  %v1320_v13 = vrot.slane %v1319_v12, 4  ;;  %v1329_v14 = vor.u32 %v1328_v17, %v1324_v35  ;;  %v1340_v20 = vshll.u32 %v1069_v21, 16  ;;  %v11660_v57 = vld [vmem:[%s14419_s14 + $0x154] sm:$0xf]  ;;  %v11661_v62 = vld [vmem:[%s14419_s14 + $0x158] sm:$0x1] }
  0xb3   : > { %13074 = vmatpush3.bf16.msra.mxu1 %v14238_v1  ;;  %v11190_v1 = vcombine.low %v1301_v60, %v1311_v11  ;;  %v15036_v63 = vsel %vm14609_vm5, %v11703_v10, %v6375_v6  ;;  %v6377_v5 = vrot.slane %v6375_v6, 4  ;;  %v1346_v15 = vshll.u32 %v1070_v0, 16  ;;  %v1075_v21 = vld [vmem:[%s14419_s14 + $0x78] sm:$0xf]  ;;  %v1076_v17 = vld [vmem:[%s14419_s14 + $0x7c] sm:$0xf] }
  0xb4   : > { %13075 = vmatprep.subr.bf16.mxu1 %v14241_v40  ;;  %v1350_v23 = vshrl.u32 %v1070_v0, 16  ;;  %v1325_v30 = vsel %vm14442_vm2, %v1320_v13, %v1324_v35  ;;  %v1330_v31 = vrot.slane %v1329_v14, 4  ;;  %v1342_v58 = vrot.slane %v1340_v20, 5  ;;  %v11662_v20 = vld [vmem:[%s14419_s14 + $0x15c] sm:$0xe] }
  0xb5   : > { %v6379_v38 = vsel %vm14609_vm5, %v6377_v5, %v6378_v7  ;;  %v1348_v39 = vrot.slane %v1346_v15, 5  ;;  %v1356_v48 = vshll.u32 %v1071_v4, 16  ;;  %v11704_v44 = vrot.slane %v11656_v8, 9  ;;  %v14265_v4 = vld [vmem:[%s16812_s1 + $0xc0] sm:$0xff]  }
  0xb6   : > { %13012 = vmatmul.mubr.bf16.gmra.mrb[8].mxu1 %v11189_v2  ;;  %v1352_v46 = vrot.slane %v1350_v23, 4  ;;  %v1335_v59 = vsel %vm14442_vm2, %v1330_v31, %v1334_v29  ;;  %v11751_v2 = vcombine.low %v15036_v63, %v6379_v38  ;;  %v6382_v51 = vrot.slane %v11657_v22, 5  ;;  %v1077_v7 = vld [vmem:[%s14419_s14 + $0x80] sm:$0x1] }
  0xb7   : > { %13076 = vmatpush3.bf16.msra.mxu1 %v14241_v40  ;;  %13015 = vmatprep.mubr.bf16.mxu1 %v11190_v1  ;;  %v1339_v40 = vrot.slane %v1337_v16, 4  ;;  %v11191_v52 = vcombine.low %v1325_v30, %v1335_v59  ;;  %v1358_v54 = vrot.slane %v1356_v48, 5  ;;  %v6385_v19 = vrot.slane %v11658_v27, 5  ;;  %v11663_v23 = vld [vmem:[%s14419_s14 + $0x160] sm:$0xf] }
  0xb8   : > { %13077 = vmatprep.subr.bf16.mxu1 %v14247_v53  ;;  %13364 = vmatmul.mubr.bf16.gmra.mrb[40].mxu0 %v11749_v42  ;;  %v1361_v18 = vshrl.u32 %v1072_v34, 16  ;;  %v1364_v42 = vshll.u32 %v1072_v34, 16  ;;  %v6383_v25 = vsel %vm14609_vm5, %v11704_v44, %v6382_v51  ;;  %v6384_v36 = vrot.slane %v6382_v51, 4  ;;  %v1079_v44 = vld [vmem:[%s14419_s14 + $0x88] sm:$0xf] }
  0xb9   : > { %v1343_v43 = vor.u32 %v1342_v58, %v1339_v40  ;;  %13367 = vmatprep.mubr.bf16.mxu0 %v11750_v3  ;;  %v1370_v45 = vshll.u32 %v1073_v50, 16  ;;  %v1374_v61 = vshrl.u32 %v1073_v50, 16  ;;  %v1380_v26 = vshll.u32 %v1074_v24, 16  ;;  %v11664_v58 = vld [vmem:[%s14419_s14 + $0x164] sm:$0x1] }
  0xba   : > { %v1363_v41 = vrot.slane %v1361_v18, 4  ;;  %v1366_v47 = vrot.slane %v1364_v42, 5  ;;  %v6386_v28 = vsel %vm14609_vm5, %v6384_v36, %v6385_v19  ;;  %v11705_v29 = vrot.slane %v11659_v55, 9  ;;  %v1080_v51 = vld [vmem:[%s14419_s14 + $0x8c] sm:$0x1] }
  0xbb   : > { %13078 = vmatpush3.bf16.msra.mxu1 %v14247_v53  ;;  %v1353_v53 = vor.u32 %v1352_v46, %v1348_v39  ;;  %v1344_v32 = vrot.slane %v1343_v43, 4  ;;  %v1372_v35 = vrot.slane %v1370_v45, 5  ;;  %v11752_v1 = vcombine.low %v6383_v25, %v6386_v28  ;;  %v1078_v46 = vld [vmem:[%s14419_s14 + $0x84] sm:$0xf]  ;;  %v11665_v42 = vld [vmem:[%s14419_s14 + $0x168] sm:$0xe] }
  0xbc   : > { %13079 = vmatprep.subr.bf16.mxu1 %v14253_v9  ;;  %v1367_v3 = vor.u32 %v1366_v47, %v1363_v41  ;;  %v1376_v12 = vrot.slane %v1374_v61, 4  ;;  %v6389_v10 = vrot.slane %v11660_v57, 5  ;;  %v6392_v6 = vrot.slane %v11661_v62, 5  ;;  %v11666_v55 = vld [vmem:[%s14419_s14 + $0x16c] sm:$0xf] }
  0xbd   : > { %v1354_v56 = vrot.slane %v1353_v53, 4  ;;  %v1349_v60 = vsel %vm14442_vm2, %v1344_v32, %v1348_v39  ;;  %v1385_v14 = vshrl.u32 %v1075_v21, 16  ;;  %v1388_v16 = vshll.u32 %v1075_v21, 16  ;;  %v11667_v57 = vld [vmem:[%s14419_s14 + $0x170] sm:$0x1] }
  0xbe   : > { %13016 = vmatmul.mubr.bf16.gmra.mrb[12].mxu1 %v11191_v52  ;;  %v1368_v8 = vrot.slane %v1367_v3, 4  ;;  %v1377_v13 = vor.u32 %v1376_v12, %v1372_v35  ;;  %v6390_v22 = vsel %vm14609_vm5, %v11705_v29, %v6389_v10  ;;  %v6391_v63 = vrot.slane %v6389_v10, 4  ;;  %v1082_v12 = vld [vmem:[%s14419_s14 + $0x94] sm:$0xf] }
  0xbf   : > { %13080 = vmatpush3.bf16.msra.mxu1 %v14253_v9  ;;  %v1359_v11 = vsel %vm14442_vm2, %v1354_v56, %v1358_v54  ;;  %v1382_v9 = vrot.slane %v1380_v26, 5  ;;  %v1394_v5 = vshll.u32 %v1076_v17, 16  ;;  %v1398_v15 = vshrl.u32 %v1076_v17, 16  ;;  %v1081_v26 = vld [vmem:[%s14419_s14 + $0x90] sm:$0xf] }
  0xc0   : > { %13081 = vmatprep.subr.bf16.mxu1 %v14259_v37  ;;  %v11192_v0 = vcombine.low %v1349_v60, %v1359_v11  ;;  %13368 = vmatmul.mubr.bf16.gmra.mrb[44].mxu0 %v11751_v2  ;;  %v1373_v27 = vsel %vm14442_vm2, %v1368_v8, %v1372_v35  ;;  %v1378_v30 = vrot.slane %v1377_v13, 4  ;;  %v1387_v31 = vrot.slane %v1385_v14, 4  ;;  %v1083_v17 = vld [vmem:[%s14419_s14 + $0x98] sm:$0x1] }
  0xc1   : > { %13371 = vmatprep.mubr.bf16.mxu0 %v11752_v1  ;;  %v1390_v40 = vrot.slane %v1388_v16, 5  ;;  %v6393_v34 = vsel %vm14609_vm5, %v6391_v63, %v6392_v6  ;;  %v1400_v38 = vrot.slane %v1398_v15, 4  ;;  %v1404_v39 = vshll.u32 %v1077_v7, 16  ;;  %v11668_v6 = vld [vmem:[%s14419_s14 + $0x174] sm:$0xe] }
  0xc2   : > { %13019 = vmatprep.mubr.bf16.mxu1 %v11192_v0  ;;  %v1383_v48 = vsel %vm14442_vm2, %v1378_v30, %v1382_v9  ;;  %v11753_v59 = vcombine.low %v6390_v22, %v6393_v34  ;;  %v11706_v43 = vrot.slane %v11662_v20, 9  ;;  %v6396_v54 = vrot.slane %v11663_v23, 5 }
  0xc3   : > { %13082 = vmatpush3.bf16.msra.mxu1 %v14259_v37  ;;  %v1396_v37 = vrot.slane %v1394_v5, 5  ;;  %v1391_v2 = vor.u32 %v1390_v40, %v1387_v31  ;;  %v11193_v50 = vcombine.low %v1373_v27, %v1383_v48  ;;  %v1406_v53 = vrot.slane %v1404_v39, 5  ;;  %v11669_v5 = vld [vmem:[%s14419_s14 + $0x178] sm:$0xf]  ;;  %v11670_v31 = vld [vmem:[%s14419_s14 + $0x17c] sm:$0x1] }
  0xc4   : > { %13147 = vmatprep.subr.bf16.mxu1 %v14265_v4  ;;  %v6399_v32 = vrot.slane %v11664_v58, 5  ;;  %v1409_v19 = vshrl.u32 %v1078_v46, 16  ;;  %v1412_v18 = vshll.u32 %v1078_v46, 16  ;;  %v6397_v25 = vsel %vm14609_vm5, %v11706_v43, %v6396_v54 }
  0xc5   : > { %v1401_v52 = vor.u32 %v1400_v38, %v1396_v37  ;;  %v1392_v24 = vrot.slane %v1391_v2, 4  ;;  %v6398_v36 = vrot.slane %v6396_v54, 4  ;;  %v1418_v45 = vshll.u32 %v1079_v44, 16  ;;  %v1084_v38 = vld [vmem:[%s14419_s14 + $0x9c] sm:$0xf] }
  0xc6   : > { %13020 = vmatmul.mubr.bf16.gmra.mrb[16].mxu1 %v11193_v50  ;;  %v1411_v41 = vrot.slane %v1409_v19, 4  ;;  %v1414_v47 = vrot.slane %v1412_v18, 5  ;;  %v1422_v61 = vshrl.u32 %v1079_v44, 16  ;;  %v1428_v35 = vshll.u32 %v1080_v51, 16  ;;  %v1085_v2 = vld [vmem:[%s14419_s14 + $0xa0] sm:$0xf] }
  0xc7   : > { %v1402_v56 = vrot.slane %v1401_v52, 4  ;;  %v1397_v60 = vsel %vm14442_vm2, %v1392_v24, %v1396_v37  ;;  %v6400_v11 = vsel %vm14609_vm5, %v6398_v36, %v6399_v32  ;;  %v1420_v28 = vrot.slane %v1418_v45, 5  ;;  %v11671_v19 = vld [vmem:[%s14419_s14 + $0x180] sm:$0xe] }
  0xc8   : > { %13372 = vmatmul.mubr.bf16.gmra.mrb[48].mxu0 %v11753_v59  ;;  %v11754_v0 = vcombine.low %v6397_v25, %v6400_v11  ;;  %v1415_v1 = vor.u32 %v1414_v47, %v1411_v41  ;;  %v1424_v3 = vrot.slane %v1422_v61, 4  ;;  %v1430_v4 = vrot.slane %v1428_v35, 5  ;;  %v11672_v25 = vld [vmem:[%s14419_s14 + $0x184] sm:$0xf]  ;;  %v11673_v41 = vld [vmem:[%s14419_s14 + $0x188] sm:$0x1] }
  0xc9   : > { %v1407_v62 = vsel %vm14442_vm2, %v1402_v56, %v1406_v53  ;;  %v11707_v9 = vrot.slane %v11665_v42, 9  ;;  %v6403_v29 = vrot.slane %v11666_v55, 5  ;;  %v6406_v10 = vrot.slane %v11667_v57, 5  ;;  %v1086_v53 = vld [vmem:[%s14419_s14 + $0xa4] sm:$0x1] }
  0xca   : > { %v11194_v21 = vcombine.low %v1397_v60, %v1407_v62  ;;  %13375 = vmatprep.mubr.bf16.mxu0 %v11754_v0  ;;  %v1416_v7 = vrot.slane %v1415_v1, 4  ;;  %v1425_v8 = vor.u32 %v1424_v3, %v1420_v28  ;;  %v1433_v13 = vshrl.u32 %v1081_v26, 16  ;;  %v1088_v1 = vld [vmem:[%s14419_s14 + $0xac] sm:$0xf]  ;;  %v1089_v3 = vld [vmem:[%s14419_s14 + $0xb0] sm:$0x1] }
  0xcb   : > { %v1436_v14 = vshll.u32 %v1081_v26, 16  ;;  %v6404_v16 = vsel %vm14609_vm5, %v11707_v9, %v6403_v29  ;;  %v6405_v20 = vrot.slane %v6403_v29, 4  ;;  %v1442_v22 = vshll.u32 %v1082_v12, 16  ;;  %v11674_v29 = vld [vmem:[%s14419_s14 + $0x18c] sm:$0xe] }
  0xcc   : > { %13023 = vmatprep.mubr.bf16.mxu1 %v11194_v21  ;;  %v1446_v63 = vshrl.u32 %v1082_v12, 16  ;;  %v1421_v15 = vsel %vm14442_vm2, %v1416_v7, %v1420_v28  ;;  %v1426_v23 = vrot.slane %v1425_v8, 4  ;;  %v1435_v27 = vrot.slane %v1433_v13, 4  ;;  %v1087_v28 = vld [vmem:[%s14419_s14 + $0xa8] sm:$0xf] }
  0xcd   : > { %v1438_v30 = vrot.slane %v1436_v14, 5  ;;  %v6407_v40 = vsel %vm14609_vm5, %v6405_v20, %v6406_v10  ;;  %v1444_v58 = vrot.slane %v1442_v22, 5  ;;  %v1452_v37 = vshll.u32 %v1083_v17, 16  ;;  %v11675_v13 = vld [vmem:[%s14419_s14 + $0x190] sm:$0xf] }
  0xce   : > { %v1448_v34 = vrot.slane %v1446_v63, 4  ;;  %v1431_v39 = vsel %vm14442_vm2, %v1426_v23, %v1430_v4  ;;  %v11755_v46 = vcombine.low %v6404_v16, %v6407_v40  ;;  %v11708_v59 = vrot.slane %v11668_v6, 9  ;;  %v11676_v63 = vld [vmem:[%s14419_s14 + $0x194] sm:$0x1] }
  0xcf   : > { %v1439_v48 = vor.u32 %v1438_v30, %v1435_v27  ;;  %v11195_v43 = vcombine.low %v1421_v15, %v1431_v39  ;;  %v1454_v50 = vrot.slane %v1452_v37, 5  ;;  %v6410_v52 = vrot.slane %v11669_v5, 5  ;;  %v1090_v30 = vld [vmem:[%s14419_s14 + $0xb4] sm:$0xf]  ;;  %v1091_v37 = vld [vmem:[%s14419_s14 + $0xb8] sm:$0xf] }
  0xd0   : > { %v1449_v44 = vor.u32 %v1448_v34, %v1444_v58  ;;  %13376 = vmatmul.mubr.bf16.gmra.mrb[52].mxu0 %v11755_v46  ;;  %v6413_v51 = vrot.slane %v11670_v31, 5  ;;  %v1457_v24 = vshrl.u32 %v1084_v38, 16  ;;  %v1460_v32 = vshll.u32 %v1084_v38, 16 }
  0xd1   : > { %v1440_v54 = vrot.slane %v1439_v48, 4  ;;  %13024 = vmatmul.mubr.bf16.gmra.mrb[20].mxu1 %v11195_v43  ;;  %v6411_v42 = vsel %vm14609_vm5, %v11708_v59, %v6410_v52  ;;  %v6412_v55 = vrot.slane %v6410_v52, 4  ;;  %v1466_v56 = vshll.u32 %v1085_v2, 16  ;;  %v1092_v59 = vld [vmem:[%s14419_s14 + $0xbc] sm:$0x1] }
  0xd2   : > { %v1450_v18 = vrot.slane %v1449_v44, 4  ;;  %v1459_v45 = vrot.slane %v1457_v24, 4  ;;  %v1462_v57 = vrot.slane %v1460_v32, 5  ;;  %v1470_v60 = vshrl.u32 %v1085_v2, 16  ;;  %v11677_v24 = vld [vmem:[%s14419_s14 + $0x198] sm:$0xe] }
  0xd3   : > { %v1445_v36 = vsel %vm14442_vm2, %v1440_v54, %v1444_v58  ;;  %v6414_v61 = vsel %vm14609_vm5, %v6412_v55, %v6413_v51  ;;  %v1468_v62 = vrot.slane %v1466_v56, 5  ;;  %v1476_v11 = vshll.u32 %v1086_v53, 16  ;;  %v11678_v32 = vld [vmem:[%s14419_s14 + $0x19c] sm:$0xf] }
  0xd4   : > { %v1455_v47 = vsel %vm14442_vm2, %v1450_v18, %v1454_v50  ;;  %v11756_v26 = vcombine.low %v6411_v42, %v6414_v61  ;;  %v1463_v21 = vor.u32 %v1462_v57, %v1459_v45  ;;  %v1472_v0 = vrot.slane %v1470_v60, 4 }
  0xd5   : > { %v11196_v35 = vcombine.low %v1445_v36, %v1455_v47  ;;  %v1478_v12 = vrot.slane %v1476_v11, 5  ;;  %v11709_v17 = vrot.slane %v11671_v19, 9  ;;  %v6417_v4 = vrot.slane %v11672_v25, 5  ;;  %v11679_v19 = vld [vmem:[%s14419_s14 + $0x1a0] sm:$0x1] }
  0xd6   : > { %v6420_v9 = vrot.slane %v11673_v41, 5  ;;  %13379 = vmatprep.mubr.bf16.mxu0 %v11756_v26  ;;  %v1464_v10 = vrot.slane %v1463_v21, 4  ;;  %v1473_v6 = vor.u32 %v1472_v0, %v1468_v62  ;;  %v1481_v7 = vshrl.u32 %v1087_v28, 16  ;;  %v1094_v11 = vld [vmem:[%s14419_s14 + $0xdc] sm:$0xf] }
  0xd7   : > { %13027 = vmatprep.mubr.bf16.mxu1 %v11196_v35  ;;  %v1484_v8 = vshll.u32 %v1087_v28, 16  ;;  %v6418_v14 = vsel %vm14609_vm5, %v11709_v17, %v6417_v4  ;;  %v6419_v16 = vrot.slane %v6417_v4, 4  ;;  %v1490_v20 = vshll.u32 %v1088_v1, 16  ;;  %v1095_v0 = vld [vmem:[%s14419_s14 + $0xe0] sm:$0x1] }
  0xd8   : > { %v1494_v22 = vshrl.u32 %v1088_v1, 16  ;;  %v1469_v5 = vsel %vm14442_vm2, %v1464_v10, %v1468_v62  ;;  %v1474_v15 = vrot.slane %v1473_v6, 4  ;;  %v1483_v23 = vrot.slane %v1481_v7, 4  ;;  %v1093_v62 = vld [vmem:[%s14419_s14 + $0xd8] sm:$0xf] }
  0xd9   : > { %v1486_v27 = vrot.slane %v1484_v8, 5  ;;  %v6421_v31 = vsel %vm14609_vm5, %v6419_v16, %v6420_v9  ;;  %v1492_v40 = vrot.slane %v1490_v20, 5  ;;  %v1500_v34 = vshll.u32 %v1089_v3, 16  ;;  %v1096_v6 = vld [vmem:[%s14419_s14 + $0xe4] sm:$0xf] }
  0xda   : > { %v1496_v58 = vrot.slane %v1494_v22, 4  ;;  %v1479_v38 = vsel %vm14442_vm2, %v1474_v15, %v1478_v12  ;;  %v11757_v39 = vcombine.low %v6418_v14, %v6421_v31  ;;  %v11710_v48 = vrot.slane %v11674_v29, 9  ;;  %v1097_v16 = vld [vmem:[%s14419_s14 + $0xe8] sm:$0xf]  ;;  %v1098_v15 = vld [vmem:[%s14419_s14 + $0xec] sm:$0x1] }
  0xdb   : > { %v1487_v46 = vor.u32 %v1486_v27, %v1483_v23  ;;  %v11197_v2 = vcombine.low %v1469_v5, %v1479_v38  ;;  %v1502_v44 = vrot.slane %v1500_v34, 5  ;;  %v6424_v50 = vrot.slane %v11675_v13, 5 }
  0xdc   : > { %v1497_v43 = vor.u32 %v1496_v58, %v1492_v40  ;;  %13380 = vmatmul.mubr.bf16.gmra.mrb[56].mxu0 %v11757_v39  ;;  %v6427_v53 = vrot.slane %v11676_v63, 5  ;;  %v1505_v54 = vshrl.u32 %v1090_v30, 16  ;;  %v1508_v51 = vshll.u32 %v1090_v30, 16  ;;  %v1099_v39 = vld [vmem:[%s14419_s14 + $0xf0] sm:$0xf] }
  0xdd   : > { %v1488_v52 = vrot.slane %v1487_v46, 4  ;;  %13028 = vmatmul.mubr.bf16.gmra.mrb[24].mxu1 %v11197_v2  ;;  %v6425_v42 = vsel %vm14609_vm5, %v11710_v48, %v6424_v50  ;;  %v6426_v55 = vrot.slane %v6424_v50, 4  ;;  %v1514_v56 = vshll.u32 %v1091_v37, 16 }
  0xde   : > { %v1498_v18 = vrot.slane %v1497_v43, 4  ;;  %v1507_v36 = vrot.slane %v1505_v54, 4  ;;  %v1510_v45 = vrot.slane %v1508_v51, 5  ;;  %v1518_v57 = vshrl.u32 %v1091_v37, 16  ;;  %v1100_v43 = vld [vmem:[%s14419_s14 + $0xf4] sm:$0xf] }
  0xdf   : > { %v1493_v25 = vsel %vm14442_vm2, %v1488_v52, %v1492_v40  ;;  %v6428_v41 = vsel %vm14609_vm5, %v6426_v55, %v6427_v53  ;;  %v1516_v47 = vrot.slane %v1514_v56, 5  ;;  %v1524_v61 = vshll.u32 %v1092_v59, 16  ;;  %v14240_v40 = vld [vmem:[%s14419_s14 + $0x18] sm:$0xff]  }
  0xe0   : > { %v1503_v60 = vsel %vm14442_vm2, %v1498_v18, %v1502_v44  ;;  %v11758_v35 = vcombine.low %v6425_v42, %v6428_v41  ;;  %v1511_v26 = vor.u32 %v1510_v45, %v1507_v36  ;;  %v1520_v21 = vrot.slane %v1518_v57, 4  ;;  %v1101_v54 = vld [vmem:[%s14419_s14 + $0xf8] sm:$0x1] }
  0xe1   : > { %v11198_v28 = vcombine.low %v1493_v25, %v1503_v60  ;;  %v1526_v1 = vrot.slane %v1524_v61, 5  ;;  %v11711_v3 = vrot.slane %v11677_v24, 9  ;;  %v6431_v12 = vrot.slane %v11678_v32, 5  ;;  %v1102_v25 = vld [vmem:[%s14419_s14 + $0xfc] sm:$0xf]  ;;  %v14242_v60 = vld [vmem:[%s14419_s14 + $0x24] sm:$0xff]  }
  0xe2   : > { %v6434_v17 = vrot.slane %v11679_v19, 5  ;;  %13383 = vmatprep.mubr.bf16.mxu0 %v11758_v35  ;;  %v1512_v4 = vrot.slane %v1511_v26, 4  ;;  %v1521_v9 = vor.u32 %v1520_v21, %v1516_v47  ;;  %v1529_v29 = vshrl.u32 %v1093_v62, 16  ;;  %v1103_v61 = vld [vmem:[%s14419_s14 + $0x100] sm:$0xf] }
  0xe3   : > { %13031 = vmatprep.mubr.bf16.mxu1 %v11198_v28  ;;  %v1532_v10 = vshll.u32 %v1093_v62, 16  ;;  %v6432_v7 = vsel %vm14609_vm5, %v11711_v3, %v6431_v12  ;;  %v6433_v8 = vrot.slane %v6431_v12, 4  ;;  %v1538_v13 = vshll.u32 %v1094_v11, 16  ;;  %v1104_v26 = vld [vmem:[%s14419_s14 + $0x104] sm:$0x1] }
  0xe4   : > { %v1542_v14 = vshrl.u32 %v1094_v11, 16  ;;  %v1517_v20 = vsel %vm14442_vm2, %v1512_v4, %v1516_v47  ;;  %v1522_v22 = vrot.slane %v1521_v9, 4  ;;  %v1531_v63 = vrot.slane %v1529_v29, 4  ;;  %v14244_v47 = vld [vmem:[%s14419_s14 + $0x30] sm:$0xff]   ;;  %v1105_v12 = vld [vmem:[%s14419_s14 + $0x108] sm:$0xf] }
  0xe5   : > { %v1534_v5 = vrot.slane %v1532_v10, 5  ;;  %v6435_v23 = vsel %vm14609_vm5, %v6433_v8, %v6434_v17  ;;  %v1540_v27 = vrot.slane %v1538_v13, 5  ;;  %v1548_v31 = vshll.u32 %v1095_v0, 16  ;;  %v14249_v10 = vld [vmem:[%s16812_s1 + $0x1c8] sm:$0xff]  }
  0xe6   : > { %v1544_v30 = vrot.slane %v1542_v14, 4  ;;  %v1527_v58 = vsel %vm14442_vm2, %v1522_v22, %v1526_v1  ;;  %v11759_v34 = vcombine.low %v6432_v7, %v6435_v23  ;;  %v1553_v38 = vshrl.u32 %v1096_v6, 16 }
  0xe7   : > { %v1535_v37 = vor.u32 %v1534_v5, %v1531_v63  ;;  %v11199_v46 = vcombine.low %v1517_v20, %v1527_v58  ;;  %v1550_v59 = vrot.slane %v1548_v31, 5  ;;  %v1556_v2 = vshll.u32 %v1096_v6, 16  ;;  %v14332_v5 = vld [vmem:[%s16812_s1 + $0x1c0] sm:$0xff]   ;;  %v14255_v31 = vld [vmem:[%s16812_s1 + $0x1d0] sm:$0xff]  }
  0xe8   : > { %v1545_v48 = vor.u32 %v1544_v30, %v1540_v27  ;;  %13384 = vmatmul.mubr.bf16.gmra.mrb[60].mxu0 %v11759_v34  ;;  %v1555_v50 = vrot.slane %v1553_v38, 4  ;;  %v1562_v52 = vshll.u32 %v1097_v16, 16  ;;  %v1566_v53 = vshrl.u32 %v1097_v16, 16  ;;  %v1106_v30 = vld [vmem:[%s14419_s14 + $0x10c] sm:$0xf] }
  0xe9   : > { %v1536_v44 = vrot.slane %v1535_v37, 4  ;;  %13032 = vmatmul.mubr.bf16.gmra.mrb[28].mxu1 %v11199_v46  ;;  %13403 = vmatprep.mubr.bf16.mxu0 %v14240_v40  ;;  %v1558_v24 = vrot.slane %v1556_v2, 5  ;;  %v1572_v32 = vshll.u32 %v1098_v15, 16  ;;  %v1577_v19 = vshrl.u32 %v1099_v39, 16  ;;  %v14245_v37 = vld [vmem:[%s14419_s14 + $0x3c] sm:$0xff]  }
  0xea   : > { %v1546_v51 = vrot.slane %v1545_v48, 4  ;;  %v1564_v42 = vrot.slane %v1562_v52, 5  ;;  %v1568_v55 = vrot.slane %v1566_v53, 4  ;;  %v1580_v56 = vshll.u32 %v1099_v39, 16  ;;  %v1107_v38 = vld [vmem:[%s14419_s14 + $0x110] sm:$0x1] }
  0xeb   : > { %v1541_v18 = vsel %vm14442_vm2, %v1536_v44, %v1540_v27  ;;  %v1559_v45 = vor.u32 %v1558_v24, %v1555_v50  ;;  %v1574_v57 = vrot.slane %v1572_v32, 5  ;;  %v1579_v41 = vrot.slane %v1577_v19, 4 }
  0xec   : > { %v1551_v36 = vsel %vm14442_vm2, %v1546_v51, %v1550_v59  ;;  %v1569_v11 = vor.u32 %v1568_v55, %v1564_v42  ;;  %v1582_v28 = vrot.slane %v1580_v56, 5  ;;  %v1586_v35 = vshll.u32 %v1100_v43, 16  ;;  %v14261_v51 = vld [vmem:[%s16812_s1 + $0x1d8] sm:$0xff]  }
  0xed   : > { %v11200_v62 = vcombine.low %v1541_v18, %v1551_v36  ;;  %v1560_v21 = vrot.slane %v1559_v45, 4  ;;  %v1590_v0 = vshrl.u32 %v1100_v43, 16  ;;  %v1596_v1 = vshll.u32 %v1101_v54, 16  ;;  %v14246_v43 = vld [vmem:[%s14419_s14 + $0x48] sm:$0xff]   ;;  %v1108_v54 = vld [vmem:[%s14419_s14 + $0x114] sm:$0xf] }
  0xee   : > { %v1601_v3 = vshrl.u32 %v1102_v25, 16  ;;  %v1570_v17 = vrot.slane %v1569_v11, 4  ;;  %v1583_v4 = vor.u32 %v1582_v28, %v1579_v41  ;;  %v1588_v9 = vrot.slane %v1586_v35, 5  ;;  %v1110_v55 = vld [vmem:[%s14419_s14 + $0x11c] sm:$0x1] }
  0xef   : > { %13035 = vmatprep.mubr.bf16.mxu1 %v11200_v62  ;;  %v1604_v29 = vshll.u32 %v1102_v25, 16  ;;  %v1565_v6 = vsel %vm14442_vm2, %v1560_v21, %v1564_v42  ;;  %v1592_v7 = vrot.slane %v1590_v0, 4  ;;  %v1598_v8 = vrot.slane %v1596_v1, 5  ;;  %v1109_v42 = vld [vmem:[%s14419_s14 + $0x118] sm:$0xf] }
  0xf0   : > { %v1603_v13 = vrot.slane %v1601_v3, 4  ;;  %v1575_v14 = vsel %vm14442_vm2, %v1570_v17, %v1574_v57  ;;  %13404 = vmatmul.mubr.bf16.vlgmr.msra.gmra.mrb[0].mxu0 %v14242_v60  ;;  %v1584_v16 = vrot.slane %v1583_v4, 4  ;;  %v1610_v22 = vshll.u32 %v1103_v61, 16 }
  0xf1   : > { %v1606_v20 = vrot.slane %v1604_v29, 5  ;;  %v11201_v63 = vcombine.low %v1565_v6, %v1575_v14  ;;  %13468 = vmatpush3.bf16.msra.mxu0 %v14332_v5  ;;  %v1593_v15 = vor.u32 %v1592_v7, %v1588_v9  ;;  %13407 = vmatprep.mubr.bf16.mxu0 %v14244_v47  ;;  %v1614_v23 = vshrl.u32 %v1103_v61, 16  ;;  %v1111_v61 = vld [vmem:[%s14419_s14 + $0x120] sm:$0xf] }
  0xf2   : > { %v1620_v27 = vshll.u32 %v1104_v26, 16  ;;  %v1589_v40 = vsel %vm14442_vm2, %v1584_v16, %v1588_v9  ;;  %v1612_v34 = vrot.slane %v1610_v22, 5  ;;  %v1625_v39 = vshrl.u32 %v1105_v12, 16  ;;  %13469 = vmatprep.subr.bf16.mxu0 %v14249_v10  ;;  %v1112_v26 = vld [vmem:[%s14419_s14 + $0x124] sm:$0xf] }
  0xf3   : > { %v1607_v58 = vor.u32 %v1606_v20, %v1603_v13  ;;  %13036 = vmatmul.mubr.bf16.gmra.mrb[32].mxu1 %v11201_v63  ;;  %v1594_v46 = vrot.slane %v1593_v15, 4  ;;  %v1616_v48 = vrot.slane %v1614_v23, 4  ;;  %v1628_v2 = vshll.u32 %v1105_v12, 16  ;;  %v1113_v12 = vld [vmem:[%s14419_s14 + $0x128] sm:$0x1]  ;;  %v14248_v13 = vld [vmem:[%s14419_s14 + $0x54] sm:$0xff]  }
  0xf4   : > { %v1622_v59 = vrot.slane %v1620_v27, 5  ;;  %v1627_v50 = vrot.slane %v1625_v39, 4  ;;  %v1634_v52 = vshll.u32 %v1106_v30, 16  ;;  %v1638_v53 = vshrl.u32 %v1106_v30, 16  ;;  %v14250_v5 = vld [vmem:[%s14419_s14 + $0x60] sm:$0xff]   ;;  %v14273_v23 = vld [vmem:[%s16812_s1 + $0x1e8] sm:$0xff]  }
  0xf5   : > { %v1608_v44 = vrot.slane %v1607_v58, 4  ;;  %v1599_v24 = vsel %vm14442_vm2, %v1594_v46, %v1598_v8  ;;  %v1617_v32 = vor.u32 %v1616_v48, %v1612_v34  ;;  %v1630_v19 = vrot.slane %v1628_v2, 5  ;;  %13470 = vmatpush3.bf16.msra.mxu0 %v14249_v10  ;;  %v14267_v10 = vld [vmem:[%s16812_s1 + $0x1e0] sm:$0xff]   ;;  %v1114_v15 = vld [vmem:[%s14419_s14 + $0x12c] sm:$0xf] }
  0xf6   : > { %v1644_v18 = vshll.u32 %v1107_v38, 16  ;;  %v11202_v56 = vcombine.low %v1589_v40, %v1599_v24  ;;  %v1636_v36 = vrot.slane %v1634_v52, 5  ;;  %v1640_v45 = vrot.slane %v1638_v53, 4  ;;  %13471 = vmatprep.subr.bf16.mxu0 %v14255_v31  ;;  %v1115_v58 = vld [vmem:[%s14419_s14 + $0x130] sm:$0xf] }
  0xf7   : > { %v1613_v25 = vsel %vm14442_vm2, %v1608_v44, %v1612_v34  ;;  %v1618_v57 = vrot.slane %v1617_v32, 4  ;;  %v1631_v60 = vor.u32 %v1630_v19, %v1627_v50  ;;  %v1649_v47 = vshrl.u32 %v1108_v54, 16  ;;  %v1116_v46 = vld [vmem:[%s14419_s14 + $0x134] sm:$0x1]  ;;  %v1117_v48 = vld [vmem:[%s14419_s14 + $0x138] sm:$0xf] }
  0xf8   : > { %v1646_v41 = vrot.slane %v1644_v18, 5  ;;  %13039 = vmatprep.mubr.bf16.mxu1 %v11202_v56  ;;  %13408 = vmatmul.mubr.bf16.gmra.mrb[4].mxu0 %v14245_v37  ;;  %v1641_v62 = vor.u32 %v1640_v45, %v1636_v36  ;;  %v1652_v11 = vshll.u32 %v1108_v54, 16  ;;  %v1658_v28 = vshll.u32 %v1109_v42, 16  ;;  %v1118_v18 = vld [vmem:[%s14419_s14 + $0x13c] sm:$0xf] }
  0xf9   : > { %v1662_v35 = vshrl.u32 %v1109_v42, 16  ;;  %v1623_v21 = vsel %vm14442_vm2, %v1618_v57, %v1622_v59  ;;  %v1632_v0 = vrot.slane %v1631_v60, 4  ;;  %13411 = vmatprep.mubr.bf16.mxu0 %v14246_v43  ;;  %v1651_v1 = vrot.slane %v1649_v47, 4  ;;  %13472 = vmatpush3.bf16.msra.mxu0 %v14255_v31  ;;  %v1120_v45 = vld [vmem:[%s14419_s14 + $0x144] sm:$0xf]  ;;  %v14279_v57 = vld [vmem:[%s16812_s1 + $0x1f0] sm:$0xff]  }
  0xfa   : > { %v1668_v3 = vshll.u32 %v1110_v55, 16  ;;  %v11203_v17 = vcombine.low %v1613_v25, %v1623_v21  ;;  %v1642_v4 = vrot.slane %v1641_v62, 4  ;;  %v1654_v9 = vrot.slane %v1652_v11, 5  ;;  %13473 = vmatprep.subr.bf16.mxu0 %v14261_v51  ;;  %v1121_v62 = vld [vmem:[%s14419_s14 + $0x148] sm:$0xf] }
  0xfb   : > { %v1660_v29 = vrot.slane %v1658_v28, 5  ;;  %v1637_v6 = vsel %vm14442_vm2, %v1632_v0, %v1636_v36  ;;  %v1664_v7 = vrot.slane %v1662_v35, 4  ;;  %v1673_v14 = vshrl.u32 %v1111_v61, 16  ;;  %v1119_v36 = vld [vmem:[%s14419_s14 + $0x140] sm:$0x1]  ;;  %v14251_v35 = vld [vmem:[%s14419_s14 + $0x6c] sm:$0xff]  }
  0xfc   : > { %v1670_v8 = vrot.slane %v1668_v3, 5  ;;  %13040 = vmatmul.mubr.bf16.gmra.mrb[36].mxu1 %v11203_v17  ;;  %v1647_v16 = vsel %vm14442_vm2, %v1642_v4, %v1646_v41  ;;  %v1655_v20 = vor.u32 %v1654_v9, %v1651_v1  ;;  %v1676_v22 = vshll.u32 %v1111_v61, 16  ;;  %v14252_v17 = vld [vmem:[%s14419_s14 + $0x78] sm:$0xff]  }
  0xfd   : > { %v1682_v63 = vshll.u32 %v1112_v26, 16  ;;  %v11204_v27 = vcombine.low %v1637_v6, %v1647_v16  ;;  %v1665_v30 = vor.u32 %v1664_v7, %v1660_v29  ;;  %v1675_v31 = vrot.slane %v1673_v14, 4  ;;  %13474 = vmatpush3.bf16.msra.mxu0 %v14261_v51  ;;  %v1122_v6 = vld [vmem:[%s14419_s14 + $0x14c] sm:$0x1]  ;;  %v14285_v7 = vld [vmem:[%s16812_s1 + $0x1f8] sm:$0xff]  }
  0xfe   : > { %v1686_v40 = vshrl.u32 %v1112_v26, 16  ;;  %v1656_v34 = vrot.slane %v1655_v20, 4  ;;  %v1678_v37 = vrot.slane %v1676_v22, 5  ;;  %v1692_v39 = vshll.u32 %v1113_v12, 16  ;;  %13475 = vmatprep.subr.bf16.mxu0 %v14267_v10  ;;  %v1123_v20 = vld [vmem:[%s14419_s14 + $0x150] sm:$0xf] }
  0xff   : > { %v1684_v38 = vrot.slane %v1682_v63, 5  ;;  %13043 = vmatprep.mubr.bf16.mxu1 %v11204_v27  ;;  %v1666_v59 = vrot.slane %v1665_v30, 4  ;;  %v1697_v43 = vshrl.u32 %v1114_v15, 16  ;;  %v1700_v44 = vshll.u32 %v1114_v15, 16 }
 0x100   : > { %v1688_v2 = vrot.slane %v1686_v40, 4  ;;  %v1661_v50 = vsel %vm14442_vm2, %v1656_v34, %v1660_v29  ;;  %13412 = vmatmul.mubr.bf16.gmra.mrb[8].mxu0 %v14248_v13  ;;  %v1679_v52 = vor.u32 %v1678_v37, %v1675_v31  ;;  %v1694_v53 = vrot.slane %v1692_v39, 5  ;;  %v14289_v39 = vld [vmem:[%s16812_s1 + $0x200] sm:$0xff]  }
 0x101   : > { %v1706_v54 = vshll.u32 %v1115_v58, 16  ;;  %v1671_v51 = vsel %vm14442_vm2, %v1666_v59, %v1670_v8  ;;  %13415 = vmatprep.mubr.bf16.mxu0 %v14250_v5  ;;  %v1699_v32 = vrot.slane %v1697_v43, 4  ;;  %v1702_v19 = vrot.slane %v1700_v44, 5  ;;  %13476 = vmatpush3.bf16.msra.mxu0 %v14267_v10  ;;  %v14254_v43 = vld [vmem:[%s14419_s14 + $0x84] sm:$0xff]   ;;  %v1125_v44 = vld [vmem:[%s14419_s14 + $0x158] sm:$0x1] }
 0x102   : > { %v1689_v24 = vor.u32 %v1688_v2, %v1684_v38  ;;  %v11205_v42 = vcombine.low %v1661_v50, %v1671_v51  ;;  %v1680_v55 = vrot.slane %v1679_v52, 4  ;;  %v1710_v25 = vshrl.u32 %v1115_v58, 16  ;;  %13477 = vmatprep.subr.bf16.mxu0 %v14273_v23  ;;  %v1126_v51 = vld [vmem:[%s14419_s14 + $0x15c] sm:$0xf] }
 0x103   : > { %v1708_v56 = vrot.slane %v1706_v54, 5  ;;  %v1703_v41 = vor.u32 %v1702_v19, %v1699_v32  ;;  %v1716_v47 = vshll.u32 %v1116_v46, 16  ;;  %v1721_v61 = vshrl.u32 %v1117_v48, 16 }
 0x104   : > { %v1690_v60 = vrot.slane %v1689_v24, 4  ;;  %13044 = vmatmul.mubr.bf16.gmra.mrb[40].mxu1 %v11205_v42  ;;  %v1685_v11 = vsel %vm14442_vm2, %v1680_v55, %v1684_v38  ;;  %v1712_v28 = vrot.slane %v1710_v25, 4  ;;  %v1724_v26 = vshll.u32 %v1117_v48, 16  ;;  %v1124_v38 = vld [vmem:[%s14419_s14 + $0x154] sm:$0xf] }
 0x105   : > { %v1730_v21 = vshll.u32 %v1118_v18, 16  ;;  %v1704_v1 = vrot.slane %v1703_v41, 4  ;;  %v1718_v3 = vrot.slane %v1716_v47, 5  ;;  %v1723_v12 = vrot.slane %v1721_v61, 4  ;;  %13478 = vmatpush3.bf16.msra.mxu0 %v14273_v23  ;;  %v14256_v42 = vld [vmem:[%s14419_s14 + $0x90] sm:$0xff]  }
 0x106   : > { %v1695_v0 = vsel %vm14442_vm2, %v1690_v60, %v1694_v53  ;;  %v1713_v9 = vor.u32 %v1712_v28, %v1708_v56  ;;  %v1726_v29 = vrot.slane %v1724_v26, 5  ;;  %13479 = vmatprep.subr.bf16.mxu0 %v14279_v57  ;;  %v1734_v13 = vshrl.u32 %v1118_v18, 16  ;;  %v1127_v55 = vld [vmem:[%s14419_s14 + $0x160] sm:$0xf] }
 0x107   : > { %v11206_v4 = vcombine.low %v1685_v11, %v1695_v0  ;;  %v1732_v10 = vrot.slane %v1730_v21, 5  ;;  %v1709_v8 = vsel %vm14442_vm2, %v1704_v1, %v1708_v56  ;;  %v1740_v14 = vshll.u32 %v1119_v36, 16 }
 0x108   : > { %v1745_v16 = vshrl.u32 %v1120_v45, 16  ;;  %v1714_v22 = vrot.slane %v1713_v9, 4  ;;  %13416 = vmatmul.mubr.bf16.gmra.mrb[12].mxu0 %v14251_v35  ;;  %v1727_v63 = vor.u32 %v1726_v29, %v1723_v12  ;;  %v1748_v5 = vshll.u32 %v1120_v45, 16  ;;  %v1130_v12 = vld [vmem:[%s14419_s14 + $0x16c] sm:$0xf] }
 0x109   : > { %13047 = vmatprep.mubr.bf16.mxu1 %v11206_v4  ;;  %v1754_v15 = vshll.u32 %v1121_v62, 16  ;;  %v1736_v23 = vrot.slane %v1734_v13, 4  ;;  %v1742_v27 = vrot.slane %v1740_v14, 5  ;;  %13419 = vmatprep.mubr.bf16.mxu0 %v14252_v17  ;;  %v1758_v31 = vshrl.u32 %v1121_v62, 16  ;;  %v1129_v62 = vld [vmem:[%s14419_s14 + $0x168] sm:$0xf] }
 0x10a   : > { %v1747_v30 = vrot.slane %v1745_v16, 4  ;;  %13480 = vmatpush3.bf16.msra.mxu0 %v14279_v57  ;;  %v1719_v40 = vsel %vm14442_vm2, %v1714_v22, %v1718_v3  ;;  %v1728_v58 = vrot.slane %v1727_v63, 4  ;;  %v1750_v34 = vrot.slane %v1748_v5, 5  ;;  %v1128_v57 = vld [vmem:[%s14419_s14 + $0x164] sm:$0x1] }
 0x10b   : > { %v1756_v37 = vrot.slane %v1754_v15, 5  ;;  %13481 = vmatprep.subr.bf16.mxu0 %v14285_v7  ;;  %v11207_v46 = vcombine.low %v1709_v8, %v1719_v40  ;;  %v1737_v48 = vor.u32 %v1736_v23, %v1732_v10  ;;  %v1760_v59 = vrot.slane %v1758_v31, 4  ;;  %v1131_v22 = vld [vmem:[%s14419_s14 + $0x170] sm:$0x1]  ;;  %v1132_v31 = vld [vmem:[%s14419_s14 + $0x174] sm:$0xf] }
 0x10c   : > { %v1764_v2 = vshll.u32 %v1122_v6, 16  ;;  %v1733_v50 = vsel %vm14442_vm2, %v1728_v58, %v1732_v10  ;;  %v1751_v52 = vor.u32 %v1750_v34, %v1747_v30  ;;  %v1769_v53 = vshrl.u32 %v1123_v20, 16  ;;  %v14258_v30 = vld [vmem:[%s14419_s14 + $0xa8] sm:$0xff]  }
 0x10d   : > { %v1772_v54 = vshll.u32 %v1123_v20, 16  ;;  %13048 = vmatmul.mubr.bf16.gmra.mrb[44].mxu1 %v11207_v46  ;;  %v1738_v24 = vrot.slane %v1737_v48, 4  ;;  %v1761_v32 = vor.u32 %v1760_v59, %v1756_v37  ;;  %v1778_v18 = vshll.u32 %v1124_v38, 16  ;;  %v14257_v20 = vld [vmem:[%s14419_s14 + $0x9c] sm:$0xff]  }
 0x10e   : > { %v1766_v19 = vrot.slane %v1764_v2, 5  ;;  %13482 = vmatpush3.bf16.msra.mxu0 %v14285_v7  ;;  %v1752_v56 = vrot.slane %v1751_v52, 4  ;;  %v1771_v25 = vrot.slane %v1769_v53, 4  ;;  %v1782_v45 = vshrl.u32 %v1124_v38, 16  ;;  %v1133_v38 = vld [vmem:[%s14419_s14 + $0x178] sm:$0xf] }
 0x10f   : > { %v1774_v36 = vrot.slane %v1772_v54, 5  ;;  %13547 = vmatprep.subr.bf16.mxu0 %v14289_v39  ;;  %v1743_v60 = vsel %vm14442_vm2, %v1738_v24, %v1742_v27  ;;  %v1762_v41 = vrot.slane %v1761_v32, 4  ;;  %v1780_v47 = vrot.slane %v1778_v18, 5  ;;  %v1135_v32 = vld [vmem:[%s14419_s14 + $0x180] sm:$0xf] }
 0x110   : > { %v1788_v61 = vshll.u32 %v1125_v44, 16  ;;  %v11208_v11 = vcombine.low %v1733_v50, %v1743_v60  ;;  %v1757_v28 = vsel %vm14442_vm2, %v1752_v56, %v1756_v37  ;;  %13420 = vmatmul.mubr.bf16.gmra.mrb[16].mxu0 %v14254_v43  ;;  %v1784_v26 = vrot.slane %v1782_v45, 4  ;;  %v1134_v50 = vld [vmem:[%s14419_s14 + $0x17c] sm:$0x1] }
 0x111   : > { %v1775_v35 = vor.u32 %v1774_v36, %v1771_v25  ;;  %v1767_v21 = vsel %vm14442_vm2, %v1762_v41, %v1766_v19  ;;  %13423 = vmatprep.mubr.bf16.mxu0 %v14256_v42  ;;  %v1793_v1 = vshrl.u32 %v1126_v51, 16  ;;  %v1796_v3 = vshll.u32 %v1126_v51, 16  ;;  %v1136_v19 = vld [vmem:[%s14419_s14 + $0x184] sm:$0xf] }
 0x112   : > { %v1790_v0 = vrot.slane %v1788_v61, 5  ;;  %13051 = vmatprep.mubr.bf16.mxu1 %v11208_v11  ;;  %v11209_v17 = vcombine.low %v1757_v28, %v1767_v21  ;;  %v1785_v9 = vor.u32 %v1784_v26, %v1780_v47  ;;  %v1802_v29 = vshll.u32 %v1127_v55, 16  ;;  %v14262_v11 = vld [vmem:[%s14419_s14 + $0xc0] sm:$0xff]   ;;  %v1137_v21 = vld [vmem:[%s14419_s14 + $0x188] sm:$0x1] }
 0x113   : > { %v1776_v4 = vrot.slane %v1775_v35, 4  ;;  %v1795_v10 = vrot.slane %v1793_v1, 4  ;;  %v1798_v6 = vrot.slane %v1796_v3, 5  ;;  %v1806_v7 = vshrl.u32 %v1127_v55, 16  ;;  %v1138_v1 = vld [vmem:[%s14419_s14 + $0x18c] sm:$0xf] }
 0x114   : > { %v1812_v8 = vshll.u32 %v1128_v57, 16  ;;  %v1786_v14 = vrot.slane %v1785_v9, 4  ;;  %v1804_v16 = vrot.slane %v1802_v29, 5  ;;  %v1817_v63 = vshrl.u32 %v1129_v62, 16 }
 0x115   : > { %v1781_v13 = vsel %vm14442_vm2, %v1776_v4, %v1780_v47  ;;  %13052 = vmatmul.mubr.bf16.gmra.mrb[48].mxu1 %v11209_v17  ;;  %v1799_v5 = vor.u32 %v1798_v6, %v1795_v10  ;;  %v1808_v15 = vrot.slane %v1806_v7, 4  ;;  %v1820_v27 = vshll.u32 %v1129_v62, 16  ;;  %v14260_v62 = vld [vmem:[%s14419_s14 + $0xb4] sm:$0xff]   ;;  %v1139_v7 = vld [vmem:[%s14419_s14 + $0x190] sm:$0xf] }
 0x116   : > { %v1814_v23 = vrot.slane %v1812_v8, 5  ;;  %v1791_v40 = vsel %vm14442_vm2, %v1786_v14, %v1790_v0  ;;  %v1819_v58 = vrot.slane %v1817_v63, 4  ;;  %v1826_v34 = vshll.u32 %v1130_v12, 16 }
 0x117   : > { %v1830_v37 = vshrl.u32 %v1130_v12, 16  ;;  %v11210_v39 = vcombine.low %v1781_v13, %v1791_v40  ;;  %v1800_v46 = vrot.slane %v1799_v5, 4  ;;  %v1809_v48 = vor.u32 %v1808_v15, %v1804_v16 }
 0x118   : > { %v1822_v59 = vrot.slane %v1820_v27, 5  ;;  %13424 = vmatmul.mubr.bf16.gmra.mrb[20].mxu0 %v14257_v20  ;;  %v1828_v2 = vrot.slane %v1826_v34, 5  ;;  %v1836_v44 = vshll.u32 %v1131_v22, 16  ;;  %v1841_v52 = vshrl.u32 %v1132_v31, 16  ;;  %v1140_v20 = vld [vmem:[%s14419_s14 + $0x194] sm:$0x1] }
 0x119   : > { %v1832_v43 = vrot.slane %v1830_v37, 4  ;;  %13055 = vmatprep.mubr.bf16.mxu1 %v11210_v39  ;;  %v1805_v53 = vsel %vm14442_vm2, %v1800_v46, %v1804_v16  ;;  %v1810_v54 = vrot.slane %v1809_v48, 4  ;;  %13427 = vmatprep.mubr.bf16.mxu0 %v14258_v30  ;;  %v1844_v24 = vshll.u32 %v1132_v31, 16  ;;  %v2586_v22 = vld [vmem:[%s14419_s14] sm:$0xe]  ;;  %v14263_v48 = vld [vmem:[%s14419_s14 + $0xcc] sm:$0xff]  }
 0x11a   : > { %v1823_v51 = vor.u32 %v1822_v59, %v1819_v58  ;;  %v1838_v42 = vrot.slane %v1836_v44, 5  ;;  %v1843_v55 = vrot.slane %v1841_v52, 4  ;;  %v1850_v56 = vshll.u32 %v1133_v38, 16  ;;  %v2587_v27 = vld [vmem:[%s14419_s14 + $0x4] sm:$0xf] }
 0x11b   : > { %v1833_v18 = vor.u32 %v1832_v43, %v1828_v2  ;;  %v1815_v25 = vsel %vm14442_vm2, %v1810_v54, %v1814_v23  ;;  %v1846_v45 = vrot.slane %v1844_v24, 5  ;;  %v1854_v57 = vshrl.u32 %v1133_v38, 16  ;;  %v2588_v30 = vld [vmem:[%s14419_s14 + $0x8] sm:$0x1]  ;;  %v2590_v59 = vld [vmem:[%s14419_s14 + $0x10] sm:$0xf] }
 0x11c   : > { %v1824_v36 = vrot.slane %v1823_v51, 4  ;;  %v11211_v60 = vcombine.low %v1805_v53, %v1815_v25  ;;  %v1852_v47 = vrot.slane %v1850_v56, 5  ;;  %v1860_v61 = vshll.u32 %v1134_v50, 16  ;;  %v14264_v24 = vld [vmem:[%s14419_s14 + $0xf0] sm:$0xff]  }
 0x11d   : > { %v1834_v41 = vrot.slane %v1833_v18, 4  ;;  %v1847_v35 = vor.u32 %v1846_v45, %v1843_v55  ;;  %v1856_v26 = vrot.slane %v1854_v57, 4  ;;  %v1865_v0 = vshrl.u32 %v1135_v32, 16  ;;  %v2591_v45 = vld [vmem:[%s14419_s14 + $0x14] sm:$0x1] }
 0x11e   : > { %v1829_v28 = vsel %vm14442_vm2, %v1824_v36, %v1828_v2  ;;  %13056 = vmatmul.mubr.bf16.gmra.mrb[52].mxu1 %v11211_v60  ;;  %v1862_v12 = vrot.slane %v1860_v61, 5  ;;  %v1868_v17 = vshll.u32 %v1135_v32, 16  ;;  %v1874_v4 = vshll.u32 %v1136_v19, 16  ;;  %v2589_v32 = vld [vmem:[%s14419_s14 + $0xc] sm:$0xe] }
 0x11f   : > { %v1839_v3 = vsel %vm14442_vm2, %v1834_v41, %v1838_v42  ;;  %v1848_v29 = vrot.slane %v1847_v35, 4  ;;  %v1857_v10 = vor.u32 %v1856_v26, %v1852_v47  ;;  %v1867_v6 = vrot.slane %v1865_v0, 4  ;;  %v2592_v57 = vld [vmem:[%s14419_s14 + $0x18] sm:$0xe] }
 0x120   : > { %v11212_v9 = vcombine.low %v1829_v28, %v1839_v3  ;;  %13428 = vmatmul.mubr.bf16.gmra.mrb[24].mxu0 %v14260_v62  ;;  %v1870_v8 = vrot.slane %v1868_v17, 5  ;;  %v1876_v13 = vrot.slane %v1874_v4, 5  ;;  %v1878_v14 = vshrl.u32 %v1136_v19, 16  ;;  %v2593_v62 = vld [vmem:[%s14419_s14 + $0x1c] sm:$0xf] }
 0x121   : > { %v1884_v16 = vshll.u32 %v1137_v21, 16  ;;  %v1853_v63 = vsel %vm14442_vm2, %v1848_v29, %v1852_v47  ;;  %v1858_v5 = vrot.slane %v1857_v10, 4  ;;  %13431 = vmatprep.mubr.bf16.mxu0 %v14262_v11  ;;  %v1889_v15 = vshrl.u32 %v1138_v1, 16  ;;  %v2594_v11 = vld [vmem:[%s14419_s14 + $0x20] sm:$0x1]  ;;  %v14268_v10 = vld [vmem:[%s14419_s14 + $0x108] sm:$0xff]  }
 0x122   : > { %13059 = vmatprep.mubr.bf16.mxu1 %v11212_v9  ;;  %v1892_v23 = vshll.u32 %v1138_v1, 16  ;;  %v1871_v31 = vor.u32 %v1870_v8, %v1867_v6  ;;  %v1880_v40 = vrot.slane %v1878_v14, 4  ;;  %v1898_v34 = vshll.u32 %v1139_v7, 16  ;;  %v2596_v3 = vld [vmem:[%s14419_s14 + $0x28] sm:$0xf]  ;;  %v14266_v9 = vld [vmem:[%s14419_s14 + $0xfc] sm:$0xff]  }
 0x123   : > { %v1886_v58 = vrot.slane %v1884_v16, 5  ;;  %v1863_v37 = vsel %vm14442_vm2, %v1858_v5, %v1862_v12  ;;  %v1891_v38 = vrot.slane %v1889_v15, 4  ;;  %v1902_v46 = vshrl.u32 %v1139_v7, 16  ;;  %v2597_v16 = vld [vmem:[%s14419_s14 + $0x2c] sm:$0x1] }
 0x124   : > { %v1894_v39 = vrot.slane %v1892_v23, 5  ;;  %v11213_v2 = vcombine.low %v1853_v63, %v1863_v37  ;;  %v1872_v43 = vrot.slane %v1871_v31, 4  ;;  %v1881_v44 = vor.u32 %v1880_v40, %v1876_v13  ;;  %v2598_v63 = vld [vmem:[%s14419_s14 + $0x30] sm:$0xe]  ;;  %v2600_v40 = vld [vmem:[%s14419_s14 + $0x38] sm:$0x1] }
 0x125   : > { %v1900_v50 = vrot.slane %v1898_v34, 5  ;;  %v1904_v53 = vrot.slane %v1902_v46, 4  ;;  %v1908_v54 = vshll.u32 %v1140_v20, 16  ;;  %v11224_v51 = vrot.slane %v2586_v22, 9  ;;  %v2599_v22 = vld [vmem:[%s14419_s14 + $0x34] sm:$0xf] }
 0x126   : > { %v1895_v52 = vor.u32 %v1894_v39, %v1891_v38  ;;  %13060 = vmatmul.mubr.bf16.gmra.mrb[56].mxu1 %v11213_v2  ;;  %v1877_v19 = vsel %vm14442_vm2, %v1872_v43, %v1876_v13  ;;  %v1882_v18 = vrot.slane %v1881_v44, 4  ;;  %v2783_v42 = vrot.slane %v2587_v27, 5  ;;  %v2595_v13 = vld [vmem:[%s14419_s14 + $0x24] sm:$0xe]  ;;  %v2602_v38 = vld [vmem:[%s14419_s14 + $0x40] sm:$0xf] }
 0x127   : > { %v2786_v55 = vrot.slane %v2588_v30, 5  ;;  %v1905_v25 = vor.u32 %v1904_v53, %v1900_v50  ;;  %v1910_v36 = vrot.slane %v1908_v54, 5  ;;  %v2790_v61 = vrot.slane %v2590_v59, 5  ;;  %v14269_v46 = vld [vmem:[%s14419_s14 + $0x114] sm:$0xff]   ;;  %v14270_v2 = vld [vmem:[%s14419_s14 + $0x120] sm:$0xff]  }
 0x128   : > { %v1896_v56 = vrot.slane %v1895_v52, 4  ;;  %v1887_v60 = vsel %vm14442_vm2, %v1882_v18, %v1886_v58  ;;  %13432 = vmatmul.mubr.bf16.gmra.mrb[28].mxu0 %v14263_v48  ;;  %v2784_v41 = vsel %vm14609_vm5, %v11224_v51, %v2783_v42  ;;  %v2785_v47 = vrot.slane %v2783_v42, 4  ;;  %v14271_v48 = vld [vmem:[%s16812_s1 + $0xc8] sm:$0xff]   ;;  %v2601_v43 = vld [vmem:[%s14419_s14 + $0x3c] sm:$0xe]  ;;  %v14333_v18 = vld [vmem:[%s16812_s1 + $0xc0] sm:$0xff]  }
 0x129   : > { %v11214_v28 = vcombine.low %v1877_v19, %v1887_v60  ;;  %v1906_v26 = vrot.slane %v1905_v25, 4  ;;  %13435 = vmatprep.mubr.bf16.mxu0 %v14264_v24  ;;  %v11225_v0 = vrot.slane %v2589_v32, 9  ;;  %v2793_v1 = vrot.slane %v2591_v45, 5  ;;  %v2603_v52 = vld [vmem:[%s14419_s14 + $0x44] sm:$0x1]  ;;  %v14277_v45 = vld [vmem:[%s16812_s1 + $0xd0] sm:$0xff]  }
 0x12a   : > { %v1901_v35 = vsel %vm14442_vm2, %v1896_v56, %v1900_v50  ;;  %v2787_v21 = vsel %vm14609_vm5, %v2785_v47, %v2786_v55  ;;  %v2792_v4 = vrot.slane %v2790_v61, 4  ;;  %v2797_v29 = vrot.slane %v2593_v62, 5  ;;  %v2605_v53 = vld [vmem:[%s14419_s14 + $0x4c] sm:$0xf]  ;;  %v2604_v51 = vld [vmem:[%s14419_s14 + $0x48] sm:$0xe] }
 0x12b   : > { %13063 = vmatprep.mubr.bf16.mxu1 %v11214_v28  ;;  %v1911_v12 = vsel %vm14442_vm2, %v1906_v26, %v1910_v36  ;;  %v11272_v17 = vcombine.low %v2784_v41, %v2787_v21  ;;  %v11226_v7 = vrot.slane %v2592_v57, 9  ;;  %v2800_v8 = vrot.slane %v2594_v11, 5  ;;  %v2606_v32 = vld [vmem:[%s14419_s14 + $0x50] sm:$0x1]  ;;  %v15358_v19 = vld [vmem:[%s14419_s14 + $0x58] sm:$0xf] }
 0x12c   : > { %v11215_v6 = vcombine.low %v1901_v35, %v1911_v12  ;;  %v2799_v14 = vrot.slane %v2797_v29, 4  ;;  %v2804_v20 = vrot.slane %v2596_v3, 5  ;;  %v2791_v5 = vsel %vm14609_vm5, %v11225_v0, %v2790_v61  ;;  %v15368_v56 = vld [vmem:[%s14419_s14 + $0x54] sm:$0xe]  ;;  %v15371_v25 = vld [vmem:[%s14419_s14 + $0x5c] sm:$0x1] }
 0x12d   : > { %v2794_v15 = vsel %vm14609_vm5, %v2792_v4, %v2793_v1  ;;  %v11227_v23 = vrot.slane %v2595_v13, 9  ;;  %v2798_v27 = vsel %vm14609_vm5, %v11226_v7, %v2797_v29  ;;  %v2807_v31 = vrot.slane %v2597_v16, 5  ;;  %v15382_v35 = vld [vmem:[%s14419_s14 + $0x64] sm:$0xf]  ;;  %v14272_v21 = vld [vmem:[%s14419_s14 + $0x12c] sm:$0xff]   ;;  %v14283_v12 = vld [vmem:[%s16812_s1 + $0xd8] sm:$0xff]  }
 0x12e   : > { %13064 = vmatmul.mubr.bf16.gmra.mrb[60].mxu1 %v11215_v6  ;;  %v2801_v30 = vsel %vm14609_vm5, %v2799_v14, %v2800_v8  ;;  %v2811_v58 = vrot.slane %v2599_v22, 5  ;;  %v2806_v34 = vrot.slane %v2804_v20, 4  ;;  %v11228_v37 = vrot.slane %v2598_v63, 9  ;;  %v15388_v3 = vld [vmem:[%s14419_s14 + $0x60] sm:$0xe]  ;;  %v14274_v4 = vld [vmem:[%s14419_s14 + $0x138] sm:$0xff]  }
 0x12f   : > { %13083 = vmatprep.mubr.bf16.mxu1 %v11272_v17  ;;  %v11273_v39 = vcombine.low %v2791_v5, %v2794_v15  ;;  %v11274_v59 = vcombine.low %v2798_v27, %v2801_v30  ;;  %v2814_v50 = vrot.slane %v2600_v40, 5  ;;  %v2818_v54 = vrot.slane %v2602_v38, 5  ;;  %v2612_v29 = vld [vmem:[%s14419_s14 + $0x68] sm:$0x1]  ;;  %v15399_v6 = vld [vmem:[%s14419_s14 + $0x6c] sm:$0xe] }
 0x130   : > { %13436 = vmatmul.mubr.bf16.gmra.mrb[32].mxu0 %v14266_v9  ;;  %v2813_v44 = vrot.slane %v2811_v58, 4  ;;  %v2825_v24 = vrot.slane %v2605_v53, 5  ;;  %v2805_v42 = vsel %vm14609_vm5, %v11227_v23, %v2804_v20  ;;  %v2808_v55 = vsel %vm14609_vm5, %v2806_v34, %v2807_v31  ;;  %v15402_v7 = vld [vmem:[%s14419_s14 + $0x70] sm:$0xf]  ;;  %v15405_v8 = vld [vmem:[%s14419_s14 + $0x74] sm:$0x1] }
 0x131   : > { %13439 = vmatprep.mubr.bf16.mxu0 %v14268_v10  ;;  %v2832_v36 = vrot.slane %v15358_v19, 5  ;;  %v2812_v57 = vsel %vm14609_vm5, %v11228_v37, %v2811_v58  ;;  %v11229_v41 = vrot.slane %v2601_v43, 9  ;;  %v2821_v47 = vrot.slane %v2603_v52, 5  ;;  %v14288_v5 = vld [vmem:[%s16812_s1 + $0xe0] sm:$0xff]   ;;  %v2616_v31 = vld [vmem:[%s14419_s14 + $0x78] sm:$0xe] }
 0x132   : > { %v2815_v60 = vsel %vm14609_vm5, %v2813_v44, %v2814_v50  ;;  %v2820_v61 = vrot.slane %v2818_v54, 4  ;;  %v11230_v62 = vrot.slane %v2604_v51, 9  ;;  %v2827_v11 = vrot.slane %v2825_v24, 4  ;;  %v2617_v40 = vld [vmem:[%s14419_s14 + $0x7c] sm:$0xf]  ;;  %v14290_v43 = vld [vmem:[%s16812_s1 + $0xe8] sm:$0xff]  }
 0x133   : > { %v2828_v28 = vrot.slane %v2606_v32, 5  ;;  %v11275_v26 = vcombine.low %v2805_v42, %v2808_v55  ;;  %v11231_v0 = vrot.slane %v15368_v56, 9  ;;  %v2835_v1 = vrot.slane %v15371_v25, 5  ;;  %v2618_v58 = vld [vmem:[%s14419_s14 + $0x80] sm:$0x1]  ;;  %v14276_v44 = vld [vmem:[%s14419_s14 + $0x150] sm:$0xff]  }
 0x134   : > { %v11276_v17 = vcombine.low %v2812_v57, %v2815_v60  ;;  %v2834_v9 = vrot.slane %v2832_v36, 4  ;;  %v2839_v10 = vrot.slane %v15382_v35, 5  ;;  %v11232_v13 = vrot.slane %v15388_v3, 9  ;;  %v2622_v32 = vld [vmem:[%s14419_s14 + $0x90] sm:$0xe] }
 0x135   : > { %v2846_v14 = vrot.slane %v15402_v7, 5  ;;  %v2819_v16 = vsel %vm14609_vm5, %v11229_v41, %v2818_v54  ;;  %v2822_v20 = vsel %vm14609_vm5, %v2820_v61, %v2821_v47  ;;  %v2826_v22 = vsel %vm14609_vm5, %v11230_v62, %v2825_v24  ;;  %v2623_v42 = vld [vmem:[%s14419_s14 + $0x94] sm:$0xf]  ;;  %v2624_v55 = vld [vmem:[%s14419_s14 + $0x98] sm:$0x1] }
 0x136   : > { %13084 = vmatmul.mubr.bf16.vlgmr.msra.gmra.mrb[0].mxu1 %v11273_v39  ;;  %v2829_v63 = vsel %vm14609_vm5, %v2827_v11, %v2828_v28  ;;  %v2841_v15 = vrot.slane %v2839_v10, 4  ;;  %v2842_v23 = vrot.slane %v2612_v29, 5  ;;  %v11233_v27 = vrot.slane %v15399_v6, 9  ;;  %v14292_v41 = vld [vmem:[%s16812_s1 + $0xf0] sm:$0xff]   ;;  %v2626_v62 = vld [vmem:[%s14419_s14 + $0xa0] sm:$0xf] }
 0x137   : > { %13148 = vmatpush3.bf16.msra.mxu1 %v14333_v18  ;;  %13087 = vmatprep.mubr.bf16.mxu1 %v11274_v59  ;;  %v2849_v30 = vrot.slane %v15405_v8, 5  ;;  %v2848_v34 = vrot.slane %v2846_v14, 4  ;;  %v2853_v37 = vrot.slane %v2617_v40, 5  ;;  %v11277_v38 = vcombine.low %v2819_v16, %v2822_v20  ;;  %v2620_v59 = vld [vmem:[%s14419_s14 + $0x88] sm:$0xf] }
 0x138   : > { %13440 = vmatmul.mubr.bf16.gmra.mrb[36].mxu0 %v14269_v46  ;;  %13149 = vmatprep.subr.bf16.mxu1 %v14271_v48  ;;  %v11278_v39 = vcombine.low %v2826_v22, %v2829_v63  ;;  %v14275_v46 = vld [vmem:[%s14419_s14 + $0x144] sm:$0xff]   ;;  %v11234_v50 = vrot.slane %v2616_v31, 9  ;;  %v2856_v53 = vrot.slane %v2618_v58, 5  ;;  %v2860_v54 = vrot.slane %v2620_v59, 5  ;;  %v2629_v7 = vld [vmem:[%s14419_s14 + $0xac] sm:$0xf] }
 0x139   : > { %13443 = vmatprep.mubr.bf16.mxu0 %v14270_v2  ;;  %v2621_v2 = vld [vmem:[%s14419_s14 + $0x8c] sm:$0x1]  ;;  %v2855_v52 = vrot.slane %v2853_v37, 4  ;;  %v11236_v56 = vrot.slane %v2622_v32, 9  ;;  %v2867_v57 = vrot.slane %v2623_v42, 5  ;;  %v2870_v60 = vrot.slane %v2624_v55, 5 }
 0x13a   : > { %v2863_v24 = vrot.slane %v2621_v2, 5  ;;  %v2862_v18 = vrot.slane %v2860_v54, 4  ;;  %v2836_v47 = vsel %vm14609_vm5, %v2834_v9, %v2835_v1  ;;  %v2840_v61 = vsel %vm14609_vm5, %v11232_v13, %v2839_v10  ;;  %v2627_v11 = vld [vmem:[%s14419_s14 + $0xa4] sm:$0x1]  ;;  %v14280_v10 = vld [vmem:[%s14419_s14 + $0x168] sm:$0xff]  }
 0x13b   : > { %13150 = vmatpush3.bf16.msra.mxu1 %v14271_v48  ;;  %v2619_v48 = vld [vmem:[%s14419_s14 + $0x84] sm:$0xe]  ;;  %v2843_v19 = vsel %vm14609_vm5, %v2841_v15, %v2842_v23  ;;  %v2869_v28 = vrot.slane %v2867_v57, 4  ;;  %v2874_v25 = vrot.slane %v2626_v62, 5  ;;  %v15460_v1 = vsel %vm14609_vm5, %v11233_v27, %v2846_v14  ;;  %v2630_v8 = vld [vmem:[%s14419_s14 + $0xb0] sm:$0x1] }
 0x13c   : > { %13151 = vmatprep.subr.bf16.mxu1 %v14277_v45  ;;  %v11235_v51 = vrot.slane %v2619_v48, 9  ;;  %v15464_v3 = vsel %vm14609_vm5, %v2848_v34, %v2849_v30  ;;  %v15473_v9 = vsel %vm14609_vm5, %v11234_v50, %v2853_v37  ;;  %v15477_v29 = vsel %vm14609_vm5, %v2855_v52, %v2856_v53  ;;  %v2631_v27 = vld [vmem:[%s14419_s14 + $0xb4] sm:$0xe]  ;;  %v2632_v30 = vld [vmem:[%s14419_s14 + $0xb8] sm:$0xf] }
 0x13d   : > { %v2876_v6 = vrot.slane %v2874_v25, 4  ;;  %v15488_v16 = vsel %vm14609_vm5, %v2862_v18, %v2863_v24  ;;  %v2881_v20 = vrot.slane %v2629_v7, 5  ;;  %v2884_v22 = vrot.slane %v2630_v8, 5  ;;  %v2633_v31 = vld [vmem:[%s14419_s14 + $0xbc] sm:$0x1] }
 0x13e   : > { %13088 = vmatmul.mubr.bf16.gmra.mrb[4].mxu1 %v11275_v26  ;;  %v2877_v26 = vrot.slane %v2627_v11, 5  ;;  %v15484_v14 = vsel %vm14609_vm5, %v11235_v51, %v2860_v54  ;;  %v11281_v63 = vcombine.low %v15460_v1, %v15464_v3  ;;  %v15498_v15 = vsel %vm14609_vm5, %v2869_v28, %v2870_v60  ;;  %v2634_v59 = vld [vmem:[%s14419_s14 + $0xd8] sm:$0xe]  ;;  %v2635_v2 = vld [vmem:[%s14419_s14 + $0xdc] sm:$0xf]  ;;  %v14282_v1 = vld [vmem:[%s14419_s14 + $0x180] sm:$0xff]  }
 0x13f   : > { %13091 = vmatprep.mubr.bf16.mxu1 %v11276_v17  ;;  %13152 = vmatpush3.bf16.msra.mxu1 %v14277_v45  ;;  %v2833_v45 = vsel %vm14609_vm5, %v11231_v0, %v2832_v36  ;;  %v2625_v36 = vld [vmem:[%s14419_s14 + $0x9c] sm:$0xe]  ;;  %v11280_v0 = vcombine.low %v2840_v61, %v2843_v19  ;;  %v2628_v17 = vld [vmem:[%s14419_s14 + $0xa8] sm:$0xe]  ;;  %v2883_v34 = vrot.slane %v2881_v20, 4  ;;  %v11239_v37 = vrot.slane %v2631_v27, 9 }
 0x140   : > { %13444 = vmatmul.mubr.bf16.gmra.mrb[40].mxu0 %v14272_v21  ;;  %13153 = vmatprep.subr.bf16.mxu1 %v14283_v12  ;;  %v11237_v35 = vrot.slane %v2625_v36, 9  ;;  %v11279_v21 = vcombine.low %v2833_v45, %v2836_v47  ;;  %v11238_v13 = vrot.slane %v2628_v17, 9  ;;  %v15509_v40 = vsel %vm14609_vm5, %v2876_v6, %v2877_v26  ;;  %v2636_v50 = vld [vmem:[%s14419_s14 + $0xe0] sm:$0x1]  ;;  %v11888_v54 = vld [vmem:[%s14419_s14 + $0x18] sm:$0xf] }
 0x141   : > { %13447 = vmatprep.mubr.bf16.mxu0 %v14274_v4  ;;  %v14294_v4 = vld [vmem:[%s16812_s1 + $0xf8] sm:$0xff]   ;;  %v2891_v48 = vrot.slane %v2633_v31, 5  ;;  %v11240_v52 = vrot.slane %v2634_v59, 9  ;;  %v2895_v53 = vrot.slane %v2635_v2, 5  ;;  %v2898_v18 = vrot.slane %v2636_v50, 5 }
 0x142   : > { %v15502_v23 = vsel %vm14609_vm5, %v11237_v35, %v2874_v25  ;;  %v15513_v58 = vsel %vm14609_vm5, %v11238_v13, %v2881_v20  ;;  %v11889_v42 = vld [vmem:[%s14419_s14 + $0x1c] sm:$0xf]  ;;  %v11890_v55 = vld [vmem:[%s14419_s14 + $0x20] sm:$0x1]  ;;  %v8013_v60 = vshll.u32 %v11888_v54, 16  ;;  %v14281_v47 = vld [vmem:[%s14419_s14 + $0x174] sm:$0xff]  }
 0x143   : > { %13154 = vmatpush3.bf16.msra.mxu1 %v14283_v12  ;;  %v14278_v12 = vld [vmem:[%s14419_s14 + $0x15c] sm:$0xff]   ;;  %v11285_v51 = vcombine.low %v15502_v23, %v15509_v40  ;;  %v2897_v45 = vrot.slane %v2895_v53, 4  ;;  %v8019_v19 = vshll.u32 %v11889_v42, 16  ;;  %v8023_v36 = vshrl.u32 %v11889_v42, 16  ;;  %v2638_v11 = vld [vmem:[%s14419_s14 + $0xe8] sm:$0xf] }
 0x144   : > { %13155 = vmatprep.subr.bf16.mxu1 %v14288_v5  ;;  %v8029_v62 = vshll.u32 %v11890_v55, 16  ;;  %v15548_v28 = vsel %vm14609_vm5, %v11240_v52, %v2895_v53  ;;  %v8015_v26 = vrot.slane %v8013_v60, 5  ;;  %v11891_v7 = vld [vmem:[%s14419_s14 + $0x24] sm:$0xf]  ;;  %v11892_v20 = vld [vmem:[%s14419_s14 + $0x28] sm:$0xf] }
 0x145   : > { %v15552_v35 = vsel %vm14609_vm5, %v2897_v45, %v2898_v18  ;;  %v8025_v17 = vrot.slane %v8023_v36, 4  ;;  %v8034_v27 = vshrl.u32 %v11891_v7, 16  ;;  %v8047_v59 = vshrl.u32 %v11892_v20, 16  ;;  %v11894_v60 = vld [vmem:[%s14419_s14 + $0x30] sm:$0xf] }
 0x146   : > { %13092 = vmatmul.mubr.bf16.gmra.mrb[8].mxu1 %v11277_v38  ;;  %v11282_v38 = vcombine.low %v15473_v9, %v15477_v29  ;;  %v11288_v8 = vcombine.low %v15548_v28, %v15552_v35  ;;  %v14293_v28 = vld [vmem:[%s16812_s1 + $0x210] sm:$0xff]   ;;  %v14335_v35 = vld [vmem:[%s16812_s1 + $0x200] sm:$0xff]  }
 0x147   : > { %13095 = vmatprep.mubr.bf16.mxu1 %v11278_v39  ;;  %13156 = vmatpush3.bf16.msra.mxu1 %v14288_v5  ;;  %v15494_v5 = vsel %vm14609_vm5, %v11236_v56, %v2867_v57  ;;  %v11283_v39 = vcombine.low %v15484_v14, %v15488_v16  ;;  %v8010_v57 = vshrl.u32 %v11888_v54, 16  ;;  %v2640_v54 = vld [vmem:[%s14419_s14 + $0xf0] sm:$0xe]  ;;  %v8049_v45 = vrot.slane %v8047_v59, 4 }
 0x148   : > { %13448 = vmatmul.mubr.bf16.gmra.mrb[44].mxu0 %v14275_v46  ;;  %13157 = vmatprep.subr.bf16.mxu1 %v14290_v43  ;;  %v2888_v46 = vrot.slane %v2632_v30, 5  ;;  %v8037_v30 = vshll.u32 %v11891_v7, 16  ;;  %v11242_v36 = vrot.slane %v2640_v54, 9 }
 0x149   : > { %13451 = vmatprep.mubr.bf16.mxu0 %v14276_v44  ;;  %v15525_v44 = vsel %vm14609_vm5, %v2883_v34, %v2884_v22  ;;  %v8012_v25 = vrot.slane %v8010_v57, 4  ;;  %v11893_v22 = vld [vmem:[%s14419_s14 + $0x2c] sm:$0x1]  ;;  %v2642_v57 = vld [vmem:[%s14419_s14 + $0xf8] sm:$0x1] }
 0x14a   : > { %v11286_v24 = vcombine.low %v15513_v58, %v15525_v44  ;;  %v2890_v32 = vrot.slane %v2888_v46, 4  ;;  %v15537_v56 = vsel %vm14609_vm5, %v11239_v37, %v2888_v46  ;;  %v8043_v37 = vshll.u32 %v11892_v20, 16 }
 0x14b   : > { %13158 = vmatpush3.bf16.msra.mxu1 %v14290_v43  ;;  %v11284_v43 = vcombine.low %v15494_v5, %v15498_v15  ;;  %v8016_v9 = vor.u32 %v8015_v26, %v8012_v25  ;;  %v8036_v46 = vrot.slane %v8034_v27, 4  ;;  %v8053_v53 = vshll.u32 %v11893_v22, 16  ;;  %v14286_v25 = vld [vmem:[%s14419_s14 + $0x198] sm:$0xff]   ;;  %v2645_v5 = vld [vmem:[%s14419_s14 + $0x104] sm:$0x1] }
 0x14c   : > { %13159 = vmatprep.subr.bf16.mxu1 %v14292_v41  ;;  %v15543_v61 = vsel %vm14609_vm5, %v2890_v32, %v2891_v48  ;;  %v8039_v48 = vrot.slane %v8037_v30, 5  ;;  %v8045_v52 = vrot.slane %v8043_v37, 5  ;;  %v2641_v32 = vld [vmem:[%s14419_s14 + $0xf4] sm:$0xf]  ;;  %v11898_v37 = vld [vmem:[%s14419_s14 + $0x40] sm:$0xf] }
 0x14d   : > { %v11287_v3 = vcombine.low %v15537_v56, %v15543_v61  ;;  %v8017_v31 = vrot.slane %v8016_v9, 4  ;;  %v8061_v9 = vshll.u32 %v11894_v60, 16 }
 0x14e   : > { %13096 = vmatmul.mubr.bf16.gmra.mrb[12].mxu1 %v11279_v21  ;;  %v2639_v21 = vld [vmem:[%s14419_s14 + $0xec] sm:$0x1]  ;;  %v8040_v55 = vor.u32 %v8039_v48, %v8036_v46 }
 0x14f   : > { %13099 = vmatprep.mubr.bf16.mxu1 %v11280_v0  ;;  %13160 = vmatpush3.bf16.msra.mxu1 %v14292_v41  ;;  %v2637_v41 = vld [vmem:[%s14419_s14 + $0xe4] sm:$0xe]  ;;  %v2905_v6 = vrot.slane %v2639_v21, 5  ;;  %v8050_v21 = vor.u32 %v8049_v45, %v8045_v52  ;;  %v8063_v20 = vrot.slane %v8061_v9, 5 }
 0x150   : > { %13452 = vmatmul.mubr.bf16.gmra.mrb[48].mxu0 %v14278_v12  ;;  %13161 = vmatprep.subr.bf16.mxu1 %v14294_v4  ;;  %v14334_v0 = vld [vmem:[%s16812_s1 + $0x100] sm:$0xff]   ;;  %v8021_v12 = vrot.slane %v8019_v19, 5  ;;  %v11241_v29 = vrot.slane %v2637_v41, 9  ;;  %v14284_v41 = vld [vmem:[%s14419_s14 + $0x18c] sm:$0xff]   ;;  %v8055_v19 = vrot.slane %v8053_v53, 5  ;;  %v8041_v26 = vrot.slane %v8040_v55, 4 }
 0x151   : > { %13455 = vmatprep.mubr.bf16.mxu0 %v14280_v10  ;;  %v2902_v10 = vrot.slane %v2638_v11, 5  ;;  %v11895_v11 = vld [vmem:[%s14419_s14 + $0x34] sm:$0xf]  ;;  %v8051_v7 = vrot.slane %v8050_v21, 4  ;;  %v11899_v53 = vld [vmem:[%s14419_s14 + $0x44] sm:$0x1] }
 0x152   : > { %v8026_v13 = vor.u32 %v8025_v17, %v8021_v12  ;;  %v8022_v2 = vsel %vm14442_vm2, %v8017_v31, %v8021_v12  ;;  %v8058_v12 = vshrl.u32 %v11894_v60, 16  ;;  %v8071_v16 = vshrl.u32 %v11895_v11, 16 }
 0x153   : > { %13162 = vmatpush3.bf16.msra.mxu1 %v14294_v4  ;;  %v8031_v4 = vrot.slane %v8029_v62, 5  ;;  %v2904_v34 = vrot.slane %v2902_v10, 4  ;;  %v2909_v62 = vrot.slane %v2641_v32, 5  ;;  %v8056_v15 = vsel %vm14442_vm2, %v8051_v7, %v8055_v19 }
 0x154   : > { %13627 = vmatprep.subr.bf16.mxu1 %v14334_v0  ;;  %v2912_v0 = vrot.slane %v2642_v57, 5  ;;  %v8060_v14 = vrot.slane %v8058_v12, 4  ;;  %v8073_v30 = vrot.slane %v8071_v16, 4  ;;  %v8091_v60 = vshll.u32 %v11898_v37, 16  ;;  %v2648_v12 = vld [vmem:[%s14419_s14 + $0x110] sm:$0x1] }
 0x155   : > { %v15574_v50 = vsel %vm14609_vm5, %v2904_v34, %v2905_v6  ;;  %v15595_v17 = vsel %vm14609_vm5, %v11242_v36, %v2909_v62  ;;  %v8046_v6 = vsel %vm14442_vm2, %v8041_v26, %v8045_v52  ;;  %v11897_v34 = vld [vmem:[%s14419_s14 + $0x3c] sm:$0xf]  ;;  %v2919_v52 = vrot.slane %v2645_v5, 5 }
 0x156   : > { %13100 = vmatmul.mubr.bf16.gmra.mrb[16].mxu1 %v11281_v63  ;;  %v15568_v63 = vsel %vm14609_vm5, %v11241_v29, %v2902_v10  ;;  %v8067_v29 = vshll.u32 %v11895_v11, 16  ;;  %v2643_v10 = vld [vmem:[%s14419_s14 + $0xfc] sm:$0xe]  ;;  %v8064_v46 = vor.u32 %v8063_v20, %v8060_v14  ;;  %v8082_v54 = vshrl.u32 %v11897_v34, 16 }
 0x157   : > { %13103 = vmatprep.mubr.bf16.mxu1 %v11282_v38  ;;  %v8027_v38 = vrot.slane %v8026_v13, 4  ;;  %v11289_v42 = vcombine.low %v15568_v63, %v15574_v50  ;;  %v11243_v31 = vrot.slane %v2643_v10, 9  ;;  %v8085_v32 = vshll.u32 %v11897_v34, 16  ;;  %v11902_v10 = vld [vmem:[%s14419_s14 + $0x50] sm:$0x1] }
 0x158   : > { %13456 = vmatmul.mubr.bf16.gmra.mrb[52].mxu0 %v14281_v47  ;;  %v8069_v22 = vrot.slane %v8067_v29, 5  ;;  %v8065_v55 = vrot.slane %v8064_v46, 4  ;;  %v8084_v36 = vrot.slane %v8082_v54, 4  ;;  %v8095_v11 = vshrl.u32 %v11898_v37, 16  ;;  %v11901_v29 = vld [vmem:[%s14419_s14 + $0x4c] sm:$0xf] }
 0x159   : > { %13459 = vmatprep.mubr.bf16.mxu0 %v14282_v1  ;;  %v8032_v18 = vsel %vm14442_vm2, %v8027_v38, %v8031_v4  ;;  %v11896_v1 = vld [vmem:[%s14419_s14 + $0x38] sm:$0x1]  ;;  %v2911_v4 = vrot.slane %v2909_v62, 4  ;;  %v15615_v38 = vcombine.low %v8046_v6, %v8056_v15  ;;  %v8087_v62 = vrot.slane %v8085_v32, 5  ;;  %v2651_v46 = vld [vmem:[%s14419_s14 + $0x11c] sm:$0x1] }
 0x15a   : > { %v15585_v47 = vcombine.low %v8022_v2, %v8032_v18  ;;  %v8077_v27 = vshll.u32 %v11896_v1, 16  ;;  %v8074_v2 = vor.u32 %v8073_v30, %v8069_v22  ;;  %v14287_v18 = vld [vmem:[%s14419_s14 + $0x1a4] sm:$0xff]   ;;  %v8070_v26 = vsel %vm14442_vm2, %v8065_v55, %v8069_v22  ;;  %v2650_v22 = vld [vmem:[%s14419_s14 + $0x118] sm:$0xf] }
 0x15b   : > { %v15606_v13 = vsel %vm14609_vm5, %v2911_v4, %v2912_v0  ;;  %v8093_v0 = vrot.slane %v8091_v60, 5  ;;  %v8101_v1 = vshll.u32 %v11899_v53, 16  ;;  %v11900_v4 = vld [vmem:[%s14419_s14 + $0x48] sm:$0xf]  ;;  %v8097_v9 = vrot.slane %v8095_v11, 4 }
 0x15c   : > { %v8079_v48 = vrot.slane %v8077_v27, 5  ;;  %v8075_v19 = vrot.slane %v8074_v2, 4  ;;  %v8106_v20 = vshrl.u32 %v11900_v4, 16  ;;  %v8109_v15 = vshll.u32 %v11900_v4, 16  ;;  %v11903_v53 = vld [vmem:[%s14419_s14 + $0x54] sm:$0xf] }
 0x15d   : > { %v8103_v7 = vrot.slane %v8101_v1, 5  ;;  %v8098_v44 = vor.u32 %v8097_v9, %v8093_v0  ;;  %v8115_v30 = vshll.u32 %v11901_v29, 16  ;;  %v8133_v56 = vshll.u32 %v11903_v53, 16  ;;  %v2652_v4 = vld [vmem:[%s14419_s14 + $0x120] sm:$0xe] }
 0x15e   : > { %13104 = vmatmul.mubr.bf16.gmra.mrb[20].mxu1 %v11283_v39  ;;  %v2644_v39 = vld [vmem:[%s14419_s14 + $0x100] sm:$0xf]  ;;  %v8080_v23 = vsel %vm14442_vm2, %v8075_v19, %v8079_v48  ;;  %v8108_v37 = vrot.slane %v8106_v20, 4  ;;  %v2653_v9 = vld [vmem:[%s14419_s14 + $0x124] sm:$0xf] }
 0x15f   : > { %13107 = vmatprep.mubr.bf16.mxu1 %v11284_v43  ;;  %v11290_v43 = vcombine.low %v15595_v17, %v15606_v13  ;;  %v2916_v59 = vrot.slane %v2644_v39, 5  ;;  %v12002_v6 = vcombine.low %v8070_v26, %v8080_v23  ;;  %v2649_v39 = vld [vmem:[%s14419_s14 + $0x114] sm:$0xe]  ;;  %v8099_v34 = vrot.slane %v8098_v44, 4  ;;  %v11905_v26 = vld [vmem:[%s14419_s14 + $0x5c] sm:$0x1] }
 0x160   : > { %13460 = vmatmul.mubr.bf16.gmra.mrb[56].mxu0 %v14284_v41  ;;  %v2646_v41 = vld [vmem:[%s14419_s14 + $0x108] sm:$0xe]  ;;  %v8117_v2 = vrot.slane %v8115_v30, 5  ;;  %v11245_v55 = vrot.slane %v2649_v39, 9  ;;  %v8135_v23 = vrot.slane %v8133_v56, 5  ;;  %v2937_v30 = vrot.slane %v2653_v9, 5 }
 0x161   : > { %13463 = vmatprep.mubr.bf16.mxu0 %v14286_v25  ;;  %v15621_v45 = vsel %vm14609_vm5, %v11243_v31, %v2916_v59  ;;  %v2918_v57 = vrot.slane %v2916_v59, 4  ;;  %v2647_v25 = vld [vmem:[%s14419_s14 + $0x10c] sm:$0xf]  ;;  %v11244_v14 = vrot.slane %v2646_v41, 9  ;;  %v8111_v59 = vrot.slane %v8109_v15, 5 }
 0x162   : > { %v2923_v16 = vrot.slane %v2647_v25, 5  ;;  %v8104_v54 = vsel %vm14442_vm2, %v8099_v34, %v8103_v7  ;;  %v2933_v25 = vrot.slane %v2651_v46, 5  ;;  %v11906_v39 = vld [vmem:[%s14419_s14 + $0x60] sm:$0xf]  ;;  %v11907_v20 = vld [vmem:[%s14419_s14 + $0x64] sm:$0xf] }
 0x163   : > { %v15632_v21 = vsel %vm14609_vm5, %v2918_v57, %v2919_v52  ;;  %v8125_v52 = vshll.u32 %v11902_v10, 16  ;;  %v11904_v57 = vld [vmem:[%s14419_s14 + $0x58] sm:$0xf]  ;;  %v8112_v41 = vor.u32 %v8111_v59, %v8108_v37  ;;  %v11246_v15 = vrot.slane %v2652_v4, 9  ;;  %v2655_v59 = vld [vmem:[%s14419_s14 + $0x12c] sm:$0xe] }
 0x164   : > { %v11291_v40 = vcombine.low %v15621_v45, %v15632_v21  ;;  %v15650_v27 = vsel %vm14609_vm5, %v11244_v14, %v2923_v16  ;;  %v2925_v5 = vrot.slane %v2923_v16, 4  ;;  %v8149_v14 = vshll.u32 %v11905_v26, 16  ;;  %v2654_v16 = vld [vmem:[%s14419_s14 + $0x128] sm:$0x1]  ;;  %v11910_v26 = vld [vmem:[%s14419_s14 + $0x70] sm:$0xf] }
 0x165   : > { %v8127_v19 = vrot.slane %v8125_v52, 5  ;;  %v8113_v61 = vrot.slane %v8112_v41, 4  ;;  %v8154_v46 = vshrl.u32 %v11906_v39, 16  ;;  %v2939_v52 = vrot.slane %v2937_v30, 4  ;;  %v2657_v41 = vld [vmem:[%s14419_s14 + $0x134] sm:$0x1] }
 0x166   : > { %13108 = vmatmul.mubr.bf16.gmra.mrb[24].mxu1 %v11285_v51  ;;  %v8088_v51 = vor.u32 %v8087_v62, %v8084_v36  ;;  %v2930_v36 = vrot.slane %v2650_v22, 5  ;;  %v14291_v62 = vld [vmem:[%s16812_s1 + $0x208] sm:$0xff]   ;;  %v14298_v4 = vld [vmem:[%s16812_s1 + $0x220] sm:$0xff]   ;;  %v2659_v9 = vld [vmem:[%s14419_s14 + $0x13c] sm:$0xf] }
 0x167   : > { %13111 = vmatprep.mubr.bf16.mxu1 %v11286_v24  ;;  %v2926_v24 = vrot.slane %v2648_v12, 5  ;;  %v8139_v12 = vshll.u32 %v11904_v57, 16 }
 0x168   : > { %13464 = vmatmul.mubr.bf16.gmra.mrb[60].mxu0 %v14287_v18  ;;  %v8089_v58 = vrot.slane %v8088_v51, 4  ;;  %v2932_v1 = vrot.slane %v2930_v36, 4  ;;  %v8143_v51 = vshrl.u32 %v11904_v57, 16  ;;  %v8167_v57 = vshrl.u32 %v11907_v20, 16 }
 0x169   : > { %13483 = vmatprep.mubr.bf16.mxu0 %v15585_v47  ;;  %v8119_v47 = vshrl.u32 %v11901_v29, 16  ;;  %v15657_v48 = vsel %vm14609_vm5, %v2925_v5, %v2926_v24  ;;  %v8118_v29 = vsel %vm14442_vm2, %v8113_v61, %v8117_v2  ;;  %v8141_v7 = vrot.slane %v8139_v12, 5  ;;  %v11911_v12 = vld [vmem:[%s14419_s14 + $0x74] sm:$0x1] }
 0x16a   : > { %v8094_v31 = vsel %vm14442_vm2, %v8089_v58, %v8093_v0  ;;  %v11292_v32 = vcombine.low %v15650_v27, %v15657_v48  ;;  %v8130_v0 = vshrl.u32 %v11903_v53, 16  ;;  %v15692_v10 = vsel %vm14609_vm5, %v2932_v1, %v2933_v25  ;;  %v11909_v25 = vld [vmem:[%s14419_s14 + $0x6c] sm:$0xf] }
 0x16b   : > { %v8121_v18 = vrot.slane %v8119_v47, 4  ;;  %v12003_v60 = vcombine.low %v8094_v31, %v8104_v54  ;;  %v8145_v24 = vrot.slane %v8143_v51, 4  ;;  %v8151_v5 = vrot.slane %v8149_v14, 5  ;;  %v11908_v31 = vld [vmem:[%s14419_s14 + $0x68] sm:$0x1] }
 0x16c   : > { %v2940_v47 = vrot.slane %v2654_v16, 5  ;;  %v8157_v53 = vshll.u32 %v11906_v39, 16  ;;  %v8163_v54 = vshll.u32 %v11907_v20, 16  ;;  %v2658_v51 = vld [vmem:[%s14419_s14 + $0x138] sm:$0xe]  ;;  %v8187_v14 = vshll.u32 %v11910_v26, 16 }
 0x16d   : > { %v8122_v11 = vor.u32 %v8121_v18, %v8117_v2  ;;  %v8146_v37 = vor.u32 %v8145_v24, %v8141_v7  ;;  %v15708_v2 = vsel %vm14609_vm5, %v11246_v15, %v2937_v30  ;;  %v2656_v18 = vld [vmem:[%s14419_s14 + $0x130] sm:$0xf]  ;;  %v2660_v16 = vld [vmem:[%s14419_s14 + $0x140] sm:$0x1]  ;;  %v14303_v39 = vld [vmem:[%s16812_s1 + $0x228] sm:$0xff]   ;;  %v8191_v20 = vshrl.u32 %v11910_v26, 16 }
 0x16e   : > { %13112 = vmatmul.mubr.bf16.gmra.mrb[28].mxu1 %v11287_v3  ;;  %v15678_v3 = vsel %vm14609_vm5, %v11245_v55, %v2930_v36  ;;  %v14295_v55 = vld [vmem:[%s16812_s1 + $0x218] sm:$0xff]   ;;  %v8159_v36 = vrot.slane %v8157_v53, 5  ;;  %v2944_v1 = vrot.slane %v2656_v18, 5  ;;  %v8189_v30 = vrot.slane %v8187_v14, 5  ;;  %v11917_v14 = vld [vmem:[%s14419_s14 + $0x8c] sm:$0x1] }
 0x16f   : > { %13115 = vmatprep.mubr.bf16.mxu1 %v11288_v8  ;;  %v8123_v8 = vrot.slane %v8122_v11, 4  ;;  %v11293_v58 = vcombine.low %v15678_v3, %v15692_v10  ;;  %v8147_v50 = vrot.slane %v8146_v37, 4  ;;  %v8173_v11 = vshll.u32 %v11908_v31, 16 }
 0x170   : > { %13484 = vmatmul.mubr.bf16.vlgmr.msra.gmra.mrb[0].mxu0 %v15615_v38  ;;  %v8132_v38 = vrot.slane %v8130_v0, 4  ;;  %v8197_v31 = vshll.u32 %v11911_v12, 16  ;;  %v8193_v37 = vrot.slane %v8191_v20, 4  ;;  %v2951_v53 = vrot.slane %v2659_v9, 5  ;;  %v14313_v9 = vld [vmem:[%s16812_s1 + $0x238] sm:$0xff]  }
 0x171   : > { %13548 = vmatpush3.bf16.msra.mxu0 %v14335_v35  ;;  %13487 = vmatprep.mubr.bf16.mxu0 %v12002_v6  ;;  %v8128_v6 = vsel %vm14442_vm2, %v8123_v8, %v8127_v19  ;;  %v15722_v19 = vsel %vm14609_vm5, %v2939_v52, %v2940_v47  ;;  %v8152_v17 = vsel %vm14442_vm2, %v8147_v50, %v8151_v5  ;;  %v8175_v61 = vrot.slane %v8173_v11, 5  ;;  %v11914_v47 = vld [vmem:[%s14419_s14 + $0x80] sm:$0x1]  ;;  %v2665_v20 = vld [vmem:[%s14419_s14 + $0x154] sm:$0xf] }
 0x172   : > { %13549 = vmatprep.subr.bf16.mxu0 %v14291_v62  ;;  %v8136_v44 = vor.u32 %v8135_v23, %v8132_v38  ;;  %v12004_v22 = vcombine.low %v8118_v29, %v8128_v6  ;;  %v11294_v13 = vcombine.low %v15708_v2, %v15722_v19  ;;  %v2947_v8 = vrot.slane %v2657_v41, 5  ;;  %v2663_v41 = vld [vmem:[%s14419_s14 + $0x14c] sm:$0x1] }
 0x173   : > { %v8178_v38 = vshrl.u32 %v11909_v25, 16  ;;  %v8181_v23 = vshll.u32 %v11909_v25, 16  ;;  %v11248_v52 = vrot.slane %v2658_v51, 9  ;;  %v8194_v27 = vor.u32 %v8193_v37, %v8189_v30 }
 0x174   : > { %v8137_v34 = vrot.slane %v8136_v44, 4  ;;  %v2954_v48 = vrot.slane %v2660_v16, 5  ;;  %v2953_v50 = vrot.slane %v2951_v53, 4 }
 0x175   : > { %13550 = vmatpush3.bf16.msra.mxu0 %v14291_v62  ;;  %v8165_v62 = vrot.slane %v8163_v54, 5  ;;  %v8180_v44 = vrot.slane %v8178_v38, 4  ;;  %v8183_v24 = vrot.slane %v8181_v23, 5  ;;  %v2661_v54 = vld [vmem:[%s14419_s14 + $0x144] sm:$0xe]  ;;  %v8195_v11 = vrot.slane %v8194_v27, 4 }
 0x176   : > { %13116 = vmatmul.mubr.bf16.gmra.mrb[32].mxu1 %v11289_v42  ;;  %13551 = vmatprep.subr.bf16.mxu0 %v14293_v28  ;;  %v8142_v63 = vsel %vm14442_vm2, %v8137_v34, %v8141_v7  ;;  %v8156_v42 = vrot.slane %v8154_v46, 4  ;;  %v2946_v7 = vrot.slane %v2944_v1, 4  ;;  %v11913_v34 = vld [vmem:[%s14419_s14 + $0x7c] sm:$0xf]  ;;  %v11920_v27 = vld [vmem:[%s14419_s14 + $0x98] sm:$0x1] }
 0x177   : > { %13119 = vmatprep.mubr.bf16.mxu1 %v11290_v43  ;;  %v8169_v43 = vrot.slane %v8167_v57, 4  ;;  %v12005_v0 = vcombine.low %v8142_v63, %v8152_v17  ;;  %v15767_v63 = vsel %vm14609_vm5, %v11248_v52, %v2951_v53  ;;  %v8211_v57 = vshll.u32 %v11913_v34, 16 }
 0x178   : > { %13488 = vmatmul.mubr.bf16.gmra.mrb[4].mxu0 %v12003_v60  ;;  %v11247_v60 = vrot.slane %v2655_v59, 9  ;;  %v8160_v56 = vor.u32 %v8159_v36, %v8156_v42  ;;  %v15752_v15 = vsel %vm14609_vm5, %v2946_v7, %v2947_v8  ;;  %v8199_v59 = vrot.slane %v8197_v31, 5  ;;  %v14308_v36 = vld [vmem:[%s16812_s1 + $0x230] sm:$0xff]  }
 0x179   : > { %13491 = vmatprep.mubr.bf16.mxu0 %v12004_v22  ;;  %13552 = vmatpush3.bf16.msra.mxu0 %v14293_v28  ;;  %v8170_v35 = vor.u32 %v8169_v43, %v8165_v62  ;;  %v11912_v22 = vld [vmem:[%s14419_s14 + $0x78] sm:$0xf]  ;;  %v8215_v17 = vshrl.u32 %v11913_v34, 16  ;;  %v15777_v43 = vsel %vm14609_vm5, %v2953_v50, %v2954_v48  ;;  %v8213_v26 = vrot.slane %v8211_v57, 5  ;;  %v2667_v50 = vld [vmem:[%s14419_s14 + $0x15c] sm:$0xe] }
 0x17a   : > { %13553 = vmatprep.subr.bf16.mxu0 %v14295_v55  ;;  %v8161_v29 = vrot.slane %v8160_v56, 4  ;;  %v15738_v28 = vsel %vm14609_vm5, %v11247_v60, %v2944_v1  ;;  %v8205_v42 = vshll.u32 %v11912_v22, 16  ;;  %v11915_v56 = vld [vmem:[%s14419_s14 + $0x84] sm:$0xf]  ;;  %v11296_v1 = vcombine.low %v15767_v63, %v15777_v43  ;;  %v2666_v34 = vld [vmem:[%s14419_s14 + $0x158] sm:$0x1] }
 0x17b   : > { %v8171_v6 = vrot.slane %v8170_v35, 4  ;;  %v11295_v21 = vcombine.low %v15738_v28, %v15752_v15  ;;  %v8217_v12 = vrot.slane %v8215_v17, 4  ;;  %v11916_v35 = vld [vmem:[%s14419_s14 + $0x88] sm:$0xf]  ;;  %v2961_v7 = vrot.slane %v2663_v41, 5 }
 0x17c   : > { %v8166_v5 = vsel %vm14442_vm2, %v8161_v29, %v8165_v62  ;;  %v8207_v60 = vrot.slane %v8205_v42, 5  ;;  %v8226_v3 = vshrl.u32 %v11915_v56, 16  ;;  %v8229_v10 = vshll.u32 %v11915_v56, 16  ;;  %v2669_v28 = vld [vmem:[%s14419_s14 + $0x164] sm:$0x1] }
 0x17d   : > { %13554 = vmatpush3.bf16.msra.mxu0 %v14295_v55  ;;  %v8176_v45 = vsel %vm14442_vm2, %v8171_v6, %v8175_v61  ;;  %v2662_v55 = vld [vmem:[%s14419_s14 + $0x148] sm:$0xf]  ;;  %v8200_v61 = vsel %vm14442_vm2, %v8195_v11, %v8199_v59  ;;  %v8218_v29 = vor.u32 %v8217_v12, %v8213_v26  ;;  %v8235_v6 = vshll.u32 %v11916_v35, 16  ;;  %v11919_v59 = vld [vmem:[%s14419_s14 + $0x94] sm:$0xf] }
 0x17e   : > { %13120 = vmatmul.mubr.bf16.gmra.mrb[36].mxu1 %v11291_v40  ;;  %13555 = vmatprep.subr.bf16.mxu0 %v14298_v4  ;;  %v8184_v40 = vor.u32 %v8183_v24, %v8180_v44  ;;  %v12006_v46 = vcombine.low %v8166_v5, %v8176_v45  ;;  %v2958_v51 = vrot.slane %v2662_v55, 5  ;;  %v2664_v44 = vld [vmem:[%s14419_s14 + $0x150] sm:$0xe]  ;;  %v8228_v2 = vrot.slane %v8226_v3, 4  ;;  %v2670_v3 = vld [vmem:[%s14419_s14 + $0x168] sm:$0xe] }
 0x17f   : > { %13123 = vmatprep.mubr.bf16.mxu1 %v11292_v32  ;;  %v8202_v32 = vshrl.u32 %v11912_v22, 16  ;;  %v8219_v24 = vrot.slane %v8218_v29, 4  ;;  %v8231_v19 = vrot.slane %v8229_v10, 5  ;;  %v8245_v31 = vshll.u32 %v11917_v14, 16  ;;  %v11918_v45 = vld [vmem:[%s14419_s14 + $0x90] sm:$0xf] }
 0x180   : > { %13492 = vmatmul.mubr.bf16.gmra.mrb[8].mxu0 %v12005_v0  ;;  %v8185_v18 = vrot.slane %v8184_v40, 4  ;;  %v8221_v0 = vshll.u32 %v11914_v47, 16  ;;  %v2968_v55 = vrot.slane %v2666_v34, 5  ;;  %v8250_v63 = vshrl.u32 %v11918_v45, 16  ;;  %v2671_v10 = vld [vmem:[%s14419_s14 + $0x16c] sm:$0xf] }
 0x181   : > { %13556 = vmatpush3.bf16.msra.mxu0 %v14298_v4  ;;  %13495 = vmatprep.mubr.bf16.mxu0 %v12006_v46  ;;  %v8204_v25 = vrot.slane %v8202_v32, 4  ;;  %v11249_v4 = vrot.slane %v2661_v54, 9  ;;  %v8232_v47 = vor.u32 %v8231_v19, %v8228_v2  ;;  %v8247_v53 = vrot.slane %v8245_v31, 5  ;;  %v11924_v31 = vld [vmem:[%s14419_s14 + $0xa8] sm:$0xf] }
 0x182   : > { %13557 = vmatprep.subr.bf16.mxu0 %v14303_v39  ;;  %v8190_v62 = vsel %vm14442_vm2, %v8185_v18, %v8189_v30  ;;  %v8223_v23 = vrot.slane %v8221_v0, 5  ;;  %v8237_v30 = vrot.slane %v8235_v6, 5  ;;  %v11250_v54 = vrot.slane %v2664_v44, 9  ;;  %v11921_v0 = vld [vmem:[%s14419_s14 + $0x9c] sm:$0xf] }
 0x183   : > { %v12007_v8 = vcombine.low %v8190_v62, %v8200_v61  ;;  %v8208_v38 = vor.u32 %v8207_v60, %v8204_v25  ;;  %v15797_v16 = vsel %vm14609_vm5, %v11249_v4, %v2958_v51  ;;  %v2965_v18 = vrot.slane %v2665_v20, 5  ;;  %v2668_v62 = vld [vmem:[%s14419_s14 + $0x160] sm:$0xf]  ;;  %v11925_v34 = vld [vmem:[%s14419_s14 + $0xac] sm:$0xf] }
 0x184   : > { %v8224_v40 = vsel %vm14442_vm2, %v8219_v24, %v8223_v23  ;;  %v8233_v48 = vrot.slane %v8232_v47, 4  ;;  %v8253_v41 = vshll.u32 %v11918_v45, 16  ;;  %v8252_v17 = vrot.slane %v8250_v63, 4  ;;  %v11922_v4 = vld [vmem:[%s14419_s14 + $0xa0] sm:$0xf] }
 0x185   : > { %13558 = vmatpush3.bf16.msra.mxu0 %v14303_v39  ;;  %v2960_v39 = vrot.slane %v2958_v51, 4  ;;  %v2966_v42 = vsel %vm14609_vm5, %v11250_v54, %v2965_v18  ;;  %v2967_v57 = vrot.slane %v2965_v18, 4  ;;  %v8263_v43 = vshrl.u32 %v11919_v59, 16  ;;  %v11923_v51 = vld [vmem:[%s14419_s14 + $0xa4] sm:$0x1] }
 0x186   : > { %13124 = vmatmul.mubr.bf16.gmra.mrb[40].mxu1 %v11293_v58  ;;  %13559 = vmatprep.subr.bf16.mxu0 %v14308_v36  ;;  %v8209_v58 = vrot.slane %v8208_v38, 4  ;;  %v8238_v11 = vsel %vm14442_vm2, %v8233_v48, %v8237_v30  ;;  %v11251_v12 = vrot.slane %v2667_v50, 9  ;;  %v2972_v23 = vrot.slane %v2668_v62, 5  ;;  %v11926_v54 = vld [vmem:[%s14419_s14 + $0xb0] sm:$0x1] }
 0x187   : > { %13127 = vmatprep.mubr.bf16.mxu1 %v11294_v13  ;;  %v8239_v13 = vshrl.u32 %v11916_v35, 16  ;;  %v15805_v5 = vsel %vm14609_vm5, %v2960_v39, %v2961_v7  ;;  %v2969_v15 = vsel %vm14609_vm5, %v2967_v57, %v2968_v55  ;;  %v2975_v29 = vrot.slane %v2669_v28, 5  ;;  %v2673_v55 = vld [vmem:[%s14419_s14 + $0x174] sm:$0xe] }
 0x188   : > { %13496 = vmatmul.mubr.bf16.gmra.mrb[12].mxu0 %v12007_v8  ;;  %v8214_v22 = vsel %vm14442_vm2, %v8209_v58, %v8213_v26  ;;  %v11297_v37 = vcombine.low %v15797_v16, %v15805_v5  ;;  %v8269_v26 = vshll.u32 %v11920_v27, 16  ;;  %v11298_v61 = vcombine.low %v2966_v42, %v2969_v15 }
 0x189   : > { %13560 = vmatpush3.bf16.msra.mxu0 %v14308_v36  ;;  %v8241_v46 = vrot.slane %v8239_v13, 4  ;;  %v12008_v52 = vcombine.low %v8214_v22, %v8224_v40  ;;  %v8259_v36 = vshll.u32 %v11919_v59, 16  ;;  %v8274_v7 = vshrl.u32 %v11921_v0, 16  ;;  %v2672_v13 = vld [vmem:[%s14419_s14 + $0x170] sm:$0x1] }
 0x18a   : > { %13561 = vmatprep.subr.bf16.mxu0 %v14313_v9  ;;  %v8271_v38 = vrot.slane %v8269_v26, 5  ;;  %v8277_v14 = vshll.u32 %v11921_v0, 16  ;;  %v2973_v16 = vsel %vm14609_vm5, %v11251_v12, %v2972_v23  ;;  %v2974_v39 = vrot.slane %v2972_v23, 4 }
 0x18b   : > { %v8242_v32 = vor.u32 %v8241_v46, %v8237_v30  ;;  %13499 = vmatprep.mubr.bf16.mxu0 %v12008_v52  ;;  %v8261_v60 = vrot.slane %v8259_v36, 5  ;;  %v8283_v6 = vshll.u32 %v11922_v4, 16  ;;  %v8276_v24 = vrot.slane %v8274_v7, 4  ;;  %v2676_v7 = vld [vmem:[%s14419_s14 + $0x180] sm:$0xe] }
 0x18c   : > { %v8279_v2 = vrot.slane %v8277_v14, 5  ;;  %v8287_v19 = vshrl.u32 %v11922_v4, 16  ;;  %v2976_v22 = vsel %vm14609_vm5, %v2974_v39, %v2975_v29  ;;  %v8293_v30 = vshll.u32 %v11923_v51, 16  ;;  %v2677_v14 = vld [vmem:[%s14419_s14 + $0x184] sm:$0xf] }
 0x18d   : > { %13562 = vmatpush3.bf16.msra.mxu0 %v14313_v9  ;;  %v8243_v25 = vrot.slane %v8242_v32, 4  ;;  %v8285_v5 = vrot.slane %v8283_v6, 5  ;;  %v11299_v40 = vcombine.low %v2973_v16, %v2976_v22  ;;  %v11252_v52 = vrot.slane %v2670_v3, 9  ;;  %v2678_v39 = vld [vmem:[%s14419_s14 + $0x188] sm:$0x1] }
 0x18e   : > { %13128 = vmatmul.mubr.bf16.gmra.mrb[44].mxu1 %v11295_v21  ;;  %v8255_v21 = vrot.slane %v8253_v41, 5  ;;  %v8280_v47 = vor.u32 %v8279_v2, %v8276_v24  ;;  %v8289_v46 = vrot.slane %v8287_v19, 4  ;;  %v8295_v59 = vrot.slane %v8293_v30, 5  ;;  %v2674_v41 = vld [vmem:[%s14419_s14 + $0x178] sm:$0xf] }
 0x18f   : > { %13131 = vmatprep.mubr.bf16.mxu1 %v11296_v1  ;;  %v8248_v56 = vsel %vm14442_vm2, %v8243_v25, %v8247_v53  ;;  %v8265_v1 = vrot.slane %v8263_v43, 4  ;;  %v2979_v53 = vrot.slane %v2671_v10, 5  ;;  %v2982_v48 = vrot.slane %v2672_v13, 5  ;;  %v11930_v19 = vld [vmem:[%s14419_s14 + $0xc0] sm:$0xf] }
 0x190   : > { %v12009_v35 = vcombine.low %v8238_v11, %v8248_v56  ;;  %v8256_v8 = vor.u32 %v8255_v21, %v8252_v17  ;;  %v8281_v18 = vrot.slane %v8280_v47, 4  ;;  %v8290_v27 = vor.u32 %v8289_v46, %v8285_v5  ;;  %v2675_v17 = vld [vmem:[%s14419_s14 + $0x17c] sm:$0x1]  ;;  %v11932_v47 = vld [vmem:[%s14419_s14 + $0xc8] sm:$0x1] }
 0x191   : > { %v8266_v9 = vor.u32 %v8265_v1, %v8261_v60  ;;  %v8298_v32 = vshrl.u32 %v11924_v31, 16  ;;  %v2980_v63 = vsel %vm14609_vm5, %v11252_v52, %v2979_v53  ;;  %v2981_v50 = vrot.slane %v2979_v53, 4  ;;  %v11928_v1 = vld [vmem:[%s14419_s14 + $0xb8] sm:$0xf]  ;;  %v2679_v53 = vld [vmem:[%s14419_s14 + $0x18c] sm:$0xe] }
 0x192   : > { %13500 = vmatmul.mubr.bf16.gmra.mrb[16].mxu0 %v12009_v35  ;;  %v8257_v58 = vrot.slane %v8256_v8, 4  ;;  %v8301_v42 = vshll.u32 %v11924_v31, 16  ;;  %v8307_v57 = vshll.u32 %v11925_v34, 16  ;;  %v8286_v36 = vsel %vm14442_vm2, %v8281_v18, %v8285_v5 }
 0x193   : > { %v8267_v44 = vrot.slane %v8266_v9, 4  ;;  %v8291_v62 = vrot.slane %v8290_v27, 4  ;;  %v8300_v11 = vrot.slane %v8298_v32, 4  ;;  %v8311_v25 = vshrl.u32 %v11925_v34, 16  ;;  %v2680_v32 = vld [vmem:[%s14419_s14 + $0x190] sm:$0xf] }
 0x194   : > { %v8262_v20 = vsel %vm14442_vm2, %v8257_v58, %v8261_v60  ;;  %v2983_v43 = vsel %vm14609_vm5, %v2981_v50, %v2982_v48  ;;  %v8303_v28 = vrot.slane %v8301_v42, 5  ;;  %v8309_v15 = vrot.slane %v8307_v57, 5  ;;  %v11927_v60 = vld [vmem:[%s14419_s14 + $0xb4] sm:$0xf] }
 0x195   : > { %v8272_v45 = vsel %vm14442_vm2, %v8267_v44, %v8271_v38  ;;  %v8317_v21 = vshll.u32 %v11926_v54, 16  ;;  %v8296_v26 = vsel %vm14442_vm2, %v8291_v62, %v8295_v59  ;;  %v11300_v0 = vcombine.low %v2980_v63, %v2983_v43  ;;  %v11929_v38 = vld [vmem:[%s14419_s14 + $0xbc] sm:$0x1]  ;;  %v2681_v57 = vld [vmem:[%s14419_s14 + $0x194] sm:$0x1] }
 0x196   : > { %13132 = vmatmul.mubr.bf16.gmra.mrb[48].mxu1 %v11297_v37  ;;  %v12010_v37 = vcombine.low %v8262_v20, %v8272_v45  ;;  %v8313_v56 = vrot.slane %v8311_v25, 4  ;;  %v12011_v12 = vcombine.low %v8286_v36, %v8296_v26  ;;  %v8304_v4 = vor.u32 %v8303_v28, %v8300_v11  ;;  %v11933_v25 = vld [vmem:[%s14419_s14 + $0xcc] sm:$0xf] }
 0x197   : > { %13135 = vmatprep.mubr.bf16.mxu1 %v11298_v61  ;;  %v11253_v61 = vrot.slane %v2673_v55, 9  ;;  %v8319_v35 = vrot.slane %v8317_v21, 5  ;;  %v2986_v8 = vrot.slane %v2674_v41, 5  ;;  %v2989_v51 = vrot.slane %v2675_v17, 5  ;;  %v11934_v21 = vld [vmem:[%s14419_s14 + $0xd0] sm:$0xf] }
 0x198   : > { %13503 = vmatprep.mubr.bf16.mxu0 %v12010_v37  ;;  %v8314_v23 = vor.u32 %v8313_v56, %v8309_v15  ;;  %v8322_v9 = vshrl.u32 %v11927_v60, 16  ;;  %v8325_v29 = vshll.u32 %v11927_v60, 16  ;;  %v8305_v3 = vrot.slane %v8304_v4, 4 }
 0x199   : > { %v2987_v10 = vsel %vm14609_vm5, %v11253_v61, %v2986_v8  ;;  %v2988_v58 = vrot.slane %v2986_v8, 4  ;;  %v8331_v16 = vshll.u32 %v11928_v1, 16  ;;  %v8335_v2 = vshrl.u32 %v11928_v1, 16  ;;  %v11935_v61 = vld [vmem:[%s14419_s14 + $0xd4] sm:$0x1] }
 0x19a   : > { %13504 = vmatmul.mubr.bf16.gmra.mrb[20].mxu0 %v12011_v12  ;;  %v8315_v6 = vrot.slane %v8314_v23, 4  ;;  %v8324_v44 = vrot.slane %v8322_v9, 4  ;;  %v8327_v24 = vrot.slane %v8325_v29, 5  ;;  %v8310_v13 = vsel %vm14442_vm2, %v8305_v3, %v8309_v15  ;;  %v14296_v3 = vld [vmem:[%s14419_s14 + $0xc] sm:$0xff]  }
 0x19b   : > { %v2990_v20 = vsel %vm14609_vm5, %v2988_v58, %v2989_v51  ;;  %v8333_v22 = vrot.slane %v8331_v16, 5  ;;  %v8341_v5 = vshll.u32 %v11929_v38, 16  ;;  %v8337_v45 = vrot.slane %v8335_v2, 4 }
 0x19c   : > { %v8320_v30 = vsel %vm14442_vm2, %v8315_v6, %v8319_v35  ;;  %v11301_v31 = vcombine.low %v2987_v10, %v2990_v20  ;;  %v8328_v34 = vor.u32 %v8327_v24, %v8324_v44  ;;  %v11254_v59 = vrot.slane %v2676_v7, 9  ;;  %v11936_v10 = vld [vmem:[%s14419_s14 + $0xf0] sm:$0xf]  ;;  %v11937_v44 = vld [vmem:[%s14419_s14 + $0xf4] sm:$0xf] }
 0x19d   : > { %v12012_v46 = vcombine.low %v8310_v13, %v8320_v30  ;;  %v8343_v37 = vrot.slane %v8341_v5, 5  ;;  %v2993_v52 = vrot.slane %v2677_v14, 5  ;;  %v8338_v18 = vor.u32 %v8337_v45, %v8333_v22  ;;  %v11938_v20 = vld [vmem:[%s14419_s14 + $0xf8] sm:$0x1] }
 0x19e   : > { %13136 = vmatmul.mubr.bf16.gmra.mrb[52].mxu1 %v11299_v40  ;;  %v11931_v40 = vld [vmem:[%s14419_s14 + $0xc4] sm:$0xf]  ;;  %v8329_v54 = vrot.slane %v8328_v34, 4  ;;  %v2996_v27 = vrot.slane %v2678_v39, 5  ;;  %v8346_v48 = vshrl.u32 %v11930_v19, 16  ;;  %v8349_v50 = vshll.u32 %v11930_v19, 16 }
 0x19f   : > { %13139 = vmatprep.mubr.bf16.mxu1 %v11300_v0  ;;  %13507 = vmatprep.mubr.bf16.mxu0 %v12012_v46  ;;  %v2994_v55 = vsel %vm14609_vm5, %v11254_v59, %v2993_v52  ;;  %v2995_v63 = vrot.slane %v2993_v52, 4  ;;  %v8355_v42 = vshll.u32 %v11931_v40, 16  ;;  %v8339_v36 = vrot.slane %v8338_v18, 4  ;;  %v11939_v34 = vld [vmem:[%s14419_s14 + $0xfc] sm:$0xf] }
 0x1a0   : > { %v8334_v41 = vsel %vm14442_vm2, %v8329_v54, %v8333_v22  ;;  %v8348_v62 = vrot.slane %v8346_v48, 4  ;;  %v8359_v11 = vshrl.u32 %v11931_v40, 16  ;;  %v8351_v43 = vrot.slane %v8349_v50, 5  ;;  %v11941_v18 = vld [vmem:[%s14419_s14 + $0x104] sm:$0x1] }
 0x1a1   : > { %v2997_v17 = vsel %vm14609_vm5, %v2995_v63, %v2996_v27  ;;  %v8357_v28 = vrot.slane %v8355_v42, 5  ;;  %v8365_v15 = vshll.u32 %v11932_v47, 16  ;;  %v8344_v60 = vsel %vm14442_vm2, %v8339_v36, %v8343_v37  ;;  %v11940_v37 = vld [vmem:[%s14419_s14 + $0x100] sm:$0xf] }
 0x1a2   : > { %v11302_v26 = vcombine.low %v2994_v55, %v2997_v17  ;;  %v8361_v0 = vrot.slane %v8359_v11, 4  ;;  %v11255_v56 = vrot.slane %v2679_v53, 9  ;;  %v12013_v1 = vcombine.low %v8334_v41, %v8344_v60  ;;  %v11943_v60 = vld [vmem:[%s14419_s14 + $0x10c] sm:$0xf] }
 0x1a3   : > { %v8352_v12 = vor.u32 %v8351_v43, %v8348_v62  ;;  %v8367_v4 = vrot.slane %v8365_v15, 5  ;;  %v3000_v35 = vrot.slane %v2680_v32, 5  ;;  %v3003_v38 = vrot.slane %v2681_v57, 5 }
 0x1a4   : > { %v8362_v8 = vor.u32 %v8361_v0, %v8357_v28  ;;  %v8370_v23 = vshrl.u32 %v11933_v25, 16  ;;  %v8373_v51 = vshll.u32 %v11933_v25, 16  ;;  %13508 = vmatmul.mubr.bf16.gmra.mrb[24].mxu0 %v12013_v1  ;;  %v8379_v14 = vshll.u32 %v11934_v21, 16  ;;  %v11942_v25 = vld [vmem:[%s14419_s14 + $0x108] sm:$0xf] }
 0x1a5   : > { %v8353_v9 = vrot.slane %v8352_v12, 4  ;;  %v3001_v29 = vsel %vm14609_vm5, %v11255_v56, %v3000_v35  ;;  %v3002_v7 = vrot.slane %v3000_v35, 4  ;;  %v8383_v6 = vshrl.u32 %v11934_v21, 16  ;;  %v14299_v1 = vld [vmem:[%s14419_s14 + $0x24] sm:$0xff]  }
 0x1a6   : > { %13140 = vmatmul.mubr.bf16.gmra.mrb[56].mxu1 %v11301_v31  ;;  %v8363_v58 = vrot.slane %v8362_v8, 4  ;;  %v8372_v16 = vrot.slane %v8370_v23, 4  ;;  %v8375_v39 = vrot.slane %v8373_v51, 5  ;;  %v8381_v19 = vrot.slane %v8379_v14, 5 }
 0x1a7   : > { %13143 = vmatprep.mubr.bf16.mxu1 %v11302_v26  ;;  %v8358_v24 = vsel %vm14442_vm2, %v8353_v9, %v8357_v28  ;;  %v3004_v2 = vsel %vm14609_vm5, %v3002_v7, %v3003_v38  ;;  %v8389_v13 = vshll.u32 %v11935_v61, 16  ;;  %v8385_v31 = vrot.slane %v8383_v6, 4  ;;  %v14297_v28 = vld [vmem:[%s14419_s14 + $0x18] sm:$0xff]   ;;  %v11944_v9 = vld [vmem:[%s14419_s14 + $0x110] sm:$0x1] }
 0x1a8   : > { %v8368_v22 = vsel %vm14442_vm2, %v8363_v58, %v8367_v4  ;;  %v11303_v5 = vcombine.low %v3001_v29, %v3004_v2  ;;  %v8376_v30 = vor.u32 %v8375_v39, %v8372_v16  ;;  %v8394_v47 = vshrl.u32 %v11936_v10, 16  ;;  %v11945_v7 = vld [vmem:[%s14419_s14 + $0x114] sm:$0xf]  ;;  %v11946_v16 = vld [vmem:[%s14419_s14 + $0x118] sm:$0xf] }
 0x1a9   : > { %v12014_v45 = vcombine.low %v8358_v24, %v8368_v22  ;;  %v8391_v40 = vrot.slane %v8389_v13, 5  ;;  %v8397_v46 = vshll.u32 %v11936_v10, 16  ;;  %v8386_v52 = vor.u32 %v8385_v31, %v8381_v19 }
 0x1aa   : > { %v8377_v59 = vrot.slane %v8376_v30, 4  ;;  %v8403_v53 = vshll.u32 %v11937_v44, 16  ;;  %v8407_v54 = vshrl.u32 %v11937_v44, 16  ;;  %v8396_v27 = vrot.slane %v8394_v47, 4  ;;  %v14336_v44 = vld [vmem:[%s16812_s1 + $0x100] sm:$0xff]   ;;  %v14337_v30 = vld [vmem:[%s16812_s1 + $0x108] sm:$0xff]  }
 0x1ab   : > { %13511 = vmatprep.mubr.bf16.mxu0 %v12014_v45  ;;  %v8399_v48 = vrot.slane %v8397_v46, 5  ;;  %v8413_v32 = vshll.u32 %v11938_v20, 16  ;;  %v8418_v55 = vshrl.u32 %v11939_v34, 16  ;;  %v8387_v50 = vrot.slane %v8386_v52, 4  ;;  %v11948_v47 = vld [vmem:[%s14419_s14 + $0x120] sm:$0xf] }
 0x1ac   : > { %v8382_v63 = vsel %vm14442_vm2, %v8377_v59, %v8381_v19  ;;  %v8405_v42 = vrot.slane %v8403_v53, 5  ;;  %v8409_v57 = vrot.slane %v8407_v54, 4  ;;  %v8421_v11 = vshll.u32 %v11939_v34, 16  ;;  %v11947_v19 = vld [vmem:[%s14419_s14 + $0x11c] sm:$0x1]  ;;  %v14300_v59 = vld [vmem:[%s14419_s14 + $0x30] sm:$0xff]  }
 0x1ad   : > { %v8400_v41 = vor.u32 %v8399_v48, %v8396_v27  ;;  %v8415_v36 = vrot.slane %v8413_v32, 5  ;;  %v8420_v62 = vrot.slane %v8418_v55, 4  ;;  %v8392_v17 = vsel %vm14442_vm2, %v8387_v50, %v8391_v40  ;;  %v14301_v54 = vld [vmem:[%s14419_s14 + $0x3c] sm:$0xff]   ;;  %v11949_v55 = vld [vmem:[%s14419_s14 + $0x124] sm:$0xf] }
 0x1ae   : > { %13144 = vmatmul.mubr.bf16.gmra.mrb[60].mxu1 %v11303_v5  ;;  %v8410_v43 = vor.u32 %v8409_v57, %v8405_v42  ;;  %v8427_v15 = vshll.u32 %v11940_v37, 16  ;;  %v8431_v21 = vshrl.u32 %v11940_v37, 16  ;;  %v12015_v26 = vcombine.low %v8382_v63, %v8392_v17 }
 0x1af   : > { %13163 = vmatprep.mubr.bf16.mxu1 %v14296_v3  ;;  %v8401_v0 = vrot.slane %v8400_v41, 4  ;;  %v8423_v56 = vrot.slane %v8421_v11, 5  ;;  %v8437_v61 = vshll.u32 %v11941_v18, 16  ;;  %v8442_v8 = vshrl.u32 %v11942_v25, 16  ;;  %v14338_v41 = vld [vmem:[%s16812_s1 + $0x110] sm:$0xff]  }
 0x1b0   : > { %v8411_v12 = vrot.slane %v8410_v43, 4  ;;  %v8429_v4 = vrot.slane %v8427_v15, 5  ;;  %v8433_v35 = vrot.slane %v8431_v21, 4  ;;  %13512 = vmatmul.mubr.bf16.gmra.mrb[28].mxu0 %v12015_v26  ;;  %v8445_v29 = vshll.u32 %v11942_v25, 16  ;;  %v11950_v25 = vld [vmem:[%s14419_s14 + $0x128] sm:$0x1] }
 0x1b1   : > { %v8406_v38 = vsel %vm14442_vm2, %v8401_v0, %v8405_v42  ;;  %v8424_v23 = vor.u32 %v8423_v56, %v8420_v62  ;;  %v8439_v51 = vrot.slane %v8437_v61, 5  ;;  %v8444_v10 = vrot.slane %v8442_v8, 4  ;;  %v11951_v43 = vld [vmem:[%s14419_s14 + $0x12c] sm:$0xf]  ;;  %v11952_v26 = vld [vmem:[%s14419_s14 + $0x130] sm:$0xf] }
 0x1b2   : > { %v8416_v14 = vsel %vm14442_vm2, %v8411_v12, %v8415_v36  ;;  %v8434_v3 = vor.u32 %v8433_v35, %v8429_v4  ;;  %v8451_v58 = vshll.u32 %v11943_v60, 16  ;;  %v8447_v24 = vrot.slane %v8445_v29, 5 }
 0x1b3   : > { %v12016_v39 = vcombine.low %v8406_v38, %v8416_v14  ;;  %v8425_v6 = vrot.slane %v8424_v23, 4  ;;  %v8455_v2 = vshrl.u32 %v11943_v60, 16  ;;  %v8461_v22 = vshll.u32 %v11944_v9, 16  ;;  %v14302_v38 = vld [vmem:[%s14419_s14 + $0x48] sm:$0xff]   ;;  %v14339_v23 = vld [vmem:[%s16812_s1 + $0x118] sm:$0xff]  }
 0x1b4   : > { %v8435_v13 = vrot.slane %v8434_v3, 4  ;;  %v8453_v20 = vrot.slane %v8451_v58, 5  ;;  %v8466_v5 = vshrl.u32 %v11945_v7, 16  ;;  %v8448_v34 = vor.u32 %v8447_v24, %v8444_v10  ;;  %v11954_v3 = vld [vmem:[%s14419_s14 + $0x138] sm:$0xf] }
 0x1b5   : > { %13515 = vmatprep.mubr.bf16.mxu0 %v12016_v39  ;;  %v8430_v31 = vsel %vm14442_vm2, %v8425_v6, %v8429_v4  ;;  %v8457_v45 = vrot.slane %v8455_v2, 4  ;;  %v8469_v40 = vshll.u32 %v11945_v7, 16  ;;  %v8463_v37 = vrot.slane %v8461_v22, 5  ;;  %v11953_v7 = vld [vmem:[%s14419_s14 + $0x134] sm:$0x1] }
 0x1b6   : > { %13164 = vmatmul.mubr.bf16.vlgmr.msra.gmra.mrb[0].mxu1 %v14297_v28  ;;  %v8440_v46 = vsel %vm14442_vm2, %v8435_v13, %v8439_v51  ;;  %v8468_v52 = vrot.slane %v8466_v5, 4  ;;  %v8475_v53 = vshll.u32 %v11946_v16, 16  ;;  %v8449_v27 = vrot.slane %v8448_v34, 4 }
 0x1b7   : > { %13635 = vmatpush3.bf16.msra.mxu1 %v14336_v44  ;;  %13167 = vmatprep.mubr.bf16.mxu1 %v14299_v1  ;;  %v12017_v18 = vcombine.low %v8430_v31, %v8440_v46  ;;  %v8458_v48 = vor.u32 %v8457_v45, %v8453_v20  ;;  %v8471_v32 = vrot.slane %v8469_v40, 5  ;;  %v8479_v50 = vshrl.u32 %v11946_v16, 16  ;;  %v14340_v31 = vld [vmem:[%s16812_s1 + $0x120] sm:$0xff]  }
 0x1b8   : > { %13628 = vmatprep.subr.bf16.mxu1 %v14337_v30  ;;  %v8477_v63 = vrot.slane %v8475_v53, 5  ;;  %v8485_v42 = vshll.u32 %v11947_v19, 16  ;;  %v8490_v57 = vshrl.u32 %v11948_v47, 16  ;;  %v8454_v36 = vsel %vm14442_vm2, %v8449_v27, %v8453_v20  ;;  %v14304_v19 = vld [vmem:[%s14419_s14 + $0x54] sm:$0xff]   ;;  %v11956_v46 = vld [vmem:[%s14419_s14 + $0x140] sm:$0x1] }
 0x1b9   : > { %13516 = vmatmul.mubr.bf16.gmra.mrb[32].mxu0 %v12017_v18  ;;  %v8459_v62 = vrot.slane %v8458_v48, 4  ;;  %v8472_v11 = vor.u32 %v8471_v32, %v8468_v52  ;;  %v8493_v17 = vshll.u32 %v11948_v47, 16  ;;  %v8481_v28 = vrot.slane %v8479_v50, 4  ;;  %v11958_v18 = vld [vmem:[%s14419_s14 + $0x148] sm:$0xf] }
 0x1ba   : > { %v8487_v15 = vrot.slane %v8485_v42, 5  ;;  %v8492_v21 = vrot.slane %v8490_v57, 4  ;;  %v8499_v60 = vshll.u32 %v11949_v55, 16  ;;  %v8503_v1 = vshrl.u32 %v11949_v55, 16 }
 0x1bb   : > { %13636 = vmatpush3.bf16.msra.mxu1 %v14337_v30  ;;  %v8464_v0 = vsel %vm14442_vm2, %v8459_v62, %v8463_v37  ;;  %v8473_v56 = vrot.slane %v8472_v11, 4  ;;  %v8495_v61 = vrot.slane %v8493_v17, 5  ;;  %v8482_v4 = vor.u32 %v8481_v28, %v8477_v63  ;;  %v11955_v30 = vld [vmem:[%s14419_s14 + $0x13c] sm:$0xf]  ;;  %v11957_v37 = vld [vmem:[%s14419_s14 + $0x144] sm:$0xf] }
 0x1bc   : > { %13629 = vmatprep.subr.bf16.mxu1 %v14338_v41  ;;  %v12018_v12 = vcombine.low %v8454_v36, %v8464_v0  ;;  %v8501_v35 = vrot.slane %v8499_v60, 5  ;;  %v8509_v8 = vshll.u32 %v11950_v25, 16  ;;  %v8505_v29 = vrot.slane %v8503_v1, 4  ;;  %v14305_v25 = vld [vmem:[%s14419_s14 + $0x60] sm:$0xff]   ;;  %v14306_v17 = vld [vmem:[%s14419_s14 + $0x6c] sm:$0xff]  }
 0x1bd   : > { %v8478_v51 = vsel %vm14442_vm2, %v8473_v56, %v8477_v63  ;;  %v8496_v9 = vor.u32 %v8495_v61, %v8492_v21  ;;  %v8514_v14 = vshrl.u32 %v11951_v43, 16  ;;  %v8483_v10 = vrot.slane %v8482_v4, 4  ;;  %v11959_v21 = vld [vmem:[%s14419_s14 + $0x14c] sm:$0x1]  ;;  %v11960_v0 = vld [vmem:[%s14419_s14 + $0x150] sm:$0xf] }
 0x1be   : > { %13168 = vmatmul.mubr.bf16.gmra.mrb[4].mxu1 %v14300_v59  ;;  %13519 = vmatprep.mubr.bf16.mxu0 %v12018_v12  ;;  %v8511_v58 = vrot.slane %v8509_v8, 5  ;;  %v8517_v16 = vshll.u32 %v11951_v43, 16  ;;  %v8523_v39 = vshll.u32 %v11952_v26, 16  ;;  %v8506_v44 = vor.u32 %v8505_v29, %v8501_v35  ;;  %v14341_v43 = vld [vmem:[%s16812_s1 + $0x128] sm:$0xff]  }
 0x1bf   : > { %13171 = vmatprep.mubr.bf16.mxu1 %v14301_v54  ;;  %13637 = vmatpush3.bf16.msra.mxu1 %v14338_v41  ;;  %v8497_v6 = vrot.slane %v8496_v9, 4  ;;  %v8516_v24 = vrot.slane %v8514_v14, 4  ;;  %v8527_v2 = vshrl.u32 %v11952_v26, 16  ;;  %v8488_v13 = vsel %vm14442_vm2, %v8483_v10, %v8487_v15  ;;  %v11962_v14 = vld [vmem:[%s14419_s14 + $0x158] sm:$0x1] }
 0x1c0   : > { %13630 = vmatprep.subr.bf16.mxu1 %v14339_v23  ;;  %v8519_v20 = vrot.slane %v8517_v16, 5  ;;  %v8525_v22 = vrot.slane %v8523_v39, 5  ;;  %v8533_v5 = vshll.u32 %v11953_v7, 16  ;;  %v12019_v34 = vcombine.low %v8478_v51, %v8488_v13 }
 0x1c1   : > { %v8502_v45 = vsel %vm14442_vm2, %v8497_v6, %v8501_v35  ;;  %v8507_v40 = vrot.slane %v8506_v44, 4  ;;  %v8529_v47 = vrot.slane %v8527_v2, 4  ;;  %v8538_v53 = vshrl.u32 %v11954_v3, 16  ;;  %v11963_v6 = vld [vmem:[%s14419_s14 + $0x15c] sm:$0xf] }
 0x1c2   : > { %v8520_v59 = vor.u32 %v8519_v20, %v8516_v24  ;;  %v8535_v52 = vrot.slane %v8533_v5, 5  ;;  %v8541_v54 = vshll.u32 %v11954_v3, 16  ;;  %13520 = vmatmul.mubr.bf16.gmra.mrb[36].mxu0 %v12019_v34  ;;  %v8547_v32 = vshll.u32 %v11955_v30, 16  ;;  %v14342_v3 = vld [vmem:[%s16812_s1 + $0x130] sm:$0xff]  }
 0x1c3   : > { %13638 = vmatpush3.bf16.msra.mxu1 %v14339_v23  ;;  %v8512_v27 = vsel %vm14442_vm2, %v8507_v40, %v8511_v58  ;;  %v8530_v48 = vor.u32 %v8529_v47, %v8525_v22  ;;  %v8551_v55 = vshrl.u32 %v11955_v30, 16  ;;  %v8540_v42 = vrot.slane %v8538_v53, 4  ;;  %v11961_v23 = vld [vmem:[%s14419_s14 + $0x154] sm:$0xf]  ;;  %v11964_v30 = vld [vmem:[%s14419_s14 + $0x160] sm:$0xf] }
 0x1c4   : > { %13631 = vmatprep.subr.bf16.mxu1 %v14340_v31  ;;  %v12020_v63 = vcombine.low %v8502_v45, %v8512_v27  ;;  %v8521_v50 = vrot.slane %v8520_v59, 4  ;;  %v8543_v57 = vrot.slane %v8541_v54, 5  ;;  %v8549_v36 = vrot.slane %v8547_v32, 5  ;;  %v14307_v47 = vld [vmem:[%s14419_s14 + $0x78] sm:$0xff]   ;;  %v11965_v53 = vld [vmem:[%s14419_s14 + $0x164] sm:$0x1] }
 0x1c5   : > { %v8531_v41 = vrot.slane %v8530_v48, 4  ;;  %v8553_v62 = vrot.slane %v8551_v55, 4  ;;  %v8557_v11 = vshll.u32 %v11956_v46, 16  ;;  %v8562_v60 = vshrl.u32 %v11957_v37, 16  ;;  %v14309_v46 = vld [vmem:[%s14419_s14 + $0x84] sm:$0xff]  }
 0x1c6   : > { %13172 = vmatmul.mubr.bf16.gmra.mrb[8].mxu1 %v14302_v38  ;;  %13523 = vmatprep.mubr.bf16.mxu0 %v12020_v63  ;;  %v8526_v28 = vsel %vm14442_vm2, %v8521_v50, %v8525_v22  ;;  %v8544_v15 = vor.u32 %v8543_v57, %v8540_v42  ;;  %v8565_v26 = vshll.u32 %v11957_v37, 16  ;;  %v8571_v12 = vshll.u32 %v11958_v18, 16  ;;  %v14343_v37 = vld [vmem:[%s16812_s1 + $0x138] sm:$0xff]  }
 0x1c7   : > { %13175 = vmatprep.mubr.bf16.mxu1 %v14304_v19  ;;  %13639 = vmatpush3.bf16.msra.mxu1 %v14340_v31  ;;  %v8536_v56 = vsel %vm14442_vm2, %v8531_v41, %v8535_v52  ;;  %v8554_v61 = vor.u32 %v8553_v62, %v8549_v36  ;;  %v8559_v1 = vrot.slane %v8557_v11, 5  ;;  %v8564_v8 = vrot.slane %v8562_v60, 4  ;;  %v11966_v41 = vld [vmem:[%s14419_s14 + $0x168] sm:$0xf] }
 0x1c8   : > { %13632 = vmatprep.subr.bf16.mxu1 %v14341_v43  ;;  %v12021_v4 = vcombine.low %v8526_v28, %v8536_v56  ;;  %v8545_v35 = vrot.slane %v8544_v15, 4  ;;  %v8567_v38 = vrot.slane %v8565_v26, 5  ;;  %v8573_v9 = vrot.slane %v8571_v12, 5  ;;  %v11969_v26 = vld [vmem:[%s14419_s14 + $0x174] sm:$0xf] }
 0x1c9   : > { %v8555_v51 = vrot.slane %v8554_v61, 4  ;;  %v8575_v29 = vshrl.u32 %v11958_v18, 16  ;;  %v8581_v7 = vshll.u32 %v11959_v21, 16  ;;  %v8586_v16 = vshrl.u32 %v11960_v0, 16 }
 0x1ca   : > { %v8550_v10 = vsel %vm14442_vm2, %v8545_v35, %v8549_v36  ;;  %v8568_v58 = vor.u32 %v8567_v38, %v8564_v8  ;;  %v8589_v39 = vshll.u32 %v11960_v0, 16  ;;  %13524 = vmatmul.mubr.bf16.gmra.mrb[40].mxu0 %v12021_v4  ;;  %v8595_v19 = vshll.u32 %v11961_v23, 16 }
 0x1cb   : > { %13640 = vmatpush3.bf16.msra.mxu1 %v14341_v43  ;;  %v8560_v44 = vsel %vm14442_vm2, %v8555_v51, %v8559_v1  ;;  %v8577_v24 = vrot.slane %v8575_v29, 4  ;;  %v8583_v2 = vrot.slane %v8581_v7, 5  ;;  %v8588_v22 = vrot.slane %v8586_v16, 4  ;;  %v11968_v43 = vld [vmem:[%s14419_s14 + $0x170] sm:$0x1] }
 0x1cc   : > { %13633 = vmatprep.subr.bf16.mxu1 %v14342_v3  ;;  %v12022_v13 = vcombine.low %v8550_v10, %v8560_v44  ;;  %v8569_v20 = vrot.slane %v8568_v58, 4  ;;  %v8591_v5 = vrot.slane %v8589_v39, 5  ;;  %v8597_v34 = vrot.slane %v8595_v19, 5  ;;  %v14310_v29 = vld [vmem:[%s14419_s14 + $0x90] sm:$0xff]   ;;  %v11970_v7 = vld [vmem:[%s14419_s14 + $0x178] sm:$0xf] }
 0x1cd   : > { %v8578_v31 = vor.u32 %v8577_v24, %v8573_v9  ;;  %v8599_v45 = vshrl.u32 %v11961_v23, 16  ;;  %v8605_v40 = vshll.u32 %v11962_v14, 16  ;;  %v8610_v54 = vshrl.u32 %v11963_v6, 16  ;;  %v11971_v16 = vld [vmem:[%s14419_s14 + $0x17c] sm:$0x1] }
 0x1ce   : > { %13176 = vmatmul.mubr.bf16.gmra.mrb[12].mxu1 %v14305_v25  ;;  %13527 = vmatprep.mubr.bf16.mxu0 %v12022_v13  ;;  %v8574_v59 = vsel %vm14442_vm2, %v8569_v20, %v8573_v9  ;;  %v8592_v52 = vor.u32 %v8591_v5, %v8588_v22  ;;  %v8613_v18 = vshll.u32 %v11963_v6, 16  ;;  %v8619_v55 = vshll.u32 %v11964_v30, 16  ;;  %v11972_v39 = vld [vmem:[%s14419_s14 + $0x180] sm:$0xf] }
 0x1cf   : > { %13179 = vmatprep.mubr.bf16.mxu1 %v14306_v17  ;;  %13641 = vmatpush3.bf16.msra.mxu1 %v14342_v3  ;;  %v8579_v27 = vrot.slane %v8578_v31, 4  ;;  %v8601_v48 = vrot.slane %v8599_v45, 4  ;;  %v8607_v32 = vrot.slane %v8605_v40, 5  ;;  %v8612_v50 = vrot.slane %v8610_v54, 4  ;;  %v11967_v17 = vld [vmem:[%s14419_s14 + $0x16c] sm:$0xf] }
 0x1d0   : > { %13634 = vmatprep.subr.bf16.mxu1 %v14343_v37  ;;  %v8593_v63 = vrot.slane %v8592_v52, 4  ;;  %v8615_v42 = vrot.slane %v8613_v18, 5  ;;  %v8623_v57 = vshrl.u32 %v11964_v30, 16  ;;  %v8621_v11 = vrot.slane %v8619_v55, 5  ;;  %v14311_v19 = vld [vmem:[%s14419_s14 + $0x9c] sm:$0xff]  }
 0x1d1   : > { %v8584_v36 = vsel %vm14442_vm2, %v8579_v27, %v8583_v2  ;;  %v8602_v62 = vor.u32 %v8601_v48, %v8597_v34  ;;  %v8629_v25 = vshll.u32 %v11965_v53, 16  ;;  %v8634_v61 = vshrl.u32 %v11966_v41, 16  ;;  %v11973_v40 = vld [vmem:[%s14419_s14 + $0x184] sm:$0xf]  ;;  %v11974_v52 = vld [vmem:[%s14419_s14 + $0x188] sm:$0x1] }
 0x1d2   : > { %v12023_v28 = vcombine.low %v8574_v59, %v8584_v36  ;;  %v8598_v15 = vsel %vm14442_vm2, %v8593_v63, %v8597_v34  ;;  %v8616_v21 = vor.u32 %v8615_v42, %v8612_v50  ;;  %v8625_v60 = vrot.slane %v8623_v57, 4  ;;  %v11975_v50 = vld [vmem:[%s14419_s14 + $0x18c] sm:$0xf] }
 0x1d3   : > { %13642 = vmatpush3.bf16.msra.mxu1 %v14343_v37  ;;  %v8603_v0 = vrot.slane %v8602_v62, 4  ;;  %v8631_v56 = vrot.slane %v8629_v25, 5  ;;  %v8637_v1 = vshll.u32 %v11966_v41, 16  ;;  %v8643_v35 = vshll.u32 %v11967_v17, 16  ;;  %v11976_v62 = vld [vmem:[%s14419_s14 + $0x190] sm:$0xf] }
 0x1d4   : > { %13528 = vmatmul.mubr.bf16.gmra.mrb[44].mxu0 %v12023_v28  ;;  %v8617_v12 = vrot.slane %v8616_v21, 4  ;;  %v8626_v4 = vor.u32 %v8625_v60, %v8621_v11  ;;  %v8647_v8 = vshrl.u32 %v11967_v17, 16  ;;  %v8636_v23 = vrot.slane %v8634_v61, 4  ;;  %v14312_v28 = vld [vmem:[%s14419_s14 + $0xa8] sm:$0xff]  }
 0x1d5   : > { %v8608_v38 = vsel %vm14442_vm2, %v8603_v0, %v8607_v32  ;;  %v8639_v51 = vrot.slane %v8637_v1, 5  ;;  %v8653_v9 = vshll.u32 %v11968_v43, 16  ;;  %v8645_v58 = vrot.slane %v8643_v35, 5  ;;  %v11978_v35 = vld [vmem:[%s14419_s14 + $0x198] sm:$0xf] }
 0x1d6   : > { %13180 = vmatmul.mubr.bf16.gmra.mrb[16].mxu1 %v14307_v47  ;;  %v12024_v14 = vcombine.low %v8598_v15, %v8608_v38  ;;  %v8622_v3 = vsel %vm14442_vm2, %v8617_v12, %v8621_v11  ;;  %v8627_v10 = vrot.slane %v8626_v4, 4  ;;  %v8649_v44 = vrot.slane %v8647_v8, 4  ;;  %v11977_v15 = vld [vmem:[%s14419_s14 + $0x194] sm:$0x1] }
 0x1d7   : > { %13183 = vmatprep.mubr.bf16.mxu1 %v14309_v46  ;;  %v8640_v6 = vor.u32 %v8639_v51, %v8636_v23  ;;  %v8655_v24 = vrot.slane %v8653_v9, 5  ;;  %v8658_v2 = vshrl.u32 %v11969_v26, 16  ;;  %v8661_v20 = vshll.u32 %v11969_v26, 16  ;;  %v11979_v9 = vld [vmem:[%s14419_s14 + $0x19c] sm:$0xf] }
 0x1d8   : > { %13531 = vmatprep.mubr.bf16.mxu0 %v12024_v14  ;;  %v8632_v13 = vsel %vm14442_vm2, %v8627_v10, %v8631_v56  ;;  %v8667_v22 = vshll.u32 %v11970_v7, 16  ;;  %v8671_v5 = vshrl.u32 %v11970_v7, 16  ;;  %v8650_v34 = vor.u32 %v8649_v44, %v8645_v58  ;;  %v14314_v56 = vld [vmem:[%s14419_s14 + $0xb4] sm:$0xff]   ;;  %v11980_v10 = vld [vmem:[%s14419_s14 + $0x1a0] sm:$0x1] }
 0x1d9   : > { %v12025_v30 = vcombine.low %v8622_v3, %v8632_v13  ;;  %v8641_v31 = vrot.slane %v8640_v6, 4  ;;  %v8660_v45 = vrot.slane %v8658_v2, 4  ;;  %v8663_v47 = vrot.slane %v8661_v20, 5  ;;  %v14315_v13 = vld [vmem:[%s14419_s14 + $0xc0] sm:$0xff]  }
 0x1da   : > { %v8669_v46 = vrot.slane %v8667_v22, 5  ;;  %v8673_v37 = vrot.slane %v8671_v5, 4  ;;  %v8677_v59 = vshll.u32 %v11971_v16, 16  ;;  %v8651_v54 = vrot.slane %v8650_v34, 4  ;;  %v11981_v20 = vld [vmem:[%s14419_s14 + $0x1a4] sm:$0xf] }
 0x1db   : > { %v8646_v53 = vsel %vm14442_vm2, %v8641_v31, %v8645_v58  ;;  %v8682_v18 = vshrl.u32 %v11972_v39, 16  ;;  %v8685_v27 = vshll.u32 %v11972_v39, 16  ;;  %v8664_v48 = vor.u32 %v8663_v47, %v8660_v45  ;;  %v11982_v34 = vld [vmem:[%s14419_s14 + $0x1a8] sm:$0xf] }
 0x1dc   : > { %13532 = vmatmul.mubr.bf16.gmra.mrb[48].mxu0 %v12025_v30  ;;  %v8674_v32 = vor.u32 %v8673_v37, %v8669_v46  ;;  %v8679_v55 = vrot.slane %v8677_v59, 5  ;;  %v8691_v63 = vshll.u32 %v11973_v40, 16  ;;  %v8656_v42 = vsel %vm14442_vm2, %v8651_v54, %v8655_v24  ;;  %v14316_v45 = vld [vmem:[%s14419_s14 + $0xe4] sm:$0xff]   ;;  %v11983_v59 = vld [vmem:[%s14419_s14 + $0x1ac] sm:$0x1] }
 0x1dd   : > { %v8684_v57 = vrot.slane %v8682_v18, 4  ;;  %v8687_v41 = vrot.slane %v8685_v27, 5  ;;  %v8695_v36 = vshrl.u32 %v11973_v40, 16  ;;  %v12026_v11 = vcombine.low %v8646_v53, %v8656_v42 }
 0x1de   : > { %13184 = vmatmul.mubr.bf16.gmra.mrb[20].mxu1 %v14310_v29  ;;  %v8665_v25 = vrot.slane %v8664_v48, 4  ;;  %v8675_v17 = vrot.slane %v8674_v32, 4  ;;  %v8693_v43 = vrot.slane %v8691_v63, 5  ;;  %v8701_v26 = vshll.u32 %v11974_v52, 16  ;;  %v12040_v63 = vld [vmem:[%s14419_s14 + $0x18] sm:$0xe] }
 0x1df   : > { %13187 = vmatprep.mubr.bf16.mxu1 %v14311_v19  ;;  %v8688_v21 = vor.u32 %v8687_v41, %v8684_v57  ;;  %v8697_v60 = vrot.slane %v8695_v36, 4  ;;  %v8706_v0 = vshrl.u32 %v11975_v50, 16  ;;  %13535 = vmatprep.mubr.bf16.mxu0 %v12026_v11  ;;  %v8709_v12 = vshll.u32 %v11975_v50, 16  ;;  %v12041_v50 = vld [vmem:[%s14419_s14 + $0x1c] sm:$0xf] }
 0x1e0   : > { %v8670_v61 = vsel %vm14442_vm2, %v8665_v25, %v8669_v46  ;;  %v8680_v1 = vsel %vm14442_vm2, %v8675_v17, %v8679_v55  ;;  %v8715_v4 = vshll.u32 %v11976_v62, 16  ;;  %v8703_v51 = vrot.slane %v8701_v26, 5 }
 0x1e1   : > { %v12027_v8 = vcombine.low %v8670_v61, %v8680_v1  ;;  %v8689_v38 = vrot.slane %v8688_v21, 4  ;;  %v8698_v23 = vor.u32 %v8697_v60, %v8693_v43  ;;  %v8708_v29 = vrot.slane %v8706_v0, 4 }
 0x1e2   : > { %v8711_v7 = vrot.slane %v8709_v12, 5  ;;  %v8717_v14 = vrot.slane %v8715_v4, 5  ;;  %v8719_v3 = vshrl.u32 %v11976_v62, 16  ;;  %v8725_v39 = vshll.u32 %v11977_v15, 16  ;;  %v12042_v62 = vld [vmem:[%s14419_s14 + $0x20] sm:$0x1] }
 0x1e3   : > { %v8694_v58 = vsel %vm14442_vm2, %v8689_v38, %v8693_v43  ;;  %v8699_v16 = vrot.slane %v8698_v23, 4  ;;  %v8730_v6 = vshrl.u32 %v11978_v35, 16  ;;  %v8733_v2 = vshll.u32 %v11978_v35, 16  ;;  %v14317_v12 = vld [vmem:[%s14419_s14 + $0xf0] sm:$0xff]   ;;  %v12044_v4 = vld [vmem:[%s14419_s14 + $0x28] sm:$0xf] }
 0x1e4   : > { %13536 = vmatmul.mubr.bf16.gmra.mrb[52].mxu0 %v12027_v8  ;;  %v8712_v44 = vor.u32 %v8711_v7, %v8708_v29  ;;  %v8721_v24 = vrot.slane %v8719_v3, 4  ;;  %v8739_v19 = vshll.u32 %v11979_v9, 16  ;;  %v8727_v5 = vrot.slane %v8725_v39, 5  ;;  %v12045_v35 = vld [vmem:[%s14419_s14 + $0x2c] sm:$0x1] }
 0x1e5   : > { %v8704_v22 = vsel %vm14442_vm2, %v8699_v16, %v8703_v51  ;;  %v8732_v30 = vrot.slane %v8730_v6, 4  ;;  %v8743_v31 = vshrl.u32 %v11979_v9, 16  ;;  %v8735_v37 = vrot.slane %v8733_v2, 5  ;;  %v12046_v51 = vld [vmem:[%s14419_s14 + $0x30] sm:$0xe]  ;;  %v14318_v6 = vld [vmem:[%s14419_s14 + $0xfc] sm:$0xff]  }
 0x1e6   : > { %13188 = vmatmul.mubr.bf16.gmra.mrb[24].mxu1 %v14312_v28  ;;  %v12028_v40 = vcombine.low %v8694_v58, %v8704_v22  ;;  %v8713_v47 = vrot.slane %v8712_v44, 4  ;;  %v8722_v46 = vor.u32 %v8721_v24, %v8717_v14  ;;  %v8741_v52 = vrot.slane %v8739_v19, 5  ;;  %v12043_v28 = vld [vmem:[%s14419_s14 + $0x24] sm:$0xe]  ;;  %v12047_v9 = vld [vmem:[%s14419_s14 + $0x34] sm:$0xf] }
 0x1e7   : > { %13191 = vmatprep.mubr.bf16.mxu1 %v14314_v56  ;;  %v8745_v53 = vrot.slane %v8743_v31, 4  ;;  %v8749_v54 = vshll.u32 %v11980_v10, 16  ;;  %v8754_v18 = vshrl.u32 %v11981_v20, 16  ;;  %v8736_v32 = vor.u32 %v8735_v37, %v8732_v30  ;;  %v12048_v44 = vld [vmem:[%s14419_s14 + $0x38] sm:$0x1] }
 0x1e8   : > { %13539 = vmatprep.mubr.bf16.mxu0 %v12028_v40  ;;  %v8718_v27 = vsel %vm14442_vm2, %v8713_v47, %v8717_v14  ;;  %v8723_v48 = vrot.slane %v8722_v46, 4  ;;  %v8757_v55 = vshll.u32 %v11981_v20, 16  ;;  %v8763_v36 = vshll.u32 %v11982_v34, 16  ;;  %v12049_v20 = vld [vmem:[%s14419_s14 + $0x3c] sm:$0xe] }
 0x1e9   : > { %v8746_v42 = vor.u32 %v8745_v53, %v8741_v52  ;;  %v8751_v57 = vrot.slane %v8749_v54, 5  ;;  %v8756_v41 = vrot.slane %v8754_v18, 4  ;;  %v8737_v25 = vrot.slane %v8736_v32, 4  ;;  %v12050_v22 = vld [vmem:[%s14419_s14 + $0x40] sm:$0xf] }
 0x1ea   : > { %v8728_v11 = vsel %vm14442_vm2, %v8723_v48, %v8727_v5  ;;  %v8759_v17 = vrot.slane %v8757_v55, 5  ;;  %v8767_v43 = vshrl.u32 %v11982_v34, 16  ;;  %v8765_v60 = vrot.slane %v8763_v36, 5  ;;  %v12051_v31 = vld [vmem:[%s14419_s14 + $0x44] sm:$0x1]  ;;  %v14319_v55 = vld [vmem:[%s14419_s14 + $0x108] sm:$0xff]  }
 0x1eb   : > { %v12029_v15 = vcombine.low %v8718_v27, %v8728_v11  ;;  %v8747_v21 = vrot.slane %v8746_v42, 4  ;;  %v8773_v26 = vshll.u32 %v11983_v59, 16  ;;  %v8742_v0 = vsel %vm14442_vm2, %v8737_v25, %v8741_v52  ;;  %v12052_v47 = vld [vmem:[%s14419_s14 + $0x48] sm:$0xe]  ;;  %v12053_v46 = vld [vmem:[%s14419_s14 + $0x4c] sm:$0xf] }
 0x1ec   : > { %v8760_v56 = vor.u32 %v8759_v17, %v8756_v41  ;;  %v8769_v61 = vrot.slane %v8767_v43, 4  ;;  %v12136_v1 = vrot.slane %v12040_v63, 9  ;;  %v9645_v38 = vrot.slane %v12041_v50, 5  ;;  %v12054_v54 = vld [vmem:[%s14419_s14 + $0x50] sm:$0x1]  ;;  %v14320_v42 = vld [vmem:[%s14419_s14 + $0x114] sm:$0xff]  }
 0x1ed   : > { %13540 = vmatmul.mubr.bf16.gmra.mrb[56].mxu0 %v12029_v15  ;;  %v8752_v8 = vsel %vm14442_vm2, %v8747_v21, %v8751_v57  ;;  %v9648_v23 = vrot.slane %v12042_v62, 5  ;;  %v8775_v3 = vrot.slane %v8773_v26, 5  ;;  %v12137_v16 = vrot.slane %v12043_v28, 9  ;;  %v12055_v18 = vld [vmem:[%s14419_s14 + $0x54] sm:$0xe] }
 0x1ee   : > { %13192 = vmatmul.mubr.bf16.gmra.mrb[28].mxu1 %v14315_v13  ;;  %v12030_v29 = vcombine.low %v8742_v0, %v8752_v8  ;;  %v8761_v7 = vrot.slane %v8760_v56, 4  ;;  %v8770_v14 = vor.u32 %v8769_v61, %v8765_v60  ;;  %v9646_v10 = vsel %vm14609_vm5, %v12136_v1, %v9645_v38  ;;  %v12056_v27 = vld [vmem:[%s14419_s14 + $0x58] sm:$0xf]  ;;  %v16082_v63 = vld [vmem:[%s14419_s14 + $0x5c] sm:$0x1] }
 0x1ef   : > { %13195 = vmatprep.mubr.bf16.mxu1 %v14316_v45  ;;  %v9647_v58 = vrot.slane %v9645_v38, 4  ;;  %v9652_v39 = vrot.slane %v12044_v4, 5  ;;  %v9655_v19 = vrot.slane %v12045_v35, 5  ;;  %v9659_v13 = vrot.slane %v12047_v9, 5  ;;  %v12058_v41 = vld [vmem:[%s14419_s14 + $0x60] sm:$0xe] }
 0x1f0   : > { %13543 = vmatprep.mubr.bf16.mxu0 %v12030_v29  ;;  %v8766_v24 = vsel %vm14442_vm2, %v8761_v7, %v8765_v60  ;;  %v8771_v2 = vrot.slane %v8770_v14, 4  ;;  %v12138_v40 = vrot.slane %v12046_v51, 9  ;;  %v9662_v52 = vrot.slane %v12048_v44, 5  ;;  %v12059_v36 = vld [vmem:[%s14419_s14 + $0x64] sm:$0xf] }
 0x1f1   : > { %v9649_v5 = vsel %vm14609_vm5, %v9647_v58, %v9648_v23  ;;  %v9654_v30 = vrot.slane %v9652_v39, 4  ;;  %v9661_v59 = vrot.slane %v9659_v13, 4  ;;  %v9666_v53 = vrot.slane %v12050_v22, 5  ;;  %v16090_v17 = vld [vmem:[%s14419_s14 + $0x68] sm:$0x1] }
 0x1f2   : > { %v8776_v34 = vsel %vm14442_vm2, %v8771_v2, %v8775_v3  ;;  %v12184_v45 = vcombine.low %v9646_v10, %v9649_v5  ;;  %v9653_v48 = vsel %vm14609_vm5, %v12137_v16, %v9652_v39  ;;  %v12139_v50 = vrot.slane %v12049_v20, 9  ;;  %v12062_v43 = vld [vmem:[%s14419_s14 + $0x70] sm:$0xf]  ;;  %v12061_v1 = vld [vmem:[%s14419_s14 + $0x6c] sm:$0xe]  ;;  %v14321_v16 = vld [vmem:[%s14419_s14 + $0x120] sm:$0xff]  }
 0x1f3   : > { %v12031_v37 = vcombine.low %v8766_v24, %v8776_v34  ;;  %v9656_v32 = vsel %vm14609_vm5, %v9654_v30, %v9655_v19  ;;  %v9673_v57 = vrot.slane %v12053_v46, 5  ;;  %v9660_v62 = vsel %vm14609_vm5, %v12138_v40, %v9659_v13  ;;  %v12063_v8 = vld [vmem:[%s14419_s14 + $0x74] sm:$0x1]  ;;  %v12065_v23 = vld [vmem:[%s14419_s14 + $0x7c] sm:$0xf]  ;;  %v14322_v13 = vld [vmem:[%s14419_s14 + $0x12c] sm:$0xff]  }
 0x1f4   : > { %v9669_v11 = vrot.slane %v12051_v31, 5  ;;  %v9680_v25 = vrot.slane %v12056_v27, 5  ;;  %v12185_v28 = vcombine.low %v9653_v48, %v9656_v32  ;;  %v9663_v15 = vsel %vm14609_vm5, %v9661_v59, %v9662_v52  ;;  %v12064_v9 = vld [vmem:[%s14419_s14 + $0x78] sm:$0xe]  ;;  %v12066_v10 = vld [vmem:[%s14419_s14 + $0x80] sm:$0x1] }
 0x1f5   : > { %13544 = vmatmul.mubr.bf16.gmra.mrb[60].mxu0 %v12031_v37  ;;  %v9668_v21 = vrot.slane %v9666_v53, 4  ;;  %v12140_v60 = vrot.slane %v12052_v47, 9  ;;  %v9676_v26 = vrot.slane %v12054_v54, 5  ;;  %v12141_v0 = vrot.slane %v12055_v18, 9  ;;  %v12068_v58 = vld [vmem:[%s14419_s14 + $0x88] sm:$0xf] }
 0x1f6   : > { %13196 = vmatmul.mubr.bf16.gmra.mrb[32].mxu1 %v14317_v12  ;;  %13563 = vmatprep.mubr.bf16.mxu0 %v12184_v45  ;;  %v9683_v56 = vrot.slane %v16082_v63, 5  ;;  %v9687_v61 = vrot.slane %v12059_v36, 5  ;;  %v9675_v12 = vrot.slane %v9673_v57, 4  ;;  %v9682_v4 = vrot.slane %v9680_v25, 4  ;;  %v12067_v44 = vld [vmem:[%s14419_s14 + $0x84] sm:$0xe] }
 0x1f7   : > { %13199 = vmatprep.mubr.bf16.mxu1 %v14318_v6  ;;  %v12142_v35 = vrot.slane %v12058_v41, 9  ;;  %v9694_v38 = vrot.slane %v12062_v43, 5  ;;  %v12186_v51 = vcombine.low %v9660_v62, %v9663_v15  ;;  %v9667_v29 = vsel %vm14609_vm5, %v12139_v50, %v9666_v53  ;;  %v12069_v24 = vld [vmem:[%s14419_s14 + $0x8c] sm:$0x1]  ;;  %v12070_v45 = vld [vmem:[%s14419_s14 + $0x90] sm:$0xe] }
 0x1f8   : > { %v9670_v7 = vsel %vm14609_vm5, %v9668_v21, %v9669_v11  ;;  %v9690_v14 = vrot.slane %v16090_v17, 5  ;;  %v12143_v3 = vrot.slane %v12061_v1, 9  ;;  %v9689_v39 = vrot.slane %v9687_v61, 4  ;;  %v12071_v40 = vld [vmem:[%s14419_s14 + $0x94] sm:$0xf]  ;;  %v14323_v21 = vld [vmem:[%s14419_s14 + $0x138] sm:$0xff]  }
 0x1f9   : > { %v9701_v6 = vrot.slane %v12065_v23, 5  ;;  %v9674_v2 = vsel %vm14609_vm5, %v12140_v60, %v9673_v57  ;;  %v9677_v19 = vsel %vm14609_vm5, %v9675_v12, %v9676_v26  ;;  %v9696_v20 = vrot.slane %v9694_v38, 4  ;;  %v12072_v59 = vld [vmem:[%s14419_s14 + $0x98] sm:$0x1]  ;;  %v12073_v50 = vld [vmem:[%s14419_s14 + $0x9c] sm:$0xe] }
 0x1fa   : > { %v9708_v22 = vrot.slane %v12068_v58, 5  ;;  %v12187_v5 = vcombine.low %v9667_v29, %v9670_v7  ;;  %v16117_v30 = vsel %vm14609_vm5, %v12141_v0, %v9680_v25  ;;  %v9697_v31 = vrot.slane %v12063_v8, 5  ;;  %v12075_v62 = vld [vmem:[%s14419_s14 + $0xa4] sm:$0x1]  ;;  %v12076_v15 = vld [vmem:[%s14419_s14 + $0xa8] sm:$0xe] }
 0x1fb   : > { %v12144_v34 = vrot.slane %v12064_v9, 9  ;;  %v9703_v47 = vrot.slane %v9701_v6, 4  ;;  %v9704_v46 = vrot.slane %v12066_v10, 5  ;;  %v12145_v37 = vrot.slane %v12067_v44, 9  ;;  %v12079_v29 = vld [vmem:[%s14419_s14 + $0xb4] sm:$0xe] }
 0x1fc   : > { %v9715_v52 = vrot.slane %v12071_v40, 5  ;;  %v12188_v53 = vcombine.low %v9674_v2, %v9677_v19  ;;  %v16124_v54 = vsel %vm14609_vm5, %v9682_v4, %v9683_v56  ;;  %v9710_v18 = vrot.slane %v9708_v22, 4  ;;  %v12077_v56 = vld [vmem:[%s14419_s14 + $0xac] sm:$0xf]  ;;  %v14324_v4 = vld [vmem:[%s14419_s14 + $0x144] sm:$0xff]  }
 0x1fd   : > { %13564 = vmatmul.mubr.bf16.vlgmr.msra.gmra.mrb[0].mxu0 %v12185_v28  ;;  %v9711_v27 = vrot.slane %v12069_v24, 5  ;;  %v16128_v48 = vsel %vm14609_vm5, %v12142_v35, %v9687_v61  ;;  %v16132_v32 = vsel %vm14609_vm5, %v12143_v3, %v9694_v38  ;;  %v9718_v63 = vrot.slane %v12072_v59, 5  ;;  %v12078_v61 = vld [vmem:[%s14419_s14 + $0xb0] sm:$0x1]  ;;  %v12080_v7 = vld [vmem:[%s14419_s14 + $0xb8] sm:$0xf] }
 0x1fe   : > { %13200 = vmatmul.mubr.bf16.gmra.mrb[36].mxu1 %v14319_v55  ;;  %13567 = vmatprep.mubr.bf16.mxu0 %v12186_v51  ;;  %v12146_v55 = vrot.slane %v12070_v45, 9  ;;  %v16138_v57 = vsel %vm14609_vm5, %v9689_v39, %v9690_v14  ;;  %v16142_v41 = vsel %vm14609_vm5, %v9696_v20, %v9697_v31  ;;  %v9717_v36 = vrot.slane %v9715_v52, 4  ;;  %v12081_v14 = vld [vmem:[%s14419_s14 + $0xbc] sm:$0x1]  ;;  %v12082_v2 = vld [vmem:[%s14419_s14 + $0xc0] sm:$0xe] }
 0x1ff   : > { %13203 = vmatprep.mubr.bf16.mxu1 %v14320_v42  ;;  %v12074_v42 = vld [vmem:[%s14419_s14 + $0xa0] sm:$0xf]  ;;  %v16147_v25 = vsel %vm14609_vm5, %v12144_v34, %v9701_v6  ;;  %v16151_v17 = vsel %vm14609_vm5, %v9703_v47, %v9704_v46  ;;  %v12147_v43 = vrot.slane %v12073_v50, 9  ;;  %v9725_v28 = vrot.slane %v12075_v62, 5  ;;  %v12083_v19 = vld [vmem:[%s14419_s14 + $0xc4] sm:$0xf] }
 0x200   : > { %v9722_v11 = vrot.slane %v12074_v42, 5  ;;  %v16157_v60 = vsel %vm14609_vm5, %v12145_v37, %v9708_v22  ;;  %v16161_v26 = vsel %vm14609_vm5, %v9710_v18, %v9711_v27  ;;  %v12148_v1 = vrot.slane %v12076_v15, 9  ;;  %v12084_v22 = vld [vmem:[%s14419_s14 + $0xc8] sm:$0x1]  ;;  %v12085_v47 = vld [vmem:[%s14419_s14 + $0xcc] sm:$0xe] }
 0x201   : > { %v12189_v12 = vcombine.low %v16117_v30, %v16124_v54  ;;  %v9729_v35 = vrot.slane %v12077_v56, 5  ;;  %v9732_v8 = vrot.slane %v12078_v61, 5  ;;  %v12190_v38 = vcombine.low %v16128_v48, %v16138_v57  ;;  %v14325_v18 = vld [vmem:[%s14419_s14 + $0x150] sm:$0xff]   ;;  %v11480_v50 = vld [vmem:[%s14419_s14 + $0xe4] sm:$0xf]  ;;  %v14326_v57 = vld [vmem:[%s14419_s14 + $0x15c] sm:$0xff]  }
 0x202   : > { %v9724_v0 = vrot.slane %v9722_v11, 4  ;;  %v12191_v23 = vcombine.low %v16132_v32, %v16142_v41  ;;  %v12192_v51 = vcombine.low %v16147_v25, %v16151_v17  ;;  %v16176_v9 = vsel %vm14609_vm5, %v12146_v55, %v9715_v52  ;;  %v12086_v52 = vld [vmem:[%s14419_s14 + $0xd0] sm:$0xf]  ;;  %v11481_v42 = vld [vmem:[%s14419_s14 + $0xe8] sm:$0xf] }
 0x203   : > { %v12193_v3 = vcombine.low %v16157_v60, %v16161_v26  ;;  %v16185_v10 = vsel %vm14609_vm5, %v9717_v36, %v9718_v63  ;;  %v9731_v58 = vrot.slane %v9729_v35, 4  ;;  %v16189_v39 = vsel %vm14609_vm5, %v12147_v43, %v9722_v11  ;;  %v11482_v11 = vld [vmem:[%s14419_s14 + $0xec] sm:$0x1]  ;;  %v12088_v15 = vld [vmem:[%s14419_s14 + $0xf0] sm:$0xe] }
 0x204   : > { %v16193_v6 = vsel %vm14609_vm5, %v9724_v0, %v9725_v28  ;;  %v9736_v44 = vrot.slane %v12080_v7, 5  ;;  %v9739_v24 = vrot.slane %v12081_v14, 5  ;;  %v9743_v30 = vrot.slane %v12083_v19, 5  ;;  %v11483_v7 = vld [vmem:[%s14419_s14 + $0xf0] sm:$0xf] }
 0x205   : > { %13568 = vmatmul.mubr.bf16.gmra.mrb[4].mxu0 %v12187_v5  ;;  %v16203_v20 = vsel %vm14609_vm5, %v9731_v58, %v9732_v8  ;;  %v12150_v5 = vrot.slane %v12082_v2, 9  ;;  %v12194_v31 = vcombine.low %v16176_v9, %v16185_v10  ;;  %v9746_v40 = vrot.slane %v12084_v22, 5  ;;  %v11487_v41 = vld [vmem:[%s14419_s14 + $0x100] sm:$0xf]  ;;  %v14330_v60 = vld [vmem:[%s14419_s14 + $0x18c] sm:$0xff]  }
 0x206   : > { %13204 = vmatmul.mubr.bf16.gmra.mrb[40].mxu1 %v14321_v16  ;;  %13571 = vmatprep.mubr.bf16.mxu0 %v12188_v53  ;;  %v12149_v16 = vrot.slane %v12079_v29, 9  ;;  %v9738_v45 = vrot.slane %v9736_v44, 4  ;;  %v12195_v46 = vcombine.low %v16189_v39, %v16193_v6  ;;  %v9745_v59 = vrot.slane %v9743_v30, 4  ;;  %v12087_v53 = vld [vmem:[%s14419_s14 + $0xd4] sm:$0x1] }
 0x207   : > { %13207 = vmatprep.mubr.bf16.mxu1 %v14322_v13  ;;  %v16199_v13 = vsel %vm14609_vm5, %v12148_v1, %v9729_v35  ;;  %v16217_v37 = vsel %vm14609_vm5, %v12150_v5, %v9743_v30  ;;  %v12151_v54 = vrot.slane %v12085_v47, 9  ;;  %v9750_v55 = vrot.slane %v12086_v52, 5  ;;  %v12089_v1 = vld [vmem:[%s14419_s14 + $0xf4] sm:$0xf]  ;;  %v11485_v5 = vld [vmem:[%s14419_s14 + $0xf8] sm:$0x1] }
 0x208   : > { %v16210_v34 = vsel %vm14609_vm5, %v12149_v16, %v9736_v44  ;;  %v12196_v27 = vcombine.low %v16199_v13, %v16203_v20  ;;  %v16226_v48 = vsel %vm14609_vm5, %v9738_v45, %v9739_v24  ;;  %v9753_v63 = vrot.slane %v12087_v53, 5  ;;  %v11484_v44 = vld [vmem:[%s14419_s14 + $0xf4] sm:$0xf] }
 0x209   : > { %v12197_v36 = vcombine.low %v16210_v34, %v16226_v48  ;;  %v16235_v62 = vsel %vm14609_vm5, %v9745_v59, %v9746_v40  ;;  %v4963_v43 = vshrl.u32 %v11480_v50, 16  ;;  %v4966_v28 = vshll.u32 %v11480_v50, 16  ;;  %v12091_v59 = vld [vmem:[%s14419_s14 + $0xfc] sm:$0xe] }
 0x20a   : > { %v16243_v0 = vsel %vm14609_vm5, %v12151_v54, %v9750_v55  ;;  %v9752_v56 = vrot.slane %v9750_v55, 4  ;;  %v4972_v61 = vshll.u32 %v11481_v42, 16  ;;  %v4976_v8 = vshrl.u32 %v11481_v42, 16 }
 0x20b   : > { %v4968_v35 = vrot.slane %v4966_v28, 5  ;;  %v4982_v29 = vshll.u32 %v11482_v11, 16  ;;  %v12152_v58 = vrot.slane %v12088_v15, 9  ;;  %v9757_v16 = vrot.slane %v12089_v1, 5  ;;  %v11486_v1 = vld [vmem:[%s14419_s14 + $0xfc] sm:$0xf] }
 0x20c   : > { %v4974_v14 = vrot.slane %v4972_v61, 5  ;;  %v4978_v19 = vrot.slane %v4976_v8, 4  ;;  %v4987_v47 = vshrl.u32 %v11483_v7, 16  ;;  %v4990_v54 = vshll.u32 %v11483_v7, 16 }
 0x20d   : > { %13572 = vmatmul.mubr.bf16.gmra.mrb[8].mxu0 %v12189_v12  ;;  %v12090_v12 = vld [vmem:[%s14419_s14 + $0xf8] sm:$0x1]  ;;  %v4984_v22 = vrot.slane %v4982_v29, 5  ;;  %v16258_v30 = vsel %vm14609_vm5, %v12152_v58, %v9757_v16  ;;  %v9759_v45 = vrot.slane %v9757_v16, 4  ;;  %v4996_v55 = vshll.u32 %v11484_v44, 16 }
 0x20e   : > { %13208 = vmatmul.mubr.bf16.gmra.mrb[44].mxu1 %v14323_v21  ;;  %13575 = vmatprep.mubr.bf16.mxu0 %v12190_v38  ;;  %v12198_v21 = vcombine.low %v16217_v37, %v16235_v62  ;;  %v16250_v38 = vsel %vm14609_vm5, %v9752_v56, %v9753_v63  ;;  %v9760_v40 = vrot.slane %v12090_v12, 5  ;;  %v4979_v53 = vor.u32 %v4978_v19, %v4974_v14  ;;  %v12092_v63 = vld [vmem:[%s14419_s14 + $0x100] sm:$0xf]  ;;  %v11500_v37 = vld [vmem:[%s14419_s14 + $0x134] sm:$0x1] }
 0x20f   : > { %13211 = vmatprep.mubr.bf16.mxu1 %v14324_v4  ;;  %v4965_v4 = vrot.slane %v4963_v43, 4  ;;  %v12199_v24 = vcombine.low %v16243_v0, %v16250_v38  ;;  %v4989_v50 = vrot.slane %v4987_v47, 4  ;;  %v5000_v42 = vshrl.u32 %v11484_v44, 16  ;;  %v12093_v43 = vld [vmem:[%s14419_s14 + $0x104] sm:$0x1] }
 0x210   : > { %v5006_v11 = vshll.u32 %v11485_v5, 16  ;;  %v4980_v15 = vrot.slane %v4979_v53, 4  ;;  %v4992_v61 = vrot.slane %v4990_v54, 5  ;;  %v4998_v12 = vrot.slane %v4996_v55, 5  ;;  %v11488_v44 = vld [vmem:[%s14419_s14 + $0x104] sm:$0x1] }
 0x211   : > { %v4969_v2 = vor.u32 %v4968_v35, %v4965_v4  ;;  %v5002_v4 = vrot.slane %v5000_v42, 4  ;;  %v12153_v32 = vrot.slane %v12091_v59, 9  ;;  %v9764_v7 = vrot.slane %v12092_v63, 5  ;;  %v11489_v42 = vld [vmem:[%s14419_s14 + $0x108] sm:$0xf] }
 0x212   : > { %v5008_v35 = vrot.slane %v5006_v11, 5  ;;  %v4985_v8 = vsel %vm14442_vm2, %v4980_v15, %v4984_v22  ;;  %v4993_v29 = vor.u32 %v4992_v61, %v4989_v50  ;;  %v5011_v25 = vshrl.u32 %v11486_v1, 16  ;;  %v12094_v22 = vld [vmem:[%s14419_s14 + $0x108] sm:$0xe]  ;;  %v12096_v50 = vld [vmem:[%s14419_s14 + $0x110] sm:$0x1] }
 0x213   : > { %v4970_v52 = vrot.slane %v4969_v2, 4  ;;  %v5003_v16 = vor.u32 %v5002_v4, %v4998_v12  ;;  %v5014_v17 = vshll.u32 %v11486_v1, 16  ;;  %v16288_v2 = vsel %vm14609_vm5, %v12153_v32, %v9764_v7  ;;  %v11490_v15 = vld [vmem:[%s14419_s14 + $0x10c] sm:$0xf]  ;;  %v11491_v32 = vld [vmem:[%s14419_s14 + $0x110] sm:$0x1] }
 0x214   : > { %v9766_v19 = vrot.slane %v9764_v7, 4  ;;  %v5020_v5 = vshll.u32 %v11487_v41, 16  ;;  %v5024_v59 = vshrl.u32 %v11487_v41, 16  ;;  %v5030_v63 = vshll.u32 %v11488_v44, 16  ;;  %v12097_v7 = vld [vmem:[%s14419_s14 + $0x114] sm:$0xe] }
 0x215   : > { %13576 = vmatmul.mubr.bf16.gmra.mrb[12].mxu0 %v12191_v23  ;;  %v4975_v28 = vsel %vm14442_vm2, %v4970_v52, %v4974_v14  ;;  %v14328_v23 = vld [vmem:[%s14419_s14 + $0x174] sm:$0xff]   ;;  %v9767_v14 = vrot.slane %v12093_v43, 5  ;;  %v5016_v47 = vrot.slane %v5014_v17, 5  ;;  %v12095_v52 = vld [vmem:[%s14419_s14 + $0x10c] sm:$0xf] }
 0x216   : > { %13212 = vmatmul.mubr.bf16.gmra.mrb[48].mxu1 %v14325_v18  ;;  %v16264_v18 = vsel %vm14609_vm5, %v9759_v45, %v9760_v40  ;;  %13579 = vmatprep.mubr.bf16.mxu0 %v12192_v51  ;;  %v16283_v58 = vcombine.low %v4975_v28, %v4985_v8  ;;  %v4994_v51 = vrot.slane %v4993_v29, 4  ;;  %v5004_v45 = vrot.slane %v5003_v16, 4  ;;  %v12098_v44 = vld [vmem:[%s14419_s14 + $0x118] sm:$0xf]  ;;  %v12099_v17 = vld [vmem:[%s14419_s14 + $0x11c] sm:$0x1] }
 0x217   : > { %13215 = vmatprep.mubr.bf16.mxu1 %v14326_v57  ;;  %v14327_v57 = vld [vmem:[%s14419_s14 + $0x168] sm:$0xff]   ;;  %v12200_v56 = vcombine.low %v16258_v30, %v16264_v18  ;;  %v5013_v40 = vrot.slane %v5011_v25, 4  ;;  %v16296_v54 = vsel %vm14609_vm5, %v9766_v19, %v9767_v14  ;;  %v5022_v55 = vrot.slane %v5020_v5, 5 }
 0x218   : > { %v4999_v53 = vsel %vm14442_vm2, %v4994_v51, %v4998_v12  ;;  %v5009_v11 = vsel %vm14442_vm2, %v5004_v45, %v5008_v35  ;;  %v12201_v43 = vcombine.low %v16288_v2, %v16296_v54  ;;  %v5026_v28 = vrot.slane %v5024_v59, 4  ;;  %v14329_v35 = vld [vmem:[%s14419_s14 + $0x180] sm:$0xff]   ;;  %v11492_v45 = vld [vmem:[%s14419_s14 + $0x114] sm:$0xf] }
 0x219   : > { %v16308_v61 = vcombine.low %v4999_v53, %v5009_v11  ;;  %v5032_v1 = vrot.slane %v5030_v63, 5  ;;  %v12154_v12 = vrot.slane %v12094_v22, 9  ;;  %v9771_v4 = vrot.slane %v12095_v52, 5  ;;  %v11493_v53 = vld [vmem:[%s14419_s14 + $0x118] sm:$0xf] }
 0x21a   : > { %v9774_v8 = vrot.slane %v12096_v50, 5  ;;  %v5035_v29 = vshrl.u32 %v11489_v42, 16  ;;  %v5038_v14 = vshll.u32 %v11489_v42, 16  ;;  %v5044_v16 = vshll.u32 %v11490_v15, 16  ;;  %v12113_v54 = vld [vmem:[%s14419_s14 + $0x154] sm:$0xf] }
 0x21b   : > { %v16319_v26 = vsel %vm14609_vm5, %v12154_v12, %v9771_v4  ;;  %v5048_v25 = vshrl.u32 %v11490_v15, 16  ;;  %v5054_v22 = vshll.u32 %v11491_v32, 16  ;;  %v12155_v52 = vrot.slane %v12097_v7, 9  ;;  %v14331_v12 = vld [vmem:[%s14419_s14 + $0x198] sm:$0xff]  }
 0x21c   : > { %v5040_v19 = vrot.slane %v5038_v14, 5  ;;  %v5046_v5 = vrot.slane %v5044_v16, 5  ;;  %v9778_v42 = vrot.slane %v12098_v44, 5  ;;  %v5059_v15 = vshrl.u32 %v11492_v45, 16  ;;  %v12102_v16 = vld [vmem:[%s14419_s14 + $0x128] sm:$0x1] }
 0x21d   : > { %13580 = vmatmul.mubr.bf16.gmra.mrb[16].mxu0 %v12193_v3  ;;  %v9773_v3 = vrot.slane %v9771_v4, 4  ;;  %v5050_v59 = vrot.slane %v5048_v25, 4  ;;  %v5056_v50 = vrot.slane %v5054_v22, 5  ;;  %v5072_v6 = vshrl.u32 %v11493_v53, 16  ;;  %v11495_v44 = vld [vmem:[%s14419_s14 + $0x120] sm:$0xf] }
 0x21e   : > { %13216 = vmatmul.mubr.bf16.gmra.mrb[52].mxu1 %v14327_v57  ;;  %v5017_v57 = vor.u32 %v5016_v47, %v5013_v40  ;;  %13583 = vmatprep.mubr.bf16.mxu0 %v12194_v31  ;;  %v5037_v31 = vrot.slane %v5035_v29, 4  ;;  %v16344_v32 = vsel %vm14609_vm5, %v12155_v52, %v9778_v42  ;;  %v5061_v29 = vrot.slane %v5059_v15, 4  ;;  %v12103_v52 = vld [vmem:[%s14419_s14 + $0x12c] sm:$0xe] }
 0x21f   : > { %13219 = vmatprep.mubr.bf16.mxu1 %v14328_v23  ;;  %v5027_v23 = vor.u32 %v5026_v28, %v5022_v55  ;;  %v16327_v51 = vsel %vm14609_vm5, %v9773_v3, %v9774_v8  ;;  %v5051_v11 = vor.u32 %v5050_v59, %v5046_v5  ;;  %v11494_v28 = vld [vmem:[%s14419_s14 + $0x11c] sm:$0x1]  ;;  %v5083_v59 = vshrl.u32 %v11495_v44, 16 }
 0x220   : > { %v5018_v41 = vrot.slane %v5017_v57, 4  ;;  %v12202_v47 = vcombine.low %v16319_v26, %v16327_v51  ;;  %v5041_v63 = vor.u32 %v5040_v19, %v5037_v31  ;;  %v9781_v57 = vrot.slane %v12099_v17, 5 }
 0x221   : > { %v5028_v10 = vrot.slane %v5027_v23, 4  ;;  %v12100_v23 = vld [vmem:[%s14419_s14 + $0x120] sm:$0xe]  ;;  %v5052_v8 = vrot.slane %v5051_v11, 4  ;;  %v5078_v14 = vshll.u32 %v11494_v28, 16  ;;  %v5085_v15 = vrot.slane %v5083_v59, 4 }
 0x222   : > { %v5023_v9 = vsel %vm14442_vm2, %v5018_v41, %v5022_v55  ;;  %v5042_v4 = vrot.slane %v5041_v63, 4  ;;  %v5068_v41 = vshll.u32 %v11493_v53, 16  ;;  %v12156_v17 = vrot.slane %v12100_v23, 9  ;;  %v12104_v11 = vld [vmem:[%s14419_s14 + $0x130] sm:$0xf] }
 0x223   : > { %v5033_v40 = vsel %vm14442_vm2, %v5028_v10, %v5032_v1  ;;  %v5062_v1 = vshll.u32 %v11492_v45, 16  ;;  %v5057_v13 = vsel %vm14442_vm2, %v5052_v8, %v5056_v50  ;;  %v11496_v10 = vld [vmem:[%s14419_s14 + $0x124] sm:$0xf]  ;;  %v5080_v25 = vrot.slane %v5078_v14, 5  ;;  %v11498_v23 = vld [vmem:[%s14419_s14 + $0x12c] sm:$0xf] }
 0x224   : > { %v16335_v55 = vcombine.low %v5023_v9, %v5033_v40  ;;  %v5047_v7 = vsel %vm14442_vm2, %v5042_v4, %v5046_v5  ;;  %v5070_v3 = vrot.slane %v5068_v41, 5  ;;  %v5074_v9 = vrot.slane %v5072_v6, 4  ;;  %v11497_v5 = vld [vmem:[%s14419_s14 + $0x128] sm:$0x1] }
 0x225   : > { %13584 = vmatmul.mubr.bf16.gmra.mrb[20].mxu0 %v12195_v46  ;;  %v5064_v39 = vrot.slane %v5062_v1, 5  ;;  %v12101_v46 = vld [vmem:[%s14419_s14 + $0x124] sm:$0xf]  ;;  %v16364_v31 = vcombine.low %v5047_v7, %v5057_v13  ;;  %v9788_v40 = vrot.slane %v12102_v16, 5  ;;  %v5086_v50 = vshll.u32 %v11495_v44, 16 }
 0x226   : > { %13220 = vmatmul.mubr.bf16.gmra.mrb[56].mxu1 %v14329_v35  ;;  %v9780_v35 = vrot.slane %v9778_v42, 4  ;;  %13587 = vmatprep.mubr.bf16.mxu0 %v12196_v27  ;;  %v9785_v19 = vrot.slane %v12101_v46, 5  ;;  %v5075_v45 = vor.u32 %v5074_v9, %v5070_v3  ;;  %v5092_v42 = vshll.u32 %v11496_v10, 16  ;;  %v12106_v9 = vld [vmem:[%s14419_s14 + $0x138] sm:$0xe] }
 0x227   : > { %13223 = vmatprep.mubr.bf16.mxu1 %v14330_v60  ;;  %v5065_v27 = vor.u32 %v5064_v39, %v5061_v29  ;;  %v5096_v1 = vshrl.u32 %v11496_v10, 16  ;;  %v5088_v4 = vrot.slane %v5086_v50, 5  ;;  %v5102_v41 = vshll.u32 %v11497_v5, 16  ;;  %v11499_v29 = vld [vmem:[%s14419_s14 + $0x130] sm:$0xf] }
 0x228   : > { %v16355_v60 = vsel %vm14609_vm5, %v9780_v35, %v9781_v57  ;;  %v16371_v53 = vsel %vm14609_vm5, %v12156_v17, %v9785_v19  ;;  %v9787_v63 = vrot.slane %v9785_v19, 4  ;;  %v5076_v28 = vrot.slane %v5075_v45, 4  ;;  %v12107_v5 = vld [vmem:[%s14419_s14 + $0x13c] sm:$0xf] }
 0x229   : > { %v12203_v20 = vcombine.low %v16344_v32, %v16355_v60  ;;  %v5066_v22 = vrot.slane %v5065_v27, 4  ;;  %v5094_v35 = vrot.slane %v5092_v42, 5  ;;  %v5098_v48 = vrot.slane %v5096_v1, 4 }
 0x22a   : > { %v5081_v8 = vsel %vm14442_vm2, %v5076_v28, %v5080_v25  ;;  %v5089_v6 = vor.u32 %v5088_v4, %v5085_v15  ;;  %v5104_v46 = vrot.slane %v5102_v41, 5  ;;  %v9792_v7 = vrot.slane %v12104_v11, 5  ;;  %v11502_v11 = vld [vmem:[%s14419_s14 + $0x13c] sm:$0xf] }
 0x22b   : > { %v5071_v57 = vsel %vm14442_vm2, %v5066_v22, %v5070_v3  ;;  %v5099_v3 = vor.u32 %v5098_v48, %v5094_v35  ;;  %v5107_v62 = vshrl.u32 %v11498_v23, 16  ;;  %v5116_v27 = vshll.u32 %v11499_v29, 16 }
 0x22c   : > { %v16393_v39 = vcombine.low %v5071_v57, %v5081_v8  ;;  %v5090_v16 = vrot.slane %v5089_v6, 4  ;;  %v9794_v13 = vrot.slane %v9792_v7, 4  ;;  %v5120_v19 = vshrl.u32 %v11499_v29, 16  ;;  %v12109_v8 = vld [vmem:[%s14419_s14 + $0x144] sm:$0xe] }
 0x22d   : > { %13588 = vmatmul.mubr.bf16.gmra.mrb[24].mxu0 %v12197_v36  ;;  %v12157_v36 = vrot.slane %v12103_v52, 9  ;;  %v5100_v10 = vrot.slane %v5099_v3, 4  ;;  %v5109_v25 = vrot.slane %v5107_v62, 4  ;;  %v5126_v59 = vshll.u32 %v11500_v37, 16  ;;  %v12108_v52 = vld [vmem:[%s14419_s14 + $0x140] sm:$0x1] }
 0x22e   : > { %13224 = vmatmul.mubr.bf16.gmra.mrb[60].mxu1 %v14331_v12  ;;  %v12105_v12 = vld [vmem:[%s14419_s14 + $0x134] sm:$0x1]  ;;  %13591 = vmatprep.mubr.bf16.mxu0 %v12198_v21  ;;  %v5110_v21 = vshll.u32 %v11498_v23, 16  ;;  %v5095_v22 = vsel %vm14442_vm2, %v5090_v16, %v5094_v35  ;;  %v5122_v42 = vrot.slane %v5120_v19, 4  ;;  %v12158_v15 = vrot.slane %v12106_v9, 9 }
 0x22f   : > { %13275 = vmatprep.mubr.bf16.mxu1 %v16283_v58  ;;  %v16382_v58 = vsel %vm14609_vm5, %v9787_v63, %v9788_v40  ;;  %v9795_v14 = vrot.slane %v12105_v12, 5  ;;  %v16398_v44 = vsel %vm14609_vm5, %v12157_v36, %v9792_v7  ;;  %v5118_v40 = vrot.slane %v5116_v27, 5  ;;  %v11503_v12 = vld [vmem:[%s14419_s14 + $0x140] sm:$0x1]  ;;  %v12110_v36 = vld [vmem:[%s14419_s14 + $0x148] sm:$0xf] }
 0x230   : > { %v12204_v34 = vcombine.low %v16371_v53, %v16382_v58  ;;  %v5112_v17 = vrot.slane %v5110_v21, 5  ;;  %v5105_v63 = vsel %vm14442_vm2, %v5100_v10, %v5104_v46  ;;  %v5128_v28 = vrot.slane %v5126_v59, 5  ;;  %v12111_v6 = vld [vmem:[%s14419_s14 + $0x14c] sm:$0x1]  ;;  %v11504_v37 = vld [vmem:[%s14419_s14 + $0x144] sm:$0xf] }
 0x231   : > { %v16408_v45 = vsel %vm14609_vm5, %v9794_v13, %v9795_v14  ;;  %v16420_v57 = vcombine.low %v5095_v22, %v5105_v63  ;;  %v9799_v1 = vrot.slane %v12107_v5, 5  ;;  %v5123_v35 = vor.u32 %v5122_v42, %v5118_v40  ;;  %v11505_v27 = vld [vmem:[%s14419_s14 + $0x148] sm:$0xf]  ;;  %v12112_v63 = vld [vmem:[%s14419_s14 + $0x150] sm:$0xe] }
 0x232   : > { %v12205_v50 = vcombine.low %v16398_v44, %v16408_v45  ;;  %v9802_v41 = vrot.slane %v12108_v52, 5  ;;  %v5140_v48 = vshll.u32 %v11502_v11, 16  ;;  %v5144_v29 = vshrl.u32 %v11502_v11, 16 }
 0x233   : > { %v16429_v0 = vsel %vm14609_vm5, %v12158_v15, %v9799_v1  ;;  %v9801_v38 = vrot.slane %v9799_v1, 4  ;;  %v5124_v18 = vrot.slane %v5123_v35, 4  ;;  %v5150_v14 = vshll.u32 %v11503_v12, 16  ;;  %v12114_v12 = vld [vmem:[%s14419_s14 + $0x158] sm:$0x1] }
 0x234   : > { %v5142_v3 = vrot.slane %v5140_v48, 5  ;;  %v5146_v16 = vrot.slane %v5144_v29, 4  ;;  %v12159_v13 = vrot.slane %v12109_v8, 9  ;;  %v9809_v5 = vrot.slane %v12111_v6, 5  ;;  %v11509_v48 = vld [vmem:[%s14419_s14 + $0x158] sm:$0x1] }
 0x235   : > { %13592 = vmatmul.mubr.bf16.gmra.mrb[28].mxu0 %v12199_v24  ;;  %v16437_v46 = vsel %vm14609_vm5, %v9801_v38, %v9802_v41  ;;  %v5129_v62 = vsel %vm14442_vm2, %v5124_v18, %v5128_v28  ;;  %v5155_v22 = vshrl.u32 %v11504_v37, 16  ;;  %v5168_v2 = vshrl.u32 %v11505_v27, 16  ;;  %v11508_v41 = vld [vmem:[%s14419_s14 + $0x154] sm:$0xf]  ;;  %v12115_v29 = vld [vmem:[%s14419_s14 + $0x15c] sm:$0xe] }
 0x236   : > { %13276 = vmatmul.mubr.bf16.vlgmr.msra.gmra.mrb[32].mxu1 %v16308_v61  ;;  %v11501_v61 = vld [vmem:[%s14419_s14 + $0x138] sm:$0xf]  ;;  %13595 = vmatprep.mubr.bf16.mxu0 %v12200_v56  ;;  %v12206_v21 = vcombine.low %v16429_v0, %v16437_v46  ;;  %v5147_v19 = vor.u32 %v5146_v16, %v5142_v3  ;;  %v12160_v38 = vrot.slane %v12112_v63, 9  ;;  %v9816_v18 = vrot.slane %v12114_v12, 5 }
 0x237   : > { %13279 = vmatprep.mubr.bf16.mxu1 %v16335_v55  ;;  %v5113_v55 = vor.u32 %v5112_v17, %v5109_v25  ;;  %v5131_v23 = vshrl.u32 %v11501_v61, 16  ;;  %v5134_v24 = vshll.u32 %v11501_v61, 16  ;;  %v5152_v25 = vrot.slane %v5150_v14, 5 }
 0x238   : > { %v9806_v17 = vrot.slane %v12110_v36, 5  ;;  %v5164_v61 = vshll.u32 %v11505_v27, 16  ;;  %v5157_v42 = vrot.slane %v5155_v22, 4  ;;  %v5170_v35 = vrot.slane %v5168_v2, 4  ;;  %v12117_v27 = vld [vmem:[%s14419_s14 + $0x164] sm:$0x1] }
 0x239   : > { %v5114_v4 = vrot.slane %v5113_v55, 4  ;;  %v5133_v56 = vrot.slane %v5131_v23, 4  ;;  %v5136_v7 = vrot.slane %v5134_v24, 5  ;;  %v5148_v55 = vrot.slane %v5147_v19, 4  ;;  %v11510_v19 = vld [vmem:[%s14419_s14 + $0x15c] sm:$0xf] }
 0x23a   : > { %v9808_v52 = vrot.slane %v9806_v17, 4  ;;  %v5166_v15 = vrot.slane %v5164_v61, 5  ;;  %v9813_v24 = vrot.slane %v12113_v54, 5  ;;  %v5188_v14 = vshll.u32 %v11508_v41, 16  ;;  %v12118_v54 = vld [vmem:[%s14419_s14 + $0x168] sm:$0xe] }
 0x23b   : > { %v5119_v30 = vsel %vm14442_vm2, %v5114_v4, %v5118_v40  ;;  %v5137_v10 = vor.u32 %v5136_v7, %v5133_v56  ;;  %v5158_v40 = vshll.u32 %v11504_v37, 16  ;;  %v11507_v4 = vld [vmem:[%s14419_s14 + $0x150] sm:$0xf]  ;;  %v5153_v26 = vsel %vm14442_vm2, %v5148_v55, %v5152_v25  ;;  %v12116_v37 = vld [vmem:[%s14419_s14 + $0x160] sm:$0xf] }
 0x23c   : > { %v11566_v9 = vcombine.low %v5119_v30, %v5129_v62  ;;  %v16464_v28 = vsel %vm14609_vm5, %v9808_v52, %v9809_v5  ;;  %v5171_v30 = vor.u32 %v5170_v35, %v5166_v15  ;;  %v5179_v56 = vshrl.u32 %v11507_v4, 16  ;;  %v11512_v55 = vld [vmem:[%s14419_s14 + $0x164] sm:$0x1] }
 0x23d   : > { %13596 = vmatmul.mubr.bf16.gmra.mrb[32].mxu0 %v12201_v43  ;;  %v5138_v59 = vrot.slane %v5137_v10, 4  ;;  %v5160_v11 = vrot.slane %v5158_v40, 5  ;;  %v16478_v6 = vsel %vm14609_vm5, %v12160_v38, %v9813_v24  ;;  %v9815_v7 = vrot.slane %v9813_v24, 4  ;;  %v11513_v38 = vld [vmem:[%s14419_s14 + $0x168] sm:$0xf] }
 0x23e   : > { %13280 = vmatmul.mubr.bf16.gmra.mrb[36].mxu1 %v16364_v31  ;;  %v11506_v31 = vld [vmem:[%s14419_s14 + $0x14c] sm:$0x1]  ;;  %13599 = vmatprep.mubr.bf16.mxu0 %v12202_v47  ;;  %v5181_v16 = vrot.slane %v5179_v56, 4  ;;  %v5190_v25 = vrot.slane %v5188_v14, 5  ;;  %v9820_v52 = vrot.slane %v12116_v37, 5  ;;  %v9823_v63 = vrot.slane %v12117_v27, 5 }
 0x23f   : > { %13283 = vmatprep.mubr.bf16.mxu1 %v16393_v39  ;;  %v16453_v39 = vsel %vm14609_vm5, %v12159_v13, %v9806_v17  ;;  %v5143_v43 = vsel %vm14442_vm2, %v5138_v59, %v5142_v3  ;;  %v5174_v1 = vshll.u32 %v11506_v31, 16  ;;  %v5161_v47 = vor.u32 %v5160_v11, %v5157_v42  ;;  %v11511_v31 = vld [vmem:[%s14419_s14 + $0x160] sm:$0xf]  ;;  %v12122_v27 = vld [vmem:[%s14419_s14 + $0x178] sm:$0xf] }
 0x240   : > { %v12207_v51 = vcombine.low %v16453_v39, %v16464_v28  ;;  %v11567_v23 = vcombine.low %v5143_v43, %v5153_v26  ;;  %v5182_v3 = vshll.u32 %v11507_v4, 16  ;;  %v5192_v13 = vshrl.u32 %v11508_v41, 16  ;;  %v12119_v4 = vld [vmem:[%s14419_s14 + $0x16c] sm:$0xf] }
 0x241   : > { %v5176_v8 = vrot.slane %v5174_v1, 5  ;;  %v5162_v36 = vrot.slane %v5161_v47, 4  ;;  %v5198_v17 = vshll.u32 %v11509_v48, 16  ;;  %v5203_v53 = vshrl.u32 %v11510_v19, 16 }
 0x242   : > { %v5184_v10 = vrot.slane %v5182_v3, 5  ;;  %v5194_v60 = vrot.slane %v5192_v13, 4  ;;  %v5206_v58 = vshll.u32 %v11510_v19, 16  ;;  %v9822_v11 = vrot.slane %v9820_v52, 4  ;;  %v11515_v3 = vld [vmem:[%s14419_s14 + $0x170] sm:$0x1] }
 0x243   : > { %v5167_v62 = vsel %vm14442_vm2, %v5162_v36, %v5166_v15  ;;  %v5200_v59 = vrot.slane %v5198_v17, 5  ;;  %v5212_v2 = vshll.u32 %v11511_v31, 16  ;;  %v5205_v15 = vrot.slane %v5203_v53, 4 }
 0x244   : > { %v5185_v40 = vor.u32 %v5184_v10, %v5181_v16  ;;  %v5195_v61 = vor.u32 %v5194_v60, %v5190_v25  ;;  %v5208_v1 = vrot.slane %v5206_v58, 5  ;;  %v5216_v12 = vshrl.u32 %v11511_v31, 16  ;;  %v12121_v16 = vld [vmem:[%s14419_s14 + $0x174] sm:$0xe] }
 0x245   : > { %13600 = vmatmul.mubr.bf16.gmra.mrb[36].mxu0 %v12203_v20  ;;  %v12161_v20 = vrot.slane %v12115_v29, 9  ;;  %v16511_v47 = vsel %vm14609_vm5, %v9822_v11, %v9823_v63  ;;  %v5214_v35 = vrot.slane %v5212_v2, 5  ;;  %v5222_v41 = vshll.u32 %v11512_v55, 16  ;;  %v11518_v11 = vld [vmem:[%s14419_s14 + $0x17c] sm:$0x1] }
 0x246   : > { %13284 = vmatmul.mubr.bf16.gmra.mrb[40].mxu1 %v16420_v57  ;;  %v5172_v57 = vrot.slane %v5171_v30, 4  ;;  %13603 = vmatprep.mubr.bf16.mxu0 %v12204_v34  ;;  %v5186_v34 = vrot.slane %v5185_v40, 4  ;;  %v5196_v43 = vrot.slane %v5195_v61, 4  ;;  %v5209_v48 = vor.u32 %v5208_v1, %v5205_v15  ;;  %v11514_v30 = vld [vmem:[%s14419_s14 + $0x16c] sm:$0xf] }
 0x247   : > { %13287 = vmatprep.mubr.bf16.mxu1 %v11566_v9  ;;  %v16489_v9 = vsel %vm14609_vm5, %v9815_v7, %v9816_v18  ;;  %v16503_v42 = vsel %vm14609_vm5, %v12161_v20, %v9820_v52  ;;  %v5218_v36 = vrot.slane %v5216_v12, 4  ;;  %v5224_v56 = vrot.slane %v5222_v41, 5  ;;  %v11516_v20 = vld [vmem:[%s14419_s14 + $0x174] sm:$0xf]  ;;  %v11517_v52 = vld [vmem:[%s14419_s14 + $0x178] sm:$0xf] }
 0x248   : > { %v5177_v5 = vsel %vm14442_vm2, %v5172_v57, %v5176_v8  ;;  %v12208_v32 = vcombine.low %v16478_v6, %v16489_v9  ;;  %v5191_v26 = vsel %vm14442_vm2, %v5186_v34, %v5190_v25  ;;  %v12120_v8 = vld [vmem:[%s14419_s14 + $0x170] sm:$0x1]  ;;  %v12209_v24 = vcombine.low %v16503_v42, %v16511_v47  ;;  %v12123_v25 = vld [vmem:[%s14419_s14 + $0x17c] sm:$0x1]  ;;  %v11519_v6 = vld [vmem:[%s14419_s14 + $0x180] sm:$0xf] }
 0x249   : > { %v11568_v22 = vcombine.low %v5167_v62, %v5177_v5  ;;  %v12162_v29 = vrot.slane %v12118_v54, 9  ;;  %v9827_v7 = vrot.slane %v12119_v4, 5  ;;  %v5210_v14 = vrot.slane %v5209_v48, 4  ;;  %v12124_v4 = vld [vmem:[%s14419_s14 + $0x180] sm:$0xe] }
 0x24a   : > { %v5219_v37 = vor.u32 %v5218_v36, %v5214_v35  ;;  %v9830_v62 = vrot.slane %v12120_v8, 5  ;;  %v5227_v57 = vshrl.u32 %v11513_v38, 16  ;;  %v5236_v13 = vshll.u32 %v11514_v30, 16  ;;  %v12126_v48 = vld [vmem:[%s14419_s14 + $0x188] sm:$0x1] }
 0x24b   : > { %v16530_v44 = vsel %vm14609_vm5, %v12162_v29, %v9827_v7  ;;  %v9829_v45 = vrot.slane %v9827_v7, 4  ;;  %v5215_v0 = vsel %vm14442_vm2, %v5210_v14, %v5214_v35  ;;  %v5240_v10 = vshrl.u32 %v11514_v30, 16  ;;  %v11521_v14 = vld [vmem:[%s14419_s14 + $0x188] sm:$0x1]  ;;  %v11523_v42 = vld [vmem:[%s14419_s14 + $0x190] sm:$0xf] }
 0x24c   : > { %v5220_v46 = vrot.slane %v5219_v37, 4  ;;  %v5238_v5 = vrot.slane %v5236_v13, 5  ;;  %v5246_v60 = vshll.u32 %v11515_v3, 16  ;;  %v9834_v53 = vrot.slane %v12122_v27, 5 }
 0x24d   : > { %13604 = vmatmul.mubr.bf16.gmra.mrb[40].mxu0 %v12205_v50  ;;  %v5230_v50 = vshll.u32 %v11513_v38, 16  ;;  %v16538_v17 = vsel %vm14609_vm5, %v9829_v45, %v9830_v62  ;;  %v5242_v40 = vrot.slane %v5240_v10, 4  ;;  %v9837_v34 = vrot.slane %v12123_v25, 5  ;;  %v12127_v45 = vld [vmem:[%s14419_s14 + $0x18c] sm:$0xe] }
 0x24e   : > { %13288 = vmatmul.mubr.bf16.gmra.mrb[44].mxu1 %v11567_v23  ;;  %v5201_v23 = vsel %vm14442_vm2, %v5196_v43, %v5200_v59  ;;  %13607 = vmatprep.mubr.bf16.mxu0 %v12206_v21  ;;  %v5229_v21 = vrot.slane %v5227_v57, 4  ;;  %v5225_v31 = vsel %vm14442_vm2, %v5220_v46, %v5224_v56  ;;  %v12163_v59 = vrot.slane %v12121_v16, 9  ;;  %v12128_v46 = vld [vmem:[%s14419_s14 + $0x190] sm:$0xf] }
 0x24f   : > { %13291 = vmatprep.mubr.bf16.mxu1 %v11568_v22  ;;  %v11569_v18 = vcombine.low %v5191_v26, %v5201_v23  ;;  %v5232_v19 = vrot.slane %v5230_v50, 5  ;;  %v12210_v22 = vcombine.low %v16530_v44, %v16538_v17  ;;  %v11570_v61 = vcombine.low %v5215_v0, %v5225_v31 }
 0x250   : > { %v5248_v55 = vrot.slane %v5246_v60, 5  ;;  %v5243_v58 = vor.u32 %v5242_v40, %v5238_v5  ;;  %v5251_v2 = vshrl.u32 %v11516_v20, 16  ;;  %v5254_v54 = vshll.u32 %v11516_v20, 16 }
 0x251   : > { %v5233_v63 = vor.u32 %v5232_v19, %v5229_v21  ;;  %v16552_v15 = vsel %vm14609_vm5, %v12163_v59, %v9834_v53  ;;  %v9836_v1 = vrot.slane %v9834_v53, 4  ;;  %v5260_v12 = vshll.u32 %v11517_v52, 16  ;;  %v11522_v59 = vld [vmem:[%s14419_s14 + $0x18c] sm:$0xf] }
 0x252   : > { %v5244_v26 = vrot.slane %v5243_v58, 4  ;;  %v5253_v35 = vrot.slane %v5251_v2, 4  ;;  %v5256_v39 = vrot.slane %v5254_v54, 5  ;;  %v5264_v28 = vshrl.u32 %v11517_v52, 16  ;;  %v11524_v2 = vld [vmem:[%s14419_s14 + $0x194] sm:$0x1] }
 0x253   : > { %v5234_v43 = vrot.slane %v5233_v63, 4  ;;  %v16563_v8 = vsel %vm14609_vm5, %v9836_v1, %v9837_v34  ;;  %v5262_v38 = vrot.slane %v5260_v12, 5  ;;  %v5270_v23 = vshll.u32 %v11518_v11, 16  ;;  %v12130_v12 = vld [vmem:[%s14419_s14 + $0x198] sm:$0xe] }
 0x254   : > { %v5249_v9 = vsel %vm14442_vm2, %v5244_v26, %v5248_v55  ;;  %v5257_v36 = vor.u32 %v5256_v39, %v5253_v35  ;;  %v5266_v30 = vrot.slane %v5264_v28, 4  ;;  %v12164_v7 = vrot.slane %v12124_v4, 9  ;;  %v12131_v28 = vld [vmem:[%s14419_s14 + $0x19c] sm:$0xf] }
 0x255   : > { %13608 = vmatmul.mubr.bf16.gmra.mrb[44].mxu0 %v12207_v51  ;;  %v12125_v51 = vld [vmem:[%s14419_s14 + $0x184] sm:$0xf]  ;;  %v5239_v41 = vsel %vm14442_vm2, %v5234_v43, %v5238_v5  ;;  %v5272_v29 = vrot.slane %v5270_v23, 5  ;;  %v9844_v57 = vrot.slane %v12126_v48, 5  ;;  %v5275_v16 = vshrl.u32 %v11519_v6, 16 }
 0x256   : > { %13292 = vmatmul.mubr.bf16.gmra.mrb[48].mxu1 %v11569_v18  ;;  %13611 = vmatprep.mubr.bf16.mxu0 %v12208_v32  ;;  %v12211_v32 = vcombine.low %v16552_v15, %v16563_v8  ;;  %v11520_v18 = vld [vmem:[%s14419_s14 + $0x184] sm:$0xf]  ;;  %v11571_v56 = vcombine.low %v5239_v41, %v5249_v9  ;;  %v9841_v3 = vrot.slane %v12125_v51, 5  ;;  %v5258_v37 = vrot.slane %v5257_v36, 4  ;;  %v12129_v5 = vld [vmem:[%s14419_s14 + $0x194] sm:$0x1] }
 0x257   : > { %13295 = vmatprep.mubr.bf16.mxu1 %v11570_v61  ;;  %v5267_v62 = vor.u32 %v5266_v30, %v5262_v38  ;;  %v5278_v27 = vshll.u32 %v11519_v6, 16  ;;  %v5284_v0 = vshll.u32 %v11520_v18, 16  ;;  %v5277_v25 = vrot.slane %v5275_v16, 4  ;;  %v12132_v48 = vld [vmem:[%s14419_s14 + $0x1a0] sm:$0x1] }
 0x258   : > { %v9842_v50 = vsel %vm14609_vm5, %v12164_v7, %v9841_v3  ;;  %v9843_v13 = vrot.slane %v9841_v3, 4  ;;  %v5263_v21 = vsel %vm14442_vm2, %v5258_v37, %v5262_v38  ;;  %v5288_v19 = vshrl.u32 %v11520_v18, 16  ;;  %v11525_v6 = vld [vmem:[%s14419_s14 + $0x198] sm:$0xf]  ;;  %v11527_v16 = vld [vmem:[%s14419_s14 + $0x1a0] sm:$0x1] }
 0x259   : > { %v5268_v10 = vrot.slane %v5267_v62, 4  ;;  %v5280_v20 = vrot.slane %v5278_v27, 5  ;;  %v5286_v31 = vrot.slane %v5284_v0, 5  ;;  %v5294_v40 = vshll.u32 %v11521_v14, 16 }
 0x25a   : > { %v9845_v60 = vsel %vm14609_vm5, %v9843_v13, %v9844_v57  ;;  %v5290_v63 = vrot.slane %v5288_v19, 4  ;;  %v12165_v55 = vrot.slane %v12127_v45, 9  ;;  %v9848_v58 = vrot.slane %v12128_v46, 5 }
 0x25b   : > { %v5273_v52 = vsel %vm14442_vm2, %v5268_v10, %v5272_v29  ;;  %v12212_v61 = vcombine.low %v9842_v50, %v9845_v60  ;;  %v5296_v53 = vrot.slane %v5294_v40, 5  ;;  %v9851_v11 = vrot.slane %v12129_v5, 5  ;;  %v12134_v10 = vld [vmem:[%s14419_s14 + $0x1a8] sm:$0xf] }
 0x25c   : > { %v11572_v47 = vcombine.low %v5263_v21, %v5273_v52  ;;  %v5291_v34 = vor.u32 %v5290_v63, %v5286_v31  ;;  %v5299_v54 = vshrl.u32 %v11522_v59, 16  ;;  %v5302_v43 = vshll.u32 %v11522_v59, 16 }
 0x25d   : > { %13612 = vmatmul.mubr.bf16.gmra.mrb[48].mxu0 %v12209_v24  ;;  %v5281_v24 = vor.u32 %v5280_v20, %v5277_v25  ;;  %v9849_v17 = vsel %vm14609_vm5, %v12165_v55, %v9848_v58  ;;  %v5308_v1 = vshll.u32 %v11523_v42, 16  ;;  %v5312_v39 = vshrl.u32 %v11523_v42, 16  ;;  %v12135_v20 = vld [vmem:[%s14419_s14 + $0x1ac] sm:$0x1] }
 0x25e   : > { %13296 = vmatmul.mubr.bf16.gmra.mrb[52].mxu1 %v11571_v56  ;;  %13615 = vmatprep.mubr.bf16.mxu0 %v12210_v22  ;;  %v9850_v22 = vrot.slane %v9848_v58, 4  ;;  %v5292_v4 = vrot.slane %v5291_v34, 4  ;;  %v5301_v26 = vrot.slane %v5299_v54, 4  ;;  %v5304_v35 = vrot.slane %v5302_v43, 5  ;;  %v11526_v56 = vld [vmem:[%s14419_s14 + $0x19c] sm:$0xf] }
 0x25f   : > { %13299 = vmatprep.mubr.bf16.mxu1 %v11572_v47  ;;  %v5282_v44 = vrot.slane %v5281_v24, 4  ;;  %v5310_v38 = vrot.slane %v5308_v1, 5  ;;  %v5318_v23 = vshll.u32 %v11524_v2, 16  ;;  %v5314_v18 = vrot.slane %v5312_v39, 4 }
 0x260   : > { %v9852_v41 = vsel %vm14609_vm5, %v9850_v22, %v9851_v11  ;;  %v5297_v9 = vsel %vm14442_vm2, %v5292_v4, %v5296_v53  ;;  %v5305_v30 = vor.u32 %v5304_v35, %v5301_v26  ;;  %v12166_v3 = vrot.slane %v12130_v12, 9 }
 0x261   : > { %v5287_v51 = vsel %vm14442_vm2, %v5282_v44, %v5286_v31  ;;  %v12213_v36 = vcombine.low %v9849_v17, %v9852_v41  ;;  %v5320_v7 = vrot.slane %v5318_v23, 5  ;;  %v9855_v14 = vrot.slane %v12131_v28, 5 }
 0x262   : > { %v11573_v29 = vcombine.low %v5287_v51, %v5297_v9  ;;  %v5306_v37 = vrot.slane %v5305_v30, 4  ;;  %v5315_v62 = vor.u32 %v5314_v18, %v5310_v38  ;;  %v9858_v57 = vrot.slane %v12132_v48, 5 }
 0x263   : > { %v5323_v45 = vshrl.u32 %v11525_v6, 16  ;;  %v9856_v50 = vsel %vm14609_vm5, %v12166_v3, %v9855_v14  ;;  %v9857_v13 = vrot.slane %v9855_v14, 4  ;;  %v5326_v15 = vshll.u32 %v11525_v6, 16 }
 0x264   : > { %v5332_v8 = vshll.u32 %v11526_v56, 16  ;;  %v5311_v27 = vsel %vm14442_vm2, %v5306_v37, %v5310_v38  ;;  %v5316_v0 = vrot.slane %v5315_v62, 4  ;;  %v5336_v21 = vshrl.u32 %v11526_v56, 16 }
 0x265   : > { %13616 = vmatmul.mubr.bf16.gmra.mrb[52].mxu0 %v12211_v32  ;;  %v12133_v32 = vld [vmem:[%s14419_s14 + $0x1a4] sm:$0xe]  ;;  %v5325_v46 = vrot.slane %v5323_v45, 4  ;;  %v9859_v25 = vsel %vm14609_vm5, %v9857_v13, %v9858_v57  ;;  %v5328_v19 = vrot.slane %v5326_v15, 5  ;;  %v5342_v60 = vshll.u32 %v11527_v16, 16 }
 0x266   : > { %13619 = vmatprep.mubr.bf16.mxu0 %v12212_v61  ;;  %13300 = vmatmul.mubr.bf16.gmra.mrb[56].mxu1 %v11573_v29  ;;  %v5334_v5 = vrot.slane %v5332_v8, 5  ;;  %v5321_v31 = vsel %vm14442_vm2, %v5316_v0, %v5320_v7  ;;  %v12214_v40 = vcombine.low %v9856_v50, %v9859_v25  ;;  %v5338_v59 = vrot.slane %v5336_v21, 4  ;;  %v16680_v8 = vld [vmem:[%s16813_s2] ss:$0 sm:$0xff] }
 0x267   : > { %v12167_v52 = vrot.slane %v12133_v32, 9  ;;  %v11574_v61 = vcombine.low %v5311_v27, %v5321_v31  ;;  %v5329_v63 = vor.u32 %v5328_v19, %v5325_v46  ;;  %v9862_v55 = vrot.slane %v12134_v10, 5 }
 0x268   : > { %v5339_v42 = vor.u32 %v5338_v59, %v5334_v5  ;;  %v5344_v47 = vrot.slane %v5342_v60, 5  ;;  %v9865_v24 = vrot.slane %v12135_v20, 5 }
 0x269   : > { %13303 = vmatprep.mubr.bf16.mxu1 %v11574_v61  ;;  %v5330_v53 = vrot.slane %v5329_v63, 4  ;;  %v9864_v58 = vrot.slane %v9862_v55, 4  ;;  %v9863_v11 = vsel %vm14609_vm5, %v12167_v52, %v9862_v55 }
 0x26a   : > { %v5340_v34 = vrot.slane %v5339_v42, 4 }
 0x26b   : > { %v5335_v2 = vsel %vm14442_vm2, %v5330_v53, %v5334_v5  ;;  %v9866_v54 = vsel %vm14609_vm5, %v9864_v58, %v9865_v24 }
 0x26c   : > { %v5345_v43 = vsel %vm14442_vm2, %v5340_v34, %v5344_v47  ;;  %v12215_v17 = vcombine.low %v9863_v11, %v9866_v54 }
 0x26d   : > { %13620 = vmatmul.mubr.bf16.gmra.mrb[56].mxu0 %v12213_v36  ;;  %v11575_v44 = vcombine.low %v5335_v2, %v5345_v43 }
 0x26e   : > { %13623 = vmatprep.mubr.bf16.mxu0 %v12214_v40 }
 0x26f   : > { %13304 = vmatmul.mubr.bf16.gmra.mrb[60].mxu1 %v11575_v44 }
 0x275   : > { %13624 = vmatmul.mubr.bf16.gmra.mrb[60].mxu0 %v12215_v17 }
 0x289   : > { %v13165_v22 = vpop.f32.mrb[0].mxu1 }
 0x28a   : > { %v4099_v1 = vpop.f32.mrb[1].mxu1 }
 0x28b   : > { %v13166_v12 = vpop.f32.mrb[2].mxu1 }
 0x28c   : > { %v4102_v4 = vpop.f32.mrb[3].mxu1 }
 0x291   : > { %v13169_v26 = vpop.f32.mrb[4].mxu1 }
 0x292   : > { %v4115_v35 = vpop.f32.mrb[5].mxu1 }
 0x293   : > { %v13170_v39 = vpop.f32.mrb[6].mxu1 }
 0x294   : > { %v4118_v28 = vpop.f32.mrb[7].mxu1 }
 0x299   : > { %v16629_v51 = vpop.f32.mrb[8].mxu1 }
 0x29a   : > { %v16631_v41 = vpop.f32.mrb[9].mxu1 }
 0x29b   : > { %v16633_v49 = vpop.f32.mrb[10].mxu1 }
 0x29c   : > { %v16635_v33 = vpop.f32.mrb[11].mxu1 }
 0x2a1   : > { %v16637_v38 = vpop.f32.mrb[12].mxu1 }
 0x2a2   : > { %v16639_v23 = vpop.f32.mrb[13].mxu1 }
 0x2a3   : > { %v16641_v48 = vpop.f32.mrb[14].mxu1 }
 0x2a4   : > { %v16643_v6 = vpop.f32.mrb[15].mxu1 }
 0x2a9   : > { %v16645_v9 = vpop.f32.mrb[16].mxu1 }
 0x2aa   : > { %v16647_v36 = vpop.f32.mrb[17].mxu1 }
 0x2ab   : > { %v16649_v30 = vpop.f32.mrb[18].mxu1 }
 0x2ac   : > { %v16651_v18 = vpop.f32.mrb[19].mxu1 }
 0x2b1   : > { %v16653_v56 = vpop.f32.mrb[20].mxu1 }
 0x2b2   : > { %v16655_v29 = vpop.f32.mrb[21].mxu1 }
 0x2b3   : > { %v16657_v7 = vpop.f32.mrb[22].mxu1 }
 0x2b4   : > { %v16659_v3 = vpop.f32.mrb[23].mxu1 }
 0x2b9   : > { %v16661_v14 = vpop.f32.mrb[24].mxu1 }
 0x2ba   : > { %v16663_v37 = vpop.f32.mrb[25].mxu1 }
 0x2bb   : > { %v16665_v62 = vpop.f32.mrb[26].mxu1 }
 0x2bc   : > { %v16667_v57 = vpop.f32.mrb[27].mxu1 }
 0x2c1   : > { %v16669_v16 = vpop.f32.mrb[28].mxu1 }
 0x2c2   : > { %v16671_v45 = vpop.f32.mrb[29].mxu1 }
 0x2c3   : > { %v16673_v50 = vpop.f32.mrb[30].mxu1 }
 0x2c4   : > { %v16675_v13 = vpop.f32.mrb[31].mxu1 }
 0x2d0   : > { %v13565_v15 = vpop.f32.mrb[0].mxu0 }
 0x2d1   : > { %v13643_v32 = vadd.f32 %v13565_v15, %v13165_v22  ;;  %v10158_v27 = vpop.f32.mrb[1].mxu0 }
 0x2d2   : > { %v13644_v0 = vadd.f32 %v10158_v27, %v4099_v1  ;;  %v13566_v46 = vpop.f32.mrb[2].mxu0 }
 0x2d3   : > { %v10614_v21 = vadd.f32 %v13643_v32, %v16680_v8  ;;  %v13645_v10 = vadd.f32 %v13566_v46, %v13166_v12  ;;  %v10161_v25 = vpop.f32.mrb[3].mxu0 }
 0x2d4   : > { %v10612_v19 = vadd.f32 %v13644_v0, %v16680_v8  ;;  %v13646_v5 = vadd.f32 %v10161_v25, %v4102_v4 }
 0x2d5   : > { %v10615_v60 = vadd.f32 %v13645_v10, %v16680_v8  ;;  %v10678_v31 = vmax.f32 %v10614_v21, 0.0 }
 0x2d6   : > { %v10613_v20 = vadd.f32 %v13646_v5, %v16680_v8  ;;  %v10676_v59 = vmax.f32 %v10612_v19, 0.0 }
 0x2d7   : > { %v10679_v40 = vmax.f32 %v10615_v60, 0.0 }
 0x2d8   : > { %v10677_v52 = vmax.f32 %v10613_v20, 0.0  ;;  %v13569_v61 = vpop.f32.mrb[4].mxu0 }
 0x2d9   : > { %v12364_v63 = vpack.c.bf16 %v10679_v40, %v10678_v31  ;;  %v13647_v55 = vadd.f32 %v13569_v61, %v13169_v26  ;;  %v10174_v42 = vpop.f32.mrb[5].mxu0 }
 0x2da   : > { %v12359_v47 = vpack.c.bf16 %v10677_v52, %v10676_v59  ;;  %v13648_v24 = vadd.f32 %v10174_v42, %v4115_v35  ;;  %v13570_v53 = vpop.f32.mrb[6].mxu0 }
 0x2db   : > { %12516 = vst [vmem:[%s16690_s22 + $0x8] sm:$0xff] %v12364_v63   ;;  %v10618_v58 = vadd.f32 %v13647_v55, %v16680_v8  ;;  %v13649_v34 = vadd.f32 %v13570_v53, %v13170_v39  ;;  %v10177_v11 = vpop.f32.mrb[7].mxu0 }
 0x2dc   : > { %12360 = vst [vmem:[%s16690_s22] sm:$0xff] %v12359_v47   ;;  %v10616_v2 = vadd.f32 %v13648_v24, %v16680_v8  ;;  %v13650_v54 = vadd.f32 %v10177_v11, %v4118_v28 }
 0x2dd   : > { %v10619_v43 = vadd.f32 %v13649_v34, %v16680_v8  ;;  %v10682_v17 = vmax.f32 %v10618_v58, 0.0 }
 0x2de   : > { %v10617_v44 = vadd.f32 %v13650_v54, %v16680_v8  ;;  %v10680_v1 = vmax.f32 %v10616_v2, 0.0 }
 0x2df   : > { %v10683_v22 = vmax.f32 %v10619_v43, 0.0 }
 0x2e0   : > { %v10681_v12 = vmax.f32 %v10617_v44, 0.0  ;;  %v13573_v4 = vpop.f32.mrb[8].mxu0 }
 0x2e1   : > { %v12374_v26 = vpack.c.bf16 %v10683_v22, %v10682_v17  ;;  %v13651_v35 = vadd.f32 %v13573_v4, %v16629_v51  ;;  %v10190_v39 = vpop.f32.mrb[9].mxu0 }
 0x2e2   : > { %v12369_v15 = vpack.c.bf16 %v10681_v12, %v10680_v1  ;;  %v13652_v32 = vadd.f32 %v10190_v39, %v16631_v41  ;;  %v13574_v27 = vpop.f32.mrb[10].mxu0 }
 0x2e3   : > { %12518 = vst [vmem:[%s16690_s22 + $0x18] sm:$0xff] %v12374_v26   ;;  %v10622_v28 = vadd.f32 %v13651_v35, %v16680_v8  ;;  %v13653_v0 = vadd.f32 %v13574_v27, %v16633_v49  ;;  %v10193_v46 = vpop.f32.mrb[11].mxu0 }
 0x2e4   : > { %12517 = vst [vmem:[%s16690_s22 + $0x10] sm:$0xff] %v12369_v15   ;;  %v10620_v21 = vadd.f32 %v13652_v32, %v16680_v8  ;;  %v13654_v10 = vadd.f32 %v10193_v46, %v16635_v33 }
 0x2e5   : > { %v10623_v25 = vadd.f32 %v13653_v0, %v16680_v8  ;;  %v10686_v19 = vmax.f32 %v10622_v28, 0.0 }
 0x2e6   : > { %v10621_v51 = vadd.f32 %v13654_v10, %v16680_v8  ;;  %v10684_v5 = vmax.f32 %v10620_v21, 0.0 }
 0x2e7   : > { %v10687_v41 = vmax.f32 %v10623_v25, 0.0 }
 0x2e8   : > { %v10685_v60 = vmax.f32 %v10621_v51, 0.0  ;;  %v13577_v20 = vpop.f32.mrb[12].mxu0 }
 0x2e9   : > { %v12384_v31 = vpack.c.bf16 %v10687_v41, %v10686_v19  ;;  %v13655_v49 = vadd.f32 %v13577_v20, %v16637_v38  ;;  %v10206_v40 = vpop.f32.mrb[13].mxu0 }
 0x2ea   : > { %v12379_v59 = vpack.c.bf16 %v10685_v60, %v10684_v5  ;;  %v13656_v52 = vadd.f32 %v10206_v40, %v16639_v23  ;;  %v13578_v61 = vpop.f32.mrb[14].mxu0 }
 0x2eb   : > { %12520 = vst [vmem:[%s16690_s22 + $0x28] sm:$0xff] %v12384_v31   ;;  %v10626_v33 = vadd.f32 %v13655_v49, %v16680_v8  ;;  %v13657_v63 = vadd.f32 %v13578_v61, %v16641_v48  ;;  %v10209_v55 = vpop.f32.mrb[15].mxu0 }
 0x2ec   : > { %12519 = vst [vmem:[%s16690_s22 + $0x20] sm:$0xff] %v12379_v59   ;;  %v10624_v42 = vadd.f32 %v13656_v52, %v16680_v8  ;;  %v13658_v47 = vadd.f32 %v10209_v55, %v16643_v6 }
 0x2ed   : > { %v10627_v24 = vadd.f32 %v13657_v63, %v16680_v8  ;;  %v10690_v53 = vmax.f32 %v10626_v33, 0.0 }
 0x2ee   : > { %v10625_v38 = vadd.f32 %v13658_v47, %v16680_v8  ;;  %v10688_v58 = vmax.f32 %v10624_v42, 0.0 }
 0x2ef   : > { %v10691_v23 = vmax.f32 %v10627_v24, 0.0 }
 0x2f0   : > { %v10689_v34 = vmax.f32 %v10625_v38, 0.0  ;;  %v13581_v11 = vpop.f32.mrb[16].mxu0 }
 0x2f1   : > { %v12394_v2 = vpack.c.bf16 %v10691_v23, %v10690_v53  ;;  %v13659_v48 = vadd.f32 %v13581_v11, %v16645_v9  ;;  %v10222_v54 = vpop.f32.mrb[17].mxu0 }
 0x2f2   : > { %v12389_v43 = vpack.c.bf16 %v10689_v34, %v10688_v58  ;;  %v13660_v44 = vadd.f32 %v10222_v54, %v16647_v36  ;;  %v13582_v17 = vpop.f32.mrb[18].mxu0 }
 0x2f3   : > { %12522 = vst [vmem:[%s16690_s22 + $0x38] sm:$0xff] %v12394_v2   ;;  %v10630_v6 = vadd.f32 %v13659_v48, %v16680_v8  ;;  %v13661_v22 = vadd.f32 %v13582_v17, %v16649_v30  ;;  %v10225_v1 = vpop.f32.mrb[19].mxu0 }
 0x2f4   : > { %12521 = vst [vmem:[%s16690_s22 + $0x30] sm:$0xff] %v12389_v43   ;;  %v10628_v12 = vadd.f32 %v13660_v44, %v16680_v8  ;;  %v13662_v4 = vadd.f32 %v10225_v1, %v16651_v18 }
 0x2f5   : > { %v10631_v26 = vadd.f32 %v13661_v22, %v16680_v8  ;;  %v10694_v35 = vmax.f32 %v10630_v6, 0.0 }
 0x2f6   : > { %v10629_v9 = vadd.f32 %v13662_v4, %v16680_v8  ;;  %v10692_v39 = vmax.f32 %v10628_v12, 0.0 }
 0x2f7   : > { %v10695_v36 = vmax.f32 %v10631_v26, 0.0 }
 0x2f8   : > { %v10693_v15 = vmax.f32 %v10629_v9, 0.0  ;;  %v13585_v32 = vpop.f32.mrb[20].mxu0 }
 0x2f9   : > { %v12404_v27 = vpack.c.bf16 %v10695_v36, %v10694_v35  ;;  %v13663_v30 = vadd.f32 %v13585_v32, %v16653_v56  ;;  %v10238_v28 = vpop.f32.mrb[21].mxu0 }
 0x2fa   : > { %v12399_v0 = vpack.c.bf16 %v10693_v15, %v10692_v39  ;;  %v13664_v46 = vadd.f32 %v10238_v28, %v16655_v29  ;;  %v13586_v21 = vpop.f32.mrb[22].mxu0 }
 0x2fb   : > { %12524 = vst [vmem:[%s16690_s22 + $0x48] sm:$0xff] %v12404_v27   ;;  %v10634_v18 = vadd.f32 %v13663_v30, %v16680_v8  ;;  %v13665_v10 = vadd.f32 %v13586_v21, %v16657_v7  ;;  %v10241_v25 = vpop.f32.mrb[23].mxu0 }
 0x2fc   : > { %12523 = vst [vmem:[%s16690_s22 + $0x40] sm:$0xff] %v12399_v0   ;;  %v10632_v51 = vadd.f32 %v13664_v46, %v16680_v8  ;;  %v13666_v19 = vadd.f32 %v10241_v25, %v16659_v3 }
 0x2fd   : > { %v10635_v41 = vadd.f32 %v13665_v10, %v16680_v8  ;;  %v10698_v5 = vmax.f32 %v10634_v18, 0.0 }
 0x2fe   : > { %v10633_v56 = vadd.f32 %v13666_v19, %v16680_v8  ;;  %v10696_v60 = vmax.f32 %v10632_v51, 0.0 }
 0x2ff   : > { %v10699_v29 = vmax.f32 %v10635_v41, 0.0 }
 0x300   : > { %v10697_v20 = vmax.f32 %v10633_v56, 0.0  ;;  %v13589_v31 = vpop.f32.mrb[24].mxu0 }
 0x301   : > { %v12414_v49 = vpack.c.bf16 %v10699_v29, %v10698_v5  ;;  %v13667_v7 = vadd.f32 %v13589_v31, %v16661_v14  ;;  %v10254_v40 = vpop.f32.mrb[25].mxu0 }
 0x302   : > { %v12409_v59 = vpack.c.bf16 %v10697_v20, %v10696_v60  ;;  %v13668_v52 = vadd.f32 %v10254_v40, %v16663_v37  ;;  %v13590_v61 = vpop.f32.mrb[26].mxu0 }
 0x303   : > { %12526 = vst [vmem:[%s16690_s22 + $0x58] sm:$0xff] %v12414_v49   ;;  %v10638_v3 = vadd.f32 %v13667_v7, %v16680_v8  ;;  %v13669_v33 = vadd.f32 %v13590_v61, %v16665_v62  ;;  %v10257_v63 = vpop.f32.mrb[27].mxu0 }
 0x304   : > { %12525 = vst [vmem:[%s16690_s22 + $0x50] sm:$0xff] %v12409_v59   ;;  %v10636_v55 = vadd.f32 %v13668_v52, %v16680_v8  ;;  %v13670_v42 = vadd.f32 %v10257_v63, %v16667_v57 }
 0x305   : > { %v10639_v47 = vadd.f32 %v13669_v33, %v16680_v8  ;;  %v10702_v37 = vmax.f32 %v10638_v3, 0.0 }
 0x306   : > { %v10637_v14 = vadd.f32 %v13670_v42, %v16680_v8  ;;  %v10700_v58 = vmax.f32 %v10636_v55, 0.0 }
 0x307   : > { %v10703_v53 = vmax.f32 %v10639_v47, 0.0 }
 0x308   : > { %v10701_v34 = vmax.f32 %v10637_v14, 0.0  ;;  %v13593_v62 = vpop.f32.mrb[28].mxu0 }
 0x309   : > { %v13277_v24 = vpop.f32.mrb[32].mxu1  ;;  %v12424_v2 = vpack.c.bf16 %v10703_v53, %v10702_v37  ;;  %v13671_v48 = vadd.f32 %v13593_v62, %v16669_v16  ;;  %v10270_v54 = vpop.f32.mrb[29].mxu0 }
 0x30a   : > { %v5765_v38 = vpop.f32.mrb[33].mxu1  ;;  %v12419_v57 = vpack.c.bf16 %v10701_v34, %v10700_v58  ;;  %v13672_v43 = vadd.f32 %v10270_v54, %v16671_v45  ;;  %v13594_v44 = vpop.f32.mrb[30].mxu0 }
 0x30b   : > { %v13278_v23 = vpop.f32.mrb[34].mxu1  ;;  %12528 = vst [vmem:[%s16690_s22 + $0x68] sm:$0xff] %v12424_v2   ;;  %v10642_v17 = vadd.f32 %v13671_v48, %v16680_v8  ;;  %v13673_v6 = vadd.f32 %v13594_v44, %v16673_v50  ;;  %v10273_v22 = vpop.f32.mrb[31].mxu0 }
 0x30c   : > { %v5768_v11 = vpop.f32.mrb[35].mxu1  ;;  %12527 = vst [vmem:[%s16690_s22 + $0x60] sm:$0xff] %v12419_v57   ;;  %v10640_v1 = vadd.f32 %v13672_v43, %v16680_v8  ;;  %v13674_v12 = vadd.f32 %v10273_v22, %v16675_v13 }
 0x30d   : > { %v10643_v4 = vadd.f32 %v13673_v6, %v16680_v8  ;;  %v10706_v45 = vmax.f32 %v10642_v17, 0.0 }
 0x30e   : > { %v10641_v16 = vadd.f32 %v13674_v12, %v16680_v8  ;;  %v10704_v39 = vmax.f32 %v10640_v1, 0.0 }
 0x30f   : > { %v10707_v35 = vmax.f32 %v10643_v4, 0.0 }
 0x310   : > { %v10705_v15 = vmax.f32 %v10641_v16, 0.0  ;;  %v13597_v50 = vpop.f32.mrb[32].mxu0 }
 0x311   : > { %v13281_v26 = vpop.f32.mrb[36].mxu1  ;;  %v12434_v27 = vpack.c.bf16 %v10707_v35, %v10706_v45  ;;  %v13675_v30 = vadd.f32 %v13597_v50, %v13277_v24  ;;  %v10286_v28 = vpop.f32.mrb[33].mxu0 }
 0x312   : > { %v5781_v9 = vpop.f32.mrb[37].mxu1  ;;  %v12429_v0 = vpack.c.bf16 %v10705_v15, %v10704_v39  ;;  %v13676_v13 = vadd.f32 %v10286_v28, %v5765_v38  ;;  %v13598_v46 = vpop.f32.mrb[34].mxu0 }
 0x313   : > { %v13282_v36 = vpop.f32.mrb[38].mxu1  ;;  %12530 = vst [vmem:[%s16690_s22 + $0x78] sm:$0xff] %v12434_v27   ;;  %v10646_v21 = vadd.f32 %v13675_v30, %v16680_v8  ;;  %v13677_v18 = vadd.f32 %v13598_v46, %v13278_v23  ;;  %v10289_v10 = vpop.f32.mrb[35].mxu0 }
 0x314   : > { %v5784_v32 = vpop.f32.mrb[39].mxu1  ;;  %12529 = vst [vmem:[%s16690_s22 + $0x70] sm:$0xff] %v12429_v0   ;;  %v10644_v25 = vadd.f32 %v13676_v13, %v16680_v8  ;;  %v13678_v51 = vadd.f32 %v10289_v10, %v5768_v11 }
 0x315   : > { %v10647_v19 = vadd.f32 %v13677_v18, %v16680_v8  ;;  %v10710_v29 = vmax.f32 %v10646_v21, 0.0 }
 0x316   : > { %v10645_v56 = vadd.f32 %v13678_v51, %v16680_v8  ;;  %v10708_v31 = vmax.f32 %v10644_v25, 0.0 }
 0x317   : > { %v10711_v60 = vmax.f32 %v10647_v19, 0.0 }
 0x318   : > { %v10709_v49 = vmax.f32 %v10645_v56, 0.0  ;;  %v13601_v7 = vpop.f32.mrb[36].mxu0 }
 0x319   : > { %v13285_v41 = vpop.f32.mrb[40].mxu1  ;;  %v12444_v59 = vpack.c.bf16 %v10711_v60, %v10710_v29  ;;  %v13679_v52 = vadd.f32 %v13601_v7, %v13281_v26  ;;  %v10302_v61 = vpop.f32.mrb[37].mxu0 }
 0x31a   : > { %v5797_v5 = vpop.f32.mrb[41].mxu1  ;;  %v12439_v3 = vpack.c.bf16 %v10709_v49, %v10708_v31  ;;  %v13680_v33 = vadd.f32 %v10302_v61, %v5781_v9  ;;  %v13602_v63 = vpop.f32.mrb[38].mxu0 }
 0x31b   : > { %v13286_v20 = vpop.f32.mrb[42].mxu1  ;;  %12532 = vst [vmem:[%s16690_s22 + $0x88] sm:$0xff] %v12444_v59   ;;  %v10650_v55 = vadd.f32 %v13679_v52, %v16680_v8  ;;  %v13681_v42 = vadd.f32 %v13602_v63, %v13282_v36  ;;  %v10305_v47 = vpop.f32.mrb[39].mxu0 }
 0x31c   : > { %v5800_v40 = vpop.f32.mrb[43].mxu1  ;;  %12531 = vst [vmem:[%s16690_s22 + $0x80] sm:$0xff] %v12439_v3   ;;  %v10648_v24 = vadd.f32 %v13680_v33, %v16680_v8  ;;  %v13682_v14 = vadd.f32 %v10305_v47, %v5784_v32 }
 0x31d   : > { %v10651_v38 = vadd.f32 %v13681_v42, %v16680_v8  ;;  %v10714_v58 = vmax.f32 %v10650_v55, 0.0 }
 0x31e   : > { %v10649_v53 = vadd.f32 %v13682_v14, %v16680_v8  ;;  %v10712_v11 = vmax.f32 %v10648_v24, 0.0 }
 0x31f   : > { %v10715_v34 = vmax.f32 %v10651_v38, 0.0 }
 0x320   : > { %v10713_v2 = vmax.f32 %v10649_v53, 0.0  ;;  %v13605_v48 = vpop.f32.mrb[40].mxu0 }
 0x321   : > { %v13289_v37 = vpop.f32.mrb[44].mxu1  ;;  %v12454_v57 = vpack.c.bf16 %v10715_v34, %v10714_v58  ;;  %v13683_v43 = vadd.f32 %v13605_v48, %v13285_v41  ;;  %v10318_v44 = vpop.f32.mrb[41].mxu0 }
 0x322   : > { %v5813_v23 = vpop.f32.mrb[45].mxu1  ;;  %v12449_v17 = vpack.c.bf16 %v10713_v2, %v10712_v11  ;;  %v13684_v6 = vadd.f32 %v10318_v44, %v5797_v5  ;;  %v13606_v22 = vpop.f32.mrb[42].mxu0 }
 0x323   : > { %v13290_v62 = vpop.f32.mrb[46].mxu1  ;;  %12534 = vst [vmem:[%s16690_s22 + $0x98] sm:$0xff] %v12454_v57   ;;  %v10654_v1 = vadd.f32 %v13683_v43, %v16680_v8  ;;  %v13685_v12 = vadd.f32 %v13606_v22, %v13286_v20  ;;  %v10321_v4 = vpop.f32.mrb[43].mxu0 }
 0x324   : > { %v5816_v54 = vpop.f32.mrb[47].mxu1  ;;  %12533 = vst [vmem:[%s16690_s22 + $0x90] sm:$0xff] %v12449_v17   ;;  %v10652_v26 = vadd.f32 %v13684_v6, %v16680_v8  ;;  %v13686_v16 = vadd.f32 %v10321_v4, %v5800_v40 }
 0x325   : > { %v10655_v9 = vadd.f32 %v13685_v12, %v16680_v8  ;;  %v10718_v39 = vmax.f32 %v10654_v1, 0.0 }
 0x326   : > { %v10653_v35 = vadd.f32 %v13686_v16, %v16680_v8  ;;  %v10716_v32 = vmax.f32 %v10652_v26, 0.0 }
 0x327   : > { %v10719_v15 = vmax.f32 %v10655_v9, 0.0 }
 0x328   : > { %v10717_v27 = vmax.f32 %v10653_v35, 0.0  ;;  %v13609_v30 = vpop.f32.mrb[44].mxu0 }
 0x329   : > { %v13293_v45 = vpop.f32.mrb[48].mxu1  ;;  %v12464_v0 = vpack.c.bf16 %v10719_v15, %v10718_v39  ;;  %v13687_v13 = vadd.f32 %v13609_v30, %v13289_v37  ;;  %v10334_v46 = vpop.f32.mrb[45].mxu0 }
 0x32a   : > { %v5829_v36 = vpop.f32.mrb[49].mxu1  ;;  %v12459_v21 = vpack.c.bf16 %v10717_v27, %v10716_v32  ;;  %v13688_v18 = vadd.f32 %v10334_v46, %v5813_v23  ;;  %v13610_v10 = vpop.f32.mrb[46].mxu0 }
 0x32b   : > { %v13294_v50 = vpop.f32.mrb[50].mxu1  ;;  %12536 = vst [vmem:[%s16690_s22 + $0xa8] sm:$0xff] %v12464_v0   ;;  %v10658_v25 = vadd.f32 %v13687_v13, %v16680_v8  ;;  %v13689_v51 = vadd.f32 %v13610_v10, %v13290_v62  ;;  %v10337_v19 = vpop.f32.mrb[47].mxu0 }
 0x32c   : > { %v5832_v28 = vpop.f32.mrb[51].mxu1  ;;  %12535 = vst [vmem:[%s16690_s22 + $0xa0] sm:$0xff] %v12459_v21   ;;  %v10656_v41 = vadd.f32 %v13688_v18, %v16680_v8  ;;  %v13690_v56 = vadd.f32 %v10337_v19, %v5816_v54 }
 0x32d   : > { %v10659_v5 = vadd.f32 %v13689_v51, %v16680_v8  ;;  %v10722_v20 = vmax.f32 %v10658_v25, 0.0 }
 0x32e   : > { %v10657_v29 = vadd.f32 %v13690_v56, %v16680_v8  ;;  %v10720_v7 = vmax.f32 %v10656_v41, 0.0 }
 0x32f   : > { %v10723_v31 = vmax.f32 %v10659_v5, 0.0 }
 0x330   : > { %v10721_v40 = vmax.f32 %v10657_v29, 0.0  ;;  %v13613_v59 = vpop.f32.mrb[48].mxu0 }
 0x331   : > { %v13297_v60 = vpop.f32.mrb[52].mxu1  ;;  %v12474_v61 = vpack.c.bf16 %v10723_v31, %v10722_v20  ;;  %v13691_v3 = vadd.f32 %v13613_v59, %v13293_v45  ;;  %v10350_v33 = vpop.f32.mrb[49].mxu0 }
 0x332   : > { %v5845_v49 = vpop.f32.mrb[53].mxu1  ;;  %v12469_v55 = vpack.c.bf16 %v10721_v40, %v10720_v7  ;;  %v13692_v42 = vadd.f32 %v10350_v33, %v5829_v36  ;;  %v13614_v47 = vpop.f32.mrb[50].mxu0 }
 0x333   : > { %v13298_v52 = vpop.f32.mrb[54].mxu1  ;;  %12538 = vst [vmem:[%s16690_s22 + $0xb8] sm:$0xff] %v12474_v61   ;;  %v10662_v24 = vadd.f32 %v13691_v3, %v16680_v8  ;;  %v13693_v14 = vadd.f32 %v13614_v47, %v13294_v50  ;;  %v10353_v38 = vpop.f32.mrb[51].mxu0 }
 0x334   : > { %v5848_v63 = vpop.f32.mrb[55].mxu1  ;;  %12537 = vst [vmem:[%s16690_s22 + $0xb0] sm:$0xff] %v12469_v55   ;;  %v10660_v37 = vadd.f32 %v13692_v42, %v16680_v8  ;;  %v13694_v53 = vadd.f32 %v10353_v38, %v5832_v28 }
 0x335   : > { %v10663_v23 = vadd.f32 %v13693_v14, %v16680_v8  ;;  %v10726_v34 = vmax.f32 %v10662_v24, 0.0 }
 0x336   : > { %v10661_v58 = vadd.f32 %v13694_v53, %v16680_v8  ;;  %v10724_v11 = vmax.f32 %v10660_v37, 0.0 }
 0x337   : > { %v10727_v62 = vmax.f32 %v10663_v23, 0.0 }
 0x338   : > { %v10725_v2 = vmax.f32 %v10661_v58, 0.0  ;;  %v13617_v48 = vpop.f32.mrb[52].mxu0 }
 0x339   : > { %v12484_v54 = vpack.c.bf16 %v10727_v62, %v10726_v34  ;;  %v13695_v57 = vadd.f32 %v13617_v48, %v13297_v60  ;;  %v10366_v43 = vpop.f32.mrb[53].mxu0  ;;  %v13301_v22 = vpop.f32.mrb[56].mxu1 }
 0x33a   : > { %v12479_v44 = vpack.c.bf16 %v10725_v2, %v10724_v11  ;;  %v13696_v17 = vadd.f32 %v10366_v43, %v5845_v49  ;;  %v13618_v6 = vpop.f32.mrb[54].mxu0  ;;  %v5861_v26 = vpop.f32.mrb[57].mxu1 }
 0x33b   : > { %12540 = vst [vmem:[%s16690_s22 + $0xc8] sm:$0xff] %v12484_v54   ;;  %v10666_v1 = vadd.f32 %v13695_v57, %v16680_v8  ;;  %v13697_v12 = vadd.f32 %v13618_v6, %v13298_v52  ;;  %v10369_v4 = vpop.f32.mrb[55].mxu0  ;;  %v13302_v45 = vpop.f32.mrb[58].mxu1 }
 0x33c   : > { %12539 = vst [vmem:[%s16690_s22 + $0xc0] sm:$0xff] %v12479_v44   ;;  %v10664_v16 = vadd.f32 %v13696_v17, %v16680_v8  ;;  %v13698_v9 = vadd.f32 %v10369_v4, %v5848_v63  ;;  %v5864_v36 = vpop.f32.mrb[59].mxu1 }
 0x33d   : > { %v10667_v35 = vadd.f32 %v13697_v12, %v16680_v8  ;;  %v10730_v15 = vmax.f32 %v10666_v1, 0.0 }
 0x33e   : > { %v10665_v39 = vadd.f32 %v13698_v9, %v16680_v8  ;;  %v10728_v32 = vmax.f32 %v10664_v16, 0.0 }
 0x33f   : > { %v10731_v50 = vmax.f32 %v10667_v35, 0.0 }
 0x340   : > { %v10729_v27 = vmax.f32 %v10665_v39, 0.0  ;;  %v13621_v30 = vpop.f32.mrb[56].mxu0 }
 0x341   : > { %v12494_v28 = vpack.c.bf16 %v10731_v50, %v10730_v15  ;;  %v13699_v0 = vadd.f32 %v13621_v30, %v13301_v22  ;;  %v10382_v13 = vpop.f32.mrb[57].mxu0 }
 0x342   : > { %v12489_v46 = vpack.c.bf16 %v10729_v27, %v10728_v32  ;;  %v13700_v21 = vadd.f32 %v10382_v13, %v5861_v26  ;;  %v13622_v18 = vpop.f32.mrb[58].mxu0  ;;  %v13305_v29 = vpop.f32.mrb[60].mxu1 }
 0x343   : > { %12542 = vst [vmem:[%s16690_s22 + $0xd8] sm:$0xff] %v12494_v28   ;;  %v10670_v10 = vadd.f32 %v13699_v0, %v16680_v8  ;;  %v13701_v25 = vadd.f32 %v13622_v18, %v13302_v45  ;;  %v10385_v51 = vpop.f32.mrb[59].mxu0  ;;  %v5877_v31 = vpop.f32.mrb[61].mxu1 }
 0x344   : > { %12541 = vst [vmem:[%s16690_s22 + $0xd0] sm:$0xff] %v12489_v46   ;;  %v10668_v19 = vadd.f32 %v13700_v21, %v16680_v8  ;;  %v13702_v41 = vadd.f32 %v10385_v51, %v5864_v36  ;;  %v13306_v59 = vpop.f32.mrb[62].mxu1 }
 0x345   : > { %v10671_v56 = vadd.f32 %v13701_v25, %v16680_v8  ;;  %v10734_v60 = vmax.f32 %v10670_v10, 0.0  ;;  %v5880_v33 = vpop.f32.mrb[63].mxu1 }
 0x346   : > { %v10669_v5 = vadd.f32 %v13702_v41, %v16680_v8  ;;  %v10732_v49 = vmax.f32 %v10668_v19, 0.0 }
 0x347   : > { %v10735_v20 = vmax.f32 %v10671_v56, 0.0 }
 0x348   : > { %v10733_v7 = vmax.f32 %v10669_v5, 0.0  ;;  %v13625_v40 = vpop.f32.mrb[60].mxu0 }
 0x349   : > { %v12504_v52 = vpack.c.bf16 %v10735_v20, %v10734_v60  ;;  %v13703_v61 = vadd.f32 %v13625_v40, %v13305_v29  ;;  %v10398_v3 = vpop.f32.mrb[61].mxu0 }
 0x34a   : > { %v12499_v63 = vpack.c.bf16 %v10733_v7, %v10732_v49  ;;  %v13704_v55 = vadd.f32 %v10398_v3, %v5877_v31  ;;  %v13626_v42 = vpop.f32.mrb[62].mxu0 }
 0x34b   : > { %12544 = vst [vmem:[%s16690_s22 + $0xe8] sm:$0xff] %v12504_v52   ;;  %v10674_v47 = vadd.f32 %v13703_v61, %v16680_v8  ;;  %v13705_v24 = vadd.f32 %v13626_v42, %v13306_v59  ;;  %v10401_v14 = vpop.f32.mrb[63].mxu0 }
 0x34c   : > { %12543 = vst [vmem:[%s16690_s22 + $0xe0] sm:$0xff] %v12499_v63   ;;  %v10672_v38 = vadd.f32 %v13704_v55, %v16680_v8  ;;  %v13706_v37 = vadd.f32 %v10401_v14, %v5880_v33 }
 0x34d   : > { %v10675_v53 = vadd.f32 %v13705_v24, %v16680_v8  ;;  %v10738_v58 = vmax.f32 %v10674_v47, 0.0 }
 0x34e   : > { %v10673_v23 = vadd.f32 %v13706_v37, %v16680_v8  ;;  %v10736_v62 = vmax.f32 %v10672_v38, 0.0 }
 0x34f   : > { %v10739_v34 = vmax.f32 %v10675_v53, 0.0 }
 0x350   : > { %v10737_v11 = vmax.f32 %v10673_v23, 0.0 }
 0x351   : > { %v12514_v2 = vpack.c.bf16 %v10739_v34, %v10738_v58 }
 0x352   : > { %v12509_v48 = vpack.c.bf16 %v10737_v11, %v10736_v62 }
 0x353   : > { %12546 = vst [vmem:[%s16690_s22 + $0xf8] sm:$0xff] %v12514_v2  }
 0x354   : > { %12545 = vst [vmem:[%s16690_s22 + $0xf0] sm:$0xff] %v12509_v48  }
 0x355 PF: > { %s13_s12 = sadd.s32 1, %s14350_s12  }
 0x356   : > { %p10_p4 = scmp.ge.s32.totalorder %s13_s12, 4  }
 0x358   :  { %12 = sbr.rel (!%p10_p4) target bundleno = 1 (0x1), region = 72 }

</bundles_post_ra>
